<compile_context>
chip_gen: v7x
topology: tpu7x:2x2x1
jax: 0.10.0
libtpu: 0.0.40
codegen_flags: <defaults>
</compile_context>

<pallas_src>
import jax
import jax.numpy as jnp
from jax import lax
from jax.experimental import pallas as pl
from jax.experimental.pallas import tpu as pltpu

EPS = 1e-5  # PyTorch BatchNorm default eps


# --------------------------------------------------------------------------- #
# kernel 1: decoder body -> x3 (Nq, D), gridded over channel blocks
# --------------------------------------------------------------------------- #
def _mean2d(x, nelem):
    # (Nq, D) -> (1, 1), two standard (lane then sublane) reductions.
    return jnp.sum(jnp.sum(x, axis=1, keepdims=True), axis=0, keepdims=True) / nelem


def _decoder_kernel(bn0_sm,              # SMEM (4,): [gamma_e, gamma_r, beta_e, beta_r]
                    we_sm, wr_sm,        # SMEM (C, K): conv taps for entity / relation row
                    cb_sm,               # SMEM (C,):   conv bias
                    g1_sm, b1_sm,        # SMEM (C,):   BatchNorm1d(C) affine
                    e_ref, r_ref,        # (Nq, D) gathered entity / relation embeddings
                    wt_ref,              # (Cb*D, D) bf16 Linear weight block (transposed)
                    g3_ref, b3_ref,      # (1, D)    BatchNorm1d(D) affine
                    x3_ref,              # (Nq, D)   output (f32)
                    ebn_scr, rbn_scr,    # (Nq, D)   f32 BN0 cache (reused across blocks)
                    x2_acc):             # (Nq, D)   f32 Linear accumulator
    nq, d = e_ref.shape
    _, k_len = we_sm.shape
    cbd = wt_ref.shape[0]
    c_blk = cbd // d
    pad_l = k_len // 2 if k_len % 2 != 0 else k_len // 2 - 1
    pad_r = k_len // 2
    nelem = float(nq * d)
    cstep = pl.program_id(0)

    # ---- block0: BatchNorm1d(2), computed once and cached (loop-invariant) ----
    @pl.when(cstep == 0)
    def _():
        x2_acc[...] = jnp.zeros_like(x2_acc)

        def bn0(x, g, b):
            mu = _mean2d(x, nelem)
            var = jnp.maximum(_mean2d(x * x, nelem) - mu * mu, 0.0)
            sc = g * lax.rsqrt(var + EPS)
            return x * sc + (b - mu * sc)

        ebn_scr[...] = bn0(e_ref[...].astype(jnp.float32), bn0_sm[0], bn0_sm[2])
        rbn_scr[...] = bn0(r_ref[...].astype(jnp.float32), bn0_sm[1], bn0_sm[3])

    e_bn = ebn_scr[...]
    r_bn = rbn_scr[...]

    # ---- block1: ZeroPad2d; K shifted (Nq, D) views built once per grid step ----
    # shifted[k][:, j] = e_bn[:, j + k - pad_l] (zero outside [0, D)) -- exactly the
    # padded cross-correlation window of PyTorch Conv2d(1, C, (2, K)).
    def padded(x):
        pieces = []
        if pad_l > 0:
            pieces.append(jnp.zeros((nq, pad_l), jnp.float32))
        pieces.append(x)
        if pad_r > 0:
            pieces.append(jnp.zeros((nq, pad_r), jnp.float32))
        return jnp.concatenate(pieces, axis=1) if len(pieces) > 1 else x

    ep = padded(e_bn)
    rp = padded(r_bn)
    sh_e = [ep[:, k:k + d] for k in range(k_len)]
    sh_r = [rp[:, k:k + d] for k in range(k_len)]

    # ---- conv per channel (scalar taps from SMEM) fused with BN1 + ReLU ----
    blocks = []
    for c_loc in range(c_blk):
        ch = cstep * c_blk + c_loc
        acc = we_sm[ch, 0] * sh_e[0] + wr_sm[ch, 0] * sh_r[0]
        for k in range(1, k_len):
            acc = acc + we_sm[ch, k] * sh_e[k] + wr_sm[ch, k] * sh_r[k]
        acc = acc + cb_sm[ch]
        # BatchNorm1d(C): per-channel training-mode stats over (Nq, D).
        mu = _mean2d(acc, nelem)
        var = jnp.maximum(_mean2d(acc * acc, nelem) - mu * mu, 0.0)
        sc = g1_sm[ch] * lax.rsqrt(var + EPS)
        blocks.append(jnp.maximum(acc * sc + (b1_sm[ch] - mu * sc), 0.0))

    # ---- Flatten (column c*D + d) + Linear(C*D -> D, no bias) on the MXU ----
    x1 = (jnp.concatenate(blocks, axis=1) if c_blk > 1 else blocks[0]).astype(wt_ref.dtype)
    x2_acc[...] += jnp.dot(x1, wt_ref[...], preferred_element_type=jnp.float32)

    # ---- BatchNorm1d(D) + ReLU, finalize on the last channel block ----
    @pl.when(cstep == pl.num_programs(0) - 1)
    def _():
        x2 = x2_acc[...]
        mu = jnp.mean(x2, axis=0, keepdims=True)
        var = jnp.maximum(jnp.mean(x2 * x2, axis=0, keepdims=True) - mu * mu, 0.0)
        sc = g3_ref[...] * lax.rsqrt(var + EPS)
        x3_ref[...] = jnp.maximum(x2 * sc + (b3_ref[...] - mu * sc), 0.0).astype(x3_ref.dtype)


# --------------------------------------------------------------------------- #
# kernel 2: scores = x3 @ h.T, tiled over entities (lane-dense output blocks)
# --------------------------------------------------------------------------- #
def _scores_kernel(x3_ref, h_ref, out_ref):
    # Stream f32 entity rows and cast to bf16 on the VPU (avoids a separate HBM
    # round trip for a casted copy of h); contract D on the MXU with f32 acc.
    x3 = x3_ref[...].astype(jnp.bfloat16)
    ht = h_ref[...].astype(jnp.bfloat16)
    out_ref[...] = lax.dot_general(
        x3, ht,
        dimension_numbers=(((1,), (1,)), ((), ())),      # contract D with D
        preferred_element_type=jnp.float32).astype(out_ref.dtype)


# --------------------------------------------------------------------------- #
# tile / budget helpers
# --------------------------------------------------------------------------- #
def _tpu_vmem_capacity_bytes():
    try:
        info = pltpu.get_tpu_info()
        cap = getattr(info, "vmem_capacity_bytes", None)
        if cap:
            return int(cap)
    except Exception:
        pass
    return 64 << 20   # conservative default: v7x physical VMEM per TensorCore


def _vmem_limit(nbytes, cap):
    # Explicit scoped-VMEM request; keep ~40% headroom of physical capacity.
    ceiling = int(0.6 * cap)
    return int(min(max(2 * nbytes, 32 << 20), ceiling))


def _pick_channel_block(c, d, nq, k, cap):
    budget = min(int(0.25 * cap), 16 << 20)

    def footprint(cb):
        cbd = cb * d
        slab = 3 * nq * cbd * 4            # per-channel conv/x1 blocks + assembled slab
        wt = 2 * cbd * d * 2               # double-buffered bf16 W^T block
        small = (2 * k + 8) * nq * d * 4   # e, r, BN0 cache, shifted views, accumulator
        return slab + wt + small

    if footprint(c) <= budget:
        return c
    cand = [cb for cb in range(c - 1, 0, -1)
            if c % cb == 0 and (cb * d) % 128 == 0 and footprint(cb) <= budget]
    if cand:
        return cand[0]
    aligned = [cb for cb in range(1, c) if c % cb == 0 and (cb * d) % 128 == 0]
    return min(aligned) if aligned else c


def _pick_entity_tile(ne):
    if ne <= 512:
        return ne
    # Prefer large lane-dense dividing tiles; keep >=2 tiles so "parallel" can
    # megacore-shard the entity axis.
    for t in (8192, 4096, 2048, 1024, 512, 256, 128):
        if ne % t == 0 and ne // t >= 2:
            return t
    for t in (8192, 4096, 2048, 1024, 512, 256, 128):
        if ne % t == 0:
            return t
    for t in (8192, 4096, 2048, 1024, 512, 256, 128):
        if t <= ne:
            return t        # ragged: wrapper pads Ne up to a tile multiple
    return ne


# --------------------------------------------------------------------------- #
# wrapper
# --------------------------------------------------------------------------- #
def init_params(key, num_relation, dim, num_channel, kernel_length):
    C, K, D = num_channel, kernel_length, dim
    ks = jax.random.split(key, 10)
    return dict(
        rel_embed=jax.random.normal(ks[0], (num_relation, D), jnp.float32),
        conv_w=jax.random.normal(ks[1], (C, 1, 2, K), jnp.float32) * 0.1,
        conv_b=jax.random.normal(ks[2], (C,), jnp.float32) * 0.1,
        bn0_g=1.0 + 0.1 * jax.random.normal(ks[3], (2,), jnp.float32),
        bn0_b=0.1 * jax.random.normal(ks[4], (2,), jnp.float32),
        bn1_g=1.0 + 0.1 * jax.random.normal(ks[5], (C,), jnp.float32),
        bn1_b=0.1 * jax.random.normal(ks[6], (C,), jnp.float32),
        lin_w=jax.random.normal(ks[7], (D, C * D), jnp.float32) * (1.0 / (C * D) ** 0.5),
        bn3_g=1.0 + 0.1 * jax.random.normal(ks[8], (D,), jnp.float32),
        bn3_b=0.1 * jax.random.normal(ks[9], (D,), jnp.float32),
    )


def sacn_forward(h, query, params, num_channel, kernel_length, *,
                 channel_block=None, scores_dtype=jnp.float32):
    Ne, D = h.shape
    C, K = num_channel, kernel_length
    CD = C * D
    Nq = query.shape[0]
    cap = _tpu_vmem_capacity_bytes()

    # Embedding gathers (wrapper glue; dropout p=0.0 is the identity).
    e = jnp.take(h, query[:, 0], axis=0).astype(jnp.float32)
    r = jnp.take(params["rel_embed"], query[:, 1], axis=0).astype(jnp.float32)

    # Small per-channel params go to SMEM as scalars (no broadcast-over-D slabs).
    w = params["conv_w"].astype(jnp.float32)                 # (C, 1, 2, K)
    we = w[:, 0, 0, :]                                       # (C, K) taps, entity row
    wr = w[:, 0, 1, :]                                       # (C, K) taps, relation row
    cb = params["conv_b"].astype(jnp.float32)
    g1 = params["bn1_g"].astype(jnp.float32)
    b1 = params["bn1_b"].astype(jnp.float32)
    bn0 = jnp.concatenate([params["bn0_g"], params["bn0_b"]]).astype(jnp.float32)
    # Dominant kernel-1 HBM stream in bf16 (MXU-native); in a serving path this
    # transposed bf16 copy should be precomputed once and reused across calls.
    wt = params["lin_w"].T.astype(jnp.bfloat16)              # (C*D, D)
    g3 = params["bn3_g"].astype(jnp.float32)[None, :]
    b3 = params["bn3_b"].astype(jnp.float32)[None, :]

    # ---- kernel 1: decoder body -> x3 (Nq, D) ----
    if channel_block is None:
        channel_block = _pick_channel_block(C, D, Nq, K, cap)
    assert C % channel_block == 0
    n_cblk = C // channel_block
    cbd = channel_block * D
    if n_cblk > 1:
        assert cbd % 128 == 0, "channel_block * dim must be a multiple of 128"

    smem = pl.BlockSpec(memory_space=pltpu.MemorySpace.SMEM)
    k1_bytes = (2 * Nq * D * 4 + 2 * cbd * D * 2 + 3 * Nq * cbd * 4
                + (2 * K + 8) * Nq * D * 4)
    x3 = pl.pallas_call(
        _decoder_kernel,
        out_shape=jax.ShapeDtypeStruct((Nq, D), jnp.float32),
        grid_spec=pltpu.PrefetchScalarGridSpec(
            num_scalar_prefetch=0,
            grid=(n_cblk,),
            in_specs=[
                smem, smem, smem, smem, smem, smem,          # bn0, we, wr, cb, g1, b1
                pl.BlockSpec((Nq, D), lambda c: (0, 0)),     # e
                pl.BlockSpec((Nq, D), lambda c: (0, 0)),     # r
                pl.BlockSpec((cbd, D), lambda c: (c, 0)),    # W^T block (bf16)
                pl.BlockSpec((1, D), lambda c: (0, 0)),      # bn3 gamma
                pl.BlockSpec((1, D), lambda c: (0, 0)),      # bn3 beta
            ],
            out_specs=pl.BlockSpec((Nq, D), lambda c: (0, 0)),
            scratch_shapes=[pltpu.VMEM((Nq, D), jnp.float32),   # BN0 cache (entity)
                            pltpu.VMEM((Nq, D), jnp.float32),   # BN0 cache (relation)
                            pltpu.VMEM((Nq, D), jnp.float32)],  # Linear accumulator
        ),
        compiler_params=pltpu.CompilerParams(
            # TODO(synk): reduction-only grid uses one TensorCore on v7x; add a
            # parallel axis with per-core partial x2 accumulators if kernel 1 dominates.
            dimension_semantics=("arbitrary",),
            vmem_limit_bytes=_vmem_limit(k1_bytes, cap)),
        cost_estimate=pl.CostEstimate(
            flops=int(2 * Nq * CD * D + 6 * K * Nq * CD),
            transcendentals=int(C + D + 2),
            bytes_accessed=int(2 * Nq * D * 4 + CD * D * 2 + Nq * D * 4)),
    )(bn0, we, wr, cb, g1, b1, e, r, wt, g3, b3)

    # ---- kernel 2: scores = x3 @ h.T, streamed over large lane-dense entity tiles ----
    tn = _pick_entity_tile(Ne)
    ne_pad = pl.cdiv(Ne, tn) * tn
    h_in = h if ne_pad == Ne else jnp.pad(h, ((0, ne_pad - Ne), (0, 0)))
    grid_n = ne_pad // tn
    k2_bytes = Nq * D * 4 + 2 * tn * D * 4 + 2 * Nq * tn * jnp.dtype(scores_dtype).itemsize
    scores = pl.pallas_call(
        _scores_kernel,
        out_shape=jax.ShapeDtypeStruct((Nq, ne_pad), scores_dtype),
        grid_spec=pltpu.PrefetchScalarGridSpec(
            num_scalar_prefetch=0,
            grid=(grid_n,),
            in_specs=[
                pl.BlockSpec((Nq, D), lambda j: (0, 0)),     # x3 (resident, tiny)
                pl.BlockSpec((tn, D), lambda j: (j, 0)),     # f32 entity tile
            ],
            out_specs=pl.BlockSpec((Nq, tn), lambda j: (0, j)),
        ),
        compiler_params=pltpu.CompilerParams(
            dimension_semantics=("parallel",),               # megacore-shard Ne
            vmem_limit_bytes=_vmem_limit(k2_bytes, cap)),
        cost_estimate=pl.CostEstimate(
            flops=int(2 * Nq * D * ne_pad),
            transcendentals=0,
            bytes_accessed=int(ne_pad * D * 4 + Nq * D * 4
                               + Nq * ne_pad * jnp.dtype(scores_dtype).itemsize)),
    )(x3, h_in)
    return scores[:, :Ne] if ne_pad != Ne else scores


# --------------------------------------------------------------------------- #
# pure-JAX reference (torch semantics, training-mode BN, f32 highest precision)
# --------------------------------------------------------------------------- #
def _reference_forward(h, query, params, C, K):
    D = h.shape[1]
    e = h[query[:, 0]]
    r = params["rel_embed"][query[:, 1]]
    x = jnp.stack([e, r], axis=1)                                  # (N, 2, D)
    mu0 = x.mean(axis=(0, 2), keepdims=True)
    v0 = x.var(axis=(0, 2), keepdims=True)
    x = (x - mu0) * lax.rsqrt(v0 + EPS)
    x = x * params["bn0_g"][None, :, None] + params["bn0_b"][None, :, None]
    pad_l = K // 2 if K % 2 != 0 else K // 2 - 1
    pad_r = K // 2
    xp = jnp.pad(x, ((0, 0), (0, 0), (pad_l, pad_r)))
    w = params["conv_w"]
    conv = params["conv_b"][None, :, None]
    for k in range(K):
        conv = conv + xp[:, None, 0, k:k + D] * w[None, :, 0, 0, k, None] \
                    + xp[:, None, 1, k:k + D] * w[None, :, 0, 1, k, None]
    mu1 = conv.mean(axis=(0, 2), keepdims=True)
    v1 = conv.var(axis=(0, 2), keepdims=True)
    x1 = (conv - mu1) * lax.rsqrt(v1 + EPS) * params["bn1_g"][None, :, None] \
         + params["bn1_b"][None, :, None]
    x1 = jnp.maximum(x1, 0.0).reshape(x1.shape[0], -1)
    x2 = jnp.matmul(x1, params["lin_w"].T, precision=lax.Precision.HIGHEST)
    mu3 = x2.mean(axis=0, keepdims=True)
    v3 = x2.var(axis=0, keepdims=True)
    x3 = jnp.maximum((x2 - mu3) * lax.rsqrt(v3 + EPS) * params["bn3_g"][None, :]
                     + params["bn3_b"][None, :], 0.0)
    return jnp.matmul(x3, h.T, precision=lax.Precision.HIGHEST)


if __name__ == "__main__":
    # Small shapes consistent with SACNBase.forward(h, query).
    num_entity, num_relation, dim = 2048, 12, 128
    num_channel, kernel_length = 16, 3
    num_query = 32

    key = jax.random.PRNGKey(0)
    k_h, k_qe, k_qr, k_p = jax.random.split(key, 4)

    h = jax.random.normal(k_h, (num_entity, dim), jnp.float32)      # encoder output
    query = jnp.stack(
        [jax.random.randint(k_qe, (num_query,), 0, num_entity),
         jax.random.randint(k_qr, (num_query,), 0, num_relation)],
        axis=1).astype(jnp.int32)                                    # (num_query, 2)

    params = init_params(k_p, num_relation, dim, num_channel, kernel_length)

    # TODO(synk): WGCNEncoder / WGCNLayer and entity_embed are built in __init__ but
    # never used by SACNBase.forward (WGCNLayer is not even defined), so they are omitted.
    scores = sacn_forward(h, query, params, num_channel, kernel_length)
    jax.block_until_ready(scores)
    assert scores.shape == (num_query, num_entity) and scores.dtype == jnp.float32

    ref = _reference_forward(h, query, params, num_channel, kernel_length)
    rel_err = float(jnp.max(jnp.abs(scores - ref)) / (jnp.max(jnp.abs(ref)) + 1e-6))
    assert rel_err < 3e-2, f"max relative error too large: {rel_err}"
    print("KERNEL_OK")
</pallas_src>

<mosaic_0001>
module attributes {stable_mosaic.version = 11 : i64} {
  func.func @_decoder_kernel(%arg0: i32, %arg1: memref<4xf32, #tpu.memory_space<smem>>, %arg2: memref<16x3xf32, #tpu.memory_space<smem>>, %arg3: memref<16x3xf32, #tpu.memory_space<smem>>, %arg4: memref<16xf32, #tpu.memory_space<smem>>, %arg5: memref<16xf32, #tpu.memory_space<smem>>, %arg6: memref<16xf32, #tpu.memory_space<smem>>, %arg7: memref<32x128xf32, #tpu.memory_space<vmem>>, %arg8: memref<32x128xf32, #tpu.memory_space<vmem>>, %arg9: memref<2048x128xbf16, #tpu.memory_space<vmem>>, %arg10: memref<1x128xf32, #tpu.memory_space<vmem>>, %arg11: memref<1x128xf32, #tpu.memory_space<vmem>>, %arg12: memref<32x128xf32, #tpu.memory_space<vmem>>, %arg13: memref<32x128xf32, #tpu.memory_space<vmem>>, %arg14: memref<32x128xf32, #tpu.memory_space<vmem>>, %arg15: memref<32x128xf32, #tpu.memory_space<vmem>>) attributes {dimension_semantics = [#tpu.dimension_semantics<arbitrary>], iteration_bounds = array<i64: 1>, scalar_prefetch = 0 : i64, scratch_operands = 3 : i64, tpu.core_type = #tpu.core_type<tc>, window_params = [{transform_indices = @transform_0, window_bounds = array<i64: 4>}, {transform_indices = @transform_1, window_bounds = array<i64: 16, 3>}, {transform_indices = @transform_2, window_bounds = array<i64: 16, 3>}, {transform_indices = @transform_3, window_bounds = array<i64: 16>}, {transform_indices = @transform_4, window_bounds = array<i64: 16>}, {transform_indices = @transform_5, window_bounds = array<i64: 16>}, {pipeline_mode = #tpu.pipeline_mode<synchronous>, transform_indices = @transform_6, window_bounds = array<i64: 32, 128>}, {pipeline_mode = #tpu.pipeline_mode<synchronous>, transform_indices = @transform_7, window_bounds = array<i64: 32, 128>}, {transform_indices = @transform_8, window_bounds = array<i64: 2048, 128>}, {pipeline_mode = #tpu.pipeline_mode<synchronous>, transform_indices = @transform_9, window_bounds = array<i64: 1, 128>}, {pipeline_mode = #tpu.pipeline_mode<synchronous>, transform_indices = @transform_10, window_bounds = array<i64: 1, 128>}, {pipeline_mode = #tpu.pipeline_mode<synchronous>, transform_indices = @transform_11, window_bounds = array<i64: 32, 128>}]} {
    %c0_i32 = arith.constant 0 : i32
    %0 = arith.cmpi eq, %arg0, %c0_i32 : i32
    %1 = arith.extui %0 : i1 to i32
    %c0_i32_0 = arith.constant 0 : i32
    %2 = arith.cmpi ne, %1, %c0_i32_0 : i32
    scf.if %2 {
      %cst_270 = arith.constant 0.000000e+00 : f32
      %1147 = vector.broadcast %cst_270 : f32 to vector<32x128xf32>
      %c0_271 = arith.constant 0 : index
      %c0_272 = arith.constant 0 : index
      %1148 = vector.load %arg15[%c0_271, %c0_272] : memref<32x128xf32, #tpu.memory_space<vmem>>, vector<32x128xf32>
      tpu.vector_store %arg15[%c0_271, %c0_272], %1147 {strides = array<i32>} : memref<32x128xf32, #tpu.memory_space<vmem>>, vector<32x128xf32>,
      %c0_273 = arith.constant 0 : index
      %c0_274 = arith.constant 0 : index
      %1149 = vector.load %arg7[%c0_273, %c0_274] : memref<32x128xf32, #tpu.memory_space<vmem>>, vector<32x128xf32>
      %c0_275 = arith.constant 0 : index
      %1150 = memref.load %arg1[%c0_275] : memref<4xf32, #tpu.memory_space<smem>>
      %c2_276 = arith.constant 2 : index
      %1151 = memref.load %arg1[%c2_276] : memref<4xf32, #tpu.memory_space<smem>>
      %cst_277 = arith.constant dense<0.000000e+00> : vector<32xf32>
      %1152 = vector.multi_reduction <add>, %1149, %cst_277 [1] : vector<32x128xf32> to vector<32xf32>
      %1153 = vector.shape_cast %1152 : vector<32xf32> to vector<32x1xf32>
      %cst_278 = arith.constant dense<0.000000e+00> : vector<1xf32>
      %1154 = vector.multi_reduction <add>, %1153, %cst_278 [0] : vector<32x1xf32> to vector<1xf32>
      %1155 = vector.shape_cast %1154 : vector<1xf32> to vector<1x1xf32>
      %cst_279 = arith.constant 4.096000e+03 : f32
      %1156 = vector.broadcast %cst_279 : f32 to vector<1x1xf32>
      %1157 = arith.divf %1155, %1156 : vector<1x1xf32>
      %1158 = arith.mulf %1149, %1149 : vector<32x128xf32>
      %cst_280 = arith.constant dense<0.000000e+00> : vector<32xf32>
      %1159 = vector.multi_reduction <add>, %1158, %cst_280 [1] : vector<32x128xf32> to vector<32xf32>
      %1160 = vector.shape_cast %1159 : vector<32xf32> to vector<32x1xf32>
      %cst_281 = arith.constant dense<0.000000e+00> : vector<1xf32>
      %1161 = vector.multi_reduction <add>, %1160, %cst_281 [0] : vector<32x1xf32> to vector<1xf32>
      %1162 = vector.shape_cast %1161 : vector<1xf32> to vector<1x1xf32>
      %cst_282 = arith.constant 4.096000e+03 : f32
      %1163 = vector.broadcast %cst_282 : f32 to vector<1x1xf32>
      %1164 = arith.divf %1162, %1163 : vector<1x1xf32>
      %1165 = arith.mulf %1157, %1157 : vector<1x1xf32>
      %1166 = arith.subf %1164, %1165 : vector<1x1xf32>
      %cst_283 = arith.constant 0.000000e+00 : f32
      %1167 = vector.broadcast %cst_283 : f32 to vector<1x1xf32>
      %1168 = arith.maximumf %1166, %1167 : vector<1x1xf32>
      %cst_284 = arith.constant 9.99999974E-6 : f32
      %1169 = vector.broadcast %cst_284 : f32 to vector<1x1xf32>
      %1170 = arith.addf %1168, %1169 : vector<1x1xf32>
      %1171 = math.rsqrt %1170 : vector<1x1xf32>
      %1172 = vector.broadcast %1150 : f32 to vector<1x1xf32>
      %1173 = arith.mulf %1172, %1171 : vector<1x1xf32>
      %1174 = vector.broadcast %1173 : vector<1x1xf32> to vector<32x128xf32>
      %1175 = arith.mulf %1149, %1174 : vector<32x128xf32>
      %1176 = arith.mulf %1157, %1173 : vector<1x1xf32>
      %1177 = vector.broadcast %1151 : f32 to vector<1x1xf32>
      %1178 = arith.subf %1177, %1176 : vector<1x1xf32>
      %1179 = vector.broadcast %1178 : vector<1x1xf32> to vector<32x128xf32>
      %1180 = arith.addf %1175, %1179 : vector<32x128xf32>
      %c0_285 = arith.constant 0 : index
      %c0_286 = arith.constant 0 : index
      %1181 = vector.load %arg13[%c0_285, %c0_286] : memref<32x128xf32, #tpu.memory_space<vmem>>, vector<32x128xf32>
      tpu.vector_store %arg13[%c0_285, %c0_286], %1180 {strides = array<i32>} : memref<32x128xf32, #tpu.memory_space<vmem>>, vector<32x128xf32>,
      %c0_287 = arith.constant 0 : index
      %c0_288 = arith.constant 0 : index
      %1182 = vector.load %arg8[%c0_287, %c0_288] : memref<32x128xf32, #tpu.memory_space<vmem>>, vector<32x128xf32>
      %c1_289 = arith.constant 1 : index
      %1183 = memref.load %arg1[%c1_289] : memref<4xf32, #tpu.memory_space<smem>>
      %c3 = arith.constant 3 : index
      %1184 = memref.load %arg1[%c3] : memref<4xf32, #tpu.memory_space<smem>>
      %cst_290 = arith.constant dense<0.000000e+00> : vector<32xf32>
      %1185 = vector.multi_reduction <add>, %1182, %cst_290 [1] : vector<32x128xf32> to vector<32xf32>
      %1186 = vector.shape_cast %1185 : vector<32xf32> to vector<32x1xf32>
      %cst_291 = arith.constant dense<0.000000e+00> : vector<1xf32>
      %1187 = vector.multi_reduction <add>, %1186, %cst_291 [0] : vector<32x1xf32> to vector<1xf32>
      %1188 = vector.shape_cast %1187 : vector<1xf32> to vector<1x1xf32>
      %cst_292 = arith.constant 4.096000e+03 : f32
      %1189 = vector.broadcast %cst_292 : f32 to vector<1x1xf32>
      %1190 = arith.divf %1188, %1189 : vector<1x1xf32>
      %1191 = arith.mulf %1182, %1182 : vector<32x128xf32>
      %cst_293 = arith.constant dense<0.000000e+00> : vector<32xf32>
      %1192 = vector.multi_reduction <add>, %1191, %cst_293 [1] : vector<32x128xf32> to vector<32xf32>
      %1193 = vector.shape_cast %1192 : vector<32xf32> to vector<32x1xf32>
      %cst_294 = arith.constant dense<0.000000e+00> : vector<1xf32>
      %1194 = vector.multi_reduction <add>, %1193, %cst_294 [0] : vector<32x1xf32> to vector<1xf32>
      %1195 = vector.shape_cast %1194 : vector<1xf32> to vector<1x1xf32>
      %cst_295 = arith.constant 4.096000e+03 : f32
      %1196 = vector.broadcast %cst_295 : f32 to vector<1x1xf32>
      %1197 = arith.divf %1195, %1196 : vector<1x1xf32>
      %1198 = arith.mulf %1190, %1190 : vector<1x1xf32>
      %1199 = arith.subf %1197, %1198 : vector<1x1xf32>
      %cst_296 = arith.constant 0.000000e+00 : f32
      %1200 = vector.broadcast %cst_296 : f32 to vector<1x1xf32>
      %1201 = arith.maximumf %1199, %1200 : vector<1x1xf32>
      %cst_297 = arith.constant 9.99999974E-6 : f32
      %1202 = vector.broadcast %cst_297 : f32 to vector<1x1xf32>
      %1203 = arith.addf %1201, %1202 : vector<1x1xf32>
      %1204 = math.rsqrt %1203 : vector<1x1xf32>
      %1205 = vector.broadcast %1183 : f32 to vector<1x1xf32>
      %1206 = arith.mulf %1205, %1204 : vector<1x1xf32>
      %1207 = vector.broadcast %1206 : vector<1x1xf32> to vector<32x128xf32>
      %1208 = arith.mulf %1182, %1207 : vector<32x128xf32>
      %1209 = arith.mulf %1190, %1206 : vector<1x1xf32>
      %1210 = vector.broadcast %1184 : f32 to vector<1x1xf32>
      %1211 = arith.subf %1210, %1209 : vector<1x1xf32>
      %1212 = vector.broadcast %1211 : vector<1x1xf32> to vector<32x128xf32>
      %1213 = arith.addf %1208, %1212 : vector<32x128xf32>
      %c0_298 = arith.constant 0 : index
      %c0_299 = arith.constant 0 : index
      %1214 = vector.load %arg14[%c0_298, %c0_299] : memref<32x128xf32, #tpu.memory_space<vmem>>, vector<32x128xf32>
      tpu.vector_store %arg14[%c0_298, %c0_299], %1213 {strides = array<i32>} : memref<32x128xf32, #tpu.memory_space<vmem>>, vector<32x128xf32>,
    } else {
    }
    %c0 = arith.constant 0 : index
    %c0_1 = arith.constant 0 : index
    %3 = vector.load %arg13[%c0, %c0_1] : memref<32x128xf32, #tpu.memory_space<vmem>>, vector<32x128xf32>
    %c0_2 = arith.constant 0 : index
    %c0_3 = arith.constant 0 : index
    %4 = vector.load %arg14[%c0_2, %c0_3] : memref<32x128xf32, #tpu.memory_space<vmem>>, vector<32x128xf32>
    %cst = arith.constant 0.000000e+00 : f32
    %5 = vector.broadcast %cst : f32 to vector<32x1xf32>
    %cst_4 = arith.constant 0.000000e+00 : f32
    %6 = vector.broadcast %cst_4 : f32 to vector<32x1xf32>
    %7 = tpu.concatenate %5, %3, %6 in 1 : vector<32x1xf32>, vector<32x128xf32>, vector<32x1xf32> -> vector<32x130xf32>
    %cst_5 = arith.constant 0.000000e+00 : f32
    %8 = vector.broadcast %cst_5 : f32 to vector<32x1xf32>
    %cst_6 = arith.constant 0.000000e+00 : f32
    %9 = vector.broadcast %cst_6 : f32 to vector<32x1xf32>
    %10 = tpu.concatenate %8, %4, %9 in 1 : vector<32x1xf32>, vector<32x128xf32>, vector<32x1xf32> -> vector<32x130xf32>
    %11 = vector.extract_strided_slice %7 {offsets = [0, 0], sizes = [32, 128], strides = [1, 1]} : vector<32x130xf32> to vector<32x128xf32>
    %12 = vector.extract_strided_slice %7 {offsets = [0, 1], sizes = [32, 128], strides = [1, 1]} : vector<32x130xf32> to vector<32x128xf32>
    %13 = vector.extract_strided_slice %7 {offsets = [0, 2], sizes = [32, 128], strides = [1, 1]} : vector<32x130xf32> to vector<32x128xf32>
    %14 = vector.extract_strided_slice %10 {offsets = [0, 0], sizes = [32, 128], strides = [1, 1]} : vector<32x130xf32> to vector<32x128xf32>
    %15 = vector.extract_strided_slice %10 {offsets = [0, 1], sizes = [32, 128], strides = [1, 1]} : vector<32x130xf32> to vector<32x128xf32>
    %16 = vector.extract_strided_slice %10 {offsets = [0, 2], sizes = [32, 128], strides = [1, 1]} : vector<32x130xf32> to vector<32x128xf32>
    %c16_i32 = arith.constant 16 : i32
    %17 = arith.muli %arg0, %c16_i32 : i32
    %c0_i32_7 = arith.constant 0 : i32
    %18 = arith.addi %17, %c0_i32_7 : i32
    %19 = arith.index_cast %18 : i32 to index
    %c0_8 = arith.constant 0 : index
    %20 = memref.load %arg2[%19, %c0_8] : memref<16x3xf32, #tpu.memory_space<smem>>
    %21 = vector.broadcast %20 : f32 to vector<32x128xf32>
    %22 = arith.mulf %21, %11 : vector<32x128xf32>
    %23 = arith.index_cast %18 : i32 to index
    %c0_9 = arith.constant 0 : index
    %24 = memref.load %arg3[%23, %c0_9] : memref<16x3xf32, #tpu.memory_space<smem>>
    %25 = vector.broadcast %24 : f32 to vector<32x128xf32>
    %26 = arith.mulf %25, %14 : vector<32x128xf32>
    %27 = arith.addf %22, %26 : vector<32x128xf32>
    %28 = arith.index_cast %18 : i32 to index
    %c1 = arith.constant 1 : index
    %29 = memref.load %arg2[%28, %c1] : memref<16x3xf32, #tpu.memory_space<smem>>
    %30 = vector.broadcast %29 : f32 to vector<32x128xf32>
    %31 = arith.mulf %30, %12 : vector<32x128xf32>
    %32 = arith.addf %27, %31 : vector<32x128xf32>
    %33 = arith.index_cast %18 : i32 to index
    %c1_10 = arith.constant 1 : index
    %34 = memref.load %arg3[%33, %c1_10] : memref<16x3xf32, #tpu.memory_space<smem>>
    %35 = vector.broadcast %34 : f32 to vector<32x128xf32>
    %36 = arith.mulf %35, %15 : vector<32x128xf32>
    %37 = arith.addf %32, %36 : vector<32x128xf32>
    %38 = arith.index_cast %18 : i32 to index
    %c2 = arith.constant 2 : index
    %39 = memref.load %arg2[%38, %c2] : memref<16x3xf32, #tpu.memory_space<smem>>
    %40 = vector.broadcast %39 : f32 to vector<32x128xf32>
    %41 = arith.mulf %40, %13 : vector<32x128xf32>
    %42 = arith.addf %37, %41 : vector<32x128xf32>
    %43 = arith.index_cast %18 : i32 to index
    %c2_11 = arith.constant 2 : index
    %44 = memref.load %arg3[%43, %c2_11] : memref<16x3xf32, #tpu.memory_space<smem>>
    %45 = vector.broadcast %44 : f32 to vector<32x128xf32>
    %46 = arith.mulf %45, %16 : vector<32x128xf32>
    %47 = arith.addf %42, %46 : vector<32x128xf32>
    %48 = arith.index_cast %18 : i32 to index
    %49 = memref.load %arg4[%48] : memref<16xf32, #tpu.memory_space<smem>>
    %50 = vector.broadcast %49 : f32 to vector<32x128xf32>
    %51 = arith.addf %47, %50 : vector<32x128xf32>
    %cst_12 = arith.constant dense<0.000000e+00> : vector<32xf32>
    %52 = vector.multi_reduction <add>, %51, %cst_12 [1] : vector<32x128xf32> to vector<32xf32>
    %53 = vector.shape_cast %52 : vector<32xf32> to vector<32x1xf32>
    %cst_13 = arith.constant dense<0.000000e+00> : vector<1xf32>
    %54 = vector.multi_reduction <add>, %53, %cst_13 [0] : vector<32x1xf32> to vector<1xf32>
    %55 = vector.shape_cast %54 : vector<1xf32> to vector<1x1xf32>
    %cst_14 = arith.constant 4.096000e+03 : f32
    %56 = vector.broadcast %cst_14 : f32 to vector<1x1xf32>
    %57 = arith.divf %55, %56 : vector<1x1xf32>
    %58 = arith.mulf %51, %51 : vector<32x128xf32>
    %cst_15 = arith.constant dense<0.000000e+00> : vector<32xf32>
    %59 = vector.multi_reduction <add>, %58, %cst_15 [1] : vector<32x128xf32> to vector<32xf32>
    %60 = vector.shape_cast %59 : vector<32xf32> to vector<32x1xf32>
    %cst_16 = arith.constant dense<0.000000e+00> : vector<1xf32>
    %61 = vector.multi_reduction <add>, %60, %cst_16 [0] : vector<32x1xf32> to vector<1xf32>
    %62 = vector.shape_cast %61 : vector<1xf32> to vector<1x1xf32>
    %cst_17 = arith.constant 4.096000e+03 : f32
    %63 = vector.broadcast %cst_17 : f32 to vector<1x1xf32>
    %64 = arith.divf %62, %63 : vector<1x1xf32>
    %65 = arith.mulf %57, %57 : vector<1x1xf32>
    %66 = arith.subf %64, %65 : vector<1x1xf32>
    %cst_18 = arith.constant 0.000000e+00 : f32
    %67 = vector.broadcast %cst_18 : f32 to vector<1x1xf32>
    %68 = arith.maximumf %66, %67 : vector<1x1xf32>
    %69 = arith.index_cast %18 : i32 to index
    %70 = memref.load %arg5[%69] : memref<16xf32, #tpu.memory_space<smem>>
    %cst_19 = arith.constant 9.99999974E-6 : f32
    %71 = vector.broadcast %cst_19 : f32 to vector<1x1xf32>
    %72 = arith.addf %68, %71 : vector<1x1xf32>
    %73 = math.rsqrt %72 : vector<1x1xf32>
    %74 = vector.broadcast %70 : f32 to vector<1x1xf32>
    %75 = arith.mulf %74, %73 : vector<1x1xf32>
    %76 = vector.broadcast %75 : vector<1x1xf32> to vector<32x128xf32>
    %77 = arith.mulf %51, %76 : vector<32x128xf32>
    %78 = arith.index_cast %18 : i32 to index
    %79 = memref.load %arg6[%78] : memref<16xf32, #tpu.memory_space<smem>>
    %80 = arith.mulf %57, %75 : vector<1x1xf32>
    %81 = vector.broadcast %79 : f32 to vector<1x1xf32>
    %82 = arith.subf %81, %80 : vector<1x1xf32>
    %83 = vector.broadcast %82 : vector<1x1xf32> to vector<32x128xf32>
    %84 = arith.addf %77, %83 : vector<32x128xf32>
    %cst_20 = arith.constant 0.000000e+00 : f32
    %85 = vector.broadcast %cst_20 : f32 to vector<32x128xf32>
    %86 = arith.maximumf %84, %85 : vector<32x128xf32>
    %c16_i32_21 = arith.constant 16 : i32
    %87 = arith.muli %arg0, %c16_i32_21 : i32
    %c1_i32 = arith.constant 1 : i32
    %88 = arith.addi %87, %c1_i32 : i32
    %89 = arith.index_cast %88 : i32 to index
    %c0_22 = arith.constant 0 : index
    %90 = memref.load %arg2[%89, %c0_22] : memref<16x3xf32, #tpu.memory_space<smem>>
    %91 = vector.broadcast %90 : f32 to vector<32x128xf32>
    %92 = arith.mulf %91, %11 : vector<32x128xf32>
    %93 = arith.index_cast %88 : i32 to index
    %c0_23 = arith.constant 0 : index
    %94 = memref.load %arg3[%93, %c0_23] : memref<16x3xf32, #tpu.memory_space<smem>>
    %95 = vector.broadcast %94 : f32 to vector<32x128xf32>
    %96 = arith.mulf %95, %14 : vector<32x128xf32>
    %97 = arith.addf %92, %96 : vector<32x128xf32>
    %98 = arith.index_cast %88 : i32 to index
    %c1_24 = arith.constant 1 : index
    %99 = memref.load %arg2[%98, %c1_24] : memref<16x3xf32, #tpu.memory_space<smem>>
    %100 = vector.broadcast %99 : f32 to vector<32x128xf32>
    %101 = arith.mulf %100, %12 : vector<32x128xf32>
    %102 = arith.addf %97, %101 : vector<32x128xf32>
    %103 = arith.index_cast %88 : i32 to index
    %c1_25 = arith.constant 1 : index
    %104 = memref.load %arg3[%103, %c1_25] : memref<16x3xf32, #tpu.memory_space<smem>>
    %105 = vector.broadcast %104 : f32 to vector<32x128xf32>
    %106 = arith.mulf %105, %15 : vector<32x128xf32>
    %107 = arith.addf %102, %106 : vector<32x128xf32>
    %108 = arith.index_cast %88 : i32 to index
    %c2_26 = arith.constant 2 : index
    %109 = memref.load %arg2[%108, %c2_26] : memref<16x3xf32, #tpu.memory_space<smem>>
    %110 = vector.broadcast %109 : f32 to vector<32x128xf32>
    %111 = arith.mulf %110, %13 : vector<32x128xf32>
    %112 = arith.addf %107, %111 : vector<32x128xf32>
    %113 = arith.index_cast %88 : i32 to index
    %c2_27 = arith.constant 2 : index
    %114 = memref.load %arg3[%113, %c2_27] : memref<16x3xf32, #tpu.memory_space<smem>>
    %115 = vector.broadcast %114 : f32 to vector<32x128xf32>
    %116 = arith.mulf %115, %16 : vector<32x128xf32>
    %117 = arith.addf %112, %116 : vector<32x128xf32>
    %118 = arith.index_cast %88 : i32 to index
    %119 = memref.load %arg4[%118] : memref<16xf32, #tpu.memory_space<smem>>
    %120 = vector.broadcast %119 : f32 to vector<32x128xf32>
    %121 = arith.addf %117, %120 : vector<32x128xf32>
    %cst_28 = arith.constant dense<0.000000e+00> : vector<32xf32>
    %122 = vector.multi_reduction <add>, %121, %cst_28 [1] : vector<32x128xf32> to vector<32xf32>
    %123 = vector.shape_cast %122 : vector<32xf32> to vector<32x1xf32>
    %cst_29 = arith.constant dense<0.000000e+00> : vector<1xf32>
    %124 = vector.multi_reduction <add>, %123, %cst_29 [0] : vector<32x1xf32> to vector<1xf32>
    %125 = vector.shape_cast %124 : vector<1xf32> to vector<1x1xf32>
    %cst_30 = arith.constant 4.096000e+03 : f32
    %126 = vector.broadcast %cst_30 : f32 to vector<1x1xf32>
    %127 = arith.divf %125, %126 : vector<1x1xf32>
    %128 = arith.mulf %121, %121 : vector<32x128xf32>
    %cst_31 = arith.constant dense<0.000000e+00> : vector<32xf32>
    %129 = vector.multi_reduction <add>, %128, %cst_31 [1] : vector<32x128xf32> to vector<32xf32>
    %130 = vector.shape_cast %129 : vector<32xf32> to vector<32x1xf32>
    %cst_32 = arith.constant dense<0.000000e+00> : vector<1xf32>
    %131 = vector.multi_reduction <add>, %130, %cst_32 [0] : vector<32x1xf32> to vector<1xf32>
    %132 = vector.shape_cast %131 : vector<1xf32> to vector<1x1xf32>
    %cst_33 = arith.constant 4.096000e+03 : f32
    %133 = vector.broadcast %cst_33 : f32 to vector<1x1xf32>
    %134 = arith.divf %132, %133 : vector<1x1xf32>
    %135 = arith.mulf %127, %127 : vector<1x1xf32>
    %136 = arith.subf %134, %135 : vector<1x1xf32>
    %cst_34 = arith.constant 0.000000e+00 : f32
    %137 = vector.broadcast %cst_34 : f32 to vector<1x1xf32>
    %138 = arith.maximumf %136, %137 : vector<1x1xf32>
    %139 = arith.index_cast %88 : i32 to index
    %140 = memref.load %arg5[%139] : memref<16xf32, #tpu.memory_space<smem>>
    %cst_35 = arith.constant 9.99999974E-6 : f32
    %141 = vector.broadcast %cst_35 : f32 to vector<1x1xf32>
    %142 = arith.addf %138, %141 : vector<1x1xf32>
    %143 = math.rsqrt %142 : vector<1x1xf32>
    %144 = vector.broadcast %140 : f32 to vector<1x1xf32>
    %145 = arith.mulf %144, %143 : vector<1x1xf32>
    %146 = vector.broadcast %145 : vector<1x1xf32> to vector<32x128xf32>
    %147 = arith.mulf %121, %146 : vector<32x128xf32>
    %148 = arith.index_cast %88 : i32 to index
    %149 = memref.load %arg6[%148] : memref<16xf32, #tpu.memory_space<smem>>
    %150 = arith.mulf %127, %145 : vector<1x1xf32>
    %151 = vector.broadcast %149 : f32 to vector<1x1xf32>
    %152 = arith.subf %151, %150 : vector<1x1xf32>
    %153 = vector.broadcast %152 : vector<1x1xf32> to vector<32x128xf32>
    %154 = arith.addf %147, %153 : vector<32x128xf32>
    %cst_36 = arith.constant 0.000000e+00 : f32
    %155 = vector.broadcast %cst_36 : f32 to vector<32x128xf32>
    %156 = arith.maximumf %154, %155 : vector<32x128xf32>
    %c16_i32_37 = arith.constant 16 : i32
    %157 = arith.muli %arg0, %c16_i32_37 : i32
    %c2_i32 = arith.constant 2 : i32
    %158 = arith.addi %157, %c2_i32 : i32
    %159 = arith.index_cast %158 : i32 to index
    %c0_38 = arith.constant 0 : index
    %160 = memref.load %arg2[%159, %c0_38] : memref<16x3xf32, #tpu.memory_space<smem>>
    %161 = vector.broadcast %160 : f32 to vector<32x128xf32>
    %162 = arith.mulf %161, %11 : vector<32x128xf32>
    %163 = arith.index_cast %158 : i32 to index
    %c0_39 = arith.constant 0 : index
    %164 = memref.load %arg3[%163, %c0_39] : memref<16x3xf32, #tpu.memory_space<smem>>
    %165 = vector.broadcast %164 : f32 to vector<32x128xf32>
    %166 = arith.mulf %165, %14 : vector<32x128xf32>
    %167 = arith.addf %162, %166 : vector<32x128xf32>
    %168 = arith.index_cast %158 : i32 to index
    %c1_40 = arith.constant 1 : index
    %169 = memref.load %arg2[%168, %c1_40] : memref<16x3xf32, #tpu.memory_space<smem>>
    %170 = vector.broadcast %169 : f32 to vector<32x128xf32>
    %171 = arith.mulf %170, %12 : vector<32x128xf32>
    %172 = arith.addf %167, %171 : vector<32x128xf32>
    %173 = arith.index_cast %158 : i32 to index
    %c1_41 = arith.constant 1 : index
    %174 = memref.load %arg3[%173, %c1_41] : memref<16x3xf32, #tpu.memory_space<smem>>
    %175 = vector.broadcast %174 : f32 to vector<32x128xf32>
    %176 = arith.mulf %175, %15 : vector<32x128xf32>
    %177 = arith.addf %172, %176 : vector<32x128xf32>
    %178 = arith.index_cast %158 : i32 to index
    %c2_42 = arith.constant 2 : index
    %179 = memref.load %arg2[%178, %c2_42] : memref<16x3xf32, #tpu.memory_space<smem>>
    %180 = vector.broadcast %179 : f32 to vector<32x128xf32>
    %181 = arith.mulf %180, %13 : vector<32x128xf32>
    %182 = arith.addf %177, %181 : vector<32x128xf32>
    %183 = arith.index_cast %158 : i32 to index
    %c2_43 = arith.constant 2 : index
    %184 = memref.load %arg3[%183, %c2_43] : memref<16x3xf32, #tpu.memory_space<smem>>
    %185 = vector.broadcast %184 : f32 to vector<32x128xf32>
    %186 = arith.mulf %185, %16 : vector<32x128xf32>
    %187 = arith.addf %182, %186 : vector<32x128xf32>
    %188 = arith.index_cast %158 : i32 to index
    %189 = memref.load %arg4[%188] : memref<16xf32, #tpu.memory_space<smem>>
    %190 = vector.broadcast %189 : f32 to vector<32x128xf32>
    %191 = arith.addf %187, %190 : vector<32x128xf32>
    %cst_44 = arith.constant dense<0.000000e+00> : vector<32xf32>
    %192 = vector.multi_reduction <add>, %191, %cst_44 [1] : vector<32x128xf32> to vector<32xf32>
    %193 = vector.shape_cast %192 : vector<32xf32> to vector<32x1xf32>
    %cst_45 = arith.constant dense<0.000000e+00> : vector<1xf32>
    %194 = vector.multi_reduction <add>, %193, %cst_45 [0] : vector<32x1xf32> to vector<1xf32>
    %195 = vector.shape_cast %194 : vector<1xf32> to vector<1x1xf32>
    %cst_46 = arith.constant 4.096000e+03 : f32
    %196 = vector.broadcast %cst_46 : f32 to vector<1x1xf32>
    %197 = arith.divf %195, %196 : vector<1x1xf32>
    %198 = arith.mulf %191, %191 : vector<32x128xf32>
    %cst_47 = arith.constant dense<0.000000e+00> : vector<32xf32>
    %199 = vector.multi_reduction <add>, %198, %cst_47 [1] : vector<32x128xf32> to vector<32xf32>
    %200 = vector.shape_cast %199 : vector<32xf32> to vector<32x1xf32>
    %cst_48 = arith.constant dense<0.000000e+00> : vector<1xf32>
    %201 = vector.multi_reduction <add>, %200, %cst_48 [0] : vector<32x1xf32> to vector<1xf32>
    %202 = vector.shape_cast %201 : vector<1xf32> to vector<1x1xf32>
    %cst_49 = arith.constant 4.096000e+03 : f32
    %203 = vector.broadcast %cst_49 : f32 to vector<1x1xf32>
    %204 = arith.divf %202, %203 : vector<1x1xf32>
    %205 = arith.mulf %197, %197 : vector<1x1xf32>
    %206 = arith.subf %204, %205 : vector<1x1xf32>
    %cst_50 = arith.constant 0.000000e+00 : f32
    %207 = vector.broadcast %cst_50 : f32 to vector<1x1xf32>
    %208 = arith.maximumf %206, %207 : vector<1x1xf32>
    %209 = arith.index_cast %158 : i32 to index
    %210 = memref.load %arg5[%209] : memref<16xf32, #tpu.memory_space<smem>>
    %cst_51 = arith.constant 9.99999974E-6 : f32
    %211 = vector.broadcast %cst_51 : f32 to vector<1x1xf32>
    %212 = arith.addf %208, %211 : vector<1x1xf32>
    %213 = math.rsqrt %212 : vector<1x1xf32>
    %214 = vector.broadcast %210 : f32 to vector<1x1xf32>
    %215 = arith.mulf %214, %213 : vector<1x1xf32>
    %216 = vector.broadcast %215 : vector<1x1xf32> to vector<32x128xf32>
    %217 = arith.mulf %191, %216 : vector<32x128xf32>
    %218 = arith.index_cast %158 : i32 to index
    %219 = memref.load %arg6[%218] : memref<16xf32, #tpu.memory_space<smem>>
    %220 = arith.mulf %197, %215 : vector<1x1xf32>
    %221 = vector.broadcast %219 : f32 to vector<1x1xf32>
    %222 = arith.subf %221, %220 : vector<1x1xf32>
    %223 = vector.broadcast %222 : vector<1x1xf32> to vector<32x128xf32>
    %224 = arith.addf %217, %223 : vector<32x128xf32>
    %cst_52 = arith.constant 0.000000e+00 : f32
    %225 = vector.broadcast %cst_52 : f32 to vector<32x128xf32>
    %226 = arith.maximumf %224, %225 : vector<32x128xf32>
    %c16_i32_53 = arith.constant 16 : i32
    %227 = arith.muli %arg0, %c16_i32_53 : i32
    %c3_i32 = arith.constant 3 : i32
    %228 = arith.addi %227, %c3_i32 : i32
    %229 = arith.index_cast %228 : i32 to index
    %c0_54 = arith.constant 0 : index
    %230 = memref.load %arg2[%229, %c0_54] : memref<16x3xf32, #tpu.memory_space<smem>>
    %231 = vector.broadcast %230 : f32 to vector<32x128xf32>
    %232 = arith.mulf %231, %11 : vector<32x128xf32>
    %233 = arith.index_cast %228 : i32 to index
    %c0_55 = arith.constant 0 : index
    %234 = memref.load %arg3[%233, %c0_55] : memref<16x3xf32, #tpu.memory_space<smem>>
    %235 = vector.broadcast %234 : f32 to vector<32x128xf32>
    %236 = arith.mulf %235, %14 : vector<32x128xf32>
    %237 = arith.addf %232, %236 : vector<32x128xf32>
    %238 = arith.index_cast %228 : i32 to index
    %c1_56 = arith.constant 1 : index
    %239 = memref.load %arg2[%238, %c1_56] : memref<16x3xf32, #tpu.memory_space<smem>>
    %240 = vector.broadcast %239 : f32 to vector<32x128xf32>
    %241 = arith.mulf %240, %12 : vector<32x128xf32>
    %242 = arith.addf %237, %241 : vector<32x128xf32>
    %243 = arith.index_cast %228 : i32 to index
    %c1_57 = arith.constant 1 : index
    %244 = memref.load %arg3[%243, %c1_57] : memref<16x3xf32, #tpu.memory_space<smem>>
    %245 = vector.broadcast %244 : f32 to vector<32x128xf32>
    %246 = arith.mulf %245, %15 : vector<32x128xf32>
    %247 = arith.addf %242, %246 : vector<32x128xf32>
    %248 = arith.index_cast %228 : i32 to index
    %c2_58 = arith.constant 2 : index
    %249 = memref.load %arg2[%248, %c2_58] : memref<16x3xf32, #tpu.memory_space<smem>>
    %250 = vector.broadcast %249 : f32 to vector<32x128xf32>
    %251 = arith.mulf %250, %13 : vector<32x128xf32>
    %252 = arith.addf %247, %251 : vector<32x128xf32>
    %253 = arith.index_cast %228 : i32 to index
    %c2_59 = arith.constant 2 : index
    %254 = memref.load %arg3[%253, %c2_59] : memref<16x3xf32, #tpu.memory_space<smem>>
    %255 = vector.broadcast %254 : f32 to vector<32x128xf32>
    %256 = arith.mulf %255, %16 : vector<32x128xf32>
    %257 = arith.addf %252, %256 : vector<32x128xf32>
    %258 = arith.index_cast %228 : i32 to index
    %259 = memref.load %arg4[%258] : memref<16xf32, #tpu.memory_space<smem>>
    %260 = vector.broadcast %259 : f32 to vector<32x128xf32>
    %261 = arith.addf %257, %260 : vector<32x128xf32>
    %cst_60 = arith.constant dense<0.000000e+00> : vector<32xf32>
    %262 = vector.multi_reduction <add>, %261, %cst_60 [1] : vector<32x128xf32> to vector<32xf32>
    %263 = vector.shape_cast %262 : vector<32xf32> to vector<32x1xf32>
    %cst_61 = arith.constant dense<0.000000e+00> : vector<1xf32>
    %264 = vector.multi_reduction <add>, %263, %cst_61 [0] : vector<32x1xf32> to vector<1xf32>
    %265 = vector.shape_cast %264 : vector<1xf32> to vector<1x1xf32>
    %cst_62 = arith.constant 4.096000e+03 : f32
    %266 = vector.broadcast %cst_62 : f32 to vector<1x1xf32>
    %267 = arith.divf %265, %266 : vector<1x1xf32>
    %268 = arith.mulf %261, %261 : vector<32x128xf32>
    %cst_63 = arith.constant dense<0.000000e+00> : vector<32xf32>
    %269 = vector.multi_reduction <add>, %268, %cst_63 [1] : vector<32x128xf32> to vector<32xf32>
    %270 = vector.shape_cast %269 : vector<32xf32> to vector<32x1xf32>
    %cst_64 = arith.constant dense<0.000000e+00> : vector<1xf32>
    %271 = vector.multi_reduction <add>, %270, %cst_64 [0] : vector<32x1xf32> to vector<1xf32>
    %272 = vector.shape_cast %271 : vector<1xf32> to vector<1x1xf32>
    %cst_65 = arith.constant 4.096000e+03 : f32
    %273 = vector.broadcast %cst_65 : f32 to vector<1x1xf32>
    %274 = arith.divf %272, %273 : vector<1x1xf32>
    %275 = arith.mulf %267, %267 : vector<1x1xf32>
    %276 = arith.subf %274, %275 : vector<1x1xf32>
    %cst_66 = arith.constant 0.000000e+00 : f32
    %277 = vector.broadcast %cst_66 : f32 to vector<1x1xf32>
    %278 = arith.maximumf %276, %277 : vector<1x1xf32>
    %279 = arith.index_cast %228 : i32 to index
    %280 = memref.load %arg5[%279] : memref<16xf32, #tpu.memory_space<smem>>
    %cst_67 = arith.constant 9.99999974E-6 : f32
    %281 = vector.broadcast %cst_67 : f32 to vector<1x1xf32>
    %282 = arith.addf %278, %281 : vector<1x1xf32>
    %283 = math.rsqrt %282 : vector<1x1xf32>
    %284 = vector.broadcast %280 : f32 to vector<1x1xf32>
    %285 = arith.mulf %284, %283 : vector<1x1xf32>
    %286 = vector.broadcast %285 : vector<1x1xf32> to vector<32x128xf32>
    %287 = arith.mulf %261, %286 : vector<32x128xf32>
    %288 = arith.index_cast %228 : i32 to index
    %289 = memref.load %arg6[%288] : memref<16xf32, #tpu.memory_space<smem>>
    %290 = arith.mulf %267, %285 : vector<1x1xf32>
    %291 = vector.broadcast %289 : f32 to vector<1x1xf32>
    %292 = arith.subf %291, %290 : vector<1x1xf32>
    %293 = vector.broadcast %292 : vector<1x1xf32> to vector<32x128xf32>
    %294 = arith.addf %287, %293 : vector<32x128xf32>
    %cst_68 = arith.constant 0.000000e+00 : f32
    %295 = vector.broadcast %cst_68 : f32 to vector<32x128xf32>
    %296 = arith.maximumf %294, %295 : vector<32x128xf32>
    %c16_i32_69 = arith.constant 16 : i32
    %297 = arith.muli %arg0, %c16_i32_69 : i32
    %c4_i32 = arith.constant 4 : i32
    %298 = arith.addi %297, %c4_i32 : i32
    %299 = arith.index_cast %298 : i32 to index
    %c0_70 = arith.constant 0 : index
    %300 = memref.load %arg2[%299, %c0_70] : memref<16x3xf32, #tpu.memory_space<smem>>
    %301 = vector.broadcast %300 : f32 to vector<32x128xf32>
    %302 = arith.mulf %301, %11 : vector<32x128xf32>
    %303 = arith.index_cast %298 : i32 to index
    %c0_71 = arith.constant 0 : index
    %304 = memref.load %arg3[%303, %c0_71] : memref<16x3xf32, #tpu.memory_space<smem>>
    %305 = vector.broadcast %304 : f32 to vector<32x128xf32>
    %306 = arith.mulf %305, %14 : vector<32x128xf32>
    %307 = arith.addf %302, %306 : vector<32x128xf32>
    %308 = arith.index_cast %298 : i32 to index
    %c1_72 = arith.constant 1 : index
    %309 = memref.load %arg2[%308, %c1_72] : memref<16x3xf32, #tpu.memory_space<smem>>
    %310 = vector.broadcast %309 : f32 to vector<32x128xf32>
    %311 = arith.mulf %310, %12 : vector<32x128xf32>
    %312 = arith.addf %307, %311 : vector<32x128xf32>
    %313 = arith.index_cast %298 : i32 to index
    %c1_73 = arith.constant 1 : index
    %314 = memref.load %arg3[%313, %c1_73] : memref<16x3xf32, #tpu.memory_space<smem>>
    %315 = vector.broadcast %314 : f32 to vector<32x128xf32>
    %316 = arith.mulf %315, %15 : vector<32x128xf32>
    %317 = arith.addf %312, %316 : vector<32x128xf32>
    %318 = arith.index_cast %298 : i32 to index
    %c2_74 = arith.constant 2 : index
    %319 = memref.load %arg2[%318, %c2_74] : memref<16x3xf32, #tpu.memory_space<smem>>
    %320 = vector.broadcast %319 : f32 to vector<32x128xf32>
    %321 = arith.mulf %320, %13 : vector<32x128xf32>
    %322 = arith.addf %317, %321 : vector<32x128xf32>
    %323 = arith.index_cast %298 : i32 to index
    %c2_75 = arith.constant 2 : index
    %324 = memref.load %arg3[%323, %c2_75] : memref<16x3xf32, #tpu.memory_space<smem>>
    %325 = vector.broadcast %324 : f32 to vector<32x128xf32>
    %326 = arith.mulf %325, %16 : vector<32x128xf32>
    %327 = arith.addf %322, %326 : vector<32x128xf32>
    %328 = arith.index_cast %298 : i32 to index
    %329 = memref.load %arg4[%328] : memref<16xf32, #tpu.memory_space<smem>>
    %330 = vector.broadcast %329 : f32 to vector<32x128xf32>
    %331 = arith.addf %327, %330 : vector<32x128xf32>
    %cst_76 = arith.constant dense<0.000000e+00> : vector<32xf32>
    %332 = vector.multi_reduction <add>, %331, %cst_76 [1] : vector<32x128xf32> to vector<32xf32>
    %333 = vector.shape_cast %332 : vector<32xf32> to vector<32x1xf32>
    %cst_77 = arith.constant dense<0.000000e+00> : vector<1xf32>
    %334 = vector.multi_reduction <add>, %333, %cst_77 [0] : vector<32x1xf32> to vector<1xf32>
    %335 = vector.shape_cast %334 : vector<1xf32> to vector<1x1xf32>
    %cst_78 = arith.constant 4.096000e+03 : f32
    %336 = vector.broadcast %cst_78 : f32 to vector<1x1xf32>
    %337 = arith.divf %335, %336 : vector<1x1xf32>
    %338 = arith.mulf %331, %331 : vector<32x128xf32>
    %cst_79 = arith.constant dense<0.000000e+00> : vector<32xf32>
    %339 = vector.multi_reduction <add>, %338, %cst_79 [1] : vector<32x128xf32> to vector<32xf32>
    %340 = vector.shape_cast %339 : vector<32xf32> to vector<32x1xf32>
    %cst_80 = arith.constant dense<0.000000e+00> : vector<1xf32>
    %341 = vector.multi_reduction <add>, %340, %cst_80 [0] : vector<32x1xf32> to vector<1xf32>
    %342 = vector.shape_cast %341 : vector<1xf32> to vector<1x1xf32>
    %cst_81 = arith.constant 4.096000e+03 : f32
    %343 = vector.broadcast %cst_81 : f32 to vector<1x1xf32>
    %344 = arith.divf %342, %343 : vector<1x1xf32>
    %345 = arith.mulf %337, %337 : vector<1x1xf32>
    %346 = arith.subf %344, %345 : vector<1x1xf32>
    %cst_82 = arith.constant 0.000000e+00 : f32
    %347 = vector.broadcast %cst_82 : f32 to vector<1x1xf32>
    %348 = arith.maximumf %346, %347 : vector<1x1xf32>
    %349 = arith.index_cast %298 : i32 to index
    %350 = memref.load %arg5[%349] : memref<16xf32, #tpu.memory_space<smem>>
    %cst_83 = arith.constant 9.99999974E-6 : f32
    %351 = vector.broadcast %cst_83 : f32 to vector<1x1xf32>
    %352 = arith.addf %348, %351 : vector<1x1xf32>
    %353 = math.rsqrt %352 : vector<1x1xf32>
    %354 = vector.broadcast %350 : f32 to vector<1x1xf32>
    %355 = arith.mulf %354, %353 : vector<1x1xf32>
    %356 = vector.broadcast %355 : vector<1x1xf32> to vector<32x128xf32>
    %357 = arith.mulf %331, %356 : vector<32x128xf32>
    %358 = arith.index_cast %298 : i32 to index
    %359 = memref.load %arg6[%358] : memref<16xf32, #tpu.memory_space<smem>>
    %360 = arith.mulf %337, %355 : vector<1x1xf32>
    %361 = vector.broadcast %359 : f32 to vector<1x1xf32>
    %362 = arith.subf %361, %360 : vector<1x1xf32>
    %363 = vector.broadcast %362 : vector<1x1xf32> to vector<32x128xf32>
    %364 = arith.addf %357, %363 : vector<32x128xf32>
    %cst_84 = arith.constant 0.000000e+00 : f32
    %365 = vector.broadcast %cst_84 : f32 to vector<32x128xf32>
    %366 = arith.maximumf %364, %365 : vector<32x128xf32>
    %c16_i32_85 = arith.constant 16 : i32
    %367 = arith.muli %arg0, %c16_i32_85 : i32
    %c5_i32 = arith.constant 5 : i32
    %368 = arith.addi %367, %c5_i32 : i32
    %369 = arith.index_cast %368 : i32 to index
    %c0_86 = arith.constant 0 : index
    %370 = memref.load %arg2[%369, %c0_86] : memref<16x3xf32, #tpu.memory_space<smem>>
    %371 = vector.broadcast %370 : f32 to vector<32x128xf32>
    %372 = arith.mulf %371, %11 : vector<32x128xf32>
    %373 = arith.index_cast %368 : i32 to index
    %c0_87 = arith.constant 0 : index
    %374 = memref.load %arg3[%373, %c0_87] : memref<16x3xf32, #tpu.memory_space<smem>>
    %375 = vector.broadcast %374 : f32 to vector<32x128xf32>
    %376 = arith.mulf %375, %14 : vector<32x128xf32>
    %377 = arith.addf %372, %376 : vector<32x128xf32>
    %378 = arith.index_cast %368 : i32 to index
    %c1_88 = arith.constant 1 : index
    %379 = memref.load %arg2[%378, %c1_88] : memref<16x3xf32, #tpu.memory_space<smem>>
    %380 = vector.broadcast %379 : f32 to vector<32x128xf32>
    %381 = arith.mulf %380, %12 : vector<32x128xf32>
    %382 = arith.addf %377, %381 : vector<32x128xf32>
    %383 = arith.index_cast %368 : i32 to index
    %c1_89 = arith.constant 1 : index
    %384 = memref.load %arg3[%383, %c1_89] : memref<16x3xf32, #tpu.memory_space<smem>>
    %385 = vector.broadcast %384 : f32 to vector<32x128xf32>
    %386 = arith.mulf %385, %15 : vector<32x128xf32>
    %387 = arith.addf %382, %386 : vector<32x128xf32>
    %388 = arith.index_cast %368 : i32 to index
    %c2_90 = arith.constant 2 : index
    %389 = memref.load %arg2[%388, %c2_90] : memref<16x3xf32, #tpu.memory_space<smem>>
    %390 = vector.broadcast %389 : f32 to vector<32x128xf32>
    %391 = arith.mulf %390, %13 : vector<32x128xf32>
    %392 = arith.addf %387, %391 : vector<32x128xf32>
    %393 = arith.index_cast %368 : i32 to index
    %c2_91 = arith.constant 2 : index
    %394 = memref.load %arg3[%393, %c2_91] : memref<16x3xf32, #tpu.memory_space<smem>>
    %395 = vector.broadcast %394 : f32 to vector<32x128xf32>
    %396 = arith.mulf %395, %16 : vector<32x128xf32>
    %397 = arith.addf %392, %396 : vector<32x128xf32>
    %398 = arith.index_cast %368 : i32 to index
    %399 = memref.load %arg4[%398] : memref<16xf32, #tpu.memory_space<smem>>
    %400 = vector.broadcast %399 : f32 to vector<32x128xf32>
    %401 = arith.addf %397, %400 : vector<32x128xf32>
    %cst_92 = arith.constant dense<0.000000e+00> : vector<32xf32>
    %402 = vector.multi_reduction <add>, %401, %cst_92 [1] : vector<32x128xf32> to vector<32xf32>
    %403 = vector.shape_cast %402 : vector<32xf32> to vector<32x1xf32>
    %cst_93 = arith.constant dense<0.000000e+00> : vector<1xf32>
    %404 = vector.multi_reduction <add>, %403, %cst_93 [0] : vector<32x1xf32> to vector<1xf32>
    %405 = vector.shape_cast %404 : vector<1xf32> to vector<1x1xf32>
    %cst_94 = arith.constant 4.096000e+03 : f32
    %406 = vector.broadcast %cst_94 : f32 to vector<1x1xf32>
    %407 = arith.divf %405, %406 : vector<1x1xf32>
    %408 = arith.mulf %401, %401 : vector<32x128xf32>
    %cst_95 = arith.constant dense<0.000000e+00> : vector<32xf32>
    %409 = vector.multi_reduction <add>, %408, %cst_95 [1] : vector<32x128xf32> to vector<32xf32>
    %410 = vector.shape_cast %409 : vector<32xf32> to vector<32x1xf32>
    %cst_96 = arith.constant dense<0.000000e+00> : vector<1xf32>
    %411 = vector.multi_reduction <add>, %410, %cst_96 [0] : vector<32x1xf32> to vector<1xf32>
    %412 = vector.shape_cast %411 : vector<1xf32> to vector<1x1xf32>
    %cst_97 = arith.constant 4.096000e+03 : f32
    %413 = vector.broadcast %cst_97 : f32 to vector<1x1xf32>
    %414 = arith.divf %412, %413 : vector<1x1xf32>
    %415 = arith.mulf %407, %407 : vector<1x1xf32>
    %416 = arith.subf %414, %415 : vector<1x1xf32>
    %cst_98 = arith.constant 0.000000e+00 : f32
    %417 = vector.broadcast %cst_98 : f32 to vector<1x1xf32>
    %418 = arith.maximumf %416, %417 : vector<1x1xf32>
    %419 = arith.index_cast %368 : i32 to index
    %420 = memref.load %arg5[%419] : memref<16xf32, #tpu.memory_space<smem>>
    %cst_99 = arith.constant 9.99999974E-6 : f32
    %421 = vector.broadcast %cst_99 : f32 to vector<1x1xf32>
    %422 = arith.addf %418, %421 : vector<1x1xf32>
    %423 = math.rsqrt %422 : vector<1x1xf32>
    %424 = vector.broadcast %420 : f32 to vector<1x1xf32>
    %425 = arith.mulf %424, %423 : vector<1x1xf32>
    %426 = vector.broadcast %425 : vector<1x1xf32> to vector<32x128xf32>
    %427 = arith.mulf %401, %426 : vector<32x128xf32>
    %428 = arith.index_cast %368 : i32 to index
    %429 = memref.load %arg6[%428] : memref<16xf32, #tpu.memory_space<smem>>
    %430 = arith.mulf %407, %425 : vector<1x1xf32>
    %431 = vector.broadcast %429 : f32 to vector<1x1xf32>
    %432 = arith.subf %431, %430 : vector<1x1xf32>
    %433 = vector.broadcast %432 : vector<1x1xf32> to vector<32x128xf32>
    %434 = arith.addf %427, %433 : vector<32x128xf32>
    %cst_100 = arith.constant 0.000000e+00 : f32
    %435 = vector.broadcast %cst_100 : f32 to vector<32x128xf32>
    %436 = arith.maximumf %434, %435 : vector<32x128xf32>
    %c16_i32_101 = arith.constant 16 : i32
    %437 = arith.muli %arg0, %c16_i32_101 : i32
    %c6_i32 = arith.constant 6 : i32
    %438 = arith.addi %437, %c6_i32 : i32
    %439 = arith.index_cast %438 : i32 to index
    %c0_102 = arith.constant 0 : index
    %440 = memref.load %arg2[%439, %c0_102] : memref<16x3xf32, #tpu.memory_space<smem>>
    %441 = vector.broadcast %440 : f32 to vector<32x128xf32>
    %442 = arith.mulf %441, %11 : vector<32x128xf32>
    %443 = arith.index_cast %438 : i32 to index
    %c0_103 = arith.constant 0 : index
    %444 = memref.load %arg3[%443, %c0_103] : memref<16x3xf32, #tpu.memory_space<smem>>
    %445 = vector.broadcast %444 : f32 to vector<32x128xf32>
    %446 = arith.mulf %445, %14 : vector<32x128xf32>
    %447 = arith.addf %442, %446 : vector<32x128xf32>
    %448 = arith.index_cast %438 : i32 to index
    %c1_104 = arith.constant 1 : index
    %449 = memref.load %arg2[%448, %c1_104] : memref<16x3xf32, #tpu.memory_space<smem>>
    %450 = vector.broadcast %449 : f32 to vector<32x128xf32>
    %451 = arith.mulf %450, %12 : vector<32x128xf32>
    %452 = arith.addf %447, %451 : vector<32x128xf32>
    %453 = arith.index_cast %438 : i32 to index
    %c1_105 = arith.constant 1 : index
    %454 = memref.load %arg3[%453, %c1_105] : memref<16x3xf32, #tpu.memory_space<smem>>
    %455 = vector.broadcast %454 : f32 to vector<32x128xf32>
    %456 = arith.mulf %455, %15 : vector<32x128xf32>
    %457 = arith.addf %452, %456 : vector<32x128xf32>
    %458 = arith.index_cast %438 : i32 to index
    %c2_106 = arith.constant 2 : index
    %459 = memref.load %arg2[%458, %c2_106] : memref<16x3xf32, #tpu.memory_space<smem>>
    %460 = vector.broadcast %459 : f32 to vector<32x128xf32>
    %461 = arith.mulf %460, %13 : vector<32x128xf32>
    %462 = arith.addf %457, %461 : vector<32x128xf32>
    %463 = arith.index_cast %438 : i32 to index
    %c2_107 = arith.constant 2 : index
    %464 = memref.load %arg3[%463, %c2_107] : memref<16x3xf32, #tpu.memory_space<smem>>
    %465 = vector.broadcast %464 : f32 to vector<32x128xf32>
    %466 = arith.mulf %465, %16 : vector<32x128xf32>
    %467 = arith.addf %462, %466 : vector<32x128xf32>
    %468 = arith.index_cast %438 : i32 to index
    %469 = memref.load %arg4[%468] : memref<16xf32, #tpu.memory_space<smem>>
    %470 = vector.broadcast %469 : f32 to vector<32x128xf32>
    %471 = arith.addf %467, %470 : vector<32x128xf32>
    %cst_108 = arith.constant dense<0.000000e+00> : vector<32xf32>
    %472 = vector.multi_reduction <add>, %471, %cst_108 [1] : vector<32x128xf32> to vector<32xf32>
    %473 = vector.shape_cast %472 : vector<32xf32> to vector<32x1xf32>
    %cst_109 = arith.constant dense<0.000000e+00> : vector<1xf32>
    %474 = vector.multi_reduction <add>, %473, %cst_109 [0] : vector<32x1xf32> to vector<1xf32>
    %475 = vector.shape_cast %474 : vector<1xf32> to vector<1x1xf32>
    %cst_110 = arith.constant 4.096000e+03 : f32
    %476 = vector.broadcast %cst_110 : f32 to vector<1x1xf32>
    %477 = arith.divf %475, %476 : vector<1x1xf32>
    %478 = arith.mulf %471, %471 : vector<32x128xf32>
    %cst_111 = arith.constant dense<0.000000e+00> : vector<32xf32>
    %479 = vector.multi_reduction <add>, %478, %cst_111 [1] : vector<32x128xf32> to vector<32xf32>
    %480 = vector.shape_cast %479 : vector<32xf32> to vector<32x1xf32>
    %cst_112 = arith.constant dense<0.000000e+00> : vector<1xf32>
    %481 = vector.multi_reduction <add>, %480, %cst_112 [0] : vector<32x1xf32> to vector<1xf32>
    %482 = vector.shape_cast %481 : vector<1xf32> to vector<1x1xf32>
    %cst_113 = arith.constant 4.096000e+03 : f32
    %483 = vector.broadcast %cst_113 : f32 to vector<1x1xf32>
    %484 = arith.divf %482, %483 : vector<1x1xf32>
    %485 = arith.mulf %477, %477 : vector<1x1xf32>
    %486 = arith.subf %484, %485 : vector<1x1xf32>
    %cst_114 = arith.constant 0.000000e+00 : f32
    %487 = vector.broadcast %cst_114 : f32 to vector<1x1xf32>
    %488 = arith.maximumf %486, %487 : vector<1x1xf32>
    %489 = arith.index_cast %438 : i32 to index
    %490 = memref.load %arg5[%489] : memref<16xf32, #tpu.memory_space<smem>>
    %cst_115 = arith.constant 9.99999974E-6 : f32
    %491 = vector.broadcast %cst_115 : f32 to vector<1x1xf32>
    %492 = arith.addf %488, %491 : vector<1x1xf32>
    %493 = math.rsqrt %492 : vector<1x1xf32>
    %494 = vector.broadcast %490 : f32 to vector<1x1xf32>
    %495 = arith.mulf %494, %493 : vector<1x1xf32>
    %496 = vector.broadcast %495 : vector<1x1xf32> to vector<32x128xf32>
    %497 = arith.mulf %471, %496 : vector<32x128xf32>
    %498 = arith.index_cast %438 : i32 to index
    %499 = memref.load %arg6[%498] : memref<16xf32, #tpu.memory_space<smem>>
    %500 = arith.mulf %477, %495 : vector<1x1xf32>
    %501 = vector.broadcast %499 : f32 to vector<1x1xf32>
    %502 = arith.subf %501, %500 : vector<1x1xf32>
    %503 = vector.broadcast %502 : vector<1x1xf32> to vector<32x128xf32>
    %504 = arith.addf %497, %503 : vector<32x128xf32>
    %cst_116 = arith.constant 0.000000e+00 : f32
    %505 = vector.broadcast %cst_116 : f32 to vector<32x128xf32>
    %506 = arith.maximumf %504, %505 : vector<32x128xf32>
    %c16_i32_117 = arith.constant 16 : i32
    %507 = arith.muli %arg0, %c16_i32_117 : i32
    %c7_i32 = arith.constant 7 : i32
    %508 = arith.addi %507, %c7_i32 : i32
    %509 = arith.index_cast %508 : i32 to index
    %c0_118 = arith.constant 0 : index
    %510 = memref.load %arg2[%509, %c0_118] : memref<16x3xf32, #tpu.memory_space<smem>>
    %511 = vector.broadcast %510 : f32 to vector<32x128xf32>
    %512 = arith.mulf %511, %11 : vector<32x128xf32>
    %513 = arith.index_cast %508 : i32 to index
    %c0_119 = arith.constant 0 : index
    %514 = memref.load %arg3[%513, %c0_119] : memref<16x3xf32, #tpu.memory_space<smem>>
    %515 = vector.broadcast %514 : f32 to vector<32x128xf32>
    %516 = arith.mulf %515, %14 : vector<32x128xf32>
    %517 = arith.addf %512, %516 : vector<32x128xf32>
    %518 = arith.index_cast %508 : i32 to index
    %c1_120 = arith.constant 1 : index
    %519 = memref.load %arg2[%518, %c1_120] : memref<16x3xf32, #tpu.memory_space<smem>>
    %520 = vector.broadcast %519 : f32 to vector<32x128xf32>
    %521 = arith.mulf %520, %12 : vector<32x128xf32>
    %522 = arith.addf %517, %521 : vector<32x128xf32>
    %523 = arith.index_cast %508 : i32 to index
    %c1_121 = arith.constant 1 : index
    %524 = memref.load %arg3[%523, %c1_121] : memref<16x3xf32, #tpu.memory_space<smem>>
    %525 = vector.broadcast %524 : f32 to vector<32x128xf32>
    %526 = arith.mulf %525, %15 : vector<32x128xf32>
    %527 = arith.addf %522, %526 : vector<32x128xf32>
    %528 = arith.index_cast %508 : i32 to index
    %c2_122 = arith.constant 2 : index
    %529 = memref.load %arg2[%528, %c2_122] : memref<16x3xf32, #tpu.memory_space<smem>>
    %530 = vector.broadcast %529 : f32 to vector<32x128xf32>
    %531 = arith.mulf %530, %13 : vector<32x128xf32>
    %532 = arith.addf %527, %531 : vector<32x128xf32>
    %533 = arith.index_cast %508 : i32 to index
    %c2_123 = arith.constant 2 : index
    %534 = memref.load %arg3[%533, %c2_123] : memref<16x3xf32, #tpu.memory_space<smem>>
    %535 = vector.broadcast %534 : f32 to vector<32x128xf32>
    %536 = arith.mulf %535, %16 : vector<32x128xf32>
    %537 = arith.addf %532, %536 : vector<32x128xf32>
    %538 = arith.index_cast %508 : i32 to index
    %539 = memref.load %arg4[%538] : memref<16xf32, #tpu.memory_space<smem>>
    %540 = vector.broadcast %539 : f32 to vector<32x128xf32>
    %541 = arith.addf %537, %540 : vector<32x128xf32>
    %cst_124 = arith.constant dense<0.000000e+00> : vector<32xf32>
    %542 = vector.multi_reduction <add>, %541, %cst_124 [1] : vector<32x128xf32> to vector<32xf32>
    %543 = vector.shape_cast %542 : vector<32xf32> to vector<32x1xf32>
    %cst_125 = arith.constant dense<0.000000e+00> : vector<1xf32>
    %544 = vector.multi_reduction <add>, %543, %cst_125 [0] : vector<32x1xf32> to vector<1xf32>
    %545 = vector.shape_cast %544 : vector<1xf32> to vector<1x1xf32>
    %cst_126 = arith.constant 4.096000e+03 : f32
    %546 = vector.broadcast %cst_126 : f32 to vector<1x1xf32>
    %547 = arith.divf %545, %546 : vector<1x1xf32>
    %548 = arith.mulf %541, %541 : vector<32x128xf32>
    %cst_127 = arith.constant dense<0.000000e+00> : vector<32xf32>
    %549 = vector.multi_reduction <add>, %548, %cst_127 [1] : vector<32x128xf32> to vector<32xf32>
    %550 = vector.shape_cast %549 : vector<32xf32> to vector<32x1xf32>
    %cst_128 = arith.constant dense<0.000000e+00> : vector<1xf32>
    %551 = vector.multi_reduction <add>, %550, %cst_128 [0] : vector<32x1xf32> to vector<1xf32>
    %552 = vector.shape_cast %551 : vector<1xf32> to vector<1x1xf32>
    %cst_129 = arith.constant 4.096000e+03 : f32
    %553 = vector.broadcast %cst_129 : f32 to vector<1x1xf32>
    %554 = arith.divf %552, %553 : vector<1x1xf32>
    %555 = arith.mulf %547, %547 : vector<1x1xf32>
    %556 = arith.subf %554, %555 : vector<1x1xf32>
    %cst_130 = arith.constant 0.000000e+00 : f32
    %557 = vector.broadcast %cst_130 : f32 to vector<1x1xf32>
    %558 = arith.maximumf %556, %557 : vector<1x1xf32>
    %559 = arith.index_cast %508 : i32 to index
    %560 = memref.load %arg5[%559] : memref<16xf32, #tpu.memory_space<smem>>
    %cst_131 = arith.constant 9.99999974E-6 : f32
    %561 = vector.broadcast %cst_131 : f32 to vector<1x1xf32>
    %562 = arith.addf %558, %561 : vector<1x1xf32>
    %563 = math.rsqrt %562 : vector<1x1xf32>
    %564 = vector.broadcast %560 : f32 to vector<1x1xf32>
    %565 = arith.mulf %564, %563 : vector<1x1xf32>
    %566 = vector.broadcast %565 : vector<1x1xf32> to vector<32x128xf32>
    %567 = arith.mulf %541, %566 : vector<32x128xf32>
    %568 = arith.index_cast %508 : i32 to index
    %569 = memref.load %arg6[%568] : memref<16xf32, #tpu.memory_space<smem>>
    %570 = arith.mulf %547, %565 : vector<1x1xf32>
    %571 = vector.broadcast %569 : f32 to vector<1x1xf32>
    %572 = arith.subf %571, %570 : vector<1x1xf32>
    %573 = vector.broadcast %572 : vector<1x1xf32> to vector<32x128xf32>
    %574 = arith.addf %567, %573 : vector<32x128xf32>
    %cst_132 = arith.constant 0.000000e+00 : f32
    %575 = vector.broadcast %cst_132 : f32 to vector<32x128xf32>
    %576 = arith.maximumf %574, %575 : vector<32x128xf32>
    %c16_i32_133 = arith.constant 16 : i32
    %577 = arith.muli %arg0, %c16_i32_133 : i32
    %c8_i32 = arith.constant 8 : i32
    %578 = arith.addi %577, %c8_i32 : i32
    %579 = arith.index_cast %578 : i32 to index
    %c0_134 = arith.constant 0 : index
    %580 = memref.load %arg2[%579, %c0_134] : memref<16x3xf32, #tpu.memory_space<smem>>
    %581 = vector.broadcast %580 : f32 to vector<32x128xf32>
    %582 = arith.mulf %581, %11 : vector<32x128xf32>
    %583 = arith.index_cast %578 : i32 to index
    %c0_135 = arith.constant 0 : index
    %584 = memref.load %arg3[%583, %c0_135] : memref<16x3xf32, #tpu.memory_space<smem>>
    %585 = vector.broadcast %584 : f32 to vector<32x128xf32>
    %586 = arith.mulf %585, %14 : vector<32x128xf32>
    %587 = arith.addf %582, %586 : vector<32x128xf32>
    %588 = arith.index_cast %578 : i32 to index
    %c1_136 = arith.constant 1 : index
    %589 = memref.load %arg2[%588, %c1_136] : memref<16x3xf32, #tpu.memory_space<smem>>
    %590 = vector.broadcast %589 : f32 to vector<32x128xf32>
    %591 = arith.mulf %590, %12 : vector<32x128xf32>
    %592 = arith.addf %587, %591 : vector<32x128xf32>
    %593 = arith.index_cast %578 : i32 to index
    %c1_137 = arith.constant 1 : index
    %594 = memref.load %arg3[%593, %c1_137] : memref<16x3xf32, #tpu.memory_space<smem>>
    %595 = vector.broadcast %594 : f32 to vector<32x128xf32>
    %596 = arith.mulf %595, %15 : vector<32x128xf32>
    %597 = arith.addf %592, %596 : vector<32x128xf32>
    %598 = arith.index_cast %578 : i32 to index
    %c2_138 = arith.constant 2 : index
    %599 = memref.load %arg2[%598, %c2_138] : memref<16x3xf32, #tpu.memory_space<smem>>
    %600 = vector.broadcast %599 : f32 to vector<32x128xf32>
    %601 = arith.mulf %600, %13 : vector<32x128xf32>
    %602 = arith.addf %597, %601 : vector<32x128xf32>
    %603 = arith.index_cast %578 : i32 to index
    %c2_139 = arith.constant 2 : index
    %604 = memref.load %arg3[%603, %c2_139] : memref<16x3xf32, #tpu.memory_space<smem>>
    %605 = vector.broadcast %604 : f32 to vector<32x128xf32>
    %606 = arith.mulf %605, %16 : vector<32x128xf32>
    %607 = arith.addf %602, %606 : vector<32x128xf32>
    %608 = arith.index_cast %578 : i32 to index
    %609 = memref.load %arg4[%608] : memref<16xf32, #tpu.memory_space<smem>>
    %610 = vector.broadcast %609 : f32 to vector<32x128xf32>
    %611 = arith.addf %607, %610 : vector<32x128xf32>
    %cst_140 = arith.constant dense<0.000000e+00> : vector<32xf32>
    %612 = vector.multi_reduction <add>, %611, %cst_140 [1] : vector<32x128xf32> to vector<32xf32>
    %613 = vector.shape_cast %612 : vector<32xf32> to vector<32x1xf32>
    %cst_141 = arith.constant dense<0.000000e+00> : vector<1xf32>
    %614 = vector.multi_reduction <add>, %613, %cst_141 [0] : vector<32x1xf32> to vector<1xf32>
    %615 = vector.shape_cast %614 : vector<1xf32> to vector<1x1xf32>
    %cst_142 = arith.constant 4.096000e+03 : f32
    %616 = vector.broadcast %cst_142 : f32 to vector<1x1xf32>
    %617 = arith.divf %615, %616 : vector<1x1xf32>
    %618 = arith.mulf %611, %611 : vector<32x128xf32>
    %cst_143 = arith.constant dense<0.000000e+00> : vector<32xf32>
    %619 = vector.multi_reduction <add>, %618, %cst_143 [1] : vector<32x128xf32> to vector<32xf32>
    %620 = vector.shape_cast %619 : vector<32xf32> to vector<32x1xf32>
    %cst_144 = arith.constant dense<0.000000e+00> : vector<1xf32>
    %621 = vector.multi_reduction <add>, %620, %cst_144 [0] : vector<32x1xf32> to vector<1xf32>
    %622 = vector.shape_cast %621 : vector<1xf32> to vector<1x1xf32>
    %cst_145 = arith.constant 4.096000e+03 : f32
    %623 = vector.broadcast %cst_145 : f32 to vector<1x1xf32>
    %624 = arith.divf %622, %623 : vector<1x1xf32>
    %625 = arith.mulf %617, %617 : vector<1x1xf32>
    %626 = arith.subf %624, %625 : vector<1x1xf32>
    %cst_146 = arith.constant 0.000000e+00 : f32
    %627 = vector.broadcast %cst_146 : f32 to vector<1x1xf32>
    %628 = arith.maximumf %626, %627 : vector<1x1xf32>
    %629 = arith.index_cast %578 : i32 to index
    %630 = memref.load %arg5[%629] : memref<16xf32, #tpu.memory_space<smem>>
    %cst_147 = arith.constant 9.99999974E-6 : f32
    %631 = vector.broadcast %cst_147 : f32 to vector<1x1xf32>
    %632 = arith.addf %628, %631 : vector<1x1xf32>
    %633 = math.rsqrt %632 : vector<1x1xf32>
    %634 = vector.broadcast %630 : f32 to vector<1x1xf32>
    %635 = arith.mulf %634, %633 : vector<1x1xf32>
    %636 = vector.broadcast %635 : vector<1x1xf32> to vector<32x128xf32>
    %637 = arith.mulf %611, %636 : vector<32x128xf32>
    %638 = arith.index_cast %578 : i32 to index
    %639 = memref.load %arg6[%638] : memref<16xf32, #tpu.memory_space<smem>>
    %640 = arith.mulf %617, %635 : vector<1x1xf32>
    %641 = vector.broadcast %639 : f32 to vector<1x1xf32>
    %642 = arith.subf %641, %640 : vector<1x1xf32>
    %643 = vector.broadcast %642 : vector<1x1xf32> to vector<32x128xf32>
    %644 = arith.addf %637, %643 : vector<32x128xf32>
    %cst_148 = arith.constant 0.000000e+00 : f32
    %645 = vector.broadcast %cst_148 : f32 to vector<32x128xf32>
    %646 = arith.maximumf %644, %645 : vector<32x128xf32>
    %c16_i32_149 = arith.constant 16 : i32
    %647 = arith.muli %arg0, %c16_i32_149 : i32
    %c9_i32 = arith.constant 9 : i32
    %648 = arith.addi %647, %c9_i32 : i32
    %649 = arith.index_cast %648 : i32 to index
    %c0_150 = arith.constant 0 : index
    %650 = memref.load %arg2[%649, %c0_150] : memref<16x3xf32, #tpu.memory_space<smem>>
    %651 = vector.broadcast %650 : f32 to vector<32x128xf32>
    %652 = arith.mulf %651, %11 : vector<32x128xf32>
    %653 = arith.index_cast %648 : i32 to index
    %c0_151 = arith.constant 0 : index
    %654 = memref.load %arg3[%653, %c0_151] : memref<16x3xf32, #tpu.memory_space<smem>>
    %655 = vector.broadcast %654 : f32 to vector<32x128xf32>
    %656 = arith.mulf %655, %14 : vector<32x128xf32>
    %657 = arith.addf %652, %656 : vector<32x128xf32>
    %658 = arith.index_cast %648 : i32 to index
    %c1_152 = arith.constant 1 : index
    %659 = memref.load %arg2[%658, %c1_152] : memref<16x3xf32, #tpu.memory_space<smem>>
    %660 = vector.broadcast %659 : f32 to vector<32x128xf32>
    %661 = arith.mulf %660, %12 : vector<32x128xf32>
    %662 = arith.addf %657, %661 : vector<32x128xf32>
    %663 = arith.index_cast %648 : i32 to index
    %c1_153 = arith.constant 1 : index
    %664 = memref.load %arg3[%663, %c1_153] : memref<16x3xf32, #tpu.memory_space<smem>>
    %665 = vector.broadcast %664 : f32 to vector<32x128xf32>
    %666 = arith.mulf %665, %15 : vector<32x128xf32>
    %667 = arith.addf %662, %666 : vector<32x128xf32>
    %668 = arith.index_cast %648 : i32 to index
    %c2_154 = arith.constant 2 : index
    %669 = memref.load %arg2[%668, %c2_154] : memref<16x3xf32, #tpu.memory_space<smem>>
    %670 = vector.broadcast %669 : f32 to vector<32x128xf32>
    %671 = arith.mulf %670, %13 : vector<32x128xf32>
    %672 = arith.addf %667, %671 : vector<32x128xf32>
    %673 = arith.index_cast %648 : i32 to index
    %c2_155 = arith.constant 2 : index
    %674 = memref.load %arg3[%673, %c2_155] : memref<16x3xf32, #tpu.memory_space<smem>>
    %675 = vector.broadcast %674 : f32 to vector<32x128xf32>
    %676 = arith.mulf %675, %16 : vector<32x128xf32>
    %677 = arith.addf %672, %676 : vector<32x128xf32>
    %678 = arith.index_cast %648 : i32 to index
    %679 = memref.load %arg4[%678] : memref<16xf32, #tpu.memory_space<smem>>
    %680 = vector.broadcast %679 : f32 to vector<32x128xf32>
    %681 = arith.addf %677, %680 : vector<32x128xf32>
    %cst_156 = arith.constant dense<0.000000e+00> : vector<32xf32>
    %682 = vector.multi_reduction <add>, %681, %cst_156 [1] : vector<32x128xf32> to vector<32xf32>
    %683 = vector.shape_cast %682 : vector<32xf32> to vector<32x1xf32>
    %cst_157 = arith.constant dense<0.000000e+00> : vector<1xf32>
    %684 = vector.multi_reduction <add>, %683, %cst_157 [0] : vector<32x1xf32> to vector<1xf32>
    %685 = vector.shape_cast %684 : vector<1xf32> to vector<1x1xf32>
    %cst_158 = arith.constant 4.096000e+03 : f32
    %686 = vector.broadcast %cst_158 : f32 to vector<1x1xf32>
    %687 = arith.divf %685, %686 : vector<1x1xf32>
    %688 = arith.mulf %681, %681 : vector<32x128xf32>
    %cst_159 = arith.constant dense<0.000000e+00> : vector<32xf32>
    %689 = vector.multi_reduction <add>, %688, %cst_159 [1] : vector<32x128xf32> to vector<32xf32>
    %690 = vector.shape_cast %689 : vector<32xf32> to vector<32x1xf32>
    %cst_160 = arith.constant dense<0.000000e+00> : vector<1xf32>
    %691 = vector.multi_reduction <add>, %690, %cst_160 [0] : vector<32x1xf32> to vector<1xf32>
    %692 = vector.shape_cast %691 : vector<1xf32> to vector<1x1xf32>
    %cst_161 = arith.constant 4.096000e+03 : f32
    %693 = vector.broadcast %cst_161 : f32 to vector<1x1xf32>
    %694 = arith.divf %692, %693 : vector<1x1xf32>
    %695 = arith.mulf %687, %687 : vector<1x1xf32>
    %696 = arith.subf %694, %695 : vector<1x1xf32>
    %cst_162 = arith.constant 0.000000e+00 : f32
    %697 = vector.broadcast %cst_162 : f32 to vector<1x1xf32>
    %698 = arith.maximumf %696, %697 : vector<1x1xf32>
    %699 = arith.index_cast %648 : i32 to index
    %700 = memref.load %arg5[%699] : memref<16xf32, #tpu.memory_space<smem>>
    %cst_163 = arith.constant 9.99999974E-6 : f32
    %701 = vector.broadcast %cst_163 : f32 to vector<1x1xf32>
    %702 = arith.addf %698, %701 : vector<1x1xf32>
    %703 = math.rsqrt %702 : vector<1x1xf32>
    %704 = vector.broadcast %700 : f32 to vector<1x1xf32>
    %705 = arith.mulf %704, %703 : vector<1x1xf32>
    %706 = vector.broadcast %705 : vector<1x1xf32> to vector<32x128xf32>
    %707 = arith.mulf %681, %706 : vector<32x128xf32>
    %708 = arith.index_cast %648 : i32 to index
    %709 = memref.load %arg6[%708] : memref<16xf32, #tpu.memory_space<smem>>
    %710 = arith.mulf %687, %705 : vector<1x1xf32>
    %711 = vector.broadcast %709 : f32 to vector<1x1xf32>
    %712 = arith.subf %711, %710 : vector<1x1xf32>
    %713 = vector.broadcast %712 : vector<1x1xf32> to vector<32x128xf32>
    %714 = arith.addf %707, %713 : vector<32x128xf32>
    %cst_164 = arith.constant 0.000000e+00 : f32
    %715 = vector.broadcast %cst_164 : f32 to vector<32x128xf32>
    %716 = arith.maximumf %714, %715 : vector<32x128xf32>
    %c16_i32_165 = arith.constant 16 : i32
    %717 = arith.muli %arg0, %c16_i32_165 : i32
    %c10_i32 = arith.constant 10 : i32
    %718 = arith.addi %717, %c10_i32 : i32
    %719 = arith.index_cast %718 : i32 to index
    %c0_166 = arith.constant 0 : index
    %720 = memref.load %arg2[%719, %c0_166] : memref<16x3xf32, #tpu.memory_space<smem>>
    %721 = vector.broadcast %720 : f32 to vector<32x128xf32>
    %722 = arith.mulf %721, %11 : vector<32x128xf32>
    %723 = arith.index_cast %718 : i32 to index
    %c0_167 = arith.constant 0 : index
    %724 = memref.load %arg3[%723, %c0_167] : memref<16x3xf32, #tpu.memory_space<smem>>
    %725 = vector.broadcast %724 : f32 to vector<32x128xf32>
    %726 = arith.mulf %725, %14 : vector<32x128xf32>
    %727 = arith.addf %722, %726 : vector<32x128xf32>
    %728 = arith.index_cast %718 : i32 to index
    %c1_168 = arith.constant 1 : index
    %729 = memref.load %arg2[%728, %c1_168] : memref<16x3xf32, #tpu.memory_space<smem>>
    %730 = vector.broadcast %729 : f32 to vector<32x128xf32>
    %731 = arith.mulf %730, %12 : vector<32x128xf32>
    %732 = arith.addf %727, %731 : vector<32x128xf32>
    %733 = arith.index_cast %718 : i32 to index
    %c1_169 = arith.constant 1 : index
    %734 = memref.load %arg3[%733, %c1_169] : memref<16x3xf32, #tpu.memory_space<smem>>
    %735 = vector.broadcast %734 : f32 to vector<32x128xf32>
    %736 = arith.mulf %735, %15 : vector<32x128xf32>
    %737 = arith.addf %732, %736 : vector<32x128xf32>
    %738 = arith.index_cast %718 : i32 to index
    %c2_170 = arith.constant 2 : index
    %739 = memref.load %arg2[%738, %c2_170] : memref<16x3xf32, #tpu.memory_space<smem>>
    %740 = vector.broadcast %739 : f32 to vector<32x128xf32>
    %741 = arith.mulf %740, %13 : vector<32x128xf32>
    %742 = arith.addf %737, %741 : vector<32x128xf32>
    %743 = arith.index_cast %718 : i32 to index
    %c2_171 = arith.constant 2 : index
    %744 = memref.load %arg3[%743, %c2_171] : memref<16x3xf32, #tpu.memory_space<smem>>
    %745 = vector.broadcast %744 : f32 to vector<32x128xf32>
    %746 = arith.mulf %745, %16 : vector<32x128xf32>
    %747 = arith.addf %742, %746 : vector<32x128xf32>
    %748 = arith.index_cast %718 : i32 to index
    %749 = memref.load %arg4[%748] : memref<16xf32, #tpu.memory_space<smem>>
    %750 = vector.broadcast %749 : f32 to vector<32x128xf32>
    %751 = arith.addf %747, %750 : vector<32x128xf32>
    %cst_172 = arith.constant dense<0.000000e+00> : vector<32xf32>
    %752 = vector.multi_reduction <add>, %751, %cst_172 [1] : vector<32x128xf32> to vector<32xf32>
    %753 = vector.shape_cast %752 : vector<32xf32> to vector<32x1xf32>
    %cst_173 = arith.constant dense<0.000000e+00> : vector<1xf32>
    %754 = vector.multi_reduction <add>, %753, %cst_173 [0] : vector<32x1xf32> to vector<1xf32>
    %755 = vector.shape_cast %754 : vector<1xf32> to vector<1x1xf32>
    %cst_174 = arith.constant 4.096000e+03 : f32
    %756 = vector.broadcast %cst_174 : f32 to vector<1x1xf32>
    %757 = arith.divf %755, %756 : vector<1x1xf32>
    %758 = arith.mulf %751, %751 : vector<32x128xf32>
    %cst_175 = arith.constant dense<0.000000e+00> : vector<32xf32>
    %759 = vector.multi_reduction <add>, %758, %cst_175 [1] : vector<32x128xf32> to vector<32xf32>
    %760 = vector.shape_cast %759 : vector<32xf32> to vector<32x1xf32>
    %cst_176 = arith.constant dense<0.000000e+00> : vector<1xf32>
    %761 = vector.multi_reduction <add>, %760, %cst_176 [0] : vector<32x1xf32> to vector<1xf32>
    %762 = vector.shape_cast %761 : vector<1xf32> to vector<1x1xf32>
    %cst_177 = arith.constant 4.096000e+03 : f32
    %763 = vector.broadcast %cst_177 : f32 to vector<1x1xf32>
    %764 = arith.divf %762, %763 : vector<1x1xf32>
    %765 = arith.mulf %757, %757 : vector<1x1xf32>
    %766 = arith.subf %764, %765 : vector<1x1xf32>
    %cst_178 = arith.constant 0.000000e+00 : f32
    %767 = vector.broadcast %cst_178 : f32 to vector<1x1xf32>
    %768 = arith.maximumf %766, %767 : vector<1x1xf32>
    %769 = arith.index_cast %718 : i32 to index
    %770 = memref.load %arg5[%769] : memref<16xf32, #tpu.memory_space<smem>>
    %cst_179 = arith.constant 9.99999974E-6 : f32
    %771 = vector.broadcast %cst_179 : f32 to vector<1x1xf32>
    %772 = arith.addf %768, %771 : vector<1x1xf32>
    %773 = math.rsqrt %772 : vector<1x1xf32>
    %774 = vector.broadcast %770 : f32 to vector<1x1xf32>
    %775 = arith.mulf %774, %773 : vector<1x1xf32>
    %776 = vector.broadcast %775 : vector<1x1xf32> to vector<32x128xf32>
    %777 = arith.mulf %751, %776 : vector<32x128xf32>
    %778 = arith.index_cast %718 : i32 to index
    %779 = memref.load %arg6[%778] : memref<16xf32, #tpu.memory_space<smem>>
    %780 = arith.mulf %757, %775 : vector<1x1xf32>
    %781 = vector.broadcast %779 : f32 to vector<1x1xf32>
    %782 = arith.subf %781, %780 : vector<1x1xf32>
    %783 = vector.broadcast %782 : vector<1x1xf32> to vector<32x128xf32>
    %784 = arith.addf %777, %783 : vector<32x128xf32>
    %cst_180 = arith.constant 0.000000e+00 : f32
    %785 = vector.broadcast %cst_180 : f32 to vector<32x128xf32>
    %786 = arith.maximumf %784, %785 : vector<32x128xf32>
    %c16_i32_181 = arith.constant 16 : i32
    %787 = arith.muli %arg0, %c16_i32_181 : i32
    %c11_i32 = arith.constant 11 : i32
    %788 = arith.addi %787, %c11_i32 : i32
    %789 = arith.index_cast %788 : i32 to index
    %c0_182 = arith.constant 0 : index
    %790 = memref.load %arg2[%789, %c0_182] : memref<16x3xf32, #tpu.memory_space<smem>>
    %791 = vector.broadcast %790 : f32 to vector<32x128xf32>
    %792 = arith.mulf %791, %11 : vector<32x128xf32>
    %793 = arith.index_cast %788 : i32 to index
    %c0_183 = arith.constant 0 : index
    %794 = memref.load %arg3[%793, %c0_183] : memref<16x3xf32, #tpu.memory_space<smem>>
    %795 = vector.broadcast %794 : f32 to vector<32x128xf32>
    %796 = arith.mulf %795, %14 : vector<32x128xf32>
    %797 = arith.addf %792, %796 : vector<32x128xf32>
    %798 = arith.index_cast %788 : i32 to index
    %c1_184 = arith.constant 1 : index
    %799 = memref.load %arg2[%798, %c1_184] : memref<16x3xf32, #tpu.memory_space<smem>>
    %800 = vector.broadcast %799 : f32 to vector<32x128xf32>
    %801 = arith.mulf %800, %12 : vector<32x128xf32>
    %802 = arith.addf %797, %801 : vector<32x128xf32>
    %803 = arith.index_cast %788 : i32 to index
    %c1_185 = arith.constant 1 : index
    %804 = memref.load %arg3[%803, %c1_185] : memref<16x3xf32, #tpu.memory_space<smem>>
    %805 = vector.broadcast %804 : f32 to vector<32x128xf32>
    %806 = arith.mulf %805, %15 : vector<32x128xf32>
    %807 = arith.addf %802, %806 : vector<32x128xf32>
    %808 = arith.index_cast %788 : i32 to index
    %c2_186 = arith.constant 2 : index
    %809 = memref.load %arg2[%808, %c2_186] : memref<16x3xf32, #tpu.memory_space<smem>>
    %810 = vector.broadcast %809 : f32 to vector<32x128xf32>
    %811 = arith.mulf %810, %13 : vector<32x128xf32>
    %812 = arith.addf %807, %811 : vector<32x128xf32>
    %813 = arith.index_cast %788 : i32 to index
    %c2_187 = arith.constant 2 : index
    %814 = memref.load %arg3[%813, %c2_187] : memref<16x3xf32, #tpu.memory_space<smem>>
    %815 = vector.broadcast %814 : f32 to vector<32x128xf32>
    %816 = arith.mulf %815, %16 : vector<32x128xf32>
    %817 = arith.addf %812, %816 : vector<32x128xf32>
    %818 = arith.index_cast %788 : i32 to index
    %819 = memref.load %arg4[%818] : memref<16xf32, #tpu.memory_space<smem>>
    %820 = vector.broadcast %819 : f32 to vector<32x128xf32>
    %821 = arith.addf %817, %820 : vector<32x128xf32>
    %cst_188 = arith.constant dense<0.000000e+00> : vector<32xf32>
    %822 = vector.multi_reduction <add>, %821, %cst_188 [1] : vector<32x128xf32> to vector<32xf32>
    %823 = vector.shape_cast %822 : vector<32xf32> to vector<32x1xf32>
    %cst_189 = arith.constant dense<0.000000e+00> : vector<1xf32>
    %824 = vector.multi_reduction <add>, %823, %cst_189 [0] : vector<32x1xf32> to vector<1xf32>
    %825 = vector.shape_cast %824 : vector<1xf32> to vector<1x1xf32>
    %cst_190 = arith.constant 4.096000e+03 : f32
    %826 = vector.broadcast %cst_190 : f32 to vector<1x1xf32>
    %827 = arith.divf %825, %826 : vector<1x1xf32>
    %828 = arith.mulf %821, %821 : vector<32x128xf32>
    %cst_191 = arith.constant dense<0.000000e+00> : vector<32xf32>
    %829 = vector.multi_reduction <add>, %828, %cst_191 [1] : vector<32x128xf32> to vector<32xf32>
    %830 = vector.shape_cast %829 : vector<32xf32> to vector<32x1xf32>
    %cst_192 = arith.constant dense<0.000000e+00> : vector<1xf32>
    %831 = vector.multi_reduction <add>, %830, %cst_192 [0] : vector<32x1xf32> to vector<1xf32>
    %832 = vector.shape_cast %831 : vector<1xf32> to vector<1x1xf32>
    %cst_193 = arith.constant 4.096000e+03 : f32
    %833 = vector.broadcast %cst_193 : f32 to vector<1x1xf32>
    %834 = arith.divf %832, %833 : vector<1x1xf32>
    %835 = arith.mulf %827, %827 : vector<1x1xf32>
    %836 = arith.subf %834, %835 : vector<1x1xf32>
    %cst_194 = arith.constant 0.000000e+00 : f32
    %837 = vector.broadcast %cst_194 : f32 to vector<1x1xf32>
    %838 = arith.maximumf %836, %837 : vector<1x1xf32>
    %839 = arith.index_cast %788 : i32 to index
    %840 = memref.load %arg5[%839] : memref<16xf32, #tpu.memory_space<smem>>
    %cst_195 = arith.constant 9.99999974E-6 : f32
    %841 = vector.broadcast %cst_195 : f32 to vector<1x1xf32>
    %842 = arith.addf %838, %841 : vector<1x1xf32>
    %843 = math.rsqrt %842 : vector<1x1xf32>
    %844 = vector.broadcast %840 : f32 to vector<1x1xf32>
    %845 = arith.mulf %844, %843 : vector<1x1xf32>
    %846 = vector.broadcast %845 : vector<1x1xf32> to vector<32x128xf32>
    %847 = arith.mulf %821, %846 : vector<32x128xf32>
    %848 = arith.index_cast %788 : i32 to index
    %849 = memref.load %arg6[%848] : memref<16xf32, #tpu.memory_space<smem>>
    %850 = arith.mulf %827, %845 : vector<1x1xf32>
    %851 = vector.broadcast %849 : f32 to vector<1x1xf32>
    %852 = arith.subf %851, %850 : vector<1x1xf32>
    %853 = vector.broadcast %852 : vector<1x1xf32> to vector<32x128xf32>
    %854 = arith.addf %847, %853 : vector<32x128xf32>
    %cst_196 = arith.constant 0.000000e+00 : f32
    %855 = vector.broadcast %cst_196 : f32 to vector<32x128xf32>
    %856 = arith.maximumf %854, %855 : vector<32x128xf32>
    %c16_i32_197 = arith.constant 16 : i32
    %857 = arith.muli %arg0, %c16_i32_197 : i32
    %c12_i32 = arith.constant 12 : i32
    %858 = arith.addi %857, %c12_i32 : i32
    %859 = arith.index_cast %858 : i32 to index
    %c0_198 = arith.constant 0 : index
    %860 = memref.load %arg2[%859, %c0_198] : memref<16x3xf32, #tpu.memory_space<smem>>
    %861 = vector.broadcast %860 : f32 to vector<32x128xf32>
    %862 = arith.mulf %861, %11 : vector<32x128xf32>
    %863 = arith.index_cast %858 : i32 to index
    %c0_199 = arith.constant 0 : index
    %864 = memref.load %arg3[%863, %c0_199] : memref<16x3xf32, #tpu.memory_space<smem>>
    %865 = vector.broadcast %864 : f32 to vector<32x128xf32>
    %866 = arith.mulf %865, %14 : vector<32x128xf32>
    %867 = arith.addf %862, %866 : vector<32x128xf32>
    %868 = arith.index_cast %858 : i32 to index
    %c1_200 = arith.constant 1 : index
    %869 = memref.load %arg2[%868, %c1_200] : memref<16x3xf32, #tpu.memory_space<smem>>
    %870 = vector.broadcast %869 : f32 to vector<32x128xf32>
    %871 = arith.mulf %870, %12 : vector<32x128xf32>
    %872 = arith.addf %867, %871 : vector<32x128xf32>
    %873 = arith.index_cast %858 : i32 to index
    %c1_201 = arith.constant 1 : index
    %874 = memref.load %arg3[%873, %c1_201] : memref<16x3xf32, #tpu.memory_space<smem>>
    %875 = vector.broadcast %874 : f32 to vector<32x128xf32>
    %876 = arith.mulf %875, %15 : vector<32x128xf32>
    %877 = arith.addf %872, %876 : vector<32x128xf32>
    %878 = arith.index_cast %858 : i32 to index
    %c2_202 = arith.constant 2 : index
    %879 = memref.load %arg2[%878, %c2_202] : memref<16x3xf32, #tpu.memory_space<smem>>
    %880 = vector.broadcast %879 : f32 to vector<32x128xf32>
    %881 = arith.mulf %880, %13 : vector<32x128xf32>
    %882 = arith.addf %877, %881 : vector<32x128xf32>
    %883 = arith.index_cast %858 : i32 to index
    %c2_203 = arith.constant 2 : index
    %884 = memref.load %arg3[%883, %c2_203] : memref<16x3xf32, #tpu.memory_space<smem>>
    %885 = vector.broadcast %884 : f32 to vector<32x128xf32>
    %886 = arith.mulf %885, %16 : vector<32x128xf32>
    %887 = arith.addf %882, %886 : vector<32x128xf32>
    %888 = arith.index_cast %858 : i32 to index
    %889 = memref.load %arg4[%888] : memref<16xf32, #tpu.memory_space<smem>>
    %890 = vector.broadcast %889 : f32 to vector<32x128xf32>
    %891 = arith.addf %887, %890 : vector<32x128xf32>
    %cst_204 = arith.constant dense<0.000000e+00> : vector<32xf32>
    %892 = vector.multi_reduction <add>, %891, %cst_204 [1] : vector<32x128xf32> to vector<32xf32>
    %893 = vector.shape_cast %892 : vector<32xf32> to vector<32x1xf32>
    %cst_205 = arith.constant dense<0.000000e+00> : vector<1xf32>
    %894 = vector.multi_reduction <add>, %893, %cst_205 [0] : vector<32x1xf32> to vector<1xf32>
    %895 = vector.shape_cast %894 : vector<1xf32> to vector<1x1xf32>
    %cst_206 = arith.constant 4.096000e+03 : f32
    %896 = vector.broadcast %cst_206 : f32 to vector<1x1xf32>
    %897 = arith.divf %895, %896 : vector<1x1xf32>
    %898 = arith.mulf %891, %891 : vector<32x128xf32>
    %cst_207 = arith.constant dense<0.000000e+00> : vector<32xf32>
    %899 = vector.multi_reduction <add>, %898, %cst_207 [1] : vector<32x128xf32> to vector<32xf32>
    %900 = vector.shape_cast %899 : vector<32xf32> to vector<32x1xf32>
    %cst_208 = arith.constant dense<0.000000e+00> : vector<1xf32>
    %901 = vector.multi_reduction <add>, %900, %cst_208 [0] : vector<32x1xf32> to vector<1xf32>
    %902 = vector.shape_cast %901 : vector<1xf32> to vector<1x1xf32>
    %cst_209 = arith.constant 4.096000e+03 : f32
    %903 = vector.broadcast %cst_209 : f32 to vector<1x1xf32>
    %904 = arith.divf %902, %903 : vector<1x1xf32>
    %905 = arith.mulf %897, %897 : vector<1x1xf32>
    %906 = arith.subf %904, %905 : vector<1x1xf32>
    %cst_210 = arith.constant 0.000000e+00 : f32
    %907 = vector.broadcast %cst_210 : f32 to vector<1x1xf32>
    %908 = arith.maximumf %906, %907 : vector<1x1xf32>
    %909 = arith.index_cast %858 : i32 to index
    %910 = memref.load %arg5[%909] : memref<16xf32, #tpu.memory_space<smem>>
    %cst_211 = arith.constant 9.99999974E-6 : f32
    %911 = vector.broadcast %cst_211 : f32 to vector<1x1xf32>
    %912 = arith.addf %908, %911 : vector<1x1xf32>
    %913 = math.rsqrt %912 : vector<1x1xf32>
    %914 = vector.broadcast %910 : f32 to vector<1x1xf32>
    %915 = arith.mulf %914, %913 : vector<1x1xf32>
    %916 = vector.broadcast %915 : vector<1x1xf32> to vector<32x128xf32>
    %917 = arith.mulf %891, %916 : vector<32x128xf32>
    %918 = arith.index_cast %858 : i32 to index
    %919 = memref.load %arg6[%918] : memref<16xf32, #tpu.memory_space<smem>>
    %920 = arith.mulf %897, %915 : vector<1x1xf32>
    %921 = vector.broadcast %919 : f32 to vector<1x1xf32>
    %922 = arith.subf %921, %920 : vector<1x1xf32>
    %923 = vector.broadcast %922 : vector<1x1xf32> to vector<32x128xf32>
    %924 = arith.addf %917, %923 : vector<32x128xf32>
    %cst_212 = arith.constant 0.000000e+00 : f32
    %925 = vector.broadcast %cst_212 : f32 to vector<32x128xf32>
    %926 = arith.maximumf %924, %925 : vector<32x128xf32>
    %c16_i32_213 = arith.constant 16 : i32
    %927 = arith.muli %arg0, %c16_i32_213 : i32
    %c13_i32 = arith.constant 13 : i32
    %928 = arith.addi %927, %c13_i32 : i32
    %929 = arith.index_cast %928 : i32 to index
    %c0_214 = arith.constant 0 : index
    %930 = memref.load %arg2[%929, %c0_214] : memref<16x3xf32, #tpu.memory_space<smem>>
    %931 = vector.broadcast %930 : f32 to vector<32x128xf32>
    %932 = arith.mulf %931, %11 : vector<32x128xf32>
    %933 = arith.index_cast %928 : i32 to index
    %c0_215 = arith.constant 0 : index
    %934 = memref.load %arg3[%933, %c0_215] : memref<16x3xf32, #tpu.memory_space<smem>>
    %935 = vector.broadcast %934 : f32 to vector<32x128xf32>
    %936 = arith.mulf %935, %14 : vector<32x128xf32>
    %937 = arith.addf %932, %936 : vector<32x128xf32>
    %938 = arith.index_cast %928 : i32 to index
    %c1_216 = arith.constant 1 : index
    %939 = memref.load %arg2[%938, %c1_216] : memref<16x3xf32, #tpu.memory_space<smem>>
    %940 = vector.broadcast %939 : f32 to vector<32x128xf32>
    %941 = arith.mulf %940, %12 : vector<32x128xf32>
    %942 = arith.addf %937, %941 : vector<32x128xf32>
    %943 = arith.index_cast %928 : i32 to index
    %c1_217 = arith.constant 1 : index
    %944 = memref.load %arg3[%943, %c1_217] : memref<16x3xf32, #tpu.memory_space<smem>>
    %945 = vector.broadcast %944 : f32 to vector<32x128xf32>
    %946 = arith.mulf %945, %15 : vector<32x128xf32>
    %947 = arith.addf %942, %946 : vector<32x128xf32>
    %948 = arith.index_cast %928 : i32 to index
    %c2_218 = arith.constant 2 : index
    %949 = memref.load %arg2[%948, %c2_218] : memref<16x3xf32, #tpu.memory_space<smem>>
    %950 = vector.broadcast %949 : f32 to vector<32x128xf32>
    %951 = arith.mulf %950, %13 : vector<32x128xf32>
    %952 = arith.addf %947, %951 : vector<32x128xf32>
    %953 = arith.index_cast %928 : i32 to index
    %c2_219 = arith.constant 2 : index
    %954 = memref.load %arg3[%953, %c2_219] : memref<16x3xf32, #tpu.memory_space<smem>>
    %955 = vector.broadcast %954 : f32 to vector<32x128xf32>
    %956 = arith.mulf %955, %16 : vector<32x128xf32>
    %957 = arith.addf %952, %956 : vector<32x128xf32>
    %958 = arith.index_cast %928 : i32 to index
    %959 = memref.load %arg4[%958] : memref<16xf32, #tpu.memory_space<smem>>
    %960 = vector.broadcast %959 : f32 to vector<32x128xf32>
    %961 = arith.addf %957, %960 : vector<32x128xf32>
    %cst_220 = arith.constant dense<0.000000e+00> : vector<32xf32>
    %962 = vector.multi_reduction <add>, %961, %cst_220 [1] : vector<32x128xf32> to vector<32xf32>
    %963 = vector.shape_cast %962 : vector<32xf32> to vector<32x1xf32>
    %cst_221 = arith.constant dense<0.000000e+00> : vector<1xf32>
    %964 = vector.multi_reduction <add>, %963, %cst_221 [0] : vector<32x1xf32> to vector<1xf32>
    %965 = vector.shape_cast %964 : vector<1xf32> to vector<1x1xf32>
    %cst_222 = arith.constant 4.096000e+03 : f32
    %966 = vector.broadcast %cst_222 : f32 to vector<1x1xf32>
    %967 = arith.divf %965, %966 : vector<1x1xf32>
    %968 = arith.mulf %961, %961 : vector<32x128xf32>
    %cst_223 = arith.constant dense<0.000000e+00> : vector<32xf32>
    %969 = vector.multi_reduction <add>, %968, %cst_223 [1] : vector<32x128xf32> to vector<32xf32>
    %970 = vector.shape_cast %969 : vector<32xf32> to vector<32x1xf32>
    %cst_224 = arith.constant dense<0.000000e+00> : vector<1xf32>
    %971 = vector.multi_reduction <add>, %970, %cst_224 [0] : vector<32x1xf32> to vector<1xf32>
    %972 = vector.shape_cast %971 : vector<1xf32> to vector<1x1xf32>
    %cst_225 = arith.constant 4.096000e+03 : f32
    %973 = vector.broadcast %cst_225 : f32 to vector<1x1xf32>
    %974 = arith.divf %972, %973 : vector<1x1xf32>
    %975 = arith.mulf %967, %967 : vector<1x1xf32>
    %976 = arith.subf %974, %975 : vector<1x1xf32>
    %cst_226 = arith.constant 0.000000e+00 : f32
    %977 = vector.broadcast %cst_226 : f32 to vector<1x1xf32>
    %978 = arith.maximumf %976, %977 : vector<1x1xf32>
    %979 = arith.index_cast %928 : i32 to index
    %980 = memref.load %arg5[%979] : memref<16xf32, #tpu.memory_space<smem>>
    %cst_227 = arith.constant 9.99999974E-6 : f32
    %981 = vector.broadcast %cst_227 : f32 to vector<1x1xf32>
    %982 = arith.addf %978, %981 : vector<1x1xf32>
    %983 = math.rsqrt %982 : vector<1x1xf32>
    %984 = vector.broadcast %980 : f32 to vector<1x1xf32>
    %985 = arith.mulf %984, %983 : vector<1x1xf32>
    %986 = vector.broadcast %985 : vector<1x1xf32> to vector<32x128xf32>
    %987 = arith.mulf %961, %986 : vector<32x128xf32>
    %988 = arith.index_cast %928 : i32 to index
    %989 = memref.load %arg6[%988] : memref<16xf32, #tpu.memory_space<smem>>
    %990 = arith.mulf %967, %985 : vector<1x1xf32>
    %991 = vector.broadcast %989 : f32 to vector<1x1xf32>
    %992 = arith.subf %991, %990 : vector<1x1xf32>
    %993 = vector.broadcast %992 : vector<1x1xf32> to vector<32x128xf32>
    %994 = arith.addf %987, %993 : vector<32x128xf32>
    %cst_228 = arith.constant 0.000000e+00 : f32
    %995 = vector.broadcast %cst_228 : f32 to vector<32x128xf32>
    %996 = arith.maximumf %994, %995 : vector<32x128xf32>
    %c16_i32_229 = arith.constant 16 : i32
    %997 = arith.muli %arg0, %c16_i32_229 : i32
    %c14_i32 = arith.constant 14 : i32
    %998 = arith.addi %997, %c14_i32 : i32
    %999 = arith.index_cast %998 : i32 to index
    %c0_230 = arith.constant 0 : index
    %1000 = memref.load %arg2[%999, %c0_230] : memref<16x3xf32, #tpu.memory_space<smem>>
    %1001 = vector.broadcast %1000 : f32 to vector<32x128xf32>
    %1002 = arith.mulf %1001, %11 : vector<32x128xf32>
    %1003 = arith.index_cast %998 : i32 to index
    %c0_231 = arith.constant 0 : index
    %1004 = memref.load %arg3[%1003, %c0_231] : memref<16x3xf32, #tpu.memory_space<smem>>
    %1005 = vector.broadcast %1004 : f32 to vector<32x128xf32>
    %1006 = arith.mulf %1005, %14 : vector<32x128xf32>
    %1007 = arith.addf %1002, %1006 : vector<32x128xf32>
    %1008 = arith.index_cast %998 : i32 to index
    %c1_232 = arith.constant 1 : index
    %1009 = memref.load %arg2[%1008, %c1_232] : memref<16x3xf32, #tpu.memory_space<smem>>
    %1010 = vector.broadcast %1009 : f32 to vector<32x128xf32>
    %1011 = arith.mulf %1010, %12 : vector<32x128xf32>
    %1012 = arith.addf %1007, %1011 : vector<32x128xf32>
    %1013 = arith.index_cast %998 : i32 to index
    %c1_233 = arith.constant 1 : index
    %1014 = memref.load %arg3[%1013, %c1_233] : memref<16x3xf32, #tpu.memory_space<smem>>
    %1015 = vector.broadcast %1014 : f32 to vector<32x128xf32>
    %1016 = arith.mulf %1015, %15 : vector<32x128xf32>
    %1017 = arith.addf %1012, %1016 : vector<32x128xf32>
    %1018 = arith.index_cast %998 : i32 to index
    %c2_234 = arith.constant 2 : index
    %1019 = memref.load %arg2[%1018, %c2_234] : memref<16x3xf32, #tpu.memory_space<smem>>
    %1020 = vector.broadcast %1019 : f32 to vector<32x128xf32>
    %1021 = arith.mulf %1020, %13 : vector<32x128xf32>
    %1022 = arith.addf %1017, %1021 : vector<32x128xf32>
    %1023 = arith.index_cast %998 : i32 to index
    %c2_235 = arith.constant 2 : index
    %1024 = memref.load %arg3[%1023, %c2_235] : memref<16x3xf32, #tpu.memory_space<smem>>
    %1025 = vector.broadcast %1024 : f32 to vector<32x128xf32>
    %1026 = arith.mulf %1025, %16 : vector<32x128xf32>
    %1027 = arith.addf %1022, %1026 : vector<32x128xf32>
    %1028 = arith.index_cast %998 : i32 to index
    %1029 = memref.load %arg4[%1028] : memref<16xf32, #tpu.memory_space<smem>>
    %1030 = vector.broadcast %1029 : f32 to vector<32x128xf32>
    %1031 = arith.addf %1027, %1030 : vector<32x128xf32>
    %cst_236 = arith.constant dense<0.000000e+00> : vector<32xf32>
    %1032 = vector.multi_reduction <add>, %1031, %cst_236 [1] : vector<32x128xf32> to vector<32xf32>
    %1033 = vector.shape_cast %1032 : vector<32xf32> to vector<32x1xf32>
    %cst_237 = arith.constant dense<0.000000e+00> : vector<1xf32>
    %1034 = vector.multi_reduction <add>, %1033, %cst_237 [0] : vector<32x1xf32> to vector<1xf32>
    %1035 = vector.shape_cast %1034 : vector<1xf32> to vector<1x1xf32>
    %cst_238 = arith.constant 4.096000e+03 : f32
    %1036 = vector.broadcast %cst_238 : f32 to vector<1x1xf32>
    %1037 = arith.divf %1035, %1036 : vector<1x1xf32>
    %1038 = arith.mulf %1031, %1031 : vector<32x128xf32>
    %cst_239 = arith.constant dense<0.000000e+00> : vector<32xf32>
    %1039 = vector.multi_reduction <add>, %1038, %cst_239 [1] : vector<32x128xf32> to vector<32xf32>
    %1040 = vector.shape_cast %1039 : vector<32xf32> to vector<32x1xf32>
    %cst_240 = arith.constant dense<0.000000e+00> : vector<1xf32>
    %1041 = vector.multi_reduction <add>, %1040, %cst_240 [0] : vector<32x1xf32> to vector<1xf32>
    %1042 = vector.shape_cast %1041 : vector<1xf32> to vector<1x1xf32>
    %cst_241 = arith.constant 4.096000e+03 : f32
    %1043 = vector.broadcast %cst_241 : f32 to vector<1x1xf32>
    %1044 = arith.divf %1042, %1043 : vector<1x1xf32>
    %1045 = arith.mulf %1037, %1037 : vector<1x1xf32>
    %1046 = arith.subf %1044, %1045 : vector<1x1xf32>
    %cst_242 = arith.constant 0.000000e+00 : f32
    %1047 = vector.broadcast %cst_242 : f32 to vector<1x1xf32>
    %1048 = arith.maximumf %1046, %1047 : vector<1x1xf32>
    %1049 = arith.index_cast %998 : i32 to index
    %1050 = memref.load %arg5[%1049] : memref<16xf32, #tpu.memory_space<smem>>
    %cst_243 = arith.constant 9.99999974E-6 : f32
    %1051 = vector.broadcast %cst_243 : f32 to vector<1x1xf32>
    %1052 = arith.addf %1048, %1051 : vector<1x1xf32>
    %1053 = math.rsqrt %1052 : vector<1x1xf32>
    %1054 = vector.broadcast %1050 : f32 to vector<1x1xf32>
    %1055 = arith.mulf %1054, %1053 : vector<1x1xf32>
    %1056 = vector.broadcast %1055 : vector<1x1xf32> to vector<32x128xf32>
    %1057 = arith.mulf %1031, %1056 : vector<32x128xf32>
    %1058 = arith.index_cast %998 : i32 to index
    %1059 = memref.load %arg6[%1058] : memref<16xf32, #tpu.memory_space<smem>>
    %1060 = arith.mulf %1037, %1055 : vector<1x1xf32>
    %1061 = vector.broadcast %1059 : f32 to vector<1x1xf32>
    %1062 = arith.subf %1061, %1060 : vector<1x1xf32>
    %1063 = vector.broadcast %1062 : vector<1x1xf32> to vector<32x128xf32>
    %1064 = arith.addf %1057, %1063 : vector<32x128xf32>
    %cst_244 = arith.constant 0.000000e+00 : f32
    %1065 = vector.broadcast %cst_244 : f32 to vector<32x128xf32>
    %1066 = arith.maximumf %1064, %1065 : vector<32x128xf32>
    %c16_i32_245 = arith.constant 16 : i32
    %1067 = arith.muli %arg0, %c16_i32_245 : i32
    %c15_i32 = arith.constant 15 : i32
    %1068 = arith.addi %1067, %c15_i32 : i32
    %1069 = arith.index_cast %1068 : i32 to index
    %c0_246 = arith.constant 0 : index
    %1070 = memref.load %arg2[%1069, %c0_246] : memref<16x3xf32, #tpu.memory_space<smem>>
    %1071 = vector.broadcast %1070 : f32 to vector<32x128xf32>
    %1072 = arith.mulf %1071, %11 : vector<32x128xf32>
    %1073 = arith.index_cast %1068 : i32 to index
    %c0_247 = arith.constant 0 : index
    %1074 = memref.load %arg3[%1073, %c0_247] : memref<16x3xf32, #tpu.memory_space<smem>>
    %1075 = vector.broadcast %1074 : f32 to vector<32x128xf32>
    %1076 = arith.mulf %1075, %14 : vector<32x128xf32>
    %1077 = arith.addf %1072, %1076 : vector<32x128xf32>
    %1078 = arith.index_cast %1068 : i32 to index
    %c1_248 = arith.constant 1 : index
    %1079 = memref.load %arg2[%1078, %c1_248] : memref<16x3xf32, #tpu.memory_space<smem>>
    %1080 = vector.broadcast %1079 : f32 to vector<32x128xf32>
    %1081 = arith.mulf %1080, %12 : vector<32x128xf32>
    %1082 = arith.addf %1077, %1081 : vector<32x128xf32>
    %1083 = arith.index_cast %1068 : i32 to index
    %c1_249 = arith.constant 1 : index
    %1084 = memref.load %arg3[%1083, %c1_249] : memref<16x3xf32, #tpu.memory_space<smem>>
    %1085 = vector.broadcast %1084 : f32 to vector<32x128xf32>
    %1086 = arith.mulf %1085, %15 : vector<32x128xf32>
    %1087 = arith.addf %1082, %1086 : vector<32x128xf32>
    %1088 = arith.index_cast %1068 : i32 to index
    %c2_250 = arith.constant 2 : index
    %1089 = memref.load %arg2[%1088, %c2_250] : memref<16x3xf32, #tpu.memory_space<smem>>
    %1090 = vector.broadcast %1089 : f32 to vector<32x128xf32>
    %1091 = arith.mulf %1090, %13 : vector<32x128xf32>
    %1092 = arith.addf %1087, %1091 : vector<32x128xf32>
    %1093 = arith.index_cast %1068 : i32 to index
    %c2_251 = arith.constant 2 : index
    %1094 = memref.load %arg3[%1093, %c2_251] : memref<16x3xf32, #tpu.memory_space<smem>>
    %1095 = vector.broadcast %1094 : f32 to vector<32x128xf32>
    %1096 = arith.mulf %1095, %16 : vector<32x128xf32>
    %1097 = arith.addf %1092, %1096 : vector<32x128xf32>
    %1098 = arith.index_cast %1068 : i32 to index
    %1099 = memref.load %arg4[%1098] : memref<16xf32, #tpu.memory_space<smem>>
    %1100 = vector.broadcast %1099 : f32 to vector<32x128xf32>
    %1101 = arith.addf %1097, %1100 : vector<32x128xf32>
    %cst_252 = arith.constant dense<0.000000e+00> : vector<32xf32>
    %1102 = vector.multi_reduction <add>, %1101, %cst_252 [1] : vector<32x128xf32> to vector<32xf32>
    %1103 = vector.shape_cast %1102 : vector<32xf32> to vector<32x1xf32>
    %cst_253 = arith.constant dense<0.000000e+00> : vector<1xf32>
    %1104 = vector.multi_reduction <add>, %1103, %cst_253 [0] : vector<32x1xf32> to vector<1xf32>
    %1105 = vector.shape_cast %1104 : vector<1xf32> to vector<1x1xf32>
    %cst_254 = arith.constant 4.096000e+03 : f32
    %1106 = vector.broadcast %cst_254 : f32 to vector<1x1xf32>
    %1107 = arith.divf %1105, %1106 : vector<1x1xf32>
    %1108 = arith.mulf %1101, %1101 : vector<32x128xf32>
    %cst_255 = arith.constant dense<0.000000e+00> : vector<32xf32>
    %1109 = vector.multi_reduction <add>, %1108, %cst_255 [1] : vector<32x128xf32> to vector<32xf32>
    %1110 = vector.shape_cast %1109 : vector<32xf32> to vector<32x1xf32>
    %cst_256 = arith.constant dense<0.000000e+00> : vector<1xf32>
    %1111 = vector.multi_reduction <add>, %1110, %cst_256 [0] : vector<32x1xf32> to vector<1xf32>
    %1112 = vector.shape_cast %1111 : vector<1xf32> to vector<1x1xf32>
    %cst_257 = arith.constant 4.096000e+03 : f32
    %1113 = vector.broadcast %cst_257 : f32 to vector<1x1xf32>
    %1114 = arith.divf %1112, %1113 : vector<1x1xf32>
    %1115 = arith.mulf %1107, %1107 : vector<1x1xf32>
    %1116 = arith.subf %1114, %1115 : vector<1x1xf32>
    %cst_258 = arith.constant 0.000000e+00 : f32
    %1117 = vector.broadcast %cst_258 : f32 to vector<1x1xf32>
    %1118 = arith.maximumf %1116, %1117 : vector<1x1xf32>
    %1119 = arith.index_cast %1068 : i32 to index
    %1120 = memref.load %arg5[%1119] : memref<16xf32, #tpu.memory_space<smem>>
    %cst_259 = arith.constant 9.99999974E-6 : f32
    %1121 = vector.broadcast %cst_259 : f32 to vector<1x1xf32>
    %1122 = arith.addf %1118, %1121 : vector<1x1xf32>
    %1123 = math.rsqrt %1122 : vector<1x1xf32>
    %1124 = vector.broadcast %1120 : f32 to vector<1x1xf32>
    %1125 = arith.mulf %1124, %1123 : vector<1x1xf32>
    %1126 = vector.broadcast %1125 : vector<1x1xf32> to vector<32x128xf32>
    %1127 = arith.mulf %1101, %1126 : vector<32x128xf32>
    %1128 = arith.index_cast %1068 : i32 to index
    %1129 = memref.load %arg6[%1128] : memref<16xf32, #tpu.memory_space<smem>>
    %1130 = arith.mulf %1107, %1125 : vector<1x1xf32>
    %1131 = vector.broadcast %1129 : f32 to vector<1x1xf32>
    %1132 = arith.subf %1131, %1130 : vector<1x1xf32>
    %1133 = vector.broadcast %1132 : vector<1x1xf32> to vector<32x128xf32>
    %1134 = arith.addf %1127, %1133 : vector<32x128xf32>
    %cst_260 = arith.constant 0.000000e+00 : f32
    %1135 = vector.broadcast %cst_260 : f32 to vector<32x128xf32>
    %1136 = arith.maximumf %1134, %1135 : vector<32x128xf32>
    %1137 = tpu.concatenate %86, %156, %226, %296, %366, %436, %506, %576, %646, %716, %786, %856, %926, %996, %1066, %1136 in 1 : vector<32x128xf32>, vector<32x128xf32>, vector<32x128xf32>, vector<32x128xf32>, vector<32x128xf32>, vector<32x128xf32>, vector<32x128xf32>, vector<32x128xf32>, vector<32x128xf32>, vector<32x128xf32>, vector<32x128xf32>, vector<32x128xf32>, vector<32x128xf32>, vector<32x128xf32>, vector<32x128xf32>, vector<32x128xf32> -> vector<32x2048xf32>
    %1138 = arith.truncf %1137 : vector<32x2048xf32> to vector<32x2048xbf16>
    %c0_261 = arith.constant 0 : index
    %c0_262 = arith.constant 0 : index
    %1139 = vector.load %arg15[%c0_261, %c0_262] : memref<32x128xf32, #tpu.memory_space<vmem>>, vector<32x128xf32>
    %c0_263 = arith.constant 0 : index
    %c0_264 = arith.constant 0 : index
    %1140 = vector.load %arg9[%c0_263, %c0_264] : memref<2048x128xbf16, #tpu.memory_space<vmem>>, vector<2048x128xbf16>
    %cst_265 = arith.constant dense<0.000000e+00> : vector<32x128xf32>
    %1141 = tpu.matmul %1138, %1140, %cst_265 {dimension_numbers = #tpu.dot_dimension_numbers<[1], [0], [0], [1], [0, 0, 1, 1], [], []>} : vector<32x2048xbf16>, vector<2048x128xbf16>, vector<32x128xf32> -> vector<32x128xf32>
    %1142 = arith.addf %1139, %1141 : vector<32x128xf32>
    %c0_266 = arith.constant 0 : index
    %c0_267 = arith.constant 0 : index
    %1143 = vector.load %arg15[%c0_266, %c0_267] : memref<32x128xf32, #tpu.memory_space<vmem>>, vector<32x128xf32>
    tpu.vector_store %arg15[%c0_266, %c0_267], %1142 {strides = array<i32>} : memref<32x128xf32, #tpu.memory_space<vmem>>, vector<32x128xf32>,
    %c0_i32_268 = arith.constant 0 : i32
    %1144 = arith.cmpi eq, %arg0, %c0_i32_268 : i32
    %1145 = arith.extui %1144 : i1 to i32
    %c0_i32_269 = arith.constant 0 : i32
    %1146 = arith.cmpi ne, %1145, %c0_i32_269 : i32
    scf.if %1146 {
      %c0_270 = arith.constant 0 : index
      %c0_271 = arith.constant 0 : index
      %1147 = vector.load %arg15[%c0_270, %c0_271] : memref<32x128xf32, #tpu.memory_space<vmem>>, vector<32x128xf32>
      %cst_272 = arith.constant dense<0.000000e+00> : vector<128xf32>
      %1148 = vector.multi_reduction <add>, %1147, %cst_272 [0] : vector<32x128xf32> to vector<128xf32>
      %1149 = vector.shape_cast %1148 : vector<128xf32> to vector<1x128xf32>
      %cst_273 = arith.constant 3.200000e+01 : f32
      %1150 = vector.broadcast %cst_273 : f32 to vector<1x128xf32>
      %1151 = arith.divf %1149, %1150 : vector<1x128xf32>
      %1152 = arith.mulf %1147, %1147 : vector<32x128xf32>
      %cst_274 = arith.constant dense<0.000000e+00> : vector<128xf32>
      %1153 = vector.multi_reduction <add>, %1152, %cst_274 [0] : vector<32x128xf32> to vector<128xf32>
      %1154 = vector.shape_cast %1153 : vector<128xf32> to vector<1x128xf32>
      %cst_275 = arith.constant 3.200000e+01 : f32
      %1155 = vector.broadcast %cst_275 : f32 to vector<1x128xf32>
      %1156 = arith.divf %1154, %1155 : vector<1x128xf32>
      %1157 = arith.mulf %1151, %1151 : vector<1x128xf32>
      %1158 = arith.subf %1156, %1157 : vector<1x128xf32>
      %cst_276 = arith.constant 0.000000e+00 : f32
      %1159 = vector.broadcast %cst_276 : f32 to vector<1x128xf32>
      %1160 = arith.maximumf %1158, %1159 : vector<1x128xf32>
      %c0_277 = arith.constant 0 : index
      %c0_278 = arith.constant 0 : index
      %1161 = vector.load %arg10[%c0_277, %c0_278] : memref<1x128xf32, #tpu.memory_space<vmem>>, vector<1x128xf32>
      %cst_279 = arith.constant 9.99999974E-6 : f32
      %1162 = vector.broadcast %cst_279 : f32 to vector<1x128xf32>
      %1163 = arith.addf %1160, %1162 : vector<1x128xf32>
      %1164 = math.rsqrt %1163 : vector<1x128xf32>
      %1165 = arith.mulf %1161, %1164 : vector<1x128xf32>
      %1166 = vector.broadcast %1165 : vector<1x128xf32> to vector<32x128xf32>
      %1167 = arith.mulf %1147, %1166 : vector<32x128xf32>
      %c0_280 = arith.constant 0 : index
      %c0_281 = arith.constant 0 : index
      %1168 = vector.load %arg11[%c0_280, %c0_281] : memref<1x128xf32, #tpu.memory_space<vmem>>, vector<1x128xf32>
      %1169 = arith.mulf %1151, %1165 : vector<1x128xf32>
      %1170 = arith.subf %1168, %1169 : vector<1x128xf32>
      %1171 = vector.broadcast %1170 : vector<1x128xf32> to vector<32x128xf32>
      %1172 = arith.addf %1167, %1171 : vector<32x128xf32>
      %cst_282 = arith.constant 0.000000e+00 : f32
      %1173 = vector.broadcast %cst_282 : f32 to vector<32x128xf32>
      %1174 = arith.maximumf %1172, %1173 : vector<32x128xf32>
      %c0_283 = arith.constant 0 : index
      %c0_284 = arith.constant 0 : index
      %1175 = vector.load %arg12[%c0_283, %c0_284] : memref<32x128xf32, #tpu.memory_space<vmem>>, vector<32x128xf32>
      tpu.vector_store %arg12[%c0_283, %c0_284], %1174 {strides = array<i32>} : memref<32x128xf32, #tpu.memory_space<vmem>>, vector<32x128xf32>,
    } else {
    }
    return
  }
  func.func @transform_0(%arg0: i32) -> i32 {
    %c0_i32 = arith.constant 0 : i32
    %c0_i32_0 = arith.constant 0 : i32
    return %c0_i32 : i32
  }
  func.func @transform_1(%arg0: i32) -> (i32, i32) {
    %c0_i32 = arith.constant 0 : i32
    %c0_i32_0 = arith.constant 0 : i32
    %c0_i32_1 = arith.constant 0 : i32
    return %c0_i32, %c0_i32_0 : i32, i32
  }
  func.func @transform_2(%arg0: i32) -> (i32, i32) {
    %c0_i32 = arith.constant 0 : i32
    %c0_i32_0 = arith.constant 0 : i32
    %c0_i32_1 = arith.constant 0 : i32
    return %c0_i32, %c0_i32_0 : i32, i32
  }
  func.func @transform_3(%arg0: i32) -> i32 {
    %c0_i32 = arith.constant 0 : i32
    %c0_i32_0 = arith.constant 0 : i32
    return %c0_i32 : i32
  }
  func.func @transform_4(%arg0: i32) -> i32 {
    %c0_i32 = arith.constant 0 : i32
    %c0_i32_0 = arith.constant 0 : i32
    return %c0_i32 : i32
  }
  func.func @transform_5(%arg0: i32) -> i32 {
    %c0_i32 = arith.constant 0 : i32
    %c0_i32_0 = arith.constant 0 : i32
    return %c0_i32 : i32
  }
  func.func @transform_6(%arg0: i32) -> (i32, i32) {
    %c0_i32 = arith.constant 0 : i32
    %c0_i32_0 = arith.constant 0 : i32
    %c0_i32_1 = arith.constant 0 : i32
    return %c0_i32, %c0_i32_0 : i32, i32
  }
  func.func @transform_7(%arg0: i32) -> (i32, i32) {
    %c0_i32 = arith.constant 0 : i32
    %c0_i32_0 = arith.constant 0 : i32
    %c0_i32_1 = arith.constant 0 : i32
    return %c0_i32, %c0_i32_0 : i32, i32
  }
  func.func @transform_8(%arg0: i32) -> (i32, i32) {
    %c0_i32 = arith.constant 0 : i32
    %c0_i32_0 = arith.constant 0 : i32
    return %arg0, %c0_i32 : i32, i32
  }
  func.func @transform_9(%arg0: i32) -> (i32, i32) {
    %c0_i32 = arith.constant 0 : i32
    %c0_i32_0 = arith.constant 0 : i32
    %c0_i32_1 = arith.constant 0 : i32
    return %c0_i32, %c0_i32_0 : i32, i32
  }
  func.func @transform_10(%arg0: i32) -> (i32, i32) {
    %c0_i32 = arith.constant 0 : i32
    %c0_i32_0 = arith.constant 0 : i32
    %c0_i32_1 = arith.constant 0 : i32
    return %c0_i32, %c0_i32_0 : i32, i32
  }
  func.func @transform_11(%arg0: i32) -> (i32, i32) {
    %c0_i32 = arith.constant 0 : i32
    %c0_i32_0 = arith.constant 0 : i32
    %c0_i32_1 = arith.constant 0 : i32
    return %c0_i32, %c0_i32_0 : i32, i32
  }
}

</mosaic_0001>

<bundles_post_ra>
// kernel: tpu_custom_call.1
= control target key start
LH: loop header
LB: loop body
LE: loop exit
PB: predicated region body
PF: predicated region fallthrough
CT: control target
= control target key end

     0   :  { %16 = vsyncpa [#allocation9], 0  ;;  %s10513_s0 = inlined_call_operand.vmem [shape: f32[4], index: 0, kind: input, shape index: {}]   ;;  %s10514_s1 = inlined_call_operand.vmem [shape: f32[16,3], index: 1, kind: input, shape index: {}]   ;;  %s10515_s2 = inlined_call_operand.vmem [shape: f32[16,3], index: 2, kind: input, shape index: {}]   ;;  %s10516_s3 = inlined_call_operand.vmem [shape: f32[16], index: 3, kind: input, shape index: {}]   ;;  %s10517_s4 = inlined_call_operand.hbm [shape: f32[16], index: 4, kind: input, shape index: {}]   ;;  %s10518_s5 = inlined_call_operand.hbm [shape: f32[16], index: 5, kind: input, shape index: {}]   ;;  %s10519_s6 = inlined_call_operand.vmem [shape: f32[32,128], index: 6, kind: input, shape index: {}]   ;;  %s10520_s7 = inlined_call_operand.vmem [shape: f32[32,128], index: 7, kind: input, shape index: {}]   ;;  %s10521_s8 = inlined_call_operand.hbm [shape: bf16[2048,128], index: 8, kind: input, shape index: {}]   ;;  %s10522_s9 = inlined_call_operand.vmem [shape: f32[1,128], index: 9, kind: input, shape index: {}]   ;;  %s10523_s10 = inlined_call_operand.vmem [shape: f32[1,128], index: 10, kind: input, shape index: {}]   ;;  %s10524_s11 = inlined_call_operand.hbm [shape: f32[32,128], index: 11, kind: output, shape index: {}]  }
   0x1   :  { %17 = vsyncpa [#allocation11], 0 }
   0x2   :  { %18 = vsyncpa [#allocation14], 0 }
   0x3   :  { %19 = vsyncpa [#allocation8], 0 }
   0x4   :  { %20 = vsyncpa [#allocation17], 0 }
   0x5   :  { %21 = vsyncpa [#allocation6], 0  ;;  %s38_s19 = sshll.u32 %s10514_s1, 4  ;;  %s39_s19 = int_to_ptr.vmem [resolvable:$true] %s38_s19 }
   0x6   :  { %22 = vsyncpa [#allocation7], 0  ;;  %s29_s22 = sshll.u32 %s10513_s0, 4  ;;  %s6942_s23 = scalar_lea.vmem %s39_s19, 256  ;;  %s30_s22 = int_to_ptr.vmem [resolvable:$true] %s29_s22 }
   0x7   :  { %p6943_p0 = scmp.ne.s32.totalorder %s39_s19, %s6942_s23  ;;  %p6947_p1 = scmp.lt.s32.totalorder %s39_s19, %s39_s19 }
   0x8   :  { %p6948_p2 = scmp.lt.s32.totalorder %s6942_s23, %s6942_s23 }
   0xa   :  { %p6949_p3 = por %p6948_p2, %p6947_p1 }
   0xc   :  { %p6950_p4 = pnand %p6949_p3, %p6943_p0 }
   0xe   :  { %6953 = shalt.err (!%p6950_p4)
}
   0xf   :  { %s7068_s24 = smov [#allocation10]   ;;  %s7069_s25 = smov 128  }
  0x10   :  { %s7070_s26 = smov 8   ;;  %s6954_s1 = scalar_lea.vmem %s30_s22, 16 }
  0x11   :  { %44 = dma.vmem_to_smem %s39_s19, 256, %s7068_s24, [#allocation11], %s7069_s25, %s7069_s25, %s7070_s26  }
  0x12   :  { %p6955_p5 = scmp.ne.s32.totalorder %s30_s22, %s6954_s1  ;;  %p6959_p6 = scmp.lt.s32.totalorder %s30_s22, %s30_s22 }
  0x13   :  { %p6960_p7 = scmp.lt.s32.totalorder %s6954_s1, %s6954_s1 }
  0x15   :  { %p6961_p8 = por %p6960_p7, %p6959_p6 }
  0x17   :  { %p6962_p9 = pnand %p6961_p8, %p6955_p5 }
  0x19   :  { %6965 = shalt.err (!%p6962_p9)
}
  0x1a   :  { %s7071_s0 = smov [#allocation5]   ;;  %s50_s29 = sshll.u32 %s10515_s2, 4  ;;  %s51_s29 = int_to_ptr.vmem [resolvable:$true] %s50_s29 }
  0x1b   :  { %32 = dma.vmem_to_smem %s30_s22, 16, %s7071_s0, [#allocation9]  }
  0x1c   :  { %s63_s13 = sshll.u32 %s10516_s3, 4  ;;  %s6966_s14 = scalar_lea.vmem %s51_s29, 256  ;;  %s64_s13 = int_to_ptr.vmem [resolvable:$true] %s63_s13 }
  0x1d   :  { %p6967_p10 = scmp.ne.s32.totalorder %s51_s29, %s6966_s14  ;;  %p6971_p11 = scmp.lt.s32.totalorder %s51_s29, %s51_s29 }
  0x1e   :  { %p6972_p12 = scmp.lt.s32.totalorder %s6966_s14, %s6966_s14 }
  0x20   :  { %p6973_p13 = por %p6972_p12, %p6971_p11 }
  0x22   :  { %p6974_p0 = pnand %p6973_p13, %p6967_p10 }
  0x24   :  { %6977 = shalt.err (!%p6974_p0)
}
  0x25   :  { %s7072_s15 = smov [#allocation12]   ;;  %s6978_s16 = scalar_lea.vmem %s64_s13, 16 }
  0x26   :  { %56 = dma.vmem_to_smem %s51_s29, 256, %s7072_s15, [#allocation11], %s7069_s25, %s7069_s25, %s7070_s26  }
  0x27   :  { %p6979_p1 = scmp.ne.s32.totalorder %s64_s13, %s6978_s16  ;;  %p6983_p2 = scmp.lt.s32.totalorder %s64_s13, %s64_s13 }
  0x28   :  { %p6984_p3 = scmp.lt.s32.totalorder %s6978_s16, %s6978_s16 }
  0x2a   :  { %p6985_p4 = por %p6984_p3, %p6983_p2 }
  0x2c   :  { %p6986_p5 = pnand %p6985_p4, %p6979_p1 }
  0x2e   :  { %6989 = shalt.err (!%p6986_p5)
}
  0x2f   :  { %s7073_s2 = smov [#allocation13]   ;;  %s6990_s18 = scalar_lea.hbm %s10517_s4, 16 }
  0x30   :  { %66 = dma.vmem_to_smem %s64_s13, 16, %s7073_s2, [#allocation14]  }
  0x31   :  { %p6991_p6 = scmp.ne.s32.totalorder %s10517_s4, %s6990_s18  ;;  %p6994_p7 = scmp.lt.u32.totalorder %s6990_s18, %s10517_s4 }
  0x33   :  { %p6996_p8 = pnand %p6994_p7, %p6991_p6 }
  0x35   :  { %6999 = shalt.err (!%p6996_p8)
}
  0x36   :  { %s7074_s23 = smov [#allocation15]   ;;  %s7000_s28 = scalar_lea.hbm %s10518_s5, 16 }
  0x37   :  { %74 = dma.hbm_to_smem %s10517_s4, 16, %s7074_s23, [#allocation8]  }
  0x38   :  { %p7001_p9 = scmp.ne.s32.totalorder %s10518_s5, %s7000_s28  ;;  %p7004_p10 = scmp.lt.u32.totalorder %s7000_s28, %s10518_s5 }
  0x3a   :  { %p7006_p11 = pnand %p7004_p10, %p7001_p9 }
  0x3c   :  { %7009 = shalt.err (!%p7006_p11)
}
  0x3d   :  { %s7075_s14 = smov [#allocation16]   ;;  %s7076_s4 = smov [#allocation18]  }
  0x3e   :  { %82 = dma.hbm_to_smem %s10518_s5, 16, %s7075_s14, [#allocation17]  }
  0x3f   :  { %s92_s2 = sshll.u32 %s7076_s4, 4  ;;  %s7010_s18 = scalar_lea.hbm %s10521_s8, 16384  ;;  %s93_s2 = int_to_ptr.vmem [resolvable:$true] %s92_s2 }
  0x40   :  { %p7011_p12 = scmp.ne.s32.totalorder %s10521_s8, %s7010_s18  ;;  %p7014_p13 = scmp.lt.u32.totalorder %s7010_s18, %s10521_s8 }
  0x42   :  { %p7016_p0 = pnand %p7014_p13, %p7011_p12 }
  0x44   :  { %7019 = shalt.err (!%p7016_p0)
}
  0x45   :  { %s7020_s23 = scalar_lea.vmem %s93_s2, 16384  ;;  %p7025_p2 = scmp.lt.s32.totalorder %s93_s2, %s93_s2 }
  0x46   :  { %p7021_p1 = scmp.ne.s32.totalorder %s93_s2, %s7020_s23  ;;  %p7026_p3 = scmp.lt.s32.totalorder %s7020_s23, %s7020_s23 }
  0x48   :  { %p7027_p4 = por %p7026_p3, %p7025_p2 }
  0x4a   :  { %p7028_p5 = pnand %p7027_p4, %p7021_p1 }
  0x4c   :  { %7031 = shalt.err (!%p7028_p5)
}
  0x4d   :  { %s7077_s5 = smov 64   ;;  %s7078_s24 = smov 4  }
  0x4e   :  { %98 = dma.hbm_to_vmem [thread:$0]  %s10521_s8, 16384, %s93_s2, [#allocation6], %s7077_s5, %s7077_s5, %s7078_s24  }
  0x4f   :  { %7054 = dma.done.wait [#allocation9], 16  }
  0x50   :  { %7055 = vsyncadd [#allocation9], 4294967280 }
  0x51   :  { %7056 = dma.done.wait [#allocation11], 512  }
  0x52   :  { %7057 = vsyncadd [#allocation11], 4294966784 }
  0x53   :  { %7058 = dma.done.wait [#allocation14], 16  }
  0x54   :  { %7059 = vsyncadd [#allocation14], 4294967280 }
  0x55   :  { %7060 = dma.done.wait [#allocation8], 16  }
  0x56   :  { %7061 = vsyncadd [#allocation8], 4294967280 }
  0x57   :  { %7062 = dma.done.wait [#allocation17], 16  }
  0x58   :  { %7063 = vsyncadd [#allocation17], 4294967280 }
  0x59   :  { %7064 = dma.done.wait [#allocation6], 16384  }
  0x5a   :  { %7065 = vsyncadd [#allocation6], 4294950912 }
  0x5b   :  { %124 = sfence }
  0x5c   :  { %v7200_v0 = vld [vmem:[%s10519_s6 + $0x10] sm:$0xff]  ;;  %v7205_v1 = vld [vmem:[%s10519_s6] sm:$0xff]  ;;  %v7212_v2 = vld [vmem:[%s10519_s6 + $0x18] sm:$0xff]  ;;  %s6267_s19 = sld [smem:[#allocation5 + $0x2]]  ;;  %s6268_s20 = sld [smem:[#allocation5 + $0x1]]  ;;  %vm295_vm0 = vcmask 7168  }
  0x5d   :  { %144 = vadd.xlane.f32.xlu1 %v7200_v0  ;;  %140 = vadd.xlane.f32.xlu0 %v7205_v1  ;;  %v7217_v3 = vld [vmem:[%s10519_s6 + $0x8] sm:$0xff]  ;;  %v159_v5 = vmul.f32 %v7205_v1, %v7205_v1  ;;  %v162_v6 = vmul.f32 %v7212_v2, %v7212_v2  ;;  %v161_v7 = vmul.f32 %v7200_v0, %v7200_v0  ;;  %v7237_v9 = vld [vmem:[%s10520_s7] sm:$0xff]  ;;  %v7242_v10 = vld [vmem:[%s10520_s7 + $0x18] sm:$0xff]  ;;  %s7079_s21 = smov 1   ;;  %s6269_s22 = sld [smem:[#allocation5 + $0x3]]  ;;  %vm381_vm1 = vcmask 1039360  }
  0x5e   :  { %v160_v4 = vmul.f32 %v7217_v3, %v7217_v3  ;;  %v7232_v8 = vld [vmem:[%s10520_s7 + $0x8] sm:$0xff]  ;;  %v7247_v11 = vld [vmem:[%s10520_s7 + $0x10] sm:$0xff]  ;;  %v227_v13 = vmul.f32 %v7237_v9, %v7237_v9  ;;  %v230_v15 = vmul.f32 %v7242_v10, %v7242_v10  ;;  %s138_s7 = sld [smem:[#allocation5]]  ;;  %s6270_s23 = sld [smem:[#allocation10 + $0x1]]  ;;  %vm475_vm2 = vcmask 1031168  }
  0x5f   :  { %v228_v12 = vmul.f32 %v7232_v8, %v7232_v8  ;;  %v229_v14 = vmul.f32 %v7247_v11, %v7247_v11  ;;  %s7080_s5 = smov 127   ;;  %s6271_s24 = sld [smem:[#allocation12 + $0x1]] }
  0x60   :  { %s6272_s1 = sld [smem:[#allocation10 + $0x2]]  ;;  %s7081_s0 = smov 126  }
  0x61   :  { %146 = vadd.xlane.f32.xlu1 %v7212_v2  ;;  %142 = vadd.xlane.f32.xlu0 %v7217_v3  ;;  %s6273_s27 = sld [smem:[#allocation12 + $0x2]]  ;;  %s6276_s28 = sld [smem:[#allocation10 + $0x81]] }
  0x62   :  { %s6277_s29 = sld [smem:[#allocation12 + $0x81]]  ;;  %s6278_s8 = sld [smem:[#allocation10 + $0x82]] }
  0x63   :  { %s6279_s30 = sld [smem:[#allocation12 + $0x82]]  ;;  %s6285_s12 = sld [smem:[#allocation10 + $0x101]] }
  0x64   :  { %s6286_s13 = sld [smem:[#allocation12 + $0x101]]  ;;  %s6287_s14 = sld [smem:[#allocation10 + $0x102]] }
  0x65   :  { %165 = vadd.xlane.f32.xlu1 %v160_v4  ;;  %163 = vadd.xlane.f32.xlu0 %v159_v5  ;;  %s6288_s6 = sld [smem:[#allocation12 + $0x102]]  ;;  %s336_s15 = sld [smem:[#allocation12]] }
  0x66   :  { %s6373_s16 = sld [smem:[#allocation10 + $0x600]] }
  0x67   :  { %s6374_s4 = sld [smem:[#allocation12 + $0x600]] }
  0x68   :  { %s330_s2 = sld [smem:[#allocation10]] }
  0x69   :  { %169 = vadd.xlane.f32.xlu1 %v162_v6  ;;  %167 = vadd.xlane.f32.xlu0 %v161_v7  ;;  %s534_s3 = sld [smem:[#allocation13]] }
  0x6a   :  { %s6275_s17 = sld [smem:[#allocation12 + $0x80]] }
  0x6b   :  { %s6274_s18 = sld [smem:[#allocation10 + $0x80]] }
  0x6d   :  { %211 = vadd.xlane.f32.xlu1 %v7232_v8  ;;  %209 = vadd.xlane.f32.xlu0 %v7237_v9 }
  0x71   :  { %215 = vadd.xlane.f32.xlu1 %v7242_v10  ;;  %213 = vadd.xlane.f32.xlu0 %v7247_v11 }
  0x75   :  { %233 = vadd.xlane.f32.xlu1 %v228_v12  ;;  %231 = vadd.xlane.f32.xlu0 %v227_v13 }
  0x79   :  { %235 = vadd.xlane.f32.xlu0 %v229_v14  ;;  %237 = vadd.xlane.f32.xlu1 %v230_v15 }
  0xea   :  { %v145_v16 = vpop.xlane.xlu1 %144  ;;  %v141_v17 = vpop.xlane.xlu0 %140 }
  0xee   :  { %v147_v18 = vpop.xlane.xlu1 %146  ;;  %v143_v19 = vpop.xlane.xlu0 %142 }
  0xef   :  { %v148_v20 = vadd.f32 %v143_v19, %v141_v17 }
  0xf1   :  { %v149_v21 = vadd.f32 %v148_v20, %v145_v16 }
  0xf2   :  { %v166_v22 = vpop.xlane.xlu1 %165  ;;  %v164_v23 = vpop.xlane.xlu0 %163 }
  0xf3   :  { %v150_v24 = vadd.f32 %v149_v21, %v147_v18  ;;  %v171_v26 = vadd.f32 %v166_v22, %v164_v23  ;;  %v186_v21 = vstv %s138_s7  ;;  %s6280_s7 = sld [smem:[#allocation13 + $0x1]] }
  0xf5   :  { %v151_v25 = vrot.slane %v150_v24, 4 }
  0xf6   :  { %v170_v27 = vpop.xlane.xlu1 %169  ;;  %v168_v28 = vpop.xlane.xlu0 %167 }
  0xf7   :  { %v152_v29 = vadd.f32 %v151_v25, %v150_v24  ;;  %v172_v30 = vadd.f32 %v171_v26, %v168_v28  ;;  %v193_v26 = vstv %s6267_s19  ;;  %s6284_s19 = sld [smem:[#allocation12 + $0x100]] }
  0xf9   :  { %v153_v31 = vrot.slane %v152_v29, 2  ;;  %v173_v32 = vadd.f32 %v172_v30, %v170_v27 }
  0xfa   :  { %v212_v33 = vpop.xlane.xlu1 %211  ;;  %v210_v34 = vpop.xlane.xlu0 %209 }
  0xfb   :  { %v154_v35 = vadd.f32 %v153_v31, %v152_v29  ;;  %v174_v36 = vrot.slane %v173_v32, 4  ;;  %v217_v39 = vadd.f32 %v212_v33, %v210_v34 }
  0xfd   :  { %v155_v37 = vrot.slane %v154_v35, 1  ;;  %v175_v38 = vadd.f32 %v174_v36, %v173_v32 }
  0xfe   :  { %v216_v40 = vpop.xlane.xlu1 %215  ;;  %v214_v41 = vpop.xlane.xlu0 %213 }
  0xff   :  { %v156_v42 = vadd.f32 %v155_v37, %v154_v35  ;;  %v176_v43 = vrot.slane %v175_v38, 2  ;;  %v218_v44 = vadd.f32 %v217_v39, %v214_v41  ;;  %v254_v37 = vstv %s6268_s20  ;;  %s6283_s20 = sld [smem:[#allocation10 + $0x100]] }
 0x101   :  { %v177_v45 = vadd.f32 %v176_v43, %v175_v38  ;;  %v219_v46 = vadd.f32 %v218_v44, %v216_v40  ;;  %v158_v49 = vmul.f32 0.00024414063, %v156_v42 }
 0x102   :  { %v234_v47 = vpop.xlane.xlu1 %233  ;;  %v232_v48 = vpop.xlane.xlu0 %231 }
 0x103   :  { %v178_v50 = vrot.slane %v177_v45, 1  ;;  %v220_v51 = vrot.slane %v219_v46, 4  ;;  %v239_v54 = vadd.f32 %v234_v47, %v232_v48  ;;  %v181_v57 = vmul.f32 %v158_v49, %v158_v49 }
 0x104   :  { %v348_v48 = vstv %s6270_s23  ;;  %s6295_s23 = sld [smem:[#allocation12 + $0x181]] }
 0x105   :  { %v179_v52 = vadd.f32 %v178_v50, %v177_v45  ;;  %v221_v53 = vadd.f32 %v220_v51, %v219_v46 }
 0x106   :  { %v236_v55 = vpop.xlane.xlu0 %235  ;;  %v238_v56 = vpop.xlane.xlu1 %237 }
 0x107   :  { %v180_v58 = vmul.f32 0.00024414063, %v179_v52  ;;  %v222_v59 = vrot.slane %v221_v53, 2  ;;  %v240_v60 = vadd.f32 %v239_v54, %v236_v55 }
 0x109   :  { %v182_v61 = vsub.f32 %v180_v58, %v181_v57  ;;  %v223_v62 = vadd.f32 %v222_v59, %v221_v53  ;;  %v241_v63 = vadd.f32 %v240_v60, %v238_v56 }
 0x10b   :  { %v183_v4 = vmax.f32 %v182_v61, 0.0  ;;  %v224_v5 = vrot.slane %v223_v62, 1  ;;  %v242_v6 = vrot.slane %v241_v63, 4 }
 0x10d   :  { %v184_v7 = vadd.f32 1e-05, %v183_v4  ;;  %v243_v12 = vadd.f32 %v242_v6, %v241_v63  ;;  %v225_v13 = vadd.f32 %v224_v5, %v223_v62  ;;  %v395_v5 = vstv %s6271_s24  ;;  %s6296_s24 = sld [smem:[#allocation10 + $0x182]] }
 0x10f   :  { %6904 = vrsqrt.f32 %v184_v7  ;;  %v244_v14 = vrot.slane %v243_v12, 2  ;;  %v226_v16 = vmul.f32 0.00024414063, %v225_v13 }
 0x111   :  { %v245_v15 = vadd.f32 %v244_v14, %v243_v12  ;;  %v249_v20 = vmul.f32 %v226_v16, %v226_v16 }
 0x113   :  { %v246_v17 = vrot.slane %v245_v15, 1 }
 0x115   :  { %v247_v18 = vadd.f32 %v246_v17, %v245_v15 }
 0x117   :  { %v248_v19 = vmul.f32 0.00024414063, %v247_v18 }
 0x119   :  { %v6905_v22 = vpop.eup %6904  ;;  %v250_v23 = vsub.f32 %v248_v19, %v249_v20 }
 0x11a   :  { %v187_v24 = vmul.f32 %v6905_v22, %v186_v21 }
 0x11b   :  { %v251_v25 = vmax.f32 %v250_v23, 0.0 }
 0x11c   :  { %v192_v27 = vmul.f32 %v187_v24, %v158_v49  ;;  %v189_v29 = vmul.f32 %v187_v24, %v7217_v3  ;;  %v188_v31 = vmul.f32 %v187_v24, %v7205_v1  ;;  %v190_v34 = vmul.f32 %v187_v24, %v7200_v0 }
 0x11d   :  { %v252_v28 = vadd.f32 1e-05, %v251_v25  ;;  %v191_v36 = vmul.f32 %v187_v24, %v7212_v2  ;;  %v261_v1 = vstv %s6269_s22  ;;  %s6294_s22 = sld [smem:[#allocation10 + $0x181]] }
 0x11e   :  { %v194_v30 = vsub.f32 %v193_v26, %v192_v27 }
 0x11f   :  { %6906 = vrsqrt.f32 %v252_v28 }
 0x120   :  { %v196_v32 = vadd.f32 %v194_v30, %v189_v29  ;;  %v195_v33 = vadd.f32 %v194_v30, %v188_v31  ;;  %v197_v35 = vadd.f32 %v194_v30, %v190_v34  ;;  %v198_v38 = vadd.f32 %v194_v30, %v191_v36 }
 0x121   :  { %v442_v30 = vstv %s6272_s1  ;;  %s6297_s1 = sld [smem:[#allocation12 + $0x182]] }
 0x122   :  { %285 = vrot.lane.b32.xlu1 %v196_v32, %s7079_s21  ;;  %283 = vrot.lane.b32.xlu0 %v195_v33, %s7079_s21 }
 0x126   :  { %287 = vrot.lane.b32.xlu1 %v197_v35, %s7079_s21 }
 0x129   :  { %v6907_v3 = vpop.eup %6906 }
 0x12a   :  { %289 = vrot.lane.b32.xlu1 %v198_v38, %s7079_s21  ;;  %v255_v39 = vmul.f32 %v6907_v3, %v254_v37  ;;  %v489_v3 = vstv %s6273_s27  ;;  %s584_s27 = sld [smem:[#allocation15]] }
 0x12c   :  { %v260_v40 = vmul.f32 %v255_v39, %v226_v16  ;;  %v257_v41 = vmul.f32 %v255_v39, %v7232_v8  ;;  %v256_v43 = vmul.f32 %v255_v39, %v7237_v9  ;;  %v259_v0 = vmul.f32 %v255_v39, %v7242_v10 }
 0x12d   :  { %v258_v2 = vmul.f32 %v255_v39, %v7247_v11 }
 0x12e   :  { %v262_v42 = vsub.f32 %v261_v1, %v260_v40 }
 0x130   :  { %v264_v44 = vadd.f32 %v262_v42, %v257_v41  ;;  %v263_v45 = vadd.f32 %v262_v42, %v256_v43  ;;  %v266_v46 = vadd.f32 %v262_v42, %v259_v0  ;;  %v265_v47 = vadd.f32 %v262_v42, %v258_v2 }
 0x131   :  { %v625_v0 = vstv %s6276_s28  ;;  %s593_s28 = sld [smem:[#allocation16]] }
 0x132   :  { %310 = vrot.lane.b32.xlu1 %v264_v44, %s7079_s21  ;;  %308 = vrot.lane.b32.xlu0 %v263_v45, %s7079_s21 }
 0x136   :  { %314 = vrot.lane.b32.xlu1 %v266_v46, %s7079_s21  ;;  %312 = vrot.lane.b32.xlu0 %v265_v47, %s7079_s21  ;;  %s6289_s21 = sld [smem:[#allocation13 + $0x2]] }
 0x194   :  { %v286_v49 = vpop.permute.xlu1 %285  ;;  %v284_v8 = vpop.permute.xlu0 %283 }
 0x195   :  { %v7270_v50 = vsel %vm295_vm0, 0.0, %v284_v8  ;;  %v7273_v9 = vsel %vm295_vm0, %v284_v8, 0.0  ;;  %v7278_v11 = vsel %vm295_vm0, 0.0, %v286_v49  ;;  %v7281_v52 = vsel %vm295_vm0, %v286_v49, 0.0 }
 0x196   :  { %v350_v51 = vmul.f32 %v348_v48, %v7273_v9  ;;  %v349_v10 = vmul.f32 %v348_v48, %v7270_v50  ;;  %10573 = vst [vmem:[#allocation27_spill] sm:$0xff] %v7281_v52  ;;  %v352_v54 = vmul.f32 %v348_v48, %v7281_v52  ;;  %v351_v55 = vmul.f32 %v348_v48, %v7278_v11 }
 0x197   :  { %v444_v31 = vmul.f32 %v442_v30, %v7273_v9  ;;  %v443_v32 = vmul.f32 %v442_v30, %v7270_v50  ;;  %v446_v33 = vmul.f32 %v442_v30, %v7281_v52  ;;  %v445_v34 = vmul.f32 %v442_v30, %v7278_v11 }
 0x198   :  { %v288_v53 = vpop.permute.xlu1 %287  ;;  %367 = vrot.lane.b32.xlu1 %v350_v51, %s7080_s5  ;;  %365 = vrot.lane.b32.xlu0 %v349_v10, %s7080_s5  ;;  %v627_v2 = vmul.f32 %v625_v0, %v7273_v9  ;;  %v626_v46 = vmul.f32 %v625_v0, %v7270_v50  ;;  %v628_v47 = vmul.f32 %v625_v0, %v7278_v11  ;;  %v671_v51 = vstv %s6277_s29  ;;  %s6281_s29 = sld [smem:[#allocation15 + $0x1]] }
 0x199   :  { %v7288_v56 = vsel %vm295_vm0, 0.0, %v288_v53  ;;  %v7291_v57 = vsel %vm295_vm0, %v288_v53, 0.0  ;;  %v629_v49 = vmul.f32 %v625_v0, %v7281_v52 }
 0x19a   :  { %10574 = vst [vmem:[#allocation28_spill] sm:$0xff] %v7291_v57  ;;  %v354_v59 = vmul.f32 %v348_v48, %v7291_v57  ;;  %v353_v60 = vmul.f32 %v348_v48, %v7288_v56  ;;  %v448_v35 = vmul.f32 %v442_v30, %v7291_v57  ;;  %v447_v36 = vmul.f32 %v442_v30, %v7288_v56 }
 0x19b   :  { %v631_v10 = vmul.f32 %v625_v0, %v7291_v57 }
 0x19c   :  { %v290_v58 = vpop.permute.xlu1 %289  ;;  %371 = vrot.lane.b32.xlu1 %v352_v54, %s7080_s5  ;;  %369 = vrot.lane.b32.xlu0 %v351_v55, %s7080_s5 }
 0x19d   :  { %v7298_v61 = vsel %vm295_vm0, 0.0, %v290_v58  ;;  %v7301_v62 = vsel %vm295_vm0, %v290_v58, 0.0 }
 0x19e   :  { %10575 = vst [vmem:[#allocation29_spill] sm:$0xff] %v7301_v62  ;;  %v356_v63 = vmul.f32 %v348_v48, %v7301_v62  ;;  %v355_v4 = vmul.f32 %v348_v48, %v7298_v61  ;;  %v450_v37 = vmul.f32 %v442_v30, %v7301_v62  ;;  %v449_v38 = vmul.f32 %v442_v30, %v7298_v61 }
 0x19f   :  { %v630_v48 = vmul.f32 %v625_v0, %v7288_v56  ;;  %v632_v8 = vmul.f32 %v625_v0, %v7298_v61  ;;  %v633_v54 = vmul.f32 %v625_v0, %v7301_v62 }
 0x1a0   :  { %375 = vrot.lane.b32.xlu1 %v354_v59, %s7080_s5  ;;  %373 = vrot.lane.b32.xlu0 %v353_v60, %s7080_s5 }
 0x1a4   :  { %v311_v6 = vpop.permute.xlu1 %310  ;;  %379 = vrot.lane.b32.xlu1 %v356_v63, %s7080_s5  ;;  %377 = vrot.lane.b32.xlu0 %v355_v4, %s7080_s5  ;;  %v309_v7 = vpop.permute.xlu0 %308  ;;  %v718_v4 = vstv %s6278_s8  ;;  %s6282_s8 = sld [smem:[#allocation16 + $0x1]] }
 0x1a5   :  { %v7310_v12 = vsel %vm295_vm0, 0.0, %v309_v7  ;;  %v7313_v13 = vsel %vm295_vm0, %v309_v7, 0.0  ;;  %v7318_v16 = vsel %vm295_vm0, 0.0, %v311_v6  ;;  %v7321_v17 = vsel %vm295_vm0, %v311_v6, 0.0 }
 0x1a6   :  { %10576 = vst [vmem:[#allocation30_spill] sm:$0xff] %v7313_v13  ;;  %v397_v14 = vmul.f32 %v395_v5, %v7313_v13  ;;  %v396_v15 = vmul.f32 %v395_v5, %v7310_v12  ;;  %10577 = vst [vmem:[#allocation31_spill] sm:$0xff] %v7321_v17  ;;  %v399_v19 = vmul.f32 %v395_v5, %v7321_v17 }
 0x1a7   :  { %v398_v20 = vmul.f32 %v395_v5, %v7318_v16  ;;  %v491_v39 = vmul.f32 %v489_v3, %v7313_v13  ;;  %v490_v1 = vmul.f32 %v489_v3, %v7310_v12  ;;  %v493_v40 = vmul.f32 %v489_v3, %v7321_v17 }
 0x1a8   :  { %414 = vrot.lane.b32.xlu1 %v397_v14, %s7080_s5  ;;  %412 = vrot.lane.b32.xlu0 %v396_v15, %s7080_s5  ;;  %v313_v18 = vpop.permute.xlu0 %312  ;;  %v315_v23 = vpop.permute.xlu1 %314  ;;  %v492_v41 = vmul.f32 %v489_v3, %v7318_v16  ;;  %v672_v53 = vmul.f32 %v671_v51, %v7310_v12  ;;  %v674_v55 = vmul.f32 %v671_v51, %v7318_v16 }
 0x1a9   :  { %v7328_v21 = vsel %vm295_vm0, 0.0, %v313_v18  ;;  %v7331_v22 = vsel %vm295_vm0, %v313_v18, 0.0  ;;  %v7338_v26 = vsel %vm295_vm0, 0.0, %v315_v23  ;;  %v7341_v27 = vsel %vm295_vm0, %v315_v23, 0.0 }
 0x1aa   :  { %10578 = vst [vmem:[#allocation32_spill] sm:$0xff] %v7328_v21  ;;  %10579 = vst [vmem:[#allocation33_spill] sm:$0xff] %v7331_v22  ;;  %v401_v24 = vmul.f32 %v395_v5, %v7331_v22  ;;  %v400_v25 = vmul.f32 %v395_v5, %v7328_v21  ;;  %v403_v28 = vmul.f32 %v395_v5, %v7341_v27  ;;  %v764_v23 = vstv %s6279_s30  ;;  %s6293_s30 = sld [smem:[#allocation12 + $0x180]] }
 0x1ab   :  { %10580 = vst [vmem:[#allocation34_spill] sm:$0xff] %v7341_v27  ;;  %v402_v29 = vmul.f32 %v395_v5, %v7338_v26  ;;  %v495_v42 = vmul.f32 %v489_v3, %v7331_v22  ;;  %v494_v43 = vmul.f32 %v489_v3, %v7328_v21  ;;  %v497_v44 = vmul.f32 %v489_v3, %v7341_v27 }
 0x1ac   :  { %418 = vrot.lane.b32.xlu1 %v399_v19, %s7080_s5  ;;  %416 = vrot.lane.b32.xlu0 %v398_v20, %s7080_s5  ;;  %v496_v45 = vmul.f32 %v489_v3, %v7338_v26  ;;  %v673_v58 = vmul.f32 %v671_v51, %v7313_v13  ;;  %v676_v59 = vmul.f32 %v671_v51, %v7328_v21 }
 0x1ad   :  { %v675_v60 = vmul.f32 %v671_v51, %v7321_v17  ;;  %v678_v63 = vmul.f32 %v671_v51, %v7338_v26  ;;  %v677_v5 = vmul.f32 %v671_v51, %v7331_v22  ;;  %v719_v6 = vmul.f32 %v718_v4, %v7270_v50 }
 0x1ae   :  { %v679_v7 = vmul.f32 %v671_v51, %v7341_v27  ;;  %v721_v14 = vmul.f32 %v718_v4, %v7278_v11  ;;  %v720_v15 = vmul.f32 %v718_v4, %v7273_v9  ;;  %v723_v18 = vmul.f32 %v718_v4, %v7288_v56 }
 0x1af   :  { %v722_v19 = vmul.f32 %v718_v4, %v7281_v52  ;;  %v725_v20 = vmul.f32 %v718_v4, %v7298_v61 }
 0x1b0   :  { %422 = vrot.lane.b32.xlu1 %v401_v24, %s7080_s5  ;;  %420 = vrot.lane.b32.xlu0 %v400_v25, %s7080_s5  ;;  %v724_v24 = vmul.f32 %v718_v4, %v7291_v57  ;;  %v765_v25 = vmul.f32 %v764_v23, %v7310_v12 }
 0x1b4   :  { %426 = vrot.lane.b32.xlu1 %v403_v28, %s7080_s5  ;;  %424 = vrot.lane.b32.xlu0 %v402_v29, %s7080_s5  ;;  %v726_v28 = vmul.f32 %v718_v4, %v7301_v62  ;;  %v767_v29 = vmul.f32 %v764_v23, %v7318_v16 }
 0x1b8   :  { %461 = vrot.lane.b32.xlu1 %v444_v31, %s7081_s0  ;;  %459 = vrot.lane.b32.xlu0 %v443_v32, %s7081_s0  ;;  %v766_v32 = vmul.f32 %v764_v23, %v7313_v13 }
 0x1bc   :  { %465 = vrot.lane.b32.xlu1 %v446_v33, %s7081_s0  ;;  %463 = vrot.lane.b32.xlu0 %v445_v34, %s7081_s0  ;;  %v769_v33 = vmul.f32 %v764_v23, %v7328_v21 }
 0x1c0   :  { %469 = vrot.lane.b32.xlu1 %v448_v35, %s7081_s0  ;;  %467 = vrot.lane.b32.xlu0 %v447_v36, %s7081_s0  ;;  %v768_v36 = vmul.f32 %v764_v23, %v7321_v17 }
 0x1c4   :  { %473 = vrot.lane.b32.xlu1 %v450_v37, %s7081_s0  ;;  %471 = vrot.lane.b32.xlu0 %v449_v38, %s7081_s0  ;;  %v771_v37 = vmul.f32 %v764_v23, %v7338_v26  ;;  %v899_v38 = vstv %s6285_s12  ;;  %s6292_s12 = sld [smem:[#allocation10 + $0x180]] }
 0x1c8   :  { %508 = vrot.lane.b32.xlu1 %v491_v39, %s7081_s0  ;;  %506 = vrot.lane.b32.xlu0 %v490_v1, %s7081_s0  ;;  %v770_v1 = vmul.f32 %v764_v23, %v7331_v22 }
 0x1cc   :  { %512 = vrot.lane.b32.xlu1 %v493_v40, %s7081_s0  ;;  %510 = vrot.lane.b32.xlu0 %v492_v41, %s7081_s0  ;;  %v900_v40 = vmul.f32 %v899_v38, %v7270_v50 }
 0x1d0   :  { %516 = vrot.lane.b32.xlu1 %v495_v42, %s7081_s0  ;;  %514 = vrot.lane.b32.xlu0 %v494_v43, %s7081_s0  ;;  %v772_v43 = vmul.f32 %v764_v23, %v7341_v27 }
 0x1d4   :  { %520 = vrot.lane.b32.xlu1 %v497_v44, %s7081_s0  ;;  %518 = vrot.lane.b32.xlu0 %v496_v45, %s7081_s0  ;;  %v904_v44 = vmul.f32 %v899_v38, %v7288_v56 }
 0x1d8   :  { %644 = vrot.lane.b32.xlu1 %v627_v2, %s7080_s5  ;;  %642 = vrot.lane.b32.xlu0 %v626_v46, %s7080_s5  ;;  %v901_v2 = vmul.f32 %v899_v38, %v7273_v9  ;;  %v906_v46 = vmul.f32 %v899_v38, %v7298_v61 }
 0x1dc   :  { %646 = vrot.lane.b32.xlu1 %v628_v47, %s7080_s5  ;;  %650 = vrot.lane.b32.xlu0 %v630_v48, %s7080_s5  ;;  %v945_v47 = vstv %s6286_s13  ;;  %s6298_s13 = sld [smem:[#allocation13 + $0x3]] }
 0x1dd   :  { %v946_v51 = vmul.f32 %v945_v47, %v7310_v12 }
 0x1e0   :  { %648 = vrot.lane.b32.xlu1 %v629_v49, %s7080_s5  ;;  %654 = vrot.lane.b32.xlu0 %v632_v8, %s7080_s5  ;;  %v902_v8 = vmul.f32 %v899_v38, %v7278_v11 }
 0x1e4   :  { %652 = vrot.lane.b32.xlu1 %v631_v10, %s7080_s5  ;;  %688 = vrot.lane.b32.xlu0 %v672_v53, %s7080_s5 }
 0x1e8   :  { %656 = vrot.lane.b32.xlu1 %v633_v54, %s7080_s5  ;;  %692 = vrot.lane.b32.xlu0 %v674_v55, %s7080_s5  ;;  %v903_v54 = vmul.f32 %v899_v38, %v7281_v52  ;;  %v948_v55 = vmul.f32 %v945_v47, %v7318_v16 }
 0x1ec   :  { %690 = vrot.lane.b32.xlu1 %v673_v58, %s7080_s5  ;;  %696 = vrot.lane.b32.xlu0 %v676_v59, %s7080_s5 }
 0x1f0   :  { %694 = vrot.lane.b32.xlu1 %v675_v60, %s7080_s5  ;;  %700 = vrot.lane.b32.xlu0 %v678_v63, %s7080_s5  ;;  %v905_v60 = vmul.f32 %v899_v38, %v7291_v57  ;;  %v950_v63 = vmul.f32 %v945_v47, %v7328_v21 }
 0x1f4   :  { %698 = vrot.lane.b32.xlu1 %v677_v5, %s7080_s5  ;;  %735 = vrot.lane.b32.xlu0 %v719_v6, %s7081_s0  ;;  %v907_v6 = vmul.f32 %v899_v38, %v7301_v62 }
 0x1f8   :  { %702 = vrot.lane.b32.xlu1 %v679_v7, %s7080_s5  ;;  %739 = vrot.lane.b32.xlu0 %v721_v14, %s7081_s0  ;;  %v952_v7 = vmul.f32 %v945_v47, %v7338_v26  ;;  %v992_v14 = vstv %s6287_s14  ;;  %s6303_s14 = sld [smem:[#allocation10 + $0x201]] }
 0x1fc   :  { %737 = vrot.lane.b32.xlu1 %v720_v15, %s7081_s0  ;;  %743 = vrot.lane.b32.xlu0 %v723_v18, %s7081_s0 }
 0x200   :  { %741 = vrot.lane.b32.xlu1 %v722_v19, %s7081_s0  ;;  %747 = vrot.lane.b32.xlu0 %v725_v20, %s7081_s0  ;;  %v947_v19 = vmul.f32 %v945_v47, %v7313_v13  ;;  %v993_v20 = vmul.f32 %v992_v14, %v7270_v50 }
 0x204   :  { %745 = vrot.lane.b32.xlu1 %v724_v24, %s7081_s0  ;;  %781 = vrot.lane.b32.xlu0 %v765_v25, %s7081_s0  ;;  %v949_v25 = vmul.f32 %v945_v47, %v7321_v17 }
 0x208   :  { %749 = vrot.lane.b32.xlu1 %v726_v28, %s7081_s0  ;;  %785 = vrot.lane.b32.xlu0 %v767_v29, %s7081_s0  ;;  %v995_v28 = vmul.f32 %v992_v14, %v7278_v11 }
 0x20a   :  { %v7433_v30 = vpop.permute.xlu1 %367  ;;  %v7435_v31 = vpop.permute.xlu0 %365 }
 0x20c   :  { %783 = vrot.lane.b32.xlu1 %v766_v32, %s7081_s0  ;;  %789 = vrot.lane.b32.xlu0 %v769_v33, %s7081_s0  ;;  %v951_v33 = vmul.f32 %v945_v47, %v7331_v22 }
 0x20e   :  { %v7441_v34 = vpop.permute.xlu1 %371  ;;  %v7443_v35 = vpop.permute.xlu0 %369 }
 0x210   :  { %787 = vrot.lane.b32.xlu1 %v768_v36, %s7081_s0  ;;  %793 = vrot.lane.b32.xlu0 %v771_v37, %s7081_s0  ;;  %v997_v36 = vmul.f32 %v992_v14, %v7288_v56 }
 0x212   :  { %v7449_v3 = vpop.permute.xlu1 %375  ;;  %v7451_v39 = vpop.permute.xlu0 %373 }
 0x214   :  { %791 = vrot.lane.b32.xlu1 %v770_v1, %s7081_s0  ;;  %916 = vrot.lane.b32.xlu0 %v900_v40, %s7080_s5  ;;  %v953_v1 = vmul.f32 %v945_v47, %v7341_v27  ;;  %v999_v40 = vmul.f32 %v992_v14, %v7298_v61 }
 0x216   :  { %v7457_v41 = vpop.permute.xlu1 %379  ;;  %v7459_v42 = vpop.permute.xlu0 %377 }
 0x218   :  { %795 = vrot.lane.b32.xlu1 %v772_v43, %s7081_s0  ;;  %924 = vrot.lane.b32.xlu0 %v904_v44, %s7080_s5  ;;  %v1038_v43 = vstv %s6288_s6  ;;  %s6304_s6 = sld [smem:[#allocation12 + $0x201]] }
 0x21a   :  { %v7465_v45 = vpop.permute.xlu1 %414  ;;  %v7467_v0 = vpop.permute.xlu0 %412 }
 0x21c   :  { %918 = vrot.lane.b32.xlu1 %v901_v2, %s7080_s5  ;;  %928 = vrot.lane.b32.xlu0 %v906_v46, %s7080_s5  ;;  %v994_v46 = vmul.f32 %v992_v14, %v7273_v9 }
 0x21e   :  { %v7473_v48 = vpop.permute.xlu1 %418  ;;  %v7475_v49 = vpop.permute.xlu0 %416 }
 0x220   :  { %920 = vrot.lane.b32.xlu1 %v902_v8, %s7080_s5  ;;  %962 = vrot.lane.b32.xlu0 %v946_v51, %s7080_s5  ;;  %v1039_v8 = vmul.f32 %v1038_v43, %v7310_v12 }
 0x222   :  { %v7481_v10 = vpop.permute.xlu1 %422  ;;  %v7483_v53 = vpop.permute.xlu0 %420 }
 0x224   :  { %922 = vrot.lane.b32.xlu1 %v903_v54, %s7080_s5  ;;  %966 = vrot.lane.b32.xlu0 %v948_v55, %s7080_s5  ;;  %v996_v54 = vmul.f32 %v992_v14, %v7281_v52  ;;  %v1041_v55 = vmul.f32 %v1038_v43, %v7318_v16 }
 0x226   :  { %v7489_v58 = vpop.permute.xlu1 %426  ;;  %v7491_v59 = vpop.permute.xlu0 %424 }
 0x228   :  { %926 = vrot.lane.b32.xlu1 %v905_v60, %s7080_s5  ;;  %970 = vrot.lane.b32.xlu0 %v950_v63, %s7080_s5 }
 0x22a   :  { %v7497_v4 = vpop.permute.xlu1 %461  ;;  %v7499_v5 = vpop.permute.xlu0 %459 }
 0x22c   :  { %930 = vrot.lane.b32.xlu1 %v907_v6, %s7080_s5  ;;  %974 = vrot.lane.b32.xlu0 %v952_v7, %s7080_s5  ;;  %v998_v6 = vmul.f32 %v992_v14, %v7291_v57  ;;  %v1043_v7 = vmul.f32 %v1038_v43, %v7328_v21 }
 0x22e   :  { %v7505_v15 = vpop.permute.xlu1 %465  ;;  %v7507_v18 = vpop.permute.xlu0 %463 }
 0x230   :  { %964 = vrot.lane.b32.xlu1 %v947_v19, %s7080_s5  ;;  %1009 = vrot.lane.b32.xlu0 %v993_v20, %s7081_s0 }
 0x232   :  { %v7513_v23 = vpop.permute.xlu1 %469  ;;  %v7515_v24 = vpop.permute.xlu0 %467 }
 0x234   :  { %968 = vrot.lane.b32.xlu1 %v949_v25, %s7080_s5  ;;  %1013 = vrot.lane.b32.xlu0 %v995_v28, %s7081_s0  ;;  %v1000_v25 = vmul.f32 %v992_v14, %v7301_v62  ;;  %v1045_v28 = vmul.f32 %v1038_v43, %v7338_v26  ;;  %v1046_v62 = vmul.f32 %v1038_v43, %v7341_v27 }
 0x236   :  { %v7521_v29 = vpop.permute.xlu1 %473  ;;  %v7523_v32 = vpop.permute.xlu0 %471 }
 0x238   :  { %972 = vrot.lane.b32.xlu1 %v951_v33, %s7080_s5  ;;  %1017 = vrot.lane.b32.xlu0 %v997_v36, %s7081_s0 }
 0x23a   :  { %v7529_v37 = vpop.permute.xlu1 %508  ;;  %v7531_v38 = vpop.permute.xlu0 %506 }
 0x23c   :  { %976 = vrot.lane.b32.xlu1 %v953_v1, %s7080_s5  ;;  %1021 = vrot.lane.b32.xlu0 %v999_v40, %s7081_s0  ;;  %v1040_v1 = vmul.f32 %v1038_v43, %v7313_v13 }
 0x23e   :  { %v7537_v44 = vpop.permute.xlu1 %512  ;;  %v7539_v2 = vpop.permute.xlu0 %510 }
 0x240   :  { %1011 = vrot.lane.b32.xlu1 %v994_v46, %s7081_s0  ;;  %1055 = vrot.lane.b32.xlu0 %v1039_v8, %s7081_s0  ;;  %v1042_v46 = vmul.f32 %v1038_v43, %v7321_v17  ;;  %v7581_v8 = vstv %s336_s15  ;;  %s6305_s15 = sld [smem:[#allocation10 + $0x202]] }
 0x241   :  { %v338_v17 = vmul.f32 %v7581_v8, %v7310_v12  ;;  %v340_v52 = vmul.f32 %v7581_v8, %v7328_v21 }
 0x242   :  { %v7545_v47 = vpop.permute.xlu1 %516  ;;  %v7547_v51 = vpop.permute.xlu0 %514 }
 0x244   :  { %1015 = vrot.lane.b32.xlu1 %v996_v54, %s7081_s0  ;;  %1059 = vrot.lane.b32.xlu0 %v1041_v55, %s7081_s0 }
 0x246   :  { %v7553_v60 = vpop.permute.xlu1 %520  ;;  %v7555_v63 = vpop.permute.xlu0 %518 }
 0x248   :  { %1019 = vrot.lane.b32.xlu1 %v998_v6, %s7081_s0  ;;  %1063 = vrot.lane.b32.xlu0 %v1043_v7, %s7081_s0  ;;  %v1044_v6 = vmul.f32 %v1038_v43, %v7331_v22  ;;  %v7588_v7 = vstv %s6373_s16  ;;  %v428_v43 = vsel %vm381_vm1, %v7467_v0, %v7465_v45  ;;  %v341_v45 = vmul.f32 %v7581_v8, %v7338_v26  ;;  %s6306_s16 = sld [smem:[#allocation12 + $0x202]] }
 0x249   :  { %10581 = vst [vmem:[#allocation35_spill] sm:$0xff] %v7588_v7 }
 0x24a   :  { %v7561_v19 = vpop.permute.xlu1 %644  ;;  %v7563_v20 = vpop.permute.xlu0 %642 }
 0x24c   :  { %1023 = vrot.lane.b32.xlu1 %v1000_v25, %s7081_s0  ;;  %1067 = vrot.lane.b32.xlu0 %v1045_v28, %s7081_s0  ;;  %v7590_v25 = vstv %s6374_s4  ;;  %v7592_v28 = vstv %s330_s2  ;;  %s6290_s4 = sld [smem:[#allocation15 + $0x2]] }
 0x24d   :  { %10582 = vst [vmem:[#allocation36_spill] sm:$0xff] %v7590_v25  ;;  %s6291_s2 = sld [smem:[#allocation16 + $0x2]] }
 0x24e   :  { %v7569_v33 = vpop.permute.xlu1 %646  ;;  %v7571_v36 = vpop.permute.xlu0 %650 }
 0x250   :  { %1057 = vrot.lane.b32.xlu1 %v1040_v1, %s7081_s0  ;;  %v3626_v1 = vmul.f32 %v7588_v7, %v7298_v61  ;;  %v382_v7 = vsel %vm381_vm1, %v7435_v31, %v7433_v30  ;;  %v334_v30 = vmul.f32 %v7592_v28, %v7288_v56 }
 0x252   :  { %v7575_v40 = vpop.permute.xlu1 %648  ;;  %v7577_v14 = vpop.permute.xlu0 %654  ;;  %v344_v31 = vadd.f32 %v340_v52, %v334_v30  ;;  %v335_v52 = vmul.f32 %v7592_v28, %v7298_v61 }
 0x254   :  { %1061 = vrot.lane.b32.xlu1 %v1042_v46, %s7081_s0  ;;  %v3632_v46 = vmul.f32 %v7590_v25, %v7338_v26 }
 0x256   :  { %v7583_v54 = vpop.permute.xlu1 %652  ;;  %v7585_v55 = vpop.permute.xlu0 %688  ;;  %v7606_v57 = vadd.f32 %v3632_v46, %v3626_v1 }
 0x258   :  { %1065 = vrot.lane.b32.xlu1 %v1044_v6, %s7081_s0  ;;  %10583 = vst [vmem:[#allocation37_spill] sm:$0xff] %v7606_v57  ;;  %v332_v6 = vmul.f32 %v7592_v28, %v7270_v50 }
 0x25a   :  { %v7601_v13 = vpop.permute.xlu1 %656  ;;  %v7603_v22 = vpop.permute.xlu0 %692  ;;  %v342_v25 = vadd.f32 %v338_v17, %v332_v6  ;;  %v476_v17 = vsel %vm475_vm2, %v7499_v5, %v7497_v4 }
 0x25c   :  { %1069 = vrot.lane.b32.xlu1 %v1046_v62, %s7081_s0  ;;  %v390_v57 = vadd.f32 %v382_v7, %v342_v25  ;;  %v384_v62 = vsel %vm381_vm1, %v7451_v39, %v7449_v3  ;;  %v430_v7 = vsel %vm381_vm1, %v7483_v53, %v7481_v10  ;;  %v522_v25 = vsel %vm475_vm2, %v7531_v38, %v7529_v37 }
 0x25d   :  { %v392_v39 = vadd.f32 %v384_v62, %v344_v31  ;;  %v478_v10 = vsel %vm475_vm2, %v7515_v24, %v7513_v23  ;;  %v345_v53 = vadd.f32 %v341_v45, %v335_v52  ;;  %v431_v38 = vsel %vm381_vm1, %v7491_v59, %v7489_v58 }
 0x25e   :  { %v7619_v1 = vpop.permute.xlu1 %690  ;;  %v7621_v46 = vpop.permute.xlu0 %696  ;;  %v436_v0 = vadd.f32 %v428_v43, %v390_v57  ;;  %v385_v57 = vsel %vm381_vm1, %v7459_v42, %v7457_v41  ;;  %v524_v43 = vsel %vm475_vm2, %v7547_v51, %v7545_v47  ;;  %v479_v23 = vsel %vm475_vm2, %v7523_v32, %v7521_v29 }
 0x25f   :  { %v438_v5 = vadd.f32 %v430_v7, %v392_v39  ;;  %v393_v41 = vadd.f32 %v385_v57, %v345_v53  ;;  %v525_v58 = vsel %vm475_vm2, %v7555_v63, %v7553_v60  ;;  %v339_v29 = vmul.f32 %v7581_v8, %v7318_v16 }
 0x260   :  { %v484_v4 = vadd.f32 %v476_v17, %v436_v0  ;;  %v535_v17 = vstv %s534_s3  ;;  %v333_v60 = vmul.f32 %v7592_v28, %v7278_v11  ;;  %v383_v63 = vsel %vm381_vm1, %v7443_v35, %v7441_v34  ;;  %s6299_s3 = sld [smem:[#allocation15 + $0x3]] }
 0x261   :  { %v486_v42 = vadd.f32 %v478_v10, %v438_v5  ;;  %v439_v24 = vadd.f32 %v431_v38, %v393_v41  ;;  %v614_v39 = vstv %s6275_s17  ;;  %v429_v8 = vsel %vm381_vm1, %v7475_v49, %v7473_v48  ;;  %s6302_s17 = sld [smem:[#allocation12 + $0x200]] }
 0x262   :  { %v7639_v6 = vpop.permute.xlu1 %694  ;;  %v7641_v3 = vpop.permute.xlu0 %700  ;;  %v530_v37 = vadd.f32 %v522_v25, %v484_v4  ;;  %v343_v4 = vadd.f32 %v339_v29, %v333_v60  ;;  %v608_v53 = vstv %s6274_s18  ;;  %v615_v28 = vmul.f32 %v614_v39, %v7310_v12  ;;  %s6301_s18 = sld [smem:[#allocation10 + $0x200]] }
 0x263   :  { %v532_v31 = vadd.f32 %v524_v43, %v486_v42  ;;  %v487_v51 = vadd.f32 %v479_v23, %v439_v24  ;;  %v477_v34 = vsel %vm475_vm2, %v7507_v18, %v7505_v15  ;;  %v523_v41 = vsel %vm475_vm2, %v7539_v2, %v7537_v44 }
 0x264   :  { %v7662_v45 = vadd.f32 %v535_v17, %v530_v37  ;;  %v391_v5 = vadd.f32 %v383_v63, %v343_v4  ;;  %v609_v37 = vmul.f32 %v608_v53, %v7270_v50  ;;  %v658_v48 = vsel %vm381_vm1, %v7563_v20, %v7561_v19 }
 0x265   :  { %v533_v0 = vadd.f32 %v525_v58, %v487_v51  ;;  %v7670_v7 = vadd.f32 %v535_v17, %v532_v31  ;;  %v616_v23 = vmul.f32 %v614_v39, %v7318_v16  ;;  %v704_v15 = vsel %vm381_vm1, %v7585_v55, %v7619_v1 }
 0x266   :  { %v7657_v30 = vpop.permute.xlu1 %698  ;;  %v736_v62 = vpop.permute.xlu0 %735  ;;  %v437_v35 = vadd.f32 %v429_v8, %v391_v5  ;;  %v619_v42 = vadd.f32 %v615_v28, %v609_v37  ;;  %v610_v31 = vmul.f32 %v608_v53, %v7278_v11  ;;  %v659_v44 = vsel %vm381_vm1, %v7569_v33, %v7575_v40 }
 0x267   :  { %v7680_v52 = vadd.f32 %v535_v17, %v533_v0  ;;  %v617_v20 = vmul.f32 %v614_v39, %v7328_v21  ;;  %v705_v55 = vsel %vm381_vm1, %v7603_v22, %v7639_v6  ;;  %v611_v29 = vmul.f32 %v608_v53, %v7288_v56 }
 0x268   :  { %v485_v49 = vadd.f32 %v477_v34, %v437_v35  ;;  %v666_v24 = vadd.f32 %v658_v48, %v619_v42  ;;  %v620_v19 = vadd.f32 %v616_v23, %v610_v31  ;;  %v660_v33 = vsel %vm381_vm1, %v7571_v36, %v7583_v54 }
 0x269   :  { %v621_v5 = vadd.f32 %v617_v20, %v611_v29  ;;  %v618_v22 = vmul.f32 %v614_v39, %v7338_v26  ;;  %v612_v35 = vmul.f32 %v608_v53, %v7298_v61  ;;  %v661_v39 = vsel %vm381_vm1, %v7577_v14, %v7601_v13 }
 0x26a   :  { %v7667_v59 = vpop.permute.xlu1 %702  ;;  %v740_v47 = vpop.permute.xlu0 %739  ;;  %v531_v18 = vadd.f32 %v523_v41, %v485_v49  ;;  %v712_v0 = vadd.f32 %v704_v15, %v666_v24  ;;  %v667_v1 = vadd.f32 %v659_v44, %v620_v19 }
 0x26b   :  { %540 = vadd.xlane.f32.xlu0 %v7662_v45  ;;  %v668_v34 = vadd.f32 %v660_v33, %v621_v5  ;;  %v622_v41 = vadd.f32 %v618_v22, %v612_v35 }
 0x26c   :  { %v7713_v8 = vadd.f32 %v535_v17, %v531_v18  ;;  %v713_v6 = vadd.f32 %v705_v55, %v667_v1  ;;  %v706_v17 = vsel %vm381_vm1, %v7621_v46, %v7657_v30  ;;  %v707_v46 = vsel %vm381_vm1, %v7641_v3, %v7667_v59 }
 0x26d   :  { %v714_v48 = vadd.f32 %v706_v17, %v668_v34  ;;  %v669_v30 = vadd.f32 %v661_v39, %v622_v41  ;;  %v882_v34 = vstv %s6283_s20  ;;  %s6312_s20 = sld [smem:[#allocation10 + $0x281]] }
 0x26e   :  { %v738_v32 = vpop.permute.xlu1 %737  ;;  %v744_v25 = vpop.permute.xlu0 %743 }
 0x26f   :  { %544 = vadd.xlane.f32.xlu0 %v7670_v7  ;;  %v751_v2 = vsel %vm475_vm2, %v736_v62, %v738_v32  ;;  %v810_v32 = vstv %s6280_s7  ;;  %s6300_s7 = sld [smem:[#allocation16 + $0x3]] }
 0x270   :  { %v759_v60 = vadd.f32 %v751_v2, %v712_v0 }
 0x272   :  { %v742_v57 = vpop.permute.xlu1 %741  ;;  %v7682_v10 = vpop.permute.xlu0 %747 }
 0x273   :  { %546 = vadd.xlane.f32.xlu0 %v7680_v52  ;;  %v752_v40 = vsel %vm475_vm2, %v740_v47, %v742_v57 }
 0x274   :  { %v760_v36 = vadd.f32 %v752_v40, %v713_v6  ;;  %v888_v6 = vstv %s6284_s19  ;;  %s8117_s19 = sld [smem:[#allocation13 + $0x4]] }
 0x275   :  { %v889_v35 = vmul.f32 %v888_v6, %v7310_v12 }
 0x276   :  { %v746_v38 = vpop.permute.xlu1 %745  ;;  %v782_v43 = vpop.permute.xlu0 %781 }
 0x277   :  { %v753_v37 = vsel %vm475_vm2, %v744_v25, %v746_v38  ;;  %v715_v25 = vadd.f32 %v707_v46, %v669_v30 }
 0x278   :  { %v761_v53 = vadd.f32 %v753_v37, %v714_v48  ;;  %v890_v37 = vmul.f32 %v888_v6, %v7318_v16 }
 0x27a   :  { %v750_v58 = vpop.permute.xlu1 %749  ;;  %v786_v51 = vpop.permute.xlu0 %785 }
 0x27b   :  { %v754_v13 = vsel %vm475_vm2, %v7682_v10, %v750_v58 }
 0x27c   :  { %v762_v18 = vadd.f32 %v754_v13, %v715_v25  ;;  %v891_v13 = vmul.f32 %v888_v6, %v7328_v21 }
 0x27e   :  { %v784_v63 = vpop.permute.xlu1 %783  ;;  %v790_v4 = vpop.permute.xlu0 %789 }
 0x27f   :  { %v797_v62 = vsel %vm475_vm2, %v782_v43, %v784_v63 }
 0x280   :  { %v805_v28 = vadd.f32 %v797_v62, %v759_v60  ;;  %542 = vadd.xlane.f32.xlu1 %v7713_v8 }
 0x282   :  { %v788_v54 = vpop.permute.xlu1 %787  ;;  %v794_v47 = vpop.permute.xlu0 %793  ;;  %v7726_v57 = vadd.f32 %v810_v32, %v805_v28 }
 0x283   :  { %v798_v43 = vsel %vm475_vm2, %v786_v51, %v788_v54 }
 0x284   :  { %v806_v49 = vadd.f32 %v798_v43, %v760_v36  ;;  %815 = vadd.xlane.f32.xlu0 %v7726_v57  ;;  %v883_v36 = vmul.f32 %v882_v34, %v7270_v50 }
 0x286   :  { %v792_v42 = vpop.permute.xlu1 %791  ;;  %v917_v23 = vpop.permute.xlu0 %916  ;;  %v7737_v15 = vadd.f32 %v810_v32, %v806_v49  ;;  %v893_v39 = vadd.f32 %v889_v35, %v883_v36  ;;  %v884_v49 = vmul.f32 %v882_v34, %v7278_v11  ;;  %v886_v35 = vmul.f32 %v882_v34, %v7298_v61 }
 0x287   :  { %v799_v14 = vsel %vm475_vm2, %v790_v4, %v792_v42 }
 0x288   :  { %v807_v38 = vadd.f32 %v799_v14, %v761_v53  ;;  %817 = vadd.xlane.f32.xlu1 %v7737_v15  ;;  %v894_v42 = vadd.f32 %v890_v37, %v884_v49 }
 0x28a   :  { %v796_v24 = vpop.permute.xlu1 %795  ;;  %v925_v31 = vpop.permute.xlu0 %924  ;;  %v7743_v51 = vadd.f32 %v810_v32, %v807_v38  ;;  %v885_v38 = vmul.f32 %v882_v34, %v7288_v56 }
 0x28b   :  { %v800_v3 = vsel %vm475_vm2, %v794_v47, %v796_v24 }
 0x28c   :  { %v808_v59 = vadd.f32 %v800_v3, %v762_v18  ;;  %819 = vadd.xlane.f32.xlu0 %v7743_v51 }
 0x28e   :  { %v919_v44 = vpop.permute.xlu1 %918  ;;  %v7747_v2 = vpop.permute.xlu0 %928  ;;  %v7749_v10 = vadd.f32 %v810_v32, %v808_v59 }
 0x28f   :  { %v932_v47 = vsel %vm381_vm1, %v917_v23, %v919_v44 }
 0x290   :  { %821 = vadd.xlane.f32.xlu0 %v7749_v10  ;;  %v940_v48 = vadd.f32 %v932_v47, %v893_v39 }
 0x292   :  { %v921_v58 = vpop.permute.xlu1 %920  ;;  %v963_v19 = vpop.permute.xlu0 %962 }
 0x296   :  { %v923_v20 = vpop.permute.xlu1 %922  ;;  %v967_v0 = vpop.permute.xlu0 %966 }
 0x297   :  { %v933_v30 = vsel %vm381_vm1, %v921_v58, %v923_v20  ;;  %v895_v20 = vadd.f32 %v891_v13, %v885_v38  ;;  %v561_v38 = vmul.f32 %v7670_v7, %v7670_v7 }
 0x298   :  { %v941_v25 = vadd.f32 %v933_v30, %v894_v42  ;;  %v560_v42 = vmul.f32 %v7713_v8, %v7713_v8 }
 0x29a   :  { %v927_v55 = vpop.permute.xlu1 %926  ;;  %v971_v1 = vpop.permute.xlu0 %970 }
 0x29b   :  { %v934_v59 = vsel %vm381_vm1, %v925_v31, %v927_v55 }
 0x29e   :  { %v931_v29 = vpop.permute.xlu1 %930  ;;  %v975_v60 = vpop.permute.xlu0 %974 }
 0x29f   :  { %v935_v31 = vsel %vm381_vm1, %v7747_v2, %v931_v29 }
 0x2a2   :  { %v965_v63 = vpop.permute.xlu1 %964  ;;  %v1010_v4 = vpop.permute.xlu0 %1009 }
 0x2a3   :  { %v978_v41 = vsel %vm381_vm1, %v963_v19, %v965_v63  ;;  %v1084_v19 = vstv %s6289_s21  ;;  %v892_v63 = vmul.f32 %v888_v6, %v7338_v26  ;;  %s6313_s21 = sld [smem:[#allocation12 + $0x281]] }
 0x2a4   :  { %v986_v14 = vadd.f32 %v978_v41, %v940_v48 }
 0x2a6   :  { %v969_v33 = vpop.permute.xlu1 %968  ;;  %v1014_v40 = vpop.permute.xlu0 %1013 }
 0x2a7   :  { %v979_v23 = vsel %vm381_vm1, %v967_v0, %v969_v33  ;;  %v942_v33 = vadd.f32 %v934_v59, %v895_v20 }
 0x2aa   :  { %v973_v62 = vpop.permute.xlu1 %972  ;;  %v1018_v32 = vpop.permute.xlu0 %1017 }
 0x2ab   :  { %v980_v0 = vsel %vm381_vm1, %v971_v1, %v973_v62 }
 0x2ac   :  { %v988_v6 = vadd.f32 %v980_v0, %v942_v33  ;;  %v6776_v0 = vld [vmem:[#allocation18 + $0x40] sm:$0xff]  }
 0x2ad   :  { %v6777_v33 = vld [vmem:[#allocation18] sm:$0xff]   ;;  %6537 = vmatprep.subr.bf16.mxu0 %v6776_v0 }
 0x2ae   :  { %v977_v5 = vpop.permute.xlu1 %976  ;;  %v1022_v28 = vpop.permute.xlu0 %1021  ;;  %6538 = vmatpush3.bf16.msra.mxu0 %v6777_v33  ;;  %v10592_v0 = vld [vmem:[#allocation31_spill] sm:$0xff] }
 0x2af   :  { %v981_v1 = vsel %vm381_vm1, %v975_v60, %v977_v5 }
 0x2b2   :  { %v1012_v22 = vpop.permute.xlu1 %1011  ;;  %v1056_v43 = vpop.permute.xlu0 %1055 }
 0x2b3   :  { %v1025_v53 = vsel %vm475_vm2, %v1010_v4, %v1012_v22  ;;  %v987_v4 = vadd.f32 %v979_v23, %v941_v25  ;;  %v559_v23 = vmul.f32 %v7662_v45, %v7662_v45  ;;  %v836_v25 = vmul.f32 %v7749_v10, %v7749_v10 }
 0x2b4   :  { %v1033_v18 = vadd.f32 %v1025_v53, %v986_v14  ;;  %v834_v14 = vmul.f32 %v7737_v15, %v7737_v15 }
 0x2b6   :  { %v1016_v17 = vpop.permute.xlu1 %1015  ;;  %v1060_v24 = vpop.permute.xlu0 %1059 }
 0x2b7   :  { %v1026_v44 = vsel %vm475_vm2, %v1014_v40, %v1016_v17  ;;  %v896_v17 = vadd.f32 %v892_v63, %v886_v35  ;;  %v6778_v35 = vld [vmem:[#allocation18 + $0x48] sm:$0xff]  }
 0x2b8   :  { %v1034_v36 = vadd.f32 %v1026_v44, %v987_v4  ;;  %6539 = vmatprep.subr.bf16.mxu0 %v6778_v35  ;;  %v10593_v35 = vld [vmem:[#allocation33_spill] sm:$0xff] }
 0x2b9   :  { %v943_v62 = vadd.f32 %v935_v31, %v896_v17  ;;  %v6780_v31 = vld [vmem:[#allocation18 + $0x50] sm:$0xff]   ;;  %v6782_v17 = vld [vmem:[#allocation18 + $0x58] sm:$0xff]  }
 0x2ba   :  { %v1020_v54 = vpop.permute.xlu1 %1019  ;;  %v1064_v37 = vpop.permute.xlu0 %1063 }
 0x2bb   :  { %v1027_v55 = vsel %vm475_vm2, %v1018_v32, %v1020_v54  ;;  %v989_v29 = vadd.f32 %v981_v1, %v943_v62  ;;  %v6784_v1 = vld [vmem:[#allocation18 + $0x60] sm:$0xff]  }
 0x2bc   :  { %v1035_v34 = vadd.f32 %v1027_v55, %v988_v6 }
 0x2be   :  { %v1024_v46 = vpop.permute.xlu1 %1023  ;;  %v1068_v30 = vpop.permute.xlu0 %1067 }
 0x2bf   :  { %v1028_v49 = vsel %vm475_vm2, %v1022_v28, %v1024_v46  ;;  %v562_v28 = vmul.f32 %v7680_v52, %v7680_v52 }
 0x2c0   :  { %v1036_v54 = vadd.f32 %v1028_v49, %v989_v29  ;;  %v6786_v49 = vld [vmem:[#allocation18 + $0x68] sm:$0xff]  }
 0x2c1   :  { %v6787_v29 = vld [vmem:[#allocation18 + $0x28] sm:$0xff]  }
 0x2c2   :  { %v1058_v3 = vpop.permute.xlu1 %1057 }
 0x2c3   :  { %v1071_v58 = vsel %vm475_vm2, %v1056_v43, %v1058_v3  ;;  %v835_v3 = vmul.f32 %v7743_v51, %v7743_v51 }
 0x2c4   :  { %v1079_v22 = vadd.f32 %v1071_v58, %v1033_v18  ;;  %v7811_v58 = vstv %s6294_s22  ;;  %s6314_s22 = sld [smem:[#allocation10 + $0x282]] }
 0x2c5   :  { %v1174_v20 = vmul.f32 %v7811_v58, %v7270_v50  ;;  %v1178_v63 = vmul.f32 %v7811_v58, %v7288_v56  ;;  %v1180_v4 = vmul.f32 %v7811_v58, %v7298_v61 }
 0x2c6   :  { %v1062_v47 = vpop.permute.xlu1 %1061  ;;  %v7769_v39 = vadd.f32 %v1084_v19, %v1079_v22  ;;  %v7824_v22 = vstv %s6295_s23  ;;  %s6315_s23 = sld [smem:[#allocation12 + $0x282]] }
 0x2c7   :  { %v1072_v40 = vsel %vm475_vm2, %v1060_v24, %v1062_v47  ;;  %v833_v24 = vmul.f32 %v7726_v57, %v7726_v57  ;;  %v6779_v47 = vld [vmem:[#allocation18 + $0x8] sm:$0xff]   ;;  %v1222_v55 = vmul.f32 %v7824_v22, %v7318_v16  ;;  %v1226_v62 = vmul.f32 %v7824_v22, %v7338_v26 }
 0x2c8   :  { %10584 = vst [vmem:[#allocation38_spill] sm:$0xff] %v7769_v39  ;;  %v1080_v43 = vadd.f32 %v1072_v40, %v1034_v36  ;;  %1089 = vadd.xlane.f32.xlu0 %v7769_v39  ;;  %v1107_v59 = vmul.f32 %v7769_v39, %v7769_v39  ;;  %v1220_v36 = vmul.f32 %v7824_v22, %v7310_v12  ;;  %v6781_v40 = vld [vmem:[#allocation18 + $0x10] sm:$0xff]  }
 0x2c9   :  { %6540 = vmatpush3.bf16.msra.mxu0 %v6779_v47  ;;  %v1223_v33 = vmul.f32 %v7824_v22, %v10592_v0  ;;  %v1227_v47 = vmul.f32 %v7824_v22, %v7341_v27 }
 0x2ca   :  { %v1066_v41 = vpop.permute.xlu1 %1065  ;;  %v7777_v48 = vadd.f32 %v1084_v19, %v1080_v43  ;;  %6541 = vmatprep.subr.bf16.mxu0 %v6780_v31  ;;  %v6783_v43 = vld [vmem:[#allocation18 + $0x18] sm:$0xff]  }
 0x2cb   :  { %v1073_v2 = vsel %vm475_vm2, %v1064_v37, %v1066_v41  ;;  %v1224_v37 = vmul.f32 %v7824_v22, %v7328_v21  ;;  %v6785_v41 = vld [vmem:[#allocation18 + $0x20] sm:$0xff]  }
 0x2cc   :  { %10585 = vst [vmem:[#allocation39_spill] sm:$0xff] %v7777_v48  ;;  %v1081_v32 = vadd.f32 %v1073_v2, %v1035_v34  ;;  %1091 = vadd.xlane.f32.xlu1 %v7777_v48  ;;  %v1108_v18 = vmul.f32 %v7777_v48, %v7777_v48  ;;  %v7840_v34 = vstv %s6296_s24  ;;  %s6311_s24 = sld [smem:[#allocation12 + $0x280]] }
 0x2cd   :  { %6542 = vmatpush3.bf16.msra.mxu0 %v6781_v40  ;;  %v1267_v2 = vmul.f32 %v7840_v34, %v7270_v50 }
 0x2ce   :  { %v1070_v53 = vpop.permute.xlu1 %1069  ;;  %v7784_v60 = vadd.f32 %v1084_v19, %v1081_v32  ;;  %6543 = vmatprep.subr.bf16.mxu0 %v6782_v17  ;;  %v6788_v32 = vld [vmem:[#allocation18 + $0x70] sm:$0xff]  }
 0x2cf   :  { %v1074_v5 = vsel %vm475_vm2, %v1068_v30, %v1070_v53  ;;  %v6789_v30 = vld [vmem:[#allocation18 + $0x30] sm:$0xff]   ;;  %v6790_v53 = vld [vmem:[#allocation18 + $0x78] sm:$0xff]  }
 0x2d0   :  { %10586 = vst [vmem:[#allocation40_spill] sm:$0xff] %v7784_v60  ;;  %v1082_v13 = vadd.f32 %v1074_v5, %v1036_v54  ;;  %565 = vadd.xlane.f32.xlu1 %v560_v42  ;;  %1093 = vadd.xlane.f32.xlu0 %v7784_v60  ;;  %v1109_v44 = vmul.f32 %v7784_v60, %v7784_v60 }
 0x2d1   :  { %6544 = vmatpush3.bf16.msra.mxu0 %v6783_v43  ;;  %v1269_v54 = vmul.f32 %v7840_v34, %v7278_v11  ;;  %v1271_v42 = vmul.f32 %v7840_v34, %v7288_v56  ;;  %v1176_v5 = vmul.f32 %v7811_v58, %v7278_v11 }
 0x2d2   :  { %v7790_v46 = vadd.f32 %v1084_v19, %v1082_v13  ;;  %v1175_v19 = vmul.f32 %v7811_v58, %v7273_v9  ;;  %6545 = vmatprep.subr.bf16.mxu0 %v6784_v1  ;;  %v6791_v13 = vld [vmem:[#allocation18 + $0x38] sm:$0xff]  }
 0x2d4   :  { %10587 = vst [vmem:[#allocation41_spill] sm:$0xff] %v7790_v46  ;;  %569 = vadd.xlane.f32.xlu1 %v562_v28  ;;  %1095 = vadd.xlane.f32.xlu0 %v7790_v46  ;;  %v1110_v6 = vmul.f32 %v7790_v46, %v7790_v46  ;;  %v1273_v28 = vmul.f32 %v7840_v34, %v7298_v61 }
 0x2d5   :  { %6546 = vmatpush3.bf16.msra.mxu0 %v6785_v41 }
 0x2d6   :  { %6547 = vmatprep.subr.bf16.mxu0 %v6786_v49 }
 0x2d8   :  { %839 = vadd.xlane.f32.xlu1 %v834_v14  ;;  %563 = vadd.xlane.f32.xlu0 %v559_v23  ;;  %v10588_v14 = vld [vmem:[#allocation27_spill] sm:$0xff] }
 0x2d9   :  { %6548 = vmatpush3.bf16.msra.mxu0 %v6787_v29  ;;  %v1177_v23 = vmul.f32 %v7811_v58, %v10588_v14  ;;  %v1270_v17 = vmul.f32 %v7840_v34, %v10588_v14 }
 0x2da   :  { %6549 = vmatprep.subr.bf16.mxu0 %v6788_v32 }
 0x2dc   :  { %843 = vadd.xlane.f32.xlu1 %v836_v25  ;;  %567 = vadd.xlane.f32.xlu0 %v561_v38  ;;  %v1312_v25 = vstv %s6297_s1  ;;  %s6310_s1 = sld [smem:[#allocation10 + $0x280]] }
 0x2dd   :  { %6550 = vmatpush3.bf16.msra.mxu0 %v6789_v30  ;;  %v1313_v38 = vmul.f32 %v1312_v25, %v7310_v12  ;;  %v1316_v32 = vmul.f32 %v1312_v25, %v10592_v0 }
 0x2de   :  { %6551 = vmatprep.subr.bf16.mxu0 %v6790_v53 }
 0x2e0   :  { %1113 = vadd.xlane.f32.xlu1 %v1108_v18  ;;  %837 = vadd.xlane.f32.xlu0 %v833_v24  ;;  %v10589_v18 = vld [vmem:[#allocation28_spill] sm:$0xff] }
 0x2e1   :  { %6552 = vmatpush3.bf16.msra.mxu0 %v6791_v13  ;;  %v1179_v24 = vmul.f32 %v7811_v58, %v10589_v18 }
 0x2e4   :  { %841 = vadd.xlane.f32.xlu0 %v835_v3  ;;  %v1315_v3 = vmul.f32 %v1312_v25, %v7318_v16 }
 0x2e8   :  { %1111 = vadd.xlane.f32.xlu0 %v1107_v59  ;;  %v10590_v59 = vld [vmem:[#allocation29_spill] sm:$0xff] }
 0x2e9   :  { %v1274_v1 = vmul.f32 %v7840_v34, %v10590_v59 }
 0x2ec   :  { %1115 = vadd.xlane.f32.xlu0 %v1109_v44  ;;  %v1181_v44 = vmul.f32 %v7811_v58, %v10590_v59 }
 0x2f1   :  { %1192 = vrot.lane.b32.xlu1 %v1175_v19, %s7080_s5  ;;  %v1317_v19 = vmul.f32 %v1312_v25, %v7328_v21 }
 0x2f8   :  { %v541_v58 = vpop.xlane.xlu0 %540 }
 0x2fc   :  { %v545_v31 = vpop.xlane.xlu0 %544 }
 0x300   :  { %v547_v40 = vpop.xlane.xlu0 %546 }
 0x302   :  { %1190 = vrot.lane.b32.xlu0 %v1174_v20, %s7080_s5  ;;  %v10591_v20 = vld [vmem:[#allocation30_spill] sm:$0xff] }
 0x303   :  { %v1314_v41 = vmul.f32 %v1312_v25, %v10591_v20 }
 0x306   :  { %1198 = vrot.lane.b32.xlu0 %v1178_v63, %s7080_s5  ;;  %v1221_v63 = vmul.f32 %v7824_v22, %v10591_v20 }
 0x30a   :  { %1202 = vrot.lane.b32.xlu0 %v1180_v4, %s7080_s5  ;;  %v1319_v4 = vmul.f32 %v1312_v25, %v7338_v26 }
 0x30e   :  { %1236 = vrot.lane.b32.xlu0 %v1220_v36, %s7080_s5  ;;  %v1225_v36 = vmul.f32 %v7824_v22, %v10593_v35  ;;  %v543_v22 = vpop.xlane.xlu1 %542 }
 0x312   :  { %1240 = vrot.lane.b32.xlu0 %v1222_v55, %s7080_s5  ;;  %v1268_v55 = vmul.f32 %v7840_v34, %v7273_v9 }
 0x315   :  { %1117 = vadd.xlane.f32.xlu1 %v1110_v6  ;;  %v816_v6 = vpop.xlane.xlu0 %815  ;;  %v818_v29 = vpop.xlane.xlu1 %817 }
 0x316   :  { %1244 = vrot.lane.b32.xlu0 %v1224_v37, %s7080_s5  ;;  %v1272_v37 = vmul.f32 %v7840_v34, %v10589_v18  ;;  %v1318_v34 = vmul.f32 %v1312_v25, %v10593_v35  ;;  %v823_v13 = vadd.f32 %v818_v29, %v816_v6 }
 0x319   :  { %v820_v43 = vpop.xlane.xlu0 %819 }
 0x31a   :  { %1248 = vrot.lane.b32.xlu0 %v1226_v62, %s7080_s5  ;;  %v548_v62 = vadd.f32 %v543_v22, %v541_v58 }
 0x31d   :  { %v822_v49 = vpop.xlane.xlu0 %821 }
 0x31e   :  { %1283 = vrot.lane.b32.xlu0 %v1267_v2, %s7081_s0  ;;  %v549_v2 = vadd.f32 %v548_v62, %v545_v31 }
 0x320   :  { %v550_v30 = vadd.f32 %v549_v2, %v547_v40 }
 0x322   :  { %1287 = vrot.lane.b32.xlu0 %v1269_v54, %s7081_s0 }
 0x326   :  { %1291 = vrot.lane.b32.xlu0 %v1271_v42, %s7081_s0  ;;  %1194 = vrot.lane.b32.xlu1 %v1176_v5, %s7080_s5  ;;  %v551_v5 = vrot.slane %v550_v30, 4 }
 0x32a   :  { %1295 = vrot.lane.b32.xlu0 %v1273_v28, %s7081_s0  ;;  %1196 = vrot.lane.b32.xlu1 %v1177_v23, %s7080_s5  ;;  %v824_v28 = vadd.f32 %v823_v13, %v820_v43  ;;  %v1320_v23 = vmul.f32 %v1312_v25, %v7341_v27 }
 0x32e   :  { %1329 = vrot.lane.b32.xlu0 %v1313_v38, %s7081_s0  ;;  %1200 = vrot.lane.b32.xlu1 %v1179_v24, %s7080_s5 }
 0x332   :  { %1333 = vrot.lane.b32.xlu0 %v1315_v3, %s7081_s0  ;;  %1204 = vrot.lane.b32.xlu1 %v1181_v44, %s7080_s5  ;;  %v552_v3 = vadd.f32 %v551_v5, %v550_v30  ;;  %v825_v44 = vadd.f32 %v824_v28, %v822_v49 }
 0x336   :  { %1337 = vrot.lane.b32.xlu0 %v1317_v19, %s7081_s0  ;;  %1238 = vrot.lane.b32.xlu1 %v1221_v63, %s7080_s5  ;;  %v553_v63 = vrot.slane %v552_v3, 2 }
 0x33a   :  { %1341 = vrot.lane.b32.xlu0 %v1319_v4, %s7081_s0  ;;  %1242 = vrot.lane.b32.xlu1 %v1223_v33, %s7080_s5  ;;  %v826_v4 = vrot.slane %v825_v44, 4 }
 0x33c   :  { %v827_v31 = vadd.f32 %v826_v4, %v825_v44 }
 0x33e   :  { %1246 = vrot.lane.b32.xlu1 %v1225_v36, %s7080_s5 }
 0x342   :  { %1250 = vrot.lane.b32.xlu1 %v1227_v47, %s7080_s5  ;;  %v554_v47 = vadd.f32 %v553_v63, %v552_v3 }
 0x344   :  { %v555_v25 = vrot.slane %v554_v47, 1 }
 0x346   :  { %1285 = vrot.lane.b32.xlu1 %v1268_v55, %s7081_s0 }
 0x34a   :  { %1289 = vrot.lane.b32.xlu1 %v1270_v17, %s7081_s0 }
 0x34e   :  { %1293 = vrot.lane.b32.xlu1 %v1272_v37, %s7081_s0  ;;  %v828_v37 = vrot.slane %v827_v31, 2 }
 0x350   :  { %v829_v49 = vadd.f32 %v828_v37, %v827_v31 }
 0x352   :  { %1297 = vrot.lane.b32.xlu1 %v1274_v1, %s7081_s0  ;;  %v830_v13 = vrot.slane %v829_v49, 1 }
 0x354   :  { %v831_v44 = vadd.f32 %v830_v13, %v829_v49 }
 0x355   :  { %v7902_v54 = vpop.xlane.xlu0 %1089 }
 0x356   :  { %1331 = vrot.lane.b32.xlu1 %v1314_v41, %s7081_s0  ;;  %v556_v41 = vadd.f32 %v555_v25, %v554_v47 }
 0x358   :  { %v558_v5 = vmul.f32 0.00024414063, %v556_v41 }
 0x359   :  { %v7905_v53 = vpop.xlane.xlu1 %1091 }
 0x35a   :  { %1335 = vrot.lane.b32.xlu1 %v1316_v32, %s7081_s0 }
 0x35d   :  { %v7908_v42 = vpop.xlane.xlu0 %1093  ;;  %v566_v38 = vpop.xlane.xlu1 %565 }
 0x35e   :  { %1339 = vrot.lane.b32.xlu1 %v1318_v34, %s7081_s0 }
 0x361   :  { %v7912_v24 = vpop.xlane.xlu0 %1095  ;;  %v570_v33 = vpop.xlane.xlu1 %569 }
 0x362   :  { %1343 = vrot.lane.b32.xlu1 %v1320_v23, %s7081_s0 }
 0x365   :  { %v564_v19 = vpop.xlane.xlu0 %563  ;;  %v840_v17 = vpop.xlane.xlu1 %839 }
 0x366   :  { %v571_v58 = vadd.f32 %v566_v38, %v564_v19  ;;  %v581_v19 = vmul.f32 %v558_v5, %v558_v5 }
 0x369   :  { %v568_v36 = vpop.xlane.xlu0 %567  ;;  %v844_v32 = vpop.xlane.xlu1 %843 }
 0x36a   :  { %v572_v55 = vadd.f32 %v571_v58, %v568_v36  ;;  %v832_v36 = vmul.f32 0.00024414063, %v831_v44 }
 0x36c   :  { %v573_v40 = vadd.f32 %v572_v55, %v570_v33 }
 0x36d   :  { %v838_v6 = vpop.xlane.xlu0 %837 }
 0x36e   :  { %v574_v22 = vrot.slane %v573_v40, 4  ;;  %v845_v1 = vadd.f32 %v840_v17, %v838_v6  ;;  %v855_v17 = vmul.f32 %v832_v36, %v832_v36 }
 0x370   :  { %v575_v43 = vadd.f32 %v574_v22, %v573_v40 }
 0x371   :  { %v842_v62 = vpop.xlane.xlu0 %841 }
 0x372   :  { %v576_v2 = vrot.slane %v575_v43, 2  ;;  %v846_v29 = vadd.f32 %v845_v1, %v842_v62  ;;  %v587_v62 = vstv %s584_s27  ;;  %s6316_s27 = sld [smem:[#allocation13 + $0x5]] }
 0x374   :  { %v577_v30 = vadd.f32 %v576_v2, %v575_v43  ;;  %v847_v34 = vadd.f32 %v846_v29, %v844_v32  ;;  %v595_v32 = vstv %s593_s28  ;;  %s6321_s28 = sld [smem:[#allocation10 + $0x301]] }
 0x375   :  { %v7915_v25 = vpop.xlane.xlu0 %1111 }
 0x376   :  { %v578_v28 = vrot.slane %v577_v30, 1  ;;  %v848_v23 = vrot.slane %v847_v34, 4 }
 0x378   :  { %v579_v38 = vadd.f32 %v578_v28, %v577_v30  ;;  %v849_v3 = vadd.f32 %v848_v23, %v847_v34  ;;  %v861_v30 = vstv %s6281_s29  ;;  %s6322_s29 = sld [smem:[#allocation12 + $0x301]] }
 0x379   :  { %v7917_v1 = vpop.xlane.xlu0 %1115 }
 0x37a   :  { %v580_v63 = vmul.f32 0.00024414063, %v579_v38  ;;  %v850_v4 = vrot.slane %v849_v3, 2  ;;  %v869_v38 = vstv %s6282_s8  ;;  %s6323_s8 = sld [smem:[#allocation10 + $0x302]] }
 0x37c   :  { %v582_v33 = vsub.f32 %v580_v63, %v581_v19  ;;  %v851_v58 = vadd.f32 %v850_v4, %v849_v3  ;;  %v7925_v63 = vpop.xlane.xlu1 %1113 }
 0x37d   :  { %v7919_v2 = vpop.permute.xlu0 %1190 }
 0x37e   :  { %v583_v47 = vmax.f32 %v582_v33, 0.0  ;;  %v852_v31 = vrot.slane %v851_v58, 1 }
 0x380   :  { %v585_v55 = vadd.f32 1e-05, %v583_v47  ;;  %v853_v40 = vadd.f32 %v852_v31, %v851_v58 }
 0x381   :  { %v7921_v13 = vpop.permute.xlu0 %1198 }
 0x382   :  { %6908 = vrsqrt.f32 %v585_v55  ;;  %v854_v6 = vmul.f32 0.00024414063, %v853_v40 }
 0x384   :  { %v856_v37 = vsub.f32 %v854_v6, %v855_v17 }
 0x385   :  { %v7931_v40 = vpop.permute.xlu0 %1202 }
 0x386   :  { %v857_v22 = vmax.f32 %v856_v37, 0.0 }
 0x388   :  { %v859_v43 = vadd.f32 1e-05, %v857_v22 }
 0x38a   :  { %6910 = vrsqrt.f32 %v859_v43 }
 0x38c   :  { %v6909_v41 = vpop.eup %6908 }
 0x38d   :  { %v588_v49 = vmul.f32 %v6909_v41, %v587_v62  ;;  %v1193_v41 = vpop.permute.xlu1 %1192 }
 0x38f   :  { %v594_v29 = vmul.f32 %v588_v49, %v558_v5  ;;  %v589_v3 = vmul.f32 %v588_v49, %v7662_v45  ;;  %v590_v44 = vmul.f32 %v588_v49, %v7713_v8 }
 0x391   :  { %v596_v28 = vsub.f32 %v595_v32, %v594_v29  ;;  %v592_v29 = vmul.f32 %v588_v49, %v7680_v52  ;;  %v1237_v32 = vpop.permute.xlu0 %1236 }
 0x393   :  { %v597_v33 = vadd.f32 %v596_v28, %v589_v3  ;;  %v598_v58 = vadd.f32 %v596_v28, %v590_v44 }
 0x394   :  { %v6911_v34 = vpop.eup %6910 }
 0x395   :  { %v862_v23 = vmul.f32 %v6911_v34, %v861_v30  ;;  %v602_v37 = vmax.f32 %v598_v58, 0.0  ;;  %v600_v34 = vadd.f32 %v596_v28, %v592_v29  ;;  %v1206_v29 = vsel %vm381_vm1, %v7919_v2, %v1193_v41 }
 0x397   :  { %v868_v19 = vmul.f32 %v862_v23, %v832_v36  ;;  %v863_v4 = vmul.f32 %v862_v23, %v7726_v57  ;;  %v864_v5 = vmul.f32 %v862_v23, %v7737_v15  ;;  %v865_v31 = vmul.f32 %v862_v23, %v7743_v51 }
 0x398   :  { %v866_v55 = vmul.f32 %v862_v23, %v7749_v10  ;;  %v601_v36 = vmax.f32 %v597_v33, 0.0  ;;  %v591_v15 = vmul.f32 %v588_v49, %v7670_v7  ;;  %v604_v44 = vmax.f32 %v600_v34, 0.0 }
 0x399   :  { %v870_v47 = vsub.f32 %v869_v38, %v868_v19  ;;  %v1241_v19 = vpop.permute.xlu0 %1240 }
 0x39a   :  { %v4715_v10 = vpack.c.bf16 %v602_v37, %v601_v36  ;;  %v599_v30 = vadd.f32 %v596_v28, %v591_v15  ;;  %v1162_v36 = vstv %s6293_s30  ;;  %s6324_s30 = sld [smem:[#allocation12 + $0x302]] }
 0x39b   :  { %v871_v17 = vadd.f32 %v870_v47, %v863_v4  ;;  %v872_v45 = vadd.f32 %v870_v47, %v864_v5  ;;  %v873_v6 = vadd.f32 %v870_v47, %v865_v31  ;;  %v874_v8 = vadd.f32 %v870_v47, %v866_v55 }
 0x39c   :  { %v603_v3 = vmax.f32 %v599_v30, 0.0  ;;  %v1164_v30 = vmul.f32 %v1162_v36, %v7318_v16  ;;  %v1165_v48 = vmul.f32 %v1162_v36, %v7328_v21 }
 0x39d   :  { %v875_v22 = vmax.f32 %v871_v17, 0.0  ;;  %v876_v43 = vmax.f32 %v872_v45, 0.0  ;;  %v877_v57 = vmax.f32 %v873_v6, 0.0  ;;  %v878_v62 = vmax.f32 %v874_v8, 0.0  ;;  %v1245_v7 = vpop.permute.xlu0 %1244 }
 0x39e   :  { %v4731_v33 = vpack.c.bf16 %v604_v44, %v603_v3 }
 0x39f   :  { %v4716_v51 = vpack.c.bf16 %v876_v43, %v875_v22  ;;  %v4732_v23 = vpack.c.bf16 %v878_v62, %v877_v57  ;;  %v1156_v43 = vstv %s6292_s12  ;;  %v1163_v57 = vmul.f32 %v1162_v36, %v7310_v12  ;;  %s6308_s12 = sld [smem:[#allocation15 + $0x4]] }
 0x3a0   :  { %v1157_v62 = vmul.f32 %v1156_v43, %v7270_v50  ;;  %v1158_v3 = vmul.f32 %v1156_v43, %v7278_v11 }
 0x3a1   :  { %5807 = vmatprep.mubr.bf16.mxu0 %v4716_v51  ;;  %v1249_v49 = vpop.permute.xlu0 %1248 }
 0x3a2   :  { %v7935_v38 = vpop.xlane.xlu1 %1117  ;;  %5808 = vmatmul.mubr.bf16.vlgmr.msra.gmra.mrb[0].mxu0 %v4715_v10  ;;  %v1167_v51 = vadd.f32 %v1163_v57, %v1157_v62  ;;  %v1168_v60 = vadd.f32 %v1164_v30, %v1158_v3  ;;  %v1159_v62 = vmul.f32 %v1156_v43, %v7288_v56 }
 0x3a3   :  { %10594 = vst [vmem:[#allocation27_spill] sm:$0xff] %v7935_v38  ;;  %5815 = vmatprep.mubr.bf16.mxu0 %v4732_v23 }
 0x3a4   :  { %v1214_v23 = vadd.f32 %v1206_v29, %v1167_v51 }
 0x3a5   :  { %v1284_v31 = vpop.permute.xlu0 %1283 }
 0x3a6   :  { %v1195_v4 = vpop.permute.xlu1 %1194 }
 0x3a9   :  { %v1288_v55 = vpop.permute.xlu0 %1287 }
 0x3aa   :  { %v1197_v58 = vpop.permute.xlu1 %1196  ;;  %5816 = vmatmul.mubr.bf16.gmra.mrb[4].mxu0 %v4731_v33 }
 0x3ab   :  { %v1207_v33 = vsel %vm381_vm1, %v1195_v4, %v1197_v58  ;;  %v1358_v58 = vstv %s6298_s13  ;;  %s6309_s13 = sld [smem:[#allocation16 + $0x4]] }
 0x3ac   :  { %v1215_v41 = vadd.f32 %v1207_v33, %v1168_v60 }
 0x3ad   :  { %v1292_v6 = vpop.permute.xlu0 %1291 }
 0x3ae   :  { %v1201_v52 = vpop.permute.xlu1 %1200 }
 0x3b1   :  { %v1296_v37 = vpop.permute.xlu0 %1295 }
 0x3b2   :  { %v1205_v5 = vpop.permute.xlu1 %1204 }
 0x3b5   :  { %v1330_v10 = vpop.permute.xlu0 %1329 }
 0x3b6   :  { %v1239_v47 = vpop.permute.xlu1 %1238 }
 0x3b7   :  { %v1252_v34 = vsel %vm381_vm1, %v1237_v32, %v1239_v47  ;;  %v1208_v47 = vsel %vm381_vm1, %v7921_v13, %v1201_v52  ;;  %v1209_v13 = vsel %vm381_vm1, %v7931_v40, %v1205_v5 }
 0x3b8   :  { %v1260_v39 = vadd.f32 %v1252_v34, %v1214_v23 }
 0x3b9   :  { %v1334_v57 = vpop.permute.xlu0 %1333 }
 0x3ba   :  { %v1243_v28 = vpop.permute.xlu1 %1242 }
 0x3bb   :  { %v1253_v2 = vsel %vm381_vm1, %v1241_v19, %v1243_v28  ;;  %v1160_v28 = vmul.f32 %v1156_v43, %v7298_v61 }
 0x3bc   :  { %v1261_v51 = vadd.f32 %v1253_v2, %v1215_v41 }
 0x3be   :  { %v1247_v17 = vpop.permute.xlu1 %1246 }
 0x3bf   :  { %v1254_v60 = vsel %vm381_vm1, %v1245_v7, %v1247_v17 }
 0x3c2   :  { %v1251_v45 = vpop.permute.xlu1 %1250 }
 0x3c3   :  { %v1255_v7 = vsel %vm381_vm1, %v1249_v49, %v1251_v45 }
 0x3c6   :  { %v1286_v8 = vpop.permute.xlu1 %1285 }
 0x3c7   :  { %v1299_v46 = vsel %vm475_vm2, %v1284_v31, %v1286_v8  ;;  %v1169_v31 = vadd.f32 %v1165_v48, %v1159_v62  ;;  %v1166_v8 = vmul.f32 %v1162_v36, %v7338_v26 }
 0x3c8   :  { %v1307_v38 = vadd.f32 %v1299_v46, %v1260_v39 }
 0x3c9   :  { %v1216_v19 = vadd.f32 %v1208_v47, %v1169_v31  ;;  %v1170_v36 = vadd.f32 %v1166_v8, %v1160_v28  ;;  %v1447_v47 = vstv %s6303_s14  ;;  %s6317_s14 = sld [smem:[#allocation15 + $0x5]] }
 0x3ca   :  { %v1290_v22 = vpop.permute.xlu1 %1289  ;;  %v1448_v31 = vmul.f32 %v1447_v47, %v7270_v50  ;;  %v1453_v8 = vmul.f32 %v1447_v47, %v10589_v18 }
 0x3cb   :  { %v1300_v29 = vsel %vm475_vm2, %v1288_v55, %v1290_v22  ;;  %v1338_v55 = vpop.permute.xlu0 %1337  ;;  %v1262_v22 = vadd.f32 %v1254_v60, %v1216_v19  ;;  %v1217_v17 = vadd.f32 %v1209_v13, %v1170_v36  ;;  %v1493_v60 = vstv %s6304_s6  ;;  %v6794_v36 = vld [vmem:[#allocation18 + $0xc8] sm:$0xff]   ;;  %s6320_s6 = sld [smem:[#allocation12 + $0x300]] }
 0x3cc   :  { %v1308_v39 = vadd.f32 %v1300_v29, %v1261_v51  ;;  %v1449_v29 = vmul.f32 %v1447_v47, %v7273_v9  ;;  %v1452_v51 = vmul.f32 %v1447_v47, %v7288_v56  ;;  %v1454_v19 = vmul.f32 %v1447_v47, %v7298_v61 }
 0x3cd   :  { %v1263_v5 = vadd.f32 %v1255_v7, %v1217_v17  ;;  %v1495_v28 = vmul.f32 %v1493_v60, %v10591_v20  ;;  %v1496_v13 = vmul.f32 %v1493_v60, %v7318_v16  ;;  %v6795_v7 = vld [vmem:[#allocation18 + $0x88] sm:$0xff]   ;;  %v1540_v17 = vstv %s6305_s15  ;;  %s6319_s15 = sld [smem:[#allocation10 + $0x300]] }
 0x3ce   :  { %v1294_v15 = vpop.permute.xlu1 %1293 }
 0x3cf   :  { %v1301_v52 = vsel %vm475_vm2, %v1292_v6, %v1294_v15  ;;  %v1342_v15 = vpop.permute.xlu0 %1341 }
 0x3d0   :  { %v1309_v43 = vadd.f32 %v1301_v52, %v1262_v22  ;;  %v1499_v52 = vmul.f32 %v1493_v60, %v10593_v35  ;;  %v1498_v22 = vmul.f32 %v1493_v60, %v7328_v21 }
 0x3d2   :  { %v1298_v44 = vpop.permute.xlu1 %1297 }
 0x3d3   :  { %v1302_v3 = vsel %vm475_vm2, %v1296_v37, %v1298_v44 }
 0x3d4   :  { %v1310_v33 = vadd.f32 %v1302_v3, %v1263_v5  ;;  %v1542_v3 = vmul.f32 %v1540_v17, %v7273_v9  ;;  %v6798_v5 = vld [vmem:[#allocation18 + $0xd8] sm:$0xff]  }
 0x3d6   :  { %v1332_v32 = vpop.permute.xlu1 %1331 }
 0x3d7   :  { %v1345_v4 = vsel %vm475_vm2, %v1330_v10, %v1332_v32 }
 0x3d8   :  { %v1353_v30 = vadd.f32 %v1345_v4, %v1307_v38  ;;  %v1450_v4 = vmul.f32 %v1447_v47, %v7278_v11 }
 0x3da   :  { %v1336_v46 = vpop.permute.xlu1 %1335  ;;  %v7956_v34 = vadd.f32 %v1358_v58, %v1353_v30  ;;  %v1455_v30 = vmul.f32 %v1447_v47, %v10590_v59 }
 0x3db   :  { %v1346_v48 = vsel %vm475_vm2, %v1334_v57, %v1336_v46  ;;  %v1497_v46 = vmul.f32 %v1493_v60, %v10592_v0 }
 0x3dc   :  { %v1354_v38 = vadd.f32 %v1346_v48, %v1308_v39  ;;  %1363 = vadd.xlane.f32.xlu0 %v7956_v34  ;;  %v1381_v62 = vmul.f32 %v7956_v34, %v7956_v34  ;;  %v1494_v39 = vmul.f32 %v1493_v60, %v7310_v12  ;;  %v6792_v48 = vld [vmem:[#allocation18 + $0xc0] sm:$0xff]  }
 0x3dd   :  { %6565 = vmatprep.subr.bf16.mxu1 %v6792_v48  ;;  %v1097_v48 = vadd.f32 %v7905_v53, %v7902_v54 }
 0x3de   :  { %v1340_v10 = vpop.permute.xlu1 %1339  ;;  %v7964_v23 = vadd.f32 %v1358_v58, %v1354_v38  ;;  %v1501_v38 = vmul.f32 %v1493_v60, %v7341_v27 }
 0x3df   :  { %v1347_v40 = vsel %vm475_vm2, %v1338_v55, %v1340_v10  ;;  %v6793_v55 = vld [vmem:[#allocation18 + $0x80] sm:$0xff]   ;;  %v1500_v10 = vmul.f32 %v1493_v60, %v7338_v26 }
 0x3e0   :  { %v1355_v6 = vadd.f32 %v1347_v40, %v1309_v43  ;;  %1365 = vadd.xlane.f32.xlu1 %v7964_v23  ;;  %v1382_v41 = vmul.f32 %v7964_v23, %v7964_v23  ;;  %6566 = vmatpush3.bf16.msra.mxu1 %v6793_v55  ;;  %v6796_v43 = vld [vmem:[#allocation18 + $0xd0] sm:$0xff]   ;;  %v1098_v55 = vadd.f32 %v1097_v48, %v7908_v42 }
 0x3e1   :  { %6567 = vmatprep.subr.bf16.mxu1 %v6794_v36  ;;  %v6797_v40 = vld [vmem:[#allocation18 + $0x90] sm:$0xff]   ;;  %v1119_v36 = vadd.f32 %v7925_v63, %v7915_v25 }
 0x3e2   :  { %v1344_v2 = vpop.permute.xlu1 %1343  ;;  %v7971_v49 = vadd.f32 %v1358_v58, %v1355_v6  ;;  %v1541_v6 = vmul.f32 %v1540_v17, %v7270_v50 }
 0x3e3   :  { %v1348_v45 = vsel %vm475_vm2, %v1342_v15, %v1344_v2  ;;  %v1544_v15 = vmul.f32 %v1540_v17, %v10588_v14  ;;  %v6800_v2 = vld [vmem:[#allocation18 + $0xe0] sm:$0xff]  }
 0x3e4   :  { %v1356_v57 = vadd.f32 %v1348_v45, %v1310_v33  ;;  %1387 = vadd.xlane.f32.xlu1 %v1382_v41  ;;  %1367 = vadd.xlane.f32.xlu0 %v7971_v49  ;;  %v1383_v32 = vmul.f32 %v7971_v49, %v7971_v49  ;;  %v6799_v33 = vld [vmem:[#allocation18 + $0x98] sm:$0xff]   ;;  %v1543_v41 = vmul.f32 %v1540_v17, %v7278_v11 }
 0x3e5   :  { %6568 = vmatpush3.bf16.msra.mxu1 %v6795_v7  ;;  %v1546_v45 = vmul.f32 %v1540_v17, %v10589_v18  ;;  %v10595_v7 = vld [vmem:[#allocation27_spill] sm:$0xff] }
 0x3e6   :  { %v7975_v37 = vadd.f32 %v1358_v58, %v1356_v57  ;;  %v1451_v58 = vmul.f32 %v1447_v47, %v10588_v14  ;;  %6569 = vmatprep.subr.bf16.mxu1 %v6796_v43  ;;  %v6801_v57 = vld [vmem:[#allocation18 + $0xa0] sm:$0xff]   ;;  %v6803_v47 = vld [vmem:[#allocation18 + $0xa8] sm:$0xff]  }
 0x3e8   :  { %1369 = vadd.xlane.f32.xlu0 %v7975_v37  ;;  %v1384_v44 = vmul.f32 %v7975_v37, %v7975_v37 }
 0x3e9   :  { %6570 = vmatpush3.bf16.msra.mxu1 %v6797_v40 }
 0x3ea   :  { %1391 = vadd.xlane.f32.xlu1 %v1384_v44  ;;  %6571 = vmatprep.subr.bf16.mxu1 %v6798_v5  ;;  %v6802_v44 = vld [vmem:[#allocation18 + $0xe8] sm:$0xff]  }
 0x3ec   :  { %1385 = vadd.xlane.f32.xlu0 %v1381_v62  ;;  %v1545_v62 = vmul.f32 %v1540_v17, %v7288_v56 }
 0x3ed   :  { %6572 = vmatpush3.bf16.msra.mxu1 %v6799_v33 }
 0x3ee   :  { %6573 = vmatprep.subr.bf16.mxu1 %v6800_v2 }
 0x3f0   :  { %1389 = vadd.xlane.f32.xlu0 %v1383_v32  ;;  %v1548_v32 = vmul.f32 %v1540_v17, %v10590_v59 }
 0x3f1   :  { %6574 = vmatpush3.bf16.msra.mxu1 %v6801_v57 }
 0x3f2   :  { %6575 = vmatprep.subr.bf16.mxu1 %v6802_v44 }
 0x3f5   :  { %6576 = vmatpush3.bf16.msra.mxu1 %v6803_v47 }
 0x3fb   :  { %1466 = vrot.lane.b32.xlu1 %v1449_v29, %s7080_s5  ;;  %v1586_v29 = vstv %s6306_s16  ;;  %s6318_s16 = sld [smem:[#allocation16 + $0x5]] }
 0x3fc   :  { %v1590_v60 = vmul.f32 %v1586_v29, %v10592_v0 }
 0x3ff   :  { %1468 = vrot.lane.b32.xlu1 %v1450_v4, %s7080_s5  ;;  %v6804_v4 = vld [vmem:[#allocation18 + $0xf0] sm:$0xff]  }
 0x400   :  { %6577 = vmatprep.subr.bf16.mxu1 %v6804_v4 }
 0x403   :  { %1470 = vrot.lane.b32.xlu1 %v1451_v58, %s7080_s5  ;;  %v1547_v58 = vmul.f32 %v1540_v17, %v7298_v61 }
 0x406   :  { %1464 = vrot.lane.b32.xlu0 %v1448_v31, %s7080_s5  ;;  %v1588_v31 = vmul.f32 %v1586_v29, %v10591_v20 }
 0x407   :  { %1474 = vrot.lane.b32.xlu1 %v1453_v8, %s7080_s5  ;;  %v6805_v8 = vld [vmem:[#allocation18 + $0xb0] sm:$0xff]  }
 0x408   :  { %6578 = vmatpush3.bf16.msra.mxu1 %v6805_v8 }
 0x40a   :  { %1472 = vrot.lane.b32.xlu0 %v1452_v51, %s7080_s5  ;;  %v6806_v51 = vld [vmem:[#allocation18 + $0xf8] sm:$0xff]  }
 0x40b   :  { %1478 = vrot.lane.b32.xlu1 %v1455_v30, %s7080_s5  ;;  %v1587_v30 = vmul.f32 %v1586_v29, %v7310_v12  ;;  %6579 = vmatprep.subr.bf16.mxu1 %v6806_v51 }
 0x40e   :  { %1476 = vrot.lane.b32.xlu0 %v1454_v19, %s7080_s5  ;;  %v6807_v19 = vld [vmem:[#allocation18 + $0xb8] sm:$0xff]  }
 0x40f   :  { %1512 = vrot.lane.b32.xlu1 %v1495_v28, %s7080_s5  ;;  %v1589_v28 = vmul.f32 %v1586_v29, %v7318_v16  ;;  %6580 = vmatpush3.bf16.msra.mxu1 %v6807_v19 }
 0x412   :  { %1510 = vrot.lane.b32.xlu0 %v1494_v39, %s7080_s5  ;;  %v1592_v39 = vmul.f32 %v1586_v29, %v10593_v35 }
 0x413   :  { %1516 = vrot.lane.b32.xlu1 %v1497_v46, %s7080_s5  ;;  %v1591_v46 = vmul.f32 %v1586_v29, %v7328_v21 }
 0x416   :  { %1514 = vrot.lane.b32.xlu0 %v1496_v13, %s7080_s5  ;;  %v1594_v13 = vmul.f32 %v1586_v29, %v7341_v27 }
 0x417   :  { %1520 = vrot.lane.b32.xlu1 %v1499_v52, %s7080_s5  ;;  %v1593_v52 = vmul.f32 %v1586_v29, %v7338_v26 }
 0x41a   :  { %1518 = vrot.lane.b32.xlu0 %v1498_v22, %s7080_s5  ;;  %v1099_v22 = vadd.f32 %v1098_v55, %v7912_v24 }
 0x41b   :  { %1524 = vrot.lane.b32.xlu1 %v1501_v38, %s7080_s5  ;;  %v1120_v38 = vadd.f32 %v1119_v36, %v7917_v1 }
 0x41c   :  { %v1100_v43 = vrot.slane %v1099_v22, 4 }
 0x41d   :  { %v1121_v17 = vadd.f32 %v1120_v38, %v10595_v7 }
 0x41e   :  { %1522 = vrot.lane.b32.xlu0 %v1500_v10, %s7080_s5 }
 0x41f   :  { %1559 = vrot.lane.b32.xlu1 %v1542_v3, %s7081_s0  ;;  %v1122_v10 = vrot.slane %v1121_v17, 4  ;;  %v1101_v3 = vadd.f32 %v1100_v43, %v1099_v22 }
 0x421   :  { %v1123_v40 = vadd.f32 %v1122_v10, %v1121_v17  ;;  %v1102_v5 = vrot.slane %v1101_v3, 2 }
 0x422   :  { %1557 = vrot.lane.b32.xlu0 %v1541_v6, %s7081_s0 }
 0x423   :  { %1563 = vrot.lane.b32.xlu1 %v1544_v15, %s7081_s0  ;;  %v1124_v6 = vrot.slane %v1123_v40, 2  ;;  %v1103_v15 = vadd.f32 %v1102_v5, %v1101_v3 }
 0x425   :  { %v1125_v53 = vadd.f32 %v1124_v6, %v1123_v40  ;;  %v1104_v42 = vrot.slane %v1103_v15, 1 }
 0x426   :  { %1561 = vrot.lane.b32.xlu0 %v1543_v41, %s7081_s0 }
 0x427   :  { %1567 = vrot.lane.b32.xlu1 %v1546_v45, %s7081_s0  ;;  %v1126_v25 = vrot.slane %v1125_v53, 1  ;;  %v1105_v45 = vadd.f32 %v1104_v42, %v1103_v15 }
 0x429   :  { %v1106_v8 = vmul.f32 0.00024414063, %v1105_v45 }
 0x42a   :  { %1565 = vrot.lane.b32.xlu0 %v1545_v62, %s7081_s0 }
 0x42b   :  { %1571 = vrot.lane.b32.xlu1 %v1548_v32, %s7081_s0  ;;  %v1127_v32 = vadd.f32 %v1126_v25, %v1125_v53 }
 0x42d   :  { %v1128_v19 = vmul.f32 0.00024414063, %v1127_v32 }
 0x42e   :  { %1569 = vrot.lane.b32.xlu0 %v1547_v58, %s7081_s0 }
 0x42f   :  { %1605 = vrot.lane.b32.xlu1 %v1588_v31, %s7081_s0 }
 0x432   :  { %1603 = vrot.lane.b32.xlu0 %v1587_v30, %s7081_s0 }
 0x433   :  { %1609 = vrot.lane.b32.xlu1 %v1590_v60, %s7081_s0 }
 0x436   :  { %1607 = vrot.lane.b32.xlu0 %v1589_v28, %s7081_s0 }
 0x437   :  { %1613 = vrot.lane.b32.xlu1 %v1592_v39, %s7081_s0 }
 0x43a   :  { %1611 = vrot.lane.b32.xlu0 %v1591_v46, %s7081_s0 }
 0x43b   :  { %1617 = vrot.lane.b32.xlu1 %v1594_v13, %s7081_s0  ;;  %v1129_v13 = vmul.f32 %v1106_v8, %v1106_v8 }
 0x43d   :  { %v1130_v38 = vsub.f32 %v1128_v19, %v1129_v13 }
 0x43e   :  { %1615 = vrot.lane.b32.xlu0 %v1593_v52, %s7081_s0 }
 0x469   :  { %v1364_v33 = vpop.xlane.xlu0 %1363 }
 0x46d   :  { %v1366_v54 = vpop.xlane.xlu1 %1365 }
 0x46e   :  { %v1371_v41 = vadd.f32 %v1366_v54, %v1364_v33  ;;  %v1131_v33 = vmax.f32 %v1130_v38, 0.0 }
 0x470   :  { %v1133_v25 = vadd.f32 1e-05, %v1131_v33 }
 0x471   :  { %v1368_v2 = vpop.xlane.xlu0 %1367  ;;  %v1388_v63 = vpop.xlane.xlu1 %1387 }
 0x472   :  { %v1372_v24 = vadd.f32 %v1371_v41, %v1368_v2  ;;  %6912 = vrsqrt.f32 %v1133_v25 }
 0x475   :  { %v6553_v1 = vpop.f32.mrb[0].mxu0  ;;  %v1370_v57 = vpop.xlane.xlu0 %1369 }
 0x476   :  { %v1373_v44 = vadd.f32 %v1372_v24, %v1370_v57  ;;  %v6554_v62 = vpop.f32.mrb[1].mxu0 }
 0x477   :  { %v8056_v47 = vadd.f32 %v6554_v62, %v6553_v1  ;;  %v6556_v29 = vpop.f32.mrb[2].mxu0  ;;  %v1392_v4 = vpop.xlane.xlu1 %1391 }
 0x478   :  { %v1374_v58 = vrot.slane %v1373_v44, 4  ;;  %v6557_v31 = vpop.f32.mrb[3].mxu0 }
 0x479   :  { %10596 = vst [vmem:[#allocation28_spill] sm:$0xff] %v8056_v47  ;;  %v8058_v51 = vadd.f32 %v6557_v31, %v6556_v29  ;;  %v1386_v30 = vpop.xlane.xlu0 %1385 }
 0x47a   :  { %v1375_v60 = vadd.f32 %v1374_v58, %v1373_v44  ;;  %v1393_v46 = vadd.f32 %v1388_v63, %v1386_v30 }
 0x47b   :  { %10597 = vst [vmem:[#allocation29_spill] sm:$0xff] %v8058_v51  ;;  %v8060_v28 = vpop.permute.xlu1 %1466 }
 0x47c   :  { %v1376_v39 = vrot.slane %v1375_v60, 2 }
 0x47d   :  { %v6559_v52 = vpop.f32.mrb[4].mxu0  ;;  %v1390_v48 = vpop.xlane.xlu0 %1389 }
 0x47e   :  { %v1377_v55 = vadd.f32 %v1376_v39, %v1375_v60  ;;  %v1394_v36 = vadd.f32 %v1393_v46, %v1390_v48  ;;  %v6560_v22 = vpop.f32.mrb[5].mxu0  ;;  %v6913_v46 = vpop.eup %6912 }
 0x47f   :  { %v8062_v7 = vadd.f32 %v6560_v22, %v6559_v52  ;;  %v6562_v17 = vpop.f32.mrb[6].mxu0  ;;  %v8064_v43 = vpop.permute.xlu1 %1468  ;;  %v1135_v52 = vstv %s6290_s4  ;;  %s8455_s4 = sld [smem:[#allocation13 + $0x6]] }
 0x480   :  { %v1395_v10 = vadd.f32 %v1394_v36, %v1392_v4  ;;  %v6563_v3 = vpop.f32.mrb[7].mxu0  ;;  %v1378_v6 = vrot.slane %v1377_v55, 1 }
 0x481   :  { %10598 = vst [vmem:[#allocation30_spill] sm:$0xff] %v8062_v7  ;;  %v8066_v40 = vadd.f32 %v6563_v3, %v6562_v17  ;;  %v8068_v5 = vpop.permute.xlu0 %1464  ;;  %v1409_v3 = vstv %s6299_s3  ;;  %s6331_s3 = sld [smem:[#allocation12 + $0x381]] }
 0x482   :  { %v1396_v15 = vrot.slane %v1395_v10, 4  ;;  %v1379_v2 = vadd.f32 %v1378_v6, %v1377_v55  ;;  %v1136_v55 = vmul.f32 %v6913_v46, %v1135_v52  ;;  %v8096_v6 = vstv %s6302_s17  ;;  %s6332_s17 = sld [smem:[#allocation10 + $0x382]] }
 0x483   :  { %10599 = vst [vmem:[#allocation31_spill] sm:$0xff] %v8066_v40  ;;  %v8070_v54 = vpop.permute.xlu1 %1470 }
 0x484   :  { %v1397_v53 = vadd.f32 %v1396_v15, %v1395_v10  ;;  %v1380_v1 = vmul.f32 0.00024414063, %v1379_v2  ;;  %v1142_v38 = vmul.f32 %v1136_v55, %v1106_v8  ;;  %v1143_v10 = vstv %s6291_s2  ;;  %s6330_s2 = sld [smem:[#allocation10 + $0x381]] }
 0x485   :  { %v8072_v42 = vpop.permute.xlu0 %1472  ;;  %v8098_v2 = vstv %s6301_s18  ;;  %s6333_s18 = sld [smem:[#allocation12 + $0x382]] }
 0x486   :  { %v1398_v41 = vrot.slane %v1397_v53, 2  ;;  %v1403_v29 = vmul.f32 %v1380_v1, %v1380_v1 }
 0x487   :  { %v8074_v63 = vpop.permute.xlu1 %1474 }
 0x488   :  { %v1399_v24 = vadd.f32 %v1398_v41, %v1397_v53  ;;  %v1144_v53 = vsub.f32 %v1143_v10, %v1142_v38 }
 0x489   :  { %v8076_v45 = vpop.permute.xlu0 %1476 }
 0x48a   :  { %v1400_v57 = vrot.slane %v1399_v24, 1 }
 0x48b   :  { %v8078_v44 = vpop.permute.xlu1 %1478 }
 0x48c   :  { %v1401_v62 = vadd.f32 %v1400_v57, %v1399_v24  ;;  %v1437_v24 = vmul.f32 %v8096_v6, %v7310_v12  ;;  %v1417_v57 = vstv %s6300_s7  ;;  %s6329_s7 = sld [smem:[#allocation12 + $0x380]] }
 0x48d   :  { %v8080_v32 = vpop.permute.xlu0 %1510 }
 0x48e   :  { %v1402_v4 = vmul.f32 0.00024414063, %v1401_v62  ;;  %v10600_v62 = vld [vmem:[#allocation38_spill] sm:$0xff] }
 0x48f   :  { %v8082_v58 = vpop.permute.xlu1 %1512 }
 0x490   :  { %v1404_v31 = vsub.f32 %v1402_v4, %v1403_v29  ;;  %v1137_v29 = vmul.f32 %v1136_v55, %v10600_v62  ;;  %v10601_v4 = vld [vmem:[#allocation39_spill] sm:$0xff] }
 0x491   :  { %v8084_v30 = vpop.permute.xlu0 %1514  ;;  %v1138_v8 = vmul.f32 %v1136_v55, %v10601_v4 }
 0x492   :  { %v1405_v60 = vmax.f32 %v1404_v31, 0.0  ;;  %v1145_v52 = vadd.f32 %v1144_v53, %v1137_v29  ;;  %v1480_v29 = vsel %vm381_vm1, %v8068_v5, %v8060_v28 }
 0x493   :  { %v8086_v19 = vpop.permute.xlu1 %1516  ;;  %v1146_v38 = vadd.f32 %v1144_v53, %v1138_v8 }
 0x494   :  { %v1407_v39 = vadd.f32 1e-05, %v1405_v60  ;;  %v1149_v8 = vmax.f32 %v1145_v52, 0.0 }
 0x495   :  { %v8088_v13 = vpop.permute.xlu0 %1518 }
 0x496   :  { %6914 = vrsqrt.f32 %v1407_v39  ;;  %v1431_v39 = vmul.f32 %v8098_v2, %v7270_v50 }
 0x497   :  { %v8090_v48 = vpop.permute.xlu1 %1520 }
 0x498   :  { %v1441_v7 = vadd.f32 %v1437_v24, %v1431_v39  ;;  %v10603_v39 = vld [vmem:[#allocation41_spill] sm:$0xff] }
 0x499   :  { %v8092_v36 = vpop.permute.xlu0 %1522  ;;  %v1140_v35 = vmul.f32 %v1136_v55, %v10603_v39  ;;  %v1483_v39 = vsel %vm381_vm1, %v8076_v45, %v8078_v44 }
 0x49a   :  { %v1488_v5 = vadd.f32 %v1480_v29, %v1441_v7 }
 0x49b   :  { %v8094_v22 = vpop.permute.xlu1 %1524 }
 0x49d   :  { %v1558_v17 = vpop.permute.xlu0 %1557 }
 0x49f   :  { %v1560_v15 = vpop.permute.xlu1 %1559 }
 0x4a0   :  { %v6915_v33 = vpop.eup %6914 }
 0x4a1   :  { %v1562_v41 = vpop.permute.xlu0 %1561  ;;  %v1410_v25 = vmul.f32 %v6915_v33, %v1409_v3 }
 0x4a3   :  { %v1564_v31 = vpop.permute.xlu1 %1563  ;;  %v1416_v60 = vmul.f32 %v1410_v25, %v1380_v1  ;;  %v1411_v46 = vmul.f32 %v1410_v25, %v7956_v34  ;;  %v1412_v3 = vmul.f32 %v1410_v25, %v7964_v23  ;;  %v1413_v40 = vmul.f32 %v1410_v25, %v7971_v49  ;;  %v10602_v49 = vld [vmem:[#allocation40_spill] sm:$0xff] }
 0x4a4   :  { %v1414_v62 = vmul.f32 %v1410_v25, %v7975_v37  ;;  %v1438_v1 = vmul.f32 %v8096_v6, %v7318_v16  ;;  %v1150_v23 = vmax.f32 %v1146_v38, 0.0 }
 0x4a5   :  { %v8107_v10 = vpop.permute.xlu0 %1565  ;;  %v1418_v33 = vsub.f32 %v1417_v57, %v1416_v60  ;;  %v1139_v57 = vmul.f32 %v1136_v55, %v10602_v49 }
 0x4a7   :  { %v1568_v4 = vpop.permute.xlu1 %1567  ;;  %v1419_v51 = vadd.f32 %v1418_v33, %v1411_v46  ;;  %v1420_v47 = vadd.f32 %v1418_v33, %v1412_v3  ;;  %v1421_v27 = vadd.f32 %v1418_v33, %v1413_v40  ;;  %v1422_v34 = vadd.f32 %v1418_v33, %v1414_v62 }
 0x4a8   :  { %v1432_v40 = vmul.f32 %v8098_v2, %v7278_v11  ;;  %v1526_v46 = vsel %vm381_vm1, %v8080_v32, %v8082_v58  ;;  %v1147_v3 = vadd.f32 %v1144_v53, %v1139_v57  ;;  %v1148_v33 = vadd.f32 %v1144_v53, %v1140_v35 }
 0x4a9   :  { %v1570_v37 = vpop.permute.xlu0 %1569  ;;  %v1423_v25 = vmax.f32 %v1419_v51, 0.0  ;;  %v1424_v24 = vmax.f32 %v1420_v47, 0.0  ;;  %v1425_v60 = vmax.f32 %v1421_v27, 0.0  ;;  %v1426_v28 = vmax.f32 %v1422_v34, 0.0 }
 0x4aa   :  { %v1481_v47 = vsel %vm381_vm1, %v8064_v43, %v8070_v54  ;;  %v1573_v27 = vsel %vm475_vm2, %v1558_v17, %v1560_v15  ;;  %v4717_v51 = vpack.c.bf16 %v1150_v23, %v1149_v8  ;;  %v1442_v55 = vadd.f32 %v1438_v1, %v1432_v40 }
 0x4ab   :  { %v1572_v52 = vpop.permute.xlu1 %1571  ;;  %v4718_v38 = vpack.c.bf16 %v1424_v24, %v1423_v25  ;;  %v1439_v62 = vmul.f32 %v8096_v6, %v7328_v21  ;;  %v1534_v49 = vadd.f32 %v1526_v46, %v1488_v5  ;;  %v4734_v7 = vpack.c.bf16 %v1426_v28, %v1425_v60 }
 0x4ac   :  { %v1433_v58 = vmul.f32 %v8098_v2, %v7288_v56  ;;  %v1527_v35 = vsel %vm381_vm1, %v8084_v30, %v8086_v19  ;;  %v1489_v43 = vadd.f32 %v1481_v47, %v1442_v55  ;;  %v1151_v15 = vmax.f32 %v1147_v3, 0.0 }
 0x4ad   :  { %5856 = vmatprep.mubr.bf16.mxu1 %v4718_v38  ;;  %v1604_v32 = vpop.permute.xlu0 %1603  ;;  %v1581_v54 = vadd.f32 %v1573_v27, %v1534_v49  ;;  %v1152_v53 = vmax.f32 %v1148_v33, 0.0  ;;  %v1482_v1 = vsel %vm381_vm1, %v8072_v42, %v8074_v63  ;;  %v1574_v34 = vsel %vm475_vm2, %v1562_v41, %v1564_v31 }
 0x4ae   :  { %5857 = vmatmul.mubr.bf16.vlgmr.msra.gmra.mrb[0].mxu1 %v4717_v51  ;;  %v1632_v8 = vstv %s8117_s19  ;;  %v1443_v23 = vadd.f32 %v1439_v62, %v1433_v58  ;;  %v1440_v30 = vmul.f32 %v8096_v6, %v7338_v26  ;;  %v1535_v19 = vadd.f32 %v1527_v35, %v1489_v43  ;;  %s6328_s19 = sld [smem:[#allocation10 + $0x380]] }
 0x4af   :  { %v1606_v17 = vpop.permute.xlu1 %1605  ;;  %5864 = vmatprep.mubr.bf16.mxu1 %v4734_v7  ;;  %v1528_v24 = vsel %vm381_vm1, %v8088_v13, %v8090_v48  ;;  %v1434_v42 = vmul.f32 %v8098_v2, %v7298_v61  ;;  %v1575_v6 = vsel %vm475_vm2, %v8107_v10, %v1568_v4  ;;  %v4733_v46 = vpack.c.bf16 %v1152_v53, %v1151_v15 }
 0x4b0   :  { %v1619_v29 = vsel %vm475_vm2, %v1604_v32, %v1606_v17  ;;  %v1490_v60 = vadd.f32 %v1482_v1, %v1443_v23  ;;  %v1582_v63 = vadd.f32 %v1574_v34, %v1535_v19  ;;  %v1529_v5 = vsel %vm381_vm1, %v8092_v36, %v8094_v22 }
 0x4b1   :  { %v1627_v57 = vadd.f32 %v1619_v29, %v1581_v54  ;;  %v1608_v25 = vpop.permute.xlu0 %1607  ;;  %v1444_v28 = vadd.f32 %v1440_v30, %v1434_v42  ;;  %v1576_v10 = vsel %vm475_vm2, %v1570_v37, %v1572_v52  ;;  %v1721_v58 = vstv %s6312_s20  ;;  %s6334_s20 = sld [smem:[#allocation13 + $0x7]] }
 0x4b2   :  { %v1536_v13 = vadd.f32 %v1528_v24, %v1490_v60  ;;  %v1723_v35 = vmul.f32 %v1721_v58, %v7273_v9  ;;  %v1724_v43 = vmul.f32 %v1721_v58, %v7278_v11  ;;  %v1725_v54 = vmul.f32 %v1721_v58, %v10588_v14  ;;  %v10609_v60 = vld [vmem:[#allocation34_spill] sm:$0xff] }
 0x4b3   :  { %v1610_v41 = vpop.permute.xlu1 %1609  ;;  %v8150_v31 = vadd.f32 %v1632_v8, %v1627_v57  ;;  %v1491_v38 = vadd.f32 %v1483_v39, %v1444_v28  ;;  %v1722_v17 = vmul.f32 %v1721_v58, %v7270_v50  ;;  %v1727_v15 = vmul.f32 %v1721_v58, %v10589_v18  ;;  %v10608_v57 = vld [vmem:[#allocation33_spill] sm:$0xff] }
 0x4b4   :  { %v1620_v40 = vsel %vm475_vm2, %v1608_v25, %v1610_v41  ;;  %v1583_v3 = vadd.f32 %v1575_v6, %v1536_v13  ;;  %v1726_v53 = vmul.f32 %v1721_v58, %v7288_v56  ;;  %v1729_v1 = vmul.f32 %v1721_v58, %v10590_v59 }
 0x4b5   :  { %10604 = vst [vmem:[#allocation27_spill] sm:$0xff] %v8150_v31  ;;  %v1628_v48 = vadd.f32 %v1620_v40, %v1582_v63  ;;  %1637 = vadd.xlane.f32.xlu0 %v8150_v31  ;;  %v1612_v2 = vpop.permute.xlu0 %1611  ;;  %v1537_v33 = vadd.f32 %v1529_v5, %v1491_v38  ;;  %v1655_v32 = vmul.f32 %v8150_v31, %v8150_v31  ;;  %v1767_v34 = vstv %s6313_s21  ;;  %s6339_s21 = sld [smem:[#allocation10 + $0x401]] }
 0x4b6   :  { %5865 = vmatmul.mubr.bf16.gmra.mrb[4].mxu1 %v4733_v46  ;;  %v1728_v29 = vmul.f32 %v1721_v58, %v7298_v61  ;;  %v1768_v23 = vmul.f32 %v1767_v34, %v7310_v12  ;;  %v1771_v30 = vmul.f32 %v1767_v34, %v10592_v0  ;;  %v1770_v19 = vmul.f32 %v1767_v34, %v7318_v16 }
 0x4b7   :  { %v1614_v45 = vpop.permute.xlu1 %1613  ;;  %v8162_v44 = vadd.f32 %v1632_v8, %v1628_v48  ;;  %v1584_v27 = vadd.f32 %v1576_v10, %v1537_v33  ;;  %v1773_v25 = vmul.f32 %v1767_v34, %v10608_v57  ;;  %v1772_v24 = vmul.f32 %v1767_v34, %v7328_v21 }
 0x4b8   :  { %v1621_v4 = vsel %vm475_vm2, %v1612_v2, %v1614_v45  ;;  %v1775_v42 = vmul.f32 %v1767_v34, %v10609_v60  ;;  %v1814_v63 = vstv %s6314_s22  ;;  %v1774_v41 = vmul.f32 %v1767_v34, %v7338_v26  ;;  %s6340_s22 = sld [smem:[#allocation12 + $0x401]] }
 0x4b9   :  { %10605 = vst [vmem:[#allocation38_spill] sm:$0xff] %v8162_v44  ;;  %v1629_v47 = vadd.f32 %v1621_v4, %v1583_v3  ;;  %1639 = vadd.xlane.f32.xlu1 %v8162_v44  ;;  %v1616_v51 = vpop.permute.xlu0 %1615  ;;  %v1656_v36 = vmul.f32 %v8162_v44, %v8162_v44  ;;  %v1816_v39 = vmul.f32 %v1814_v63, %v7273_v9  ;;  %v1860_v2 = vstv %s6315_s23  ;;  %s6341_s23 = sld [smem:[#allocation10 + $0x402]] }
 0x4ba   :  { %v1815_v6 = vmul.f32 %v1814_v63, %v7270_v50  ;;  %v1818_v40 = vmul.f32 %v1814_v63, %v10588_v14  ;;  %v1817_v46 = vmul.f32 %v1814_v63, %v7278_v11  ;;  %v1820_v28 = vmul.f32 %v1814_v63, %v10589_v18 }
 0x4bb   :  { %v1618_v55 = vpop.permute.xlu1 %1617  ;;  %v8169_v22 = vadd.f32 %v1632_v8, %v1629_v47  ;;  %v1819_v13 = vmul.f32 %v1814_v63, %v7288_v56  ;;  %v1822_v48 = vmul.f32 %v1814_v63, %v10590_v59  ;;  %v1821_v5 = vmul.f32 %v1814_v63, %v7298_v61 }
 0x4bc   :  { %v1622_v62 = vsel %vm475_vm2, %v1616_v51, %v1618_v55  ;;  %v1862_v38 = vmul.f32 %v1860_v2, %v10591_v20  ;;  %v1861_v3 = vmul.f32 %v1860_v2, %v7310_v12  ;;  %v1864_v45 = vmul.f32 %v1860_v2, %v10592_v0 }
 0x4bd   :  { %10606 = vst [vmem:[#allocation39_spill] sm:$0xff] %v8169_v22  ;;  %v1630_v49 = vadd.f32 %v1622_v62, %v1584_v27  ;;  %1661 = vadd.xlane.f32.xlu1 %v1656_v36  ;;  %1641 = vadd.xlane.f32.xlu0 %v8169_v22  ;;  %v1657_v7 = vmul.f32 %v8169_v22, %v8169_v22 }
 0x4be   :  { %v1863_v10 = vmul.f32 %v1860_v2, %v7318_v16  ;;  %v1866_v4 = vmul.f32 %v1860_v2, %v10608_v57  ;;  %v1865_v33 = vmul.f32 %v1860_v2, %v7328_v21  ;;  %v1868_v47 = vmul.f32 %v1860_v2, %v10609_v60 }
 0x4bf   :  { %v8173_v37 = vadd.f32 %v1632_v8, %v1630_v49  ;;  %v1769_v8 = vmul.f32 %v1767_v34, %v10591_v20  ;;  %v1867_v27 = vmul.f32 %v1860_v2, %v7338_v26 }
 0x4c1   :  { %10607 = vst [vmem:[#allocation40_spill] sm:$0xff] %v8173_v37  ;;  %1643 = vadd.xlane.f32.xlu0 %v8173_v37  ;;  %v1658_v52 = vmul.f32 %v8173_v37, %v8173_v37 }
 0x4c3   :  { %1665 = vadd.xlane.f32.xlu1 %v1658_v52 }
 0x4c5   :  { %1659 = vadd.xlane.f32.xlu0 %v1655_v32 }
 0x4c9   :  { %1663 = vadd.xlane.f32.xlu0 %v1657_v7 }
 0x4d4   :  { %1740 = vrot.lane.b32.xlu1 %v1723_v35, %s7080_s5 }
 0x4d8   :  { %1742 = vrot.lane.b32.xlu1 %v1724_v43, %s7080_s5 }
 0x4dc   :  { %1744 = vrot.lane.b32.xlu1 %v1725_v54, %s7080_s5 }
 0x4df   :  { %1738 = vrot.lane.b32.xlu0 %v1722_v17, %s7080_s5 }
 0x4e0   :  { %1748 = vrot.lane.b32.xlu1 %v1727_v15, %s7080_s5 }
 0x4e3   :  { %1746 = vrot.lane.b32.xlu0 %v1726_v53, %s7080_s5 }
 0x4e4   :  { %1752 = vrot.lane.b32.xlu1 %v1729_v1, %s7080_s5 }
 0x4e7   :  { %1750 = vrot.lane.b32.xlu0 %v1728_v29, %s7080_s5 }
 0x4e8   :  { %1786 = vrot.lane.b32.xlu1 %v1769_v8, %s7080_s5 }
 0x4eb   :  { %1784 = vrot.lane.b32.xlu0 %v1768_v23, %s7080_s5 }
 0x4ec   :  { %1790 = vrot.lane.b32.xlu1 %v1771_v30, %s7080_s5 }
 0x4ef   :  { %1788 = vrot.lane.b32.xlu0 %v1770_v19, %s7080_s5 }
 0x4f0   :  { %1794 = vrot.lane.b32.xlu1 %v1773_v25, %s7080_s5 }
 0x4f3   :  { %1792 = vrot.lane.b32.xlu0 %v1772_v24, %s7080_s5 }
 0x4f4   :  { %1798 = vrot.lane.b32.xlu1 %v1775_v42, %s7080_s5 }
 0x4f7   :  { %1796 = vrot.lane.b32.xlu0 %v1774_v41, %s7080_s5 }
 0x4f8   :  { %1833 = vrot.lane.b32.xlu1 %v1816_v39, %s7081_s0  ;;  %v1710_v39 = vstv %s6311_s24  ;;  %s6342_s24 = sld [smem:[#allocation12 + $0x402]] }
 0x4fb   :  { %1831 = vrot.lane.b32.xlu0 %v1815_v6, %s7081_s0 }
 0x4fc   :  { %1837 = vrot.lane.b32.xlu1 %v1818_v40, %s7081_s0  ;;  %v1704_v40 = vstv %s6310_s1  ;;  %s6326_s1 = sld [smem:[#allocation15 + $0x6]] }
 0x4fd   :  { %v1706_v37 = vmul.f32 %v1704_v40, %v7278_v11 }
 0x4ff   :  { %1835 = vrot.lane.b32.xlu0 %v1817_v46, %s7081_s0  ;;  %v1711_v46 = vmul.f32 %v1710_v39, %v7310_v12 }
 0x500   :  { %1841 = vrot.lane.b32.xlu1 %v1820_v28, %s7081_s0 }
 0x503   :  { %1839 = vrot.lane.b32.xlu0 %v1819_v13, %s7081_s0  ;;  %v1705_v13 = vmul.f32 %v1704_v40, %v7270_v50 }
 0x504   :  { %1845 = vrot.lane.b32.xlu1 %v1822_v48, %s7081_s0 }
 0x507   :  { %1843 = vrot.lane.b32.xlu0 %v1821_v5, %s7081_s0 }
 0x508   :  { %1879 = vrot.lane.b32.xlu1 %v1862_v38, %s7081_s0  ;;  %v1715_v38 = vadd.f32 %v1711_v46, %v1705_v13 }
 0x50b   :  { %1877 = vrot.lane.b32.xlu0 %v1861_v3, %s7081_s0  ;;  %v1712_v3 = vmul.f32 %v1710_v39, %v7318_v16 }
 0x50c   :  { %1883 = vrot.lane.b32.xlu1 %v1864_v45, %s7081_s0 }
 0x50d   :  { %v1716_v13 = vadd.f32 %v1712_v3, %v1706_v37  ;;  %v1906_v3 = vstv %s6316_s27  ;;  %s6327_s27 = sld [smem:[#allocation16 + $0x6]] }
 0x50f   :  { %1881 = vrot.lane.b32.xlu0 %v1863_v10, %s7081_s0 }
 0x510   :  { %1887 = vrot.lane.b32.xlu1 %v1866_v4, %s7081_s0 }
 0x513   :  { %1885 = vrot.lane.b32.xlu0 %v1865_v33, %s7081_s0 }
 0x514   :  { %1891 = vrot.lane.b32.xlu1 %v1868_v47, %s7081_s0 }
 0x517   :  { %1889 = vrot.lane.b32.xlu0 %v1867_v27, %s7081_s0 }
 0x542   :  { %v8246_v51 = vpop.xlane.xlu0 %1637 }
 0x546   :  { %v8248_v55 = vpop.xlane.xlu1 %1639 }
 0x54a   :  { %v8250_v36 = vpop.xlane.xlu0 %1641  ;;  %v8252_v62 = vpop.xlane.xlu1 %1661 }
 0x54e   :  { %v8254_v49 = vpop.xlane.xlu0 %1643 }
 0x54f   :  { %10610 = vst [vmem:[#allocation41_spill] sm:$0xff] %v8254_v49  ;;  %v1713_v49 = vmul.f32 %v1710_v39, %v7328_v21 }
 0x550   :  { %v8256_v52 = vpop.xlane.xlu1 %1665 }
 0x551   :  { %10611 = vst [vmem:[#allocation42_spill] sm:$0xff] %v8256_v52 }
 0x552   :  { %v8258_v32 = vpop.xlane.xlu0 %1659 }
 0x554   :  { %v1741_v7 = vpop.permute.xlu1 %1740 }
 0x556   :  { %v8260_v58 = vpop.xlane.xlu0 %1663 }
 0x557   :  { %10612 = vst [vmem:[#allocation43_spill] sm:$0xff] %v8260_v58 }
 0x558   :  { %v1743_v35 = vpop.permute.xlu1 %1742 }
 0x55a   :  { %v1739_v43 = vpop.permute.xlu0 %1738 }
 0x55b   :  { %v1754_v2 = vsel %vm381_vm1, %v1739_v43, %v1741_v7  ;;  %v10613_v43 = vld [vmem:[#allocation28_spill] sm:$0xff] }
 0x55c   :  { %v1745_v54 = vpop.permute.xlu1 %1744  ;;  %v1762_v27 = vadd.f32 %v1754_v2, %v1715_v38  ;;  %v10615_v2 = vld [vmem:[#allocation29_spill] sm:$0xff] }
 0x55d   :  { %v1755_v31 = vsel %vm381_vm1, %v1743_v35, %v1745_v54 }
 0x55e   :  { %v1747_v17 = vpop.permute.xlu0 %1746  ;;  %v1763_v38 = vadd.f32 %v1755_v31, %v1716_v13  ;;  %v1708_v31 = vmul.f32 %v1704_v40, %v7298_v61  ;;  %v10617_v13 = vld [vmem:[#allocation30_spill] sm:$0xff] }
 0x560   :  { %v1749_v15 = vpop.permute.xlu1 %1748 }
 0x562   :  { %v8262_v53 = vpop.permute.xlu0 %1750 }
 0x564   :  { %v8264_v1 = vpop.permute.xlu1 %1752 }
 0x566   :  { %v1785_v34 = vpop.permute.xlu0 %1784 }
 0x568   :  { %v1787_v29 = vpop.permute.xlu1 %1786 }
 0x569   :  { %v1800_v4 = vsel %vm381_vm1, %v1785_v34, %v1787_v29 }
 0x56a   :  { %v1789_v8 = vpop.permute.xlu0 %1788  ;;  %v1808_v58 = vadd.f32 %v1800_v4, %v1762_v27 }
 0x56c   :  { %v1791_v23 = vpop.permute.xlu1 %1790 }
 0x56d   :  { %v1801_v29 = vsel %vm381_vm1, %v1789_v8, %v1791_v23 }
 0x56e   :  { %v1793_v30 = vpop.permute.xlu0 %1792  ;;  %v1809_v8 = vadd.f32 %v1801_v29, %v1763_v38 }
 0x570   :  { %v1795_v19 = vpop.permute.xlu1 %1794 }
 0x572   :  { %v8266_v25 = vpop.permute.xlu0 %1796 }
 0x574   :  { %v8268_v24 = vpop.permute.xlu1 %1798 }
 0x576   :  { %v1832_v42 = vpop.permute.xlu0 %1831 }
 0x578   :  { %v1834_v63 = vpop.permute.xlu1 %1833 }
 0x579   :  { %v1847_v7 = vsel %vm475_vm2, %v1832_v42, %v1834_v63  ;;  %v1756_v42 = vsel %vm381_vm1, %v1747_v17, %v1749_v15  ;;  %v1757_v15 = vsel %vm381_vm1, %v8262_v53, %v8264_v1  ;;  %v1803_v53 = vsel %vm381_vm1, %v8266_v25, %v8268_v24  ;;  %v10619_v1 = vld [vmem:[#allocation31_spill] sm:$0xff] }
 0x57a   :  { %v1836_v41 = vpop.permute.xlu0 %1835  ;;  %v1855_v35 = vadd.f32 %v1847_v7, %v1808_v58  ;;  %v1802_v58 = vsel %vm381_vm1, %v1793_v30, %v1795_v19 }
 0x57c   :  { %v1838_v6 = vpop.permute.xlu1 %1837 }
 0x57d   :  { %v1848_v63 = vsel %vm475_vm2, %v1836_v41, %v1838_v6 }
 0x57e   :  { %v1840_v28 = vpop.permute.xlu0 %1839  ;;  %v1856_v41 = vadd.f32 %v1848_v63, %v1809_v8 }
 0x580   :  { %v1842_v48 = vpop.permute.xlu1 %1841 }
 0x581   :  { %v6581_v5 = vpop.f32.mrb[0].mxu1 }
 0x582   :  { %v6582_v45 = vpop.f32.mrb[1].mxu1  ;;  %v1844_v10 = vpop.permute.xlu0 %1843 }
 0x583   :  { %v6583_v33 = vadd.f32 %v6582_v45, %v6581_v5  ;;  %v6584_v47 = vpop.f32.mrb[2].mxu1  ;;  %v1707_v45 = vmul.f32 %v1704_v40, %v7288_v56 }
 0x584   :  { %v6585_v22 = vpop.f32.mrb[3].mxu1  ;;  %v1846_v44 = vpop.permute.xlu1 %1845 }
 0x585   :  { %v8279_v52 = vadd.f32 %v6583_v33, %v10613_v43  ;;  %v6586_v46 = vadd.f32 %v6585_v22, %v6584_v47  ;;  %v1717_v4 = vadd.f32 %v1713_v49, %v1707_v45  ;;  %v1714_v33 = vmul.f32 %v1710_v39, %v7338_v26 }
 0x586   :  { %v1878_v34 = vpop.permute.xlu0 %1877  ;;  %v1849_v39 = vsel %vm475_vm2, %v1840_v28, %v1842_v48 }
 0x587   :  { %10614 = vst [vmem:[#allocation28_spill] sm:$0xff] %v8279_v52  ;;  %v8284_v5 = vadd.f32 %v6586_v46, %v10615_v2  ;;  %v1764_v17 = vadd.f32 %v1756_v42, %v1717_v4  ;;  %v1718_v19 = vadd.f32 %v1714_v33, %v1708_v31  ;;  %v1850_v42 = vsel %vm475_vm2, %v1844_v10, %v1846_v44 }
 0x588   :  { %v1880_v54 = vpop.permute.xlu1 %1879 }
 0x589   :  { %10616 = vst [vmem:[#allocation29_spill] sm:$0xff] %v8284_v5  ;;  %v1893_v22 = vsel %vm475_vm2, %v1878_v34, %v1880_v54  ;;  %v6587_v37 = vpop.f32.mrb[4].mxu1  ;;  %v1810_v29 = vadd.f32 %v1802_v58, %v1764_v17  ;;  %v1765_v28 = vadd.f32 %v1757_v15, %v1718_v19  ;;  %v1995_v58 = vstv %s6321_s28  ;;  %s6335_s28 = sld [smem:[#allocation15 + $0x7]] }
 0x58a   :  { %v1901_v23 = vadd.f32 %v1893_v22, %v1855_v35  ;;  %v6588_v47 = vpop.f32.mrb[5].mxu1  ;;  %v1882_v27 = vpop.permute.xlu0 %1881  ;;  %v1996_v17 = vmul.f32 %v1995_v58, %v7270_v50  ;;  %v2001_v15 = vmul.f32 %v1995_v58, %v10589_v18 }
 0x58b   :  { %v6589_v7 = vadd.f32 %v6588_v47, %v6587_v37  ;;  %v6590_v43 = vpop.f32.mrb[6].mxu1  ;;  %v1857_v48 = vadd.f32 %v1849_v39, %v1810_v29  ;;  %v1811_v22 = vadd.f32 %v1803_v53, %v1765_v28  ;;  %v2002_v39 = vmul.f32 %v1995_v58, %v7298_v61  ;;  %v6810_v53 = vld [vmem:[#allocation18 + $0x148] sm:$0xff]  }
 0x58c   :  { %v6591_v6 = vpop.f32.mrb[7].mxu1  ;;  %v1884_v49 = vpop.permute.xlu1 %1883  ;;  %v8296_v46 = vadd.f32 %v1906_v3, %v1901_v23 }
 0x58d   :  { %v8300_v34 = vadd.f32 %v6589_v7, %v10617_v13  ;;  %v6592_v40 = vadd.f32 %v6591_v6, %v6590_v43  ;;  %v1894_v30 = vsel %vm475_vm2, %v1882_v27, %v1884_v49  ;;  %v1858_v4 = vadd.f32 %v1850_v42, %v1811_v22  ;;  %v6812_v42 = vld [vmem:[#allocation18 + $0x150] sm:$0xff]  }
 0x58e   :  { %v1902_v2 = vadd.f32 %v1894_v30, %v1856_v41  ;;  %1911 = vadd.xlane.f32.xlu0 %v8296_v46  ;;  %v1886_v38 = vpop.permute.xlu0 %1885  ;;  %v1929_v27 = vmul.f32 %v8296_v46, %v8296_v46  ;;  %v1997_v7 = vmul.f32 %v1995_v58, %v7273_v9  ;;  %v1999_v43 = vmul.f32 %v1995_v58, %v10588_v14 }
 0x58f   :  { %10618 = vst [vmem:[#allocation30_spill] sm:$0xff] %v8300_v34  ;;  %v8308_v45 = vadd.f32 %v6592_v40, %v10619_v1  ;;  %v2000_v41 = vmul.f32 %v1995_v58, %v7288_v56  ;;  %v2003_v6 = vmul.f32 %v1995_v58, %v10590_v59  ;;  %v2041_v49 = vstv %s6322_s29  ;;  %s6338_s29 = sld [smem:[#allocation12 + $0x400]] }
 0x590   :  { %v1888_v35 = vpop.permute.xlu1 %1887  ;;  %v8310_v54 = vadd.f32 %v1906_v3, %v1902_v2  ;;  %v2043_v13 = vmul.f32 %v2041_v49, %v10591_v20  ;;  %v2042_v40 = vmul.f32 %v2041_v49, %v7310_v12  ;;  %v2045_v30 = vmul.f32 %v2041_v49, %v10592_v0  ;;  %v6808_v2 = vld [vmem:[#allocation18 + $0x140] sm:$0xff]  }
 0x591   :  { %10620 = vst [vmem:[#allocation31_spill] sm:$0xff] %v8308_v45  ;;  %v1895_v63 = vsel %vm475_vm2, %v1886_v38, %v1888_v35  ;;  %v2044_v19 = vmul.f32 %v2041_v49, %v7318_v16  ;;  %v2047_v29 = vmul.f32 %v2041_v49, %v10608_v57  ;;  %v6809_v38 = vld [vmem:[#allocation18 + $0x100] sm:$0xff]   ;;  %v2046_v1 = vmul.f32 %v2041_v49, %v7328_v21 }
 0x592   :  { %v1903_v37 = vadd.f32 %v1895_v63, %v1857_v48  ;;  %1913 = vadd.xlane.f32.xlu1 %v8310_v54  ;;  %v1890_v33 = vpop.permute.xlu0 %1889  ;;  %v1930_v25 = vmul.f32 %v8310_v54, %v8310_v54  ;;  %6593 = vmatprep.subr.bf16.mxu0 %v6808_v2  ;;  %v2049_v28 = vmul.f32 %v2041_v49, %v10609_v60  ;;  %v6811_v48 = vld [vmem:[#allocation18 + $0x108] sm:$0xff]   ;;  %v2088_v35 = vstv %s6323_s8  ;;  %s6337_s8 = sld [smem:[#allocation10 + $0x400]] }
 0x593   :  { %6594 = vmatpush3.bf16.msra.mxu0 %v6809_v38  ;;  %v2048_v63 = vmul.f32 %v2041_v49, %v7338_v26  ;;  %v2090_v22 = vmul.f32 %v2088_v35, %v7273_v9  ;;  %v6822_v49 = vld [vmem:[#allocation18 + $0x178] sm:$0xff]  }
 0x594   :  { %v1892_v8 = vpop.permute.xlu1 %1891  ;;  %v8317_v24 = vadd.f32 %v1906_v3, %v1903_v37  ;;  %6595 = vmatprep.subr.bf16.mxu0 %v6810_v53  ;;  %v6813_v37 = vld [vmem:[#allocation18 + $0x110] sm:$0xff]   ;;  %v1645_v53 = vadd.f32 %v8248_v55, %v8246_v51 }
 0x595   :  { %v1896_v23 = vsel %vm475_vm2, %v1890_v33, %v1892_v8  ;;  %v2089_v33 = vmul.f32 %v2088_v35, %v7270_v50  ;;  %v2092_v8 = vmul.f32 %v2088_v35, %v10588_v14 }
 0x596   :  { %v1904_v47 = vadd.f32 %v1896_v23, %v1858_v4  ;;  %1935 = vadd.xlane.f32.xlu1 %v1930_v25  ;;  %1915 = vadd.xlane.f32.xlu0 %v8317_v24  ;;  %v1931_v31 = vmul.f32 %v8317_v24, %v8317_v24  ;;  %v6814_v4 = vld [vmem:[#allocation18 + $0x158] sm:$0xff]   ;;  %v6816_v23 = vld [vmem:[#allocation18 + $0x160] sm:$0xff]  }
 0x597   :  { %6596 = vmatpush3.bf16.msra.mxu0 %v6811_v48  ;;  %v6815_v25 = vld [vmem:[#allocation18 + $0x118] sm:$0xff]   ;;  %v10621_v48 = vld [vmem:[#allocation43_spill] sm:$0xff] }
 0x598   :  { %v8321_v44 = vadd.f32 %v1906_v3, %v1904_v47  ;;  %v1998_v3 = vmul.f32 %v1995_v58, %v7278_v11  ;;  %6597 = vmatprep.subr.bf16.mxu0 %v6812_v42  ;;  %v2091_v47 = vmul.f32 %v2088_v35, %v7278_v11  ;;  %v2093_v58 = vmul.f32 %v2088_v35, %v7288_v56  ;;  %v10622_v42 = vld [vmem:[#allocation41_spill] sm:$0xff] }
 0x59a   :  { %1917 = vadd.xlane.f32.xlu0 %v8321_v44  ;;  %v1932_v10 = vmul.f32 %v8321_v44, %v8321_v44 }
 0x59b   :  { %6598 = vmatpush3.bf16.msra.mxu0 %v6813_v37 }
 0x59c   :  { %1939 = vadd.xlane.f32.xlu1 %v1932_v10  ;;  %6599 = vmatprep.subr.bf16.mxu0 %v6814_v4  ;;  %v2094_v10 = vmul.f32 %v2088_v35, %v10589_v18 }
 0x59e   :  { %1933 = vadd.xlane.f32.xlu0 %v1929_v27  ;;  %v6817_v27 = vld [vmem:[#allocation18 + $0x120] sm:$0xff]  }
 0x59f   :  { %6600 = vmatpush3.bf16.msra.mxu0 %v6815_v25 }
 0x5a0   :  { %6601 = vmatprep.subr.bf16.mxu0 %v6816_v23 }
 0x5a2   :  { %1937 = vadd.xlane.f32.xlu0 %v1931_v31  ;;  %v6818_v31 = vld [vmem:[#allocation18 + $0x168] sm:$0xff]  }
 0x5a3   :  { %6602 = vmatpush3.bf16.msra.mxu0 %v6817_v27 }
 0x5a4   :  { %6603 = vmatprep.subr.bf16.mxu0 %v6818_v31 }
 0x5ad   :  { %2014 = vrot.lane.b32.xlu1 %v1997_v7, %s7080_s5  ;;  %v2096_v7 = vmul.f32 %v2088_v35, %v10590_v59 }
 0x5b1   :  { %2016 = vrot.lane.b32.xlu1 %v1998_v3, %s7080_s5  ;;  %v6819_v3 = vld [vmem:[#allocation18 + $0x128] sm:$0xff]  }
 0x5b2   :  { %6604 = vmatpush3.bf16.msra.mxu0 %v6819_v3 }
 0x5b5   :  { %2018 = vrot.lane.b32.xlu1 %v1999_v43, %s7080_s5  ;;  %v2134_v43 = vstv %s6324_s30  ;;  %s6336_s30 = sld [smem:[#allocation16 + $0x7]] }
 0x5b6   :  { %v2142_v2 = vmul.f32 %v2134_v43, %v10609_v60  ;;  %v2141_v38 = vmul.f32 %v2134_v43, %v7338_v26 }
 0x5b8   :  { %2012 = vrot.lane.b32.xlu0 %v1996_v17, %s7080_s5  ;;  %v6820_v17 = vld [vmem:[#allocation18 + $0x170] sm:$0xff]  }
 0x5b9   :  { %2022 = vrot.lane.b32.xlu1 %v2001_v15, %s7080_s5  ;;  %v2095_v15 = vmul.f32 %v2088_v35, %v7298_v61  ;;  %6605 = vmatprep.subr.bf16.mxu0 %v6820_v17 }
 0x5bc   :  { %2020 = vrot.lane.b32.xlu0 %v2000_v41, %s7080_s5  ;;  %v2136_v41 = vmul.f32 %v2134_v43, %v10591_v20 }
 0x5bd   :  { %2026 = vrot.lane.b32.xlu1 %v2003_v6, %s7080_s5  ;;  %v6821_v6 = vld [vmem:[#allocation18 + $0x130] sm:$0xff]  }
 0x5be   :  { %6606 = vmatpush3.bf16.msra.mxu0 %v6821_v6 }
 0x5bf   :  { %6607 = vmatprep.subr.bf16.mxu0 %v6822_v49 }
 0x5c0   :  { %2024 = vrot.lane.b32.xlu0 %v2002_v39, %s7080_s5  ;;  %v2135_v39 = vmul.f32 %v2134_v43, %v7310_v12 }
 0x5c1   :  { %2060 = vrot.lane.b32.xlu1 %v2043_v13, %s7080_s5  ;;  %v2138_v13 = vmul.f32 %v2134_v43, %v10592_v0 }
 0x5c4   :  { %2058 = vrot.lane.b32.xlu0 %v2042_v40, %s7080_s5  ;;  %v6823_v40 = vld [vmem:[#allocation18 + $0x138] sm:$0xff]  }
 0x5c5   :  { %2064 = vrot.lane.b32.xlu1 %v2045_v30, %s7080_s5  ;;  %v2137_v30 = vmul.f32 %v2134_v43, %v7318_v16  ;;  %6608 = vmatpush3.bf16.msra.mxu0 %v6823_v40 }
 0x5c8   :  { %2062 = vrot.lane.b32.xlu0 %v2044_v19, %s7080_s5  ;;  %v2140_v19 = vmul.f32 %v2134_v43, %v10608_v57 }
 0x5c9   :  { %2068 = vrot.lane.b32.xlu1 %v2047_v29, %s7080_s5  ;;  %v2139_v29 = vmul.f32 %v2134_v43, %v7328_v21 }
 0x5cc   :  { %2066 = vrot.lane.b32.xlu0 %v2046_v1, %s7080_s5  ;;  %v1667_v1 = vadd.f32 %v8252_v62, %v8258_v32 }
 0x5cd   :  { %2072 = vrot.lane.b32.xlu1 %v2049_v28, %s7080_s5  ;;  %v1646_v28 = vadd.f32 %v1645_v53, %v8250_v36 }
 0x5ce   :  { %v1668_v35 = vadd.f32 %v1667_v1, %v10621_v48 }
 0x5d0   :  { %2070 = vrot.lane.b32.xlu0 %v2048_v63, %s7080_s5  ;;  %v1647_v63 = vadd.f32 %v1646_v28, %v10622_v42 }
 0x5d1   :  { %2107 = vrot.lane.b32.xlu1 %v2090_v22, %s7081_s0  ;;  %v10623_v22 = vld [vmem:[#allocation42_spill] sm:$0xff] }
 0x5d2   :  { %v1669_v37 = vadd.f32 %v1668_v35, %v10623_v22  ;;  %v1648_v4 = vrot.slane %v1647_v63, 4 }
 0x5d4   :  { %2105 = vrot.lane.b32.xlu0 %v2089_v33, %s7081_s0  ;;  %v1670_v33 = vrot.slane %v1669_v37, 4 }
 0x5d5   :  { %2111 = vrot.lane.b32.xlu1 %v2092_v8, %s7081_s0  ;;  %v1649_v8 = vadd.f32 %v1648_v4, %v1647_v63 }
 0x5d6   :  { %v1671_v25 = vadd.f32 %v1670_v33, %v1669_v37 }
 0x5d7   :  { %v1650_v23 = vrot.slane %v1649_v8, 2 }
 0x5d8   :  { %2109 = vrot.lane.b32.xlu0 %v2091_v47, %s7081_s0  ;;  %v1672_v47 = vrot.slane %v1671_v25, 2 }
 0x5d9   :  { %2115 = vrot.lane.b32.xlu1 %v2094_v10, %s7081_s0  ;;  %v1651_v10 = vadd.f32 %v1650_v23, %v1649_v8 }
 0x5da   :  { %v1673_v55 = vadd.f32 %v1672_v47, %v1671_v25 }
 0x5db   :  { %v1652_v31 = vrot.slane %v1651_v10, 1 }
 0x5dc   :  { %2113 = vrot.lane.b32.xlu0 %v2093_v58, %s7081_s0  ;;  %v1674_v36 = vrot.slane %v1673_v55, 1 }
 0x5dd   :  { %2119 = vrot.lane.b32.xlu1 %v2096_v7, %s7081_s0  ;;  %v1653_v3 = vadd.f32 %v1652_v31, %v1651_v10 }
 0x5df   :  { %v1654_v49 = vmul.f32 0.00024414063, %v1653_v3 }
 0x5e0   :  { %2117 = vrot.lane.b32.xlu0 %v2095_v15, %s7081_s0  ;;  %v1675_v15 = vadd.f32 %v1674_v36, %v1673_v55 }
 0x5e1   :  { %2153 = vrot.lane.b32.xlu1 %v2136_v41, %s7081_s0 }
 0x5e2   :  { %v1676_v40 = vmul.f32 0.00024414063, %v1675_v15 }
 0x5e4   :  { %2151 = vrot.lane.b32.xlu0 %v2135_v39, %s7081_s0 }
 0x5e5   :  { %2157 = vrot.lane.b32.xlu1 %v2138_v13, %s7081_s0 }
 0x5e8   :  { %2155 = vrot.lane.b32.xlu0 %v2137_v30, %s7081_s0 }
 0x5e9   :  { %2161 = vrot.lane.b32.xlu1 %v2140_v19, %s7081_s0 }
 0x5ec   :  { %2159 = vrot.lane.b32.xlu0 %v2139_v29, %s7081_s0 }
 0x5ed   :  { %2165 = vrot.lane.b32.xlu1 %v2142_v2, %s7081_s0  ;;  %v1677_v2 = vmul.f32 %v1654_v49, %v1654_v49 }
 0x5ef   :  { %v1678_v28 = vsub.f32 %v1676_v40, %v1677_v2 }
 0x5f0   :  { %2163 = vrot.lane.b32.xlu0 %v2141_v38, %s7081_s0 }
 0x5f1   :  { %v1679_v37 = vmax.f32 %v1678_v28, 0.0  ;;  %v1691_v28 = vstv %s6309_s13  ;;  %s6348_s13 = sld [smem:[#allocation10 + $0x481]] }
 0x5f3   :  { %v1681_v47 = vadd.f32 1e-05, %v1679_v37 }
 0x5f5   :  { %6916 = vrsqrt.f32 %v1681_v47 }
 0x61b   :  { %v1912_v27 = vpop.xlane.xlu0 %1911 }
 0x61f   :  { %v1914_v51 = vpop.xlane.xlu1 %1913 }
 0x620   :  { %v1919_v32 = vadd.f32 %v1914_v51, %v1912_v27 }
 0x623   :  { %v1916_v62 = vpop.xlane.xlu0 %1915  ;;  %v1936_v58 = vpop.xlane.xlu1 %1935 }
 0x624   :  { %v1920_v7 = vadd.f32 %v1919_v32, %v1916_v62 }
 0x627   :  { %v1918_v43 = vpop.xlane.xlu0 %1917 }
 0x628   :  { %v1921_v17 = vadd.f32 %v1920_v7, %v1918_v43 }
 0x629   :  { %v1940_v41 = vpop.xlane.xlu1 %1939 }
 0x62a   :  { %v1922_v6 = vrot.slane %v1921_v17, 4 }
 0x62b   :  { %v1934_v39 = vpop.xlane.xlu0 %1933 }
 0x62c   :  { %v1923_v13 = vadd.f32 %v1922_v6, %v1921_v17  ;;  %v1941_v29 = vadd.f32 %v1936_v58, %v1934_v39  ;;  %v6917_v39 = vpop.eup %6916 }
 0x62d   :  { %v8402_v30 = vpop.permute.xlu1 %2014 }
 0x62e   :  { %v1924_v19 = vrot.slane %v1923_v13, 2 }
 0x62f   :  { %v1938_v38 = vpop.xlane.xlu0 %1937 }
 0x630   :  { %v1925_v53 = vadd.f32 %v1924_v19, %v1923_v13  ;;  %v1942_v1 = vadd.f32 %v1941_v29, %v1938_v38  ;;  %v1683_v13 = vstv %s6308_s12  ;;  %s8793_s12 = sld [smem:[#allocation13 + $0x8]] }
 0x631   :  { %v8404_v48 = vpop.permute.xlu1 %2016  ;;  %v1684_v29 = vmul.f32 %v6917_v39, %v1683_v13 }
 0x632   :  { %v1943_v35 = vadd.f32 %v1942_v1, %v1940_v41  ;;  %v1926_v63 = vrot.slane %v1925_v53, 1 }
 0x633   :  { %v8406_v42 = vpop.permute.xlu0 %2012 }
 0x634   :  { %v1944_v22 = vrot.slane %v1943_v35, 4  ;;  %v1927_v25 = vadd.f32 %v1926_v63, %v1925_v53  ;;  %v1690_v53 = vmul.f32 %v1684_v29, %v1654_v49  ;;  %v8434_v63 = vstv %s6320_s6  ;;  %s6350_s6 = sld [smem:[#allocation10 + $0x482]] }
 0x635   :  { %v8408_v4 = vpop.permute.xlu1 %2018 }
 0x636   :  { %v1945_v33 = vadd.f32 %v1944_v22, %v1943_v35  ;;  %v1928_v55 = vmul.f32 0.00024414063, %v1927_v25  ;;  %v1957_v35 = vstv %s6317_s14  ;;  %v8436_v25 = vstv %s6319_s15  ;;  %s6349_s14 = sld [smem:[#allocation12 + $0x481]]  ;;  %s6351_s15 = sld [smem:[#allocation12 + $0x482]] }
 0x637   :  { %v8410_v8 = vpop.permute.xlu0 %2020 }
 0x638   :  { %v1946_v23 = vrot.slane %v1945_v33, 2  ;;  %v1951_v58 = vmul.f32 %v1928_v55, %v1928_v55 }
 0x639   :  { %v8412_v10 = vpop.permute.xlu1 %2022 }
 0x63a   :  { %v1947_v27 = vadd.f32 %v1946_v23, %v1945_v33  ;;  %v1692_v33 = vsub.f32 %v1691_v28, %v1690_v53 }
 0x63b   :  { %v8414_v51 = vpop.permute.xlu0 %2024 }
 0x63c   :  { %v1948_v31 = vrot.slane %v1947_v27, 1 }
 0x63d   :  { %v8416_v62 = vpop.permute.xlu1 %2026 }
 0x63e   :  { %v1949_v32 = vadd.f32 %v1948_v31, %v1947_v27  ;;  %v1985_v27 = vmul.f32 %v8434_v63, %v7310_v12  ;;  %v1965_v31 = vstv %s6318_s16  ;;  %s6347_s16 = sld [smem:[#allocation12 + $0x480]] }
 0x63f   :  { %v8418_v36 = vpop.permute.xlu0 %2058 }
 0x640   :  { %v1950_v7 = vmul.f32 0.00024414063, %v1949_v32  ;;  %v10624_v32 = vld [vmem:[#allocation27_spill] sm:$0xff] }
 0x641   :  { %v8420_v3 = vpop.permute.xlu1 %2060 }
 0x642   :  { %v1952_v43 = vsub.f32 %v1950_v7, %v1951_v58  ;;  %v1685_v58 = vmul.f32 %v1684_v29, %v10624_v32  ;;  %v10625_v7 = vld [vmem:[#allocation38_spill] sm:$0xff] }
 0x643   :  { %v8422_v17 = vpop.permute.xlu0 %2062  ;;  %v1686_v49 = vmul.f32 %v1684_v29, %v10625_v7 }
 0x644   :  { %v1953_v15 = vmax.f32 %v1952_v43, 0.0  ;;  %v1693_v13 = vadd.f32 %v1692_v33, %v1685_v58  ;;  %v2028_v58 = vsel %vm381_vm1, %v8406_v42, %v8402_v30 }
 0x645   :  { %v8424_v41 = vpop.permute.xlu1 %2064  ;;  %v1694_v53 = vadd.f32 %v1692_v33, %v1686_v49 }
 0x646   :  { %v1955_v6 = vadd.f32 1e-05, %v1953_v15  ;;  %v1697_v49 = vmax.f32 %v1693_v13, 0.0 }
 0x647   :  { %v8426_v40 = vpop.permute.xlu0 %2066 }
 0x648   :  { %6918 = vrsqrt.f32 %v1955_v6  ;;  %v1979_v6 = vmul.f32 %v8436_v25, %v7270_v50 }
 0x649   :  { %v8428_v19 = vpop.permute.xlu1 %2068 }
 0x64a   :  { %v1989_v34 = vadd.f32 %v1985_v27, %v1979_v6  ;;  %v10627_v6 = vld [vmem:[#allocation40_spill] sm:$0xff] }
 0x64b   :  { %v8430_v2 = vpop.permute.xlu0 %2070  ;;  %v1688_v57 = vmul.f32 %v1684_v29, %v10627_v6  ;;  %v2031_v6 = vsel %vm381_vm1, %v8414_v51, %v8416_v62 }
 0x64c   :  { %v2036_v42 = vadd.f32 %v2028_v58, %v1989_v34 }
 0x64d   :  { %v8432_v38 = vpop.permute.xlu1 %2072 }
 0x64f   :  { %v2106_v1 = vpop.permute.xlu0 %2105 }
 0x651   :  { %v2108_v22 = vpop.permute.xlu1 %2107 }
 0x652   :  { %v6919_v37 = vpop.eup %6918 }
 0x653   :  { %v2110_v23 = vpop.permute.xlu0 %2109  ;;  %v1958_v47 = vmul.f32 %v6919_v37, %v1957_v35 }
 0x655   :  { %v2112_v43 = vpop.permute.xlu1 %2111  ;;  %v1964_v15 = vmul.f32 %v1958_v47, %v1928_v55  ;;  %v1959_v39 = vmul.f32 %v1958_v47, %v8296_v46  ;;  %v1960_v35 = vmul.f32 %v1958_v47, %v8310_v54  ;;  %v1961_v45 = vmul.f32 %v1958_v47, %v8317_v24  ;;  %v10626_v24 = vld [vmem:[#allocation39_spill] sm:$0xff] }
 0x656   :  { %v1962_v32 = vmul.f32 %v1958_v47, %v8321_v44  ;;  %v1986_v55 = vmul.f32 %v8434_v63, %v7318_v16  ;;  %v1698_v54 = vmax.f32 %v1694_v53, 0.0 }
 0x657   :  { %v8445_v28 = vpop.permute.xlu0 %2113  ;;  %v1966_v37 = vsub.f32 %v1965_v31, %v1964_v15  ;;  %v1687_v31 = vmul.f32 %v1684_v29, %v10626_v24 }
 0x659   :  { %v2116_v7 = vpop.permute.xlu1 %2115  ;;  %v1967_v5 = vadd.f32 %v1966_v37, %v1959_v39  ;;  %v1968_v52 = vadd.f32 %v1966_v37, %v1960_v35  ;;  %v1969_v60 = vadd.f32 %v1966_v37, %v1961_v45  ;;  %v1970_v46 = vadd.f32 %v1966_v37, %v1962_v32 }
 0x65a   :  { %v1980_v45 = vmul.f32 %v8436_v25, %v7278_v11  ;;  %v2074_v39 = vsel %vm381_vm1, %v8418_v36, %v8420_v3  ;;  %v1695_v35 = vadd.f32 %v1692_v33, %v1687_v31  ;;  %v1696_v37 = vadd.f32 %v1692_v33, %v1688_v57 }
 0x65b   :  { %v2118_v44 = vpop.permute.xlu0 %2117  ;;  %v1971_v47 = vmax.f32 %v1967_v5, 0.0  ;;  %v1972_v27 = vmax.f32 %v1968_v52, 0.0  ;;  %v1973_v15 = vmax.f32 %v1969_v60, 0.0  ;;  %v1974_v30 = vmax.f32 %v1970_v46, 0.0 }
 0x65c   :  { %v2029_v52 = vsel %vm381_vm1, %v8404_v48, %v8408_v4  ;;  %v2121_v60 = vsel %vm475_vm2, %v2106_v1, %v2108_v22  ;;  %v4719_v5 = vpack.c.bf16 %v1698_v54, %v1697_v49  ;;  %v1990_v29 = vadd.f32 %v1986_v55, %v1980_v45 }
 0x65d   :  { %v2120_v13 = vpop.permute.xlu1 %2119  ;;  %v4720_v53 = vpack.c.bf16 %v1972_v27, %v1971_v47  ;;  %v1987_v32 = vmul.f32 %v8434_v63, %v7328_v21  ;;  %v2082_v24 = vadd.f32 %v2074_v39, %v2036_v42  ;;  %v4736_v34 = vpack.c.bf16 %v1974_v30, %v1973_v15 }
 0x65e   :  { %v1981_v3 = vmul.f32 %v8436_v25, %v7288_v56  ;;  %v2075_v57 = vsel %vm381_vm1, %v8422_v17, %v8424_v41  ;;  %v2037_v48 = vadd.f32 %v2029_v52, %v1990_v29  ;;  %v1699_v22 = vmax.f32 %v1695_v35, 0.0 }
 0x65f   :  { %5905 = vmatprep.mubr.bf16.mxu0 %v4720_v53  ;;  %v2152_v36 = vpop.permute.xlu0 %2151  ;;  %v2129_v4 = vadd.f32 %v2121_v60, %v2082_v24  ;;  %v1700_v33 = vmax.f32 %v1696_v37, 0.0  ;;  %v2030_v55 = vsel %vm381_vm1, %v8410_v8, %v8412_v10  ;;  %v2122_v46 = vsel %vm475_vm2, %v2110_v23, %v2112_v43 }
 0x660   :  { %5906 = vmatmul.mubr.bf16.vlgmr.msra.gmra.mrb[8].mxu0 %v4719_v5  ;;  %v2180_v49 = vstv %s8455_s4  ;;  %v1991_v54 = vadd.f32 %v1987_v32, %v1981_v3  ;;  %v1988_v17 = vmul.f32 %v8434_v63, %v7338_v26  ;;  %v2083_v41 = vadd.f32 %v2075_v57, %v2037_v48  ;;  %s6346_s4 = sld [smem:[#allocation10 + $0x480]] }
 0x661   :  { %v2154_v1 = vpop.permute.xlu1 %2153  ;;  %5913 = vmatprep.mubr.bf16.mxu0 %v4736_v34  ;;  %v2076_v27 = vsel %vm381_vm1, %v8426_v40, %v8428_v19  ;;  %v1982_v8 = vmul.f32 %v8436_v25, %v7298_v61  ;;  %v2123_v63 = vsel %vm475_vm2, %v8445_v28, %v2116_v7  ;;  %v4735_v39 = vpack.c.bf16 %v1700_v33, %v1699_v22 }
 0x662   :  { %v2167_v58 = vsel %vm475_vm2, %v2152_v36, %v2154_v1  ;;  %v2038_v15 = vadd.f32 %v2030_v55, %v1991_v54  ;;  %v2130_v10 = vadd.f32 %v2122_v46, %v2083_v41  ;;  %v2077_v42 = vsel %vm381_vm1, %v8430_v2, %v8432_v38 }
 0x663   :  { %v2175_v31 = vadd.f32 %v2167_v58, %v2129_v4  ;;  %v2156_v47 = vpop.permute.xlu0 %2155  ;;  %v1992_v30 = vadd.f32 %v1988_v17, %v1982_v8  ;;  %v2124_v28 = vsel %vm475_vm2, %v2118_v44, %v2120_v13  ;;  %v2269_v3 = vstv %s6330_s2  ;;  %s6352_s2 = sld [smem:[#allocation13 + $0x9]] }
 0x664   :  { %v2084_v40 = vadd.f32 %v2076_v27, %v2038_v15  ;;  %v2271_v57 = vmul.f32 %v2269_v3, %v7273_v9  ;;  %v2272_v48 = vmul.f32 %v2269_v3, %v7278_v11  ;;  %v2273_v4 = vmul.f32 %v2269_v3, %v10588_v14  ;;  %v10633_v15 = vld [vmem:[#allocation34_spill] sm:$0xff] }
 0x665   :  { %v2158_v23 = vpop.permute.xlu1 %2157  ;;  %v8488_v43 = vadd.f32 %v2180_v49, %v2175_v31  ;;  %v2039_v53 = vadd.f32 %v2031_v6, %v1992_v30  ;;  %v2270_v1 = vmul.f32 %v2269_v3, %v7270_v50  ;;  %v2275_v22 = vmul.f32 %v2269_v3, %v10589_v18  ;;  %v10632_v31 = vld [vmem:[#allocation33_spill] sm:$0xff] }
 0x666   :  { %v2168_v45 = vsel %vm475_vm2, %v2156_v47, %v2158_v23  ;;  %v2131_v35 = vadd.f32 %v2123_v63, %v2084_v40  ;;  %v2274_v33 = vmul.f32 %v2269_v3, %v7288_v56  ;;  %v2277_v55 = vmul.f32 %v2269_v3, %v10590_v59 }
 0x667   :  { %10628 = vst [vmem:[#allocation43_spill] sm:$0xff] %v8488_v43  ;;  %v2176_v19 = vadd.f32 %v2168_v45, %v2130_v10  ;;  %2185 = vadd.xlane.f32.xlu0 %v8488_v43  ;;  %v2160_v25 = vpop.permute.xlu0 %2159  ;;  %v2085_v37 = vadd.f32 %v2077_v42, %v2039_v53  ;;  %v2203_v36 = vmul.f32 %v8488_v43, %v8488_v43  ;;  %v2315_v46 = vstv %s6331_s3  ;;  %s6357_s3 = sld [smem:[#allocation10 + $0x501]] }
 0x668   :  { %5914 = vmatmul.mubr.bf16.gmra.mrb[12].mxu0 %v4735_v39  ;;  %v2276_v58 = vmul.f32 %v2269_v3, %v7298_v61  ;;  %v2316_v54 = vmul.f32 %v2315_v46, %v7310_v12  ;;  %v2319_v17 = vmul.f32 %v2315_v46, %v10592_v0  ;;  %v2318_v41 = vmul.f32 %v2315_v46, %v7318_v16 }
 0x669   :  { %v2162_v51 = vpop.permute.xlu1 %2161  ;;  %v8500_v62 = vadd.f32 %v2180_v49, %v2176_v19  ;;  %v2132_v60 = vadd.f32 %v2124_v28, %v2085_v37  ;;  %v2321_v47 = vmul.f32 %v2315_v46, %v10632_v31  ;;  %v2320_v27 = vmul.f32 %v2315_v46, %v7328_v21 }
 0x66a   :  { %v2169_v7 = vsel %vm475_vm2, %v2160_v25, %v2162_v51  ;;  %v2323_v8 = vmul.f32 %v2315_v46, %v10633_v15  ;;  %v2362_v10 = vstv %s6332_s17  ;;  %v2322_v23 = vmul.f32 %v2315_v46, %v7338_v26  ;;  %s6358_s17 = sld [smem:[#allocation12 + $0x501]] }
 0x66b   :  { %10629 = vst [vmem:[#allocation41_spill] sm:$0xff] %v8500_v62  ;;  %v2177_v52 = vadd.f32 %v2169_v7, %v2131_v35  ;;  %2187 = vadd.xlane.f32.xlu1 %v8500_v62  ;;  %v2164_v5 = vpop.permute.xlu0 %2163  ;;  %v2204_v2 = vmul.f32 %v8500_v62, %v8500_v62  ;;  %v2364_v6 = vmul.f32 %v2362_v10, %v7273_v9  ;;  %v2408_v25 = vstv %s6333_s18  ;;  %s6359_s18 = sld [smem:[#allocation10 + $0x502]] }
 0x66c   :  { %v2363_v63 = vmul.f32 %v2362_v10, %v7270_v50  ;;  %v2366_v45 = vmul.f32 %v2362_v10, %v10588_v14  ;;  %v2365_v39 = vmul.f32 %v2362_v10, %v7278_v11  ;;  %v2368_v30 = vmul.f32 %v2362_v10, %v10589_v18 }
 0x66d   :  { %v2166_v29 = vpop.permute.xlu1 %2165  ;;  %v8507_v38 = vadd.f32 %v2180_v49, %v2177_v52  ;;  %v2367_v40 = vmul.f32 %v2362_v10, %v7288_v56  ;;  %v2370_v19 = vmul.f32 %v2362_v10, %v10590_v59  ;;  %v2369_v42 = vmul.f32 %v2362_v10, %v7298_v61 }
 0x66e   :  { %v2170_v32 = vsel %vm475_vm2, %v2164_v5, %v2166_v29  ;;  %v2410_v53 = vmul.f32 %v2408_v25, %v10591_v20  ;;  %v2409_v35 = vmul.f32 %v2408_v25, %v7310_v12  ;;  %v2412_v51 = vmul.f32 %v2408_v25, %v10592_v0 }
 0x66f   :  { %10630 = vst [vmem:[#allocation42_spill] sm:$0xff] %v8507_v38  ;;  %v2178_v24 = vadd.f32 %v2170_v32, %v2132_v60  ;;  %2209 = vadd.xlane.f32.xlu1 %v2204_v2  ;;  %2189 = vadd.xlane.f32.xlu0 %v8507_v38  ;;  %v2205_v34 = vmul.f32 %v8507_v38, %v8507_v38 }
 0x670   :  { %v2411_v28 = vmul.f32 %v2408_v25, %v7318_v16  ;;  %v2414_v7 = vmul.f32 %v2408_v25, %v10632_v31  ;;  %v2413_v37 = vmul.f32 %v2408_v25, %v7328_v21  ;;  %v2416_v52 = vmul.f32 %v2408_v25, %v10633_v15 }
 0x671   :  { %v8511_v44 = vadd.f32 %v2180_v49, %v2178_v24  ;;  %v2317_v49 = vmul.f32 %v2315_v46, %v10591_v20  ;;  %v2415_v60 = vmul.f32 %v2408_v25, %v7338_v26 }
 0x673   :  { %10631 = vst [vmem:[#allocation27_spill] sm:$0xff] %v8511_v44  ;;  %2191 = vadd.xlane.f32.xlu0 %v8511_v44  ;;  %v2206_v13 = vmul.f32 %v8511_v44, %v8511_v44 }
 0x675   :  { %2213 = vadd.xlane.f32.xlu1 %v2206_v13 }
 0x677   :  { %2207 = vadd.xlane.f32.xlu0 %v2203_v36 }
 0x67b   :  { %2211 = vadd.xlane.f32.xlu0 %v2205_v34 }
 0x686   :  { %2288 = vrot.lane.b32.xlu1 %v2271_v57, %s7080_s5 }
 0x68a   :  { %2290 = vrot.lane.b32.xlu1 %v2272_v48, %s7080_s5 }
 0x68e   :  { %2292 = vrot.lane.b32.xlu1 %v2273_v4, %s7080_s5 }
 0x691   :  { %2286 = vrot.lane.b32.xlu0 %v2270_v1, %s7080_s5 }
 0x692   :  { %2296 = vrot.lane.b32.xlu1 %v2275_v22, %s7080_s5 }
 0x695   :  { %2294 = vrot.lane.b32.xlu0 %v2274_v33, %s7080_s5 }
 0x696   :  { %2300 = vrot.lane.b32.xlu1 %v2277_v55, %s7080_s5 }
 0x699   :  { %2298 = vrot.lane.b32.xlu0 %v2276_v58, %s7080_s5 }
 0x69a   :  { %2334 = vrot.lane.b32.xlu1 %v2317_v49, %s7080_s5 }
 0x69d   :  { %2332 = vrot.lane.b32.xlu0 %v2316_v54, %s7080_s5 }
 0x69e   :  { %2338 = vrot.lane.b32.xlu1 %v2319_v17, %s7080_s5 }
 0x6a1   :  { %2336 = vrot.lane.b32.xlu0 %v2318_v41, %s7080_s5 }
 0x6a2   :  { %2342 = vrot.lane.b32.xlu1 %v2321_v47, %s7080_s5 }
 0x6a5   :  { %2340 = vrot.lane.b32.xlu0 %v2320_v27, %s7080_s5 }
 0x6a6   :  { %2346 = vrot.lane.b32.xlu1 %v2323_v8, %s7080_s5 }
 0x6a9   :  { %2344 = vrot.lane.b32.xlu0 %v2322_v23, %s7080_s5 }
 0x6aa   :  { %2381 = vrot.lane.b32.xlu1 %v2364_v6, %s7081_s0  ;;  %v2258_v6 = vstv %s6329_s7  ;;  %s6360_s7 = sld [smem:[#allocation12 + $0x502]] }
 0x6ad   :  { %2379 = vrot.lane.b32.xlu0 %v2363_v63, %s7081_s0 }
 0x6ae   :  { %2385 = vrot.lane.b32.xlu1 %v2366_v45, %s7081_s0  ;;  %v2252_v45 = vstv %s6328_s19  ;;  %s6344_s19 = sld [smem:[#allocation15 + $0x8]] }
 0x6af   :  { %v2254_v44 = vmul.f32 %v2252_v45, %v7278_v11 }
 0x6b1   :  { %2383 = vrot.lane.b32.xlu0 %v2365_v39, %s7081_s0  ;;  %v2259_v39 = vmul.f32 %v2258_v6, %v7310_v12 }
 0x6b2   :  { %2389 = vrot.lane.b32.xlu1 %v2368_v30, %s7081_s0 }
 0x6b5   :  { %2387 = vrot.lane.b32.xlu0 %v2367_v40, %s7081_s0  ;;  %v2253_v40 = vmul.f32 %v2252_v45, %v7270_v50 }
 0x6b6   :  { %2393 = vrot.lane.b32.xlu1 %v2370_v19, %s7081_s0 }
 0x6b9   :  { %2391 = vrot.lane.b32.xlu0 %v2369_v42, %s7081_s0 }
 0x6ba   :  { %2427 = vrot.lane.b32.xlu1 %v2410_v53, %s7081_s0  ;;  %v2263_v53 = vadd.f32 %v2259_v39, %v2253_v40 }
 0x6bd   :  { %2425 = vrot.lane.b32.xlu0 %v2409_v35, %s7081_s0  ;;  %v2260_v35 = vmul.f32 %v2258_v6, %v7318_v16 }
 0x6be   :  { %2431 = vrot.lane.b32.xlu1 %v2412_v51, %s7081_s0 }
 0x6bf   :  { %v2264_v40 = vadd.f32 %v2260_v35, %v2254_v44  ;;  %v2454_v35 = vstv %s6334_s20  ;;  %s6345_s20 = sld [smem:[#allocation16 + $0x8]] }
 0x6c1   :  { %2429 = vrot.lane.b32.xlu0 %v2411_v28, %s7081_s0 }
 0x6c2   :  { %2435 = vrot.lane.b32.xlu1 %v2414_v7, %s7081_s0 }
 0x6c5   :  { %2433 = vrot.lane.b32.xlu0 %v2413_v37, %s7081_s0 }
 0x6c6   :  { %2439 = vrot.lane.b32.xlu1 %v2416_v52, %s7081_s0 }
 0x6c9   :  { %2437 = vrot.lane.b32.xlu0 %v2415_v60, %s7081_s0 }
 0x6f4   :  { %v8584_v5 = vpop.xlane.xlu0 %2185 }
 0x6f8   :  { %v8586_v29 = vpop.xlane.xlu1 %2187 }
 0x6fc   :  { %v8588_v2 = vpop.xlane.xlu0 %2189  ;;  %v8590_v32 = vpop.xlane.xlu1 %2209 }
 0x700   :  { %v8592_v24 = vpop.xlane.xlu0 %2191 }
 0x701   :  { %10634 = vst [vmem:[#allocation38_spill] sm:$0xff] %v8592_v24  ;;  %v2261_v24 = vmul.f32 %v2258_v6, %v7328_v21 }
 0x702   :  { %v8594_v13 = vpop.xlane.xlu1 %2213 }
 0x703   :  { %10635 = vst [vmem:[#allocation39_spill] sm:$0xff] %v8594_v13 }
 0x704   :  { %v8596_v36 = vpop.xlane.xlu0 %2207 }
 0x706   :  { %v2289_v34 = vpop.permute.xlu1 %2288 }
 0x708   :  { %v8598_v3 = vpop.xlane.xlu0 %2211 }
 0x709   :  { %10636 = vst [vmem:[#allocation40_spill] sm:$0xff] %v8598_v3 }
 0x70a   :  { %v2291_v57 = vpop.permute.xlu1 %2290 }
 0x70c   :  { %v2287_v48 = vpop.permute.xlu0 %2286 }
 0x70d   :  { %v2302_v25 = vsel %vm381_vm1, %v2287_v48, %v2289_v34  ;;  %v10637_v48 = vld [vmem:[#allocation28_spill] sm:$0xff] }
 0x70e   :  { %v2293_v4 = vpop.permute.xlu1 %2292  ;;  %v2310_v60 = vadd.f32 %v2302_v25, %v2263_v53  ;;  %v10639_v25 = vld [vmem:[#allocation29_spill] sm:$0xff] }
 0x70f   :  { %v2303_v43 = vsel %vm381_vm1, %v2291_v57, %v2293_v4 }
 0x710   :  { %v2295_v1 = vpop.permute.xlu0 %2294  ;;  %v2311_v53 = vadd.f32 %v2303_v43, %v2264_v40  ;;  %v2256_v43 = vmul.f32 %v2252_v45, %v7298_v61  ;;  %v10641_v40 = vld [vmem:[#allocation30_spill] sm:$0xff] }
 0x712   :  { %v2297_v22 = vpop.permute.xlu1 %2296 }
 0x714   :  { %v8600_v33 = vpop.permute.xlu0 %2298 }
 0x716   :  { %v8602_v55 = vpop.permute.xlu1 %2300 }
 0x718   :  { %v2333_v46 = vpop.permute.xlu0 %2332 }
 0x71a   :  { %v2335_v58 = vpop.permute.xlu1 %2334 }
 0x71b   :  { %v2348_v7 = vsel %vm381_vm1, %v2333_v46, %v2335_v58 }
 0x71c   :  { %v2337_v49 = vpop.permute.xlu0 %2336  ;;  %v2356_v3 = vadd.f32 %v2348_v7, %v2310_v60 }
 0x71e   :  { %v2339_v54 = vpop.permute.xlu1 %2338 }
 0x71f   :  { %v2349_v58 = vsel %vm381_vm1, %v2337_v49, %v2339_v54 }
 0x720   :  { %v2341_v17 = vpop.permute.xlu0 %2340  ;;  %v2357_v49 = vadd.f32 %v2349_v58, %v2311_v53 }
 0x722   :  { %v2343_v41 = vpop.permute.xlu1 %2342 }
 0x724   :  { %v8604_v47 = vpop.permute.xlu0 %2344 }
 0x726   :  { %v8606_v27 = vpop.permute.xlu1 %2346 }
 0x728   :  { %v2380_v8 = vpop.permute.xlu0 %2379 }
 0x72a   :  { %v2382_v10 = vpop.permute.xlu1 %2381 }
 0x72b   :  { %v2395_v34 = vsel %vm475_vm2, %v2380_v8, %v2382_v10  ;;  %v2304_v8 = vsel %vm381_vm1, %v2295_v1, %v2297_v22  ;;  %v2305_v22 = vsel %vm381_vm1, %v8600_v33, %v8602_v55  ;;  %v2351_v33 = vsel %vm381_vm1, %v8604_v47, %v8606_v27  ;;  %v10643_v55 = vld [vmem:[#allocation31_spill] sm:$0xff] }
 0x72c   :  { %v2384_v23 = vpop.permute.xlu0 %2383  ;;  %v2403_v57 = vadd.f32 %v2395_v34, %v2356_v3  ;;  %v2350_v3 = vsel %vm381_vm1, %v2341_v17, %v2343_v41 }
 0x72e   :  { %v2386_v63 = vpop.permute.xlu1 %2385 }
 0x72f   :  { %v2396_v10 = vsel %vm475_vm2, %v2384_v23, %v2386_v63 }
 0x730   :  { %v2388_v30 = vpop.permute.xlu0 %2387  ;;  %v2404_v23 = vadd.f32 %v2396_v10, %v2357_v49 }
 0x732   :  { %v2390_v19 = vpop.permute.xlu1 %2389 }
 0x733   :  { %v6609_v42 = vpop.f32.mrb[8].mxu0 }
 0x734   :  { %v6610_v51 = vpop.f32.mrb[9].mxu0  ;;  %v2392_v28 = vpop.permute.xlu0 %2391 }
 0x735   :  { %v6611_v37 = vadd.f32 %v6610_v51, %v6609_v42  ;;  %v6612_v52 = vpop.f32.mrb[10].mxu0  ;;  %v2255_v51 = vmul.f32 %v2252_v45, %v7288_v56 }
 0x736   :  { %v6613_v38 = vpop.f32.mrb[11].mxu0  ;;  %v2394_v62 = vpop.permute.xlu1 %2393 }
 0x737   :  { %v8617_v13 = vadd.f32 %v6611_v37, %v10637_v48  ;;  %v6614_v39 = vadd.f32 %v6613_v38, %v6612_v52  ;;  %v2265_v7 = vadd.f32 %v2261_v24, %v2255_v51  ;;  %v2262_v37 = vmul.f32 %v2258_v6, %v7338_v26 }
 0x738   :  { %v2426_v46 = vpop.permute.xlu0 %2425  ;;  %v2397_v6 = vsel %vm475_vm2, %v2388_v30, %v2390_v19 }
 0x739   :  { %10638 = vst [vmem:[#allocation28_spill] sm:$0xff] %v8617_v13  ;;  %v8622_v42 = vadd.f32 %v6614_v39, %v10639_v25  ;;  %v2312_v1 = vadd.f32 %v2304_v8, %v2265_v7  ;;  %v2266_v41 = vadd.f32 %v2262_v37, %v2256_v43  ;;  %v2398_v8 = vsel %vm475_vm2, %v2392_v28, %v2394_v62 }
 0x73a   :  { %v2428_v4 = vpop.permute.xlu1 %2427 }
 0x73b   :  { %10640 = vst [vmem:[#allocation29_spill] sm:$0xff] %v8622_v42  ;;  %v2441_v38 = vsel %vm475_vm2, %v2426_v46, %v2428_v4  ;;  %v6615_v44 = vpop.f32.mrb[12].mxu0  ;;  %v2358_v58 = vadd.f32 %v2350_v3, %v2312_v1  ;;  %v2313_v30 = vadd.f32 %v2305_v22, %v2266_v41  ;;  %v2543_v3 = vstv %s6339_s21  ;;  %s6353_s21 = sld [smem:[#allocation15 + $0x9]] }
 0x73c   :  { %v2449_v54 = vadd.f32 %v2441_v38, %v2403_v57  ;;  %v6616_v52 = vpop.f32.mrb[13].mxu0  ;;  %v2430_v60 = vpop.permute.xlu0 %2429  ;;  %v2544_v1 = vmul.f32 %v2543_v3, %v7270_v50  ;;  %v2549_v22 = vmul.f32 %v2543_v3, %v10589_v18 }
 0x73d   :  { %v6617_v34 = vadd.f32 %v6616_v52, %v6615_v44  ;;  %v6618_v48 = vpop.f32.mrb[14].mxu0  ;;  %v2405_v19 = vadd.f32 %v2397_v6, %v2358_v58  ;;  %v2359_v38 = vadd.f32 %v2351_v33, %v2313_v30  ;;  %v2550_v6 = vmul.f32 %v2543_v3, %v7298_v61  ;;  %v6826_v33 = vld [vmem:[#allocation18 + $0x1c8] sm:$0xff]  }
 0x73e   :  { %v6619_v63 = vpop.f32.mrb[15].mxu0  ;;  %v2432_v24 = vpop.permute.xlu1 %2431  ;;  %v8634_v39 = vadd.f32 %v2454_v35, %v2449_v54 }
 0x73f   :  { %v8638_v46 = vadd.f32 %v6617_v34, %v10641_v40  ;;  %v6620_v45 = vadd.f32 %v6619_v63, %v6618_v48  ;;  %v2442_v17 = vsel %vm475_vm2, %v2430_v60, %v2432_v24  ;;  %v2406_v7 = vadd.f32 %v2398_v8, %v2359_v38  ;;  %v6828_v8 = vld [vmem:[#allocation18 + $0x1d0] sm:$0xff]  }
 0x740   :  { %v2450_v25 = vadd.f32 %v2442_v17, %v2404_v23  ;;  %2459 = vadd.xlane.f32.xlu0 %v8634_v39  ;;  %v2434_v53 = vpop.permute.xlu0 %2433  ;;  %v2477_v60 = vmul.f32 %v8634_v39, %v8634_v39  ;;  %v2545_v34 = vmul.f32 %v2543_v3, %v7273_v9  ;;  %v2547_v48 = vmul.f32 %v2543_v3, %v10588_v14 }
 0x741   :  { %10642 = vst [vmem:[#allocation30_spill] sm:$0xff] %v8638_v46  ;;  %v8646_v51 = vadd.f32 %v6620_v45, %v10643_v55  ;;  %v2548_v23 = vmul.f32 %v2543_v3, %v7288_v56  ;;  %v2551_v63 = vmul.f32 %v2543_v3, %v10590_v59  ;;  %v2589_v24 = vstv %s6340_s22  ;;  %s6356_s22 = sld [smem:[#allocation12 + $0x500]] }
 0x742   :  { %v2436_v57 = vpop.permute.xlu1 %2435  ;;  %v8648_v4 = vadd.f32 %v2454_v35, %v2450_v25  ;;  %v2591_v40 = vmul.f32 %v2589_v24, %v10591_v20  ;;  %v2590_v45 = vmul.f32 %v2589_v24, %v7310_v12  ;;  %v2593_v17 = vmul.f32 %v2589_v24, %v10592_v0  ;;  %v6824_v25 = vld [vmem:[#allocation18 + $0x1c0] sm:$0xff]  }
 0x743   :  { %10644 = vst [vmem:[#allocation31_spill] sm:$0xff] %v8646_v51  ;;  %v2443_v10 = vsel %vm475_vm2, %v2434_v53, %v2436_v57  ;;  %v2592_v41 = vmul.f32 %v2589_v24, %v7318_v16  ;;  %v2595_v58 = vmul.f32 %v2589_v24, %v10632_v31  ;;  %v6825_v53 = vld [vmem:[#allocation18 + $0x180] sm:$0xff]   ;;  %v2594_v55 = vmul.f32 %v2589_v24, %v7328_v21 }
 0x744   :  { %v2451_v44 = vadd.f32 %v2443_v10, %v2405_v19  ;;  %2461 = vadd.xlane.f32.xlu1 %v8648_v4  ;;  %v2438_v37 = vpop.permute.xlu0 %2437  ;;  %v2478_v47 = vmul.f32 %v8648_v4, %v8648_v4  ;;  %6621 = vmatprep.subr.bf16.mxu1 %v6824_v25  ;;  %v2597_v30 = vmul.f32 %v2589_v24, %v10633_v15  ;;  %v6827_v19 = vld [vmem:[#allocation18 + $0x188] sm:$0xff]   ;;  %v2636_v57 = vstv %s6341_s23  ;;  %s6355_s23 = sld [smem:[#allocation10 + $0x500]] }
 0x745   :  { %6622 = vmatpush3.bf16.msra.mxu1 %v6825_v53  ;;  %v2596_v10 = vmul.f32 %v2589_v24, %v7338_v26  ;;  %v2638_v38 = vmul.f32 %v2636_v57, %v7273_v9  ;;  %v6838_v24 = vld [vmem:[#allocation18 + $0x1f8] sm:$0xff]  }
 0x746   :  { %v2440_v49 = vpop.permute.xlu1 %2439  ;;  %v8655_v27 = vadd.f32 %v2454_v35, %v2451_v44  ;;  %6623 = vmatprep.subr.bf16.mxu1 %v6826_v33  ;;  %v6829_v44 = vld [vmem:[#allocation18 + $0x190] sm:$0xff]   ;;  %v2193_v33 = vadd.f32 %v8586_v29, %v8584_v5 }
 0x747   :  { %v2444_v54 = vsel %vm475_vm2, %v2438_v37, %v2440_v49  ;;  %v2637_v37 = vmul.f32 %v2636_v57, %v7270_v50  ;;  %v2640_v49 = vmul.f32 %v2636_v57, %v10588_v14 }
 0x748   :  { %v2452_v52 = vadd.f32 %v2444_v54, %v2406_v7  ;;  %2483 = vadd.xlane.f32.xlu1 %v2478_v47  ;;  %2463 = vadd.xlane.f32.xlu0 %v8655_v27  ;;  %v2479_v43 = vmul.f32 %v8655_v27, %v8655_v27  ;;  %v6830_v7 = vld [vmem:[#allocation18 + $0x1d8] sm:$0xff]   ;;  %v6832_v54 = vld [vmem:[#allocation18 + $0x1e0] sm:$0xff]  }
 0x749   :  { %6624 = vmatpush3.bf16.msra.mxu1 %v6827_v19  ;;  %v6831_v47 = vld [vmem:[#allocation18 + $0x198] sm:$0xff]   ;;  %v10645_v19 = vld [vmem:[#allocation40_spill] sm:$0xff] }
 0x74a   :  { %v8659_v62 = vadd.f32 %v2454_v35, %v2452_v52  ;;  %v2546_v35 = vmul.f32 %v2543_v3, %v7278_v11  ;;  %6625 = vmatprep.subr.bf16.mxu1 %v6828_v8  ;;  %v2639_v52 = vmul.f32 %v2636_v57, %v7278_v11  ;;  %v2641_v3 = vmul.f32 %v2636_v57, %v7288_v56  ;;  %v10646_v8 = vld [vmem:[#allocation38_spill] sm:$0xff] }
 0x74c   :  { %2465 = vadd.xlane.f32.xlu0 %v8659_v62  ;;  %v2480_v28 = vmul.f32 %v8659_v62, %v8659_v62 }
 0x74d   :  { %6626 = vmatpush3.bf16.msra.mxu1 %v6829_v44 }
 0x74e   :  { %2487 = vadd.xlane.f32.xlu1 %v2480_v28  ;;  %6627 = vmatprep.subr.bf16.mxu1 %v6830_v7  ;;  %v2642_v28 = vmul.f32 %v2636_v57, %v10589_v18 }
 0x750   :  { %2481 = vadd.xlane.f32.xlu0 %v2477_v60  ;;  %v6833_v60 = vld [vmem:[#allocation18 + $0x1a0] sm:$0xff]  }
 0x751   :  { %6628 = vmatpush3.bf16.msra.mxu1 %v6831_v47 }
 0x752   :  { %6629 = vmatprep.subr.bf16.mxu1 %v6832_v54 }
 0x754   :  { %2485 = vadd.xlane.f32.xlu0 %v2479_v43  ;;  %v6834_v43 = vld [vmem:[#allocation18 + $0x1e8] sm:$0xff]  }
 0x755   :  { %6630 = vmatpush3.bf16.msra.mxu1 %v6833_v60 }
 0x756   :  { %6631 = vmatprep.subr.bf16.mxu1 %v6834_v43 }
 0x75f   :  { %2562 = vrot.lane.b32.xlu1 %v2545_v34, %s7080_s5  ;;  %v2644_v34 = vmul.f32 %v2636_v57, %v10590_v59 }
 0x763   :  { %2564 = vrot.lane.b32.xlu1 %v2546_v35, %s7080_s5  ;;  %v6835_v35 = vld [vmem:[#allocation18 + $0x1a8] sm:$0xff]  }
 0x764   :  { %6632 = vmatpush3.bf16.msra.mxu1 %v6835_v35 }
 0x767   :  { %2566 = vrot.lane.b32.xlu1 %v2547_v48, %s7080_s5  ;;  %v2682_v48 = vstv %s6342_s24  ;;  %s6354_s24 = sld [smem:[#allocation16 + $0x9]] }
 0x768   :  { %v2690_v25 = vmul.f32 %v2682_v48, %v10633_v15  ;;  %v2689_v53 = vmul.f32 %v2682_v48, %v7338_v26 }
 0x76a   :  { %2560 = vrot.lane.b32.xlu0 %v2544_v1, %s7080_s5  ;;  %v6836_v1 = vld [vmem:[#allocation18 + $0x1f0] sm:$0xff]  }
 0x76b   :  { %2570 = vrot.lane.b32.xlu1 %v2549_v22, %s7080_s5  ;;  %v2643_v22 = vmul.f32 %v2636_v57, %v7298_v61  ;;  %6633 = vmatprep.subr.bf16.mxu1 %v6836_v1 }
 0x76e   :  { %2568 = vrot.lane.b32.xlu0 %v2548_v23, %s7080_s5  ;;  %v2684_v23 = vmul.f32 %v2682_v48, %v10591_v20 }
 0x76f   :  { %2574 = vrot.lane.b32.xlu1 %v2551_v63, %s7080_s5  ;;  %v6837_v63 = vld [vmem:[#allocation18 + $0x1b0] sm:$0xff]  }
 0x770   :  { %6634 = vmatpush3.bf16.msra.mxu1 %v6837_v63 }
 0x771   :  { %6635 = vmatprep.subr.bf16.mxu1 %v6838_v24 }
 0x772   :  { %2572 = vrot.lane.b32.xlu0 %v2550_v6, %s7080_s5  ;;  %v2683_v6 = vmul.f32 %v2682_v48, %v7310_v12 }
 0x773   :  { %2608 = vrot.lane.b32.xlu1 %v2591_v40, %s7080_s5  ;;  %v2686_v40 = vmul.f32 %v2682_v48, %v10592_v0 }
 0x776   :  { %2606 = vrot.lane.b32.xlu0 %v2590_v45, %s7080_s5  ;;  %v6839_v45 = vld [vmem:[#allocation18 + $0x1b8] sm:$0xff]  }
 0x777   :  { %2612 = vrot.lane.b32.xlu1 %v2593_v17, %s7080_s5  ;;  %v2685_v17 = vmul.f32 %v2682_v48, %v7318_v16  ;;  %6636 = vmatpush3.bf16.msra.mxu1 %v6839_v45 }
 0x77a   :  { %2610 = vrot.lane.b32.xlu0 %v2592_v41, %s7080_s5  ;;  %v2688_v41 = vmul.f32 %v2682_v48, %v10632_v31 }
 0x77b   :  { %2616 = vrot.lane.b32.xlu1 %v2595_v58, %s7080_s5  ;;  %v2687_v58 = vmul.f32 %v2682_v48, %v7328_v21 }
 0x77e   :  { %2614 = vrot.lane.b32.xlu0 %v2594_v55, %s7080_s5  ;;  %v2215_v55 = vadd.f32 %v8590_v32, %v8596_v36 }
 0x77f   :  { %2620 = vrot.lane.b32.xlu1 %v2597_v30, %s7080_s5  ;;  %v2194_v30 = vadd.f32 %v2193_v33, %v8588_v2 }
 0x780   :  { %v2216_v57 = vadd.f32 %v2215_v55, %v10645_v19 }
 0x782   :  { %2618 = vrot.lane.b32.xlu0 %v2596_v10, %s7080_s5  ;;  %v2195_v10 = vadd.f32 %v2194_v30, %v10646_v8 }
 0x783   :  { %2655 = vrot.lane.b32.xlu1 %v2638_v38, %s7081_s0  ;;  %v10647_v38 = vld [vmem:[#allocation39_spill] sm:$0xff] }
 0x784   :  { %v2217_v44 = vadd.f32 %v2216_v57, %v10647_v38  ;;  %v2196_v7 = vrot.slane %v2195_v10, 4 }
 0x786   :  { %2653 = vrot.lane.b32.xlu0 %v2637_v37, %s7081_s0  ;;  %v2218_v37 = vrot.slane %v2217_v44, 4 }
 0x787   :  { %2659 = vrot.lane.b32.xlu1 %v2640_v49, %s7081_s0  ;;  %v2197_v49 = vadd.f32 %v2196_v7, %v2195_v10 }
 0x788   :  { %v2219_v47 = vadd.f32 %v2218_v37, %v2217_v44 }
 0x789   :  { %v2198_v54 = vrot.slane %v2197_v49, 2 }
 0x78a   :  { %2657 = vrot.lane.b32.xlu0 %v2639_v52, %s7081_s0  ;;  %v2220_v52 = vrot.slane %v2219_v47, 2 }
 0x78b   :  { %2663 = vrot.lane.b32.xlu1 %v2642_v28, %s7081_s0  ;;  %v2199_v28 = vadd.f32 %v2198_v54, %v2197_v49 }
 0x78c   :  { %v2221_v29 = vadd.f32 %v2220_v52, %v2219_v47 }
 0x78d   :  { %v2200_v43 = vrot.slane %v2199_v28, 1 }
 0x78e   :  { %2661 = vrot.lane.b32.xlu0 %v2641_v3, %s7081_s0  ;;  %v2222_v2 = vrot.slane %v2221_v29, 1 }
 0x78f   :  { %2667 = vrot.lane.b32.xlu1 %v2644_v34, %s7081_s0  ;;  %v2201_v35 = vadd.f32 %v2200_v43, %v2199_v28 }
 0x791   :  { %v2202_v24 = vmul.f32 0.00024414063, %v2201_v35 }
 0x792   :  { %2665 = vrot.lane.b32.xlu0 %v2643_v22, %s7081_s0  ;;  %v2223_v22 = vadd.f32 %v2222_v2, %v2221_v29 }
 0x793   :  { %2701 = vrot.lane.b32.xlu1 %v2684_v23, %s7081_s0 }
 0x794   :  { %v2224_v45 = vmul.f32 0.00024414063, %v2223_v22 }
 0x796   :  { %2699 = vrot.lane.b32.xlu0 %v2683_v6, %s7081_s0 }
 0x797   :  { %2705 = vrot.lane.b32.xlu1 %v2686_v40, %s7081_s0 }
 0x79a   :  { %2703 = vrot.lane.b32.xlu0 %v2685_v17, %s7081_s0 }
 0x79b   :  { %2709 = vrot.lane.b32.xlu1 %v2688_v41, %s7081_s0 }
 0x79e   :  { %2707 = vrot.lane.b32.xlu0 %v2687_v58, %s7081_s0 }
 0x79f   :  { %2713 = vrot.lane.b32.xlu1 %v2690_v25, %s7081_s0  ;;  %v2225_v25 = vmul.f32 %v2202_v24, %v2202_v24 }
 0x7a1   :  { %v2226_v30 = vsub.f32 %v2224_v45, %v2225_v25 }
 0x7a2   :  { %2711 = vrot.lane.b32.xlu0 %v2689_v53, %s7081_s0 }
 0x7a3   :  { %v2227_v44 = vmax.f32 %v2226_v30, 0.0  ;;  %v2239_v30 = vstv %s6327_s27  ;;  %s6366_s27 = sld [smem:[#allocation10 + $0x581]] }
 0x7a5   :  { %v2229_v52 = vadd.f32 1e-05, %v2227_v44 }
 0x7a7   :  { %6920 = vrsqrt.f32 %v2229_v52 }
 0x7cd   :  { %v2460_v60 = vpop.xlane.xlu0 %2459 }
 0x7d1   :  { %v2462_v5 = vpop.xlane.xlu1 %2461 }
 0x7d2   :  { %v2467_v36 = vadd.f32 %v2462_v5, %v2460_v60 }
 0x7d5   :  { %v2464_v32 = vpop.xlane.xlu0 %2463  ;;  %v2484_v3 = vpop.xlane.xlu1 %2483 }
 0x7d6   :  { %v2468_v34 = vadd.f32 %v2467_v36, %v2464_v32 }
 0x7d9   :  { %v2466_v48 = vpop.xlane.xlu0 %2465 }
 0x7da   :  { %v2469_v1 = vadd.f32 %v2468_v34, %v2466_v48 }
 0x7db   :  { %v2488_v23 = vpop.xlane.xlu1 %2487 }
 0x7dc   :  { %v2470_v63 = vrot.slane %v2469_v1, 4 }
 0x7dd   :  { %v2482_v6 = vpop.xlane.xlu0 %2481 }
 0x7de   :  { %v2471_v40 = vadd.f32 %v2470_v63, %v2469_v1  ;;  %v2489_v58 = vadd.f32 %v2484_v3, %v2482_v6  ;;  %v6921_v6 = vpop.eup %6920 }
 0x7df   :  { %v8740_v17 = vpop.permute.xlu1 %2562 }
 0x7e0   :  { %v2472_v41 = vrot.slane %v2471_v40, 2 }
 0x7e1   :  { %v2486_v53 = vpop.xlane.xlu0 %2485 }
 0x7e2   :  { %v2473_v33 = vadd.f32 %v2472_v41, %v2471_v40  ;;  %v2490_v55 = vadd.f32 %v2489_v58, %v2486_v53  ;;  %v2231_v40 = vstv %s6326_s1  ;;  %s9131_s1 = sld [smem:[#allocation13 + $0xa]] }
 0x7e3   :  { %v8742_v19 = vpop.permute.xlu1 %2564  ;;  %v2232_v58 = vmul.f32 %v6921_v6, %v2231_v40 }
 0x7e4   :  { %v2491_v57 = vadd.f32 %v2490_v55, %v2488_v23  ;;  %v2474_v10 = vrot.slane %v2473_v33, 1 }
 0x7e5   :  { %v8744_v8 = vpop.permute.xlu0 %2560 }
 0x7e6   :  { %v2492_v38 = vrot.slane %v2491_v57, 4  ;;  %v2475_v47 = vadd.f32 %v2474_v10, %v2473_v33  ;;  %v2238_v33 = vmul.f32 %v2232_v58, %v2202_v24  ;;  %v8772_v10 = vstv %s6338_s29  ;;  %s6368_s29 = sld [smem:[#allocation10 + $0x582]] }
 0x7e7   :  { %v8746_v7 = vpop.permute.xlu1 %2566 }
 0x7e8   :  { %v2493_v37 = vadd.f32 %v2492_v38, %v2491_v57  ;;  %v2476_v29 = vmul.f32 0.00024414063, %v2475_v47  ;;  %v2505_v57 = vstv %s6335_s28  ;;  %v8774_v47 = vstv %s6337_s8  ;;  %s6367_s28 = sld [smem:[#allocation12 + $0x581]]  ;;  %s6369_s8 = sld [smem:[#allocation12 + $0x582]] }
 0x7e9   :  { %v8748_v49 = vpop.permute.xlu0 %2568 }
 0x7ea   :  { %v2494_v54 = vrot.slane %v2493_v37, 2  ;;  %v2499_v3 = vmul.f32 %v2476_v29, %v2476_v29 }
 0x7eb   :  { %v8750_v28 = vpop.permute.xlu1 %2570 }
 0x7ec   :  { %v2495_v60 = vadd.f32 %v2494_v54, %v2493_v37  ;;  %v2240_v37 = vsub.f32 %v2239_v30, %v2238_v33 }
 0x7ed   :  { %v8752_v5 = vpop.permute.xlu0 %2572 }
 0x7ee   :  { %v2496_v43 = vrot.slane %v2495_v60, 1 }
 0x7ef   :  { %v8754_v32 = vpop.permute.xlu1 %2574 }
 0x7f0   :  { %v2497_v36 = vadd.f32 %v2496_v43, %v2495_v60  ;;  %v2533_v60 = vmul.f32 %v8772_v10, %v7310_v12  ;;  %v2513_v43 = vstv %s6336_s30  ;;  %s6384_s30 = sld [smem:[#allocation10 + $0x681]] }
 0x7f1   :  { %v8756_v2 = vpop.permute.xlu0 %2606 }
 0x7f2   :  { %v2498_v34 = vmul.f32 0.00024414063, %v2497_v36  ;;  %v10648_v36 = vld [vmem:[#allocation43_spill] sm:$0xff] }
 0x7f3   :  { %v8758_v35 = vpop.permute.xlu1 %2608 }
 0x7f4   :  { %v2500_v48 = vsub.f32 %v2498_v34, %v2499_v3  ;;  %v2233_v3 = vmul.f32 %v2232_v58, %v10648_v36  ;;  %v10649_v34 = vld [vmem:[#allocation41_spill] sm:$0xff] }
 0x7f5   :  { %v8760_v1 = vpop.permute.xlu0 %2610  ;;  %v2234_v24 = vmul.f32 %v2232_v58, %v10649_v34 }
 0x7f6   :  { %v2501_v22 = vmax.f32 %v2500_v48, 0.0  ;;  %v2241_v40 = vadd.f32 %v2240_v37, %v2233_v3  ;;  %v2576_v3 = vsel %vm381_vm1, %v8744_v8, %v8740_v17 }
 0x7f7   :  { %v8762_v23 = vpop.permute.xlu1 %2612  ;;  %v2242_v33 = vadd.f32 %v2240_v37, %v2234_v24 }
 0x7f8   :  { %v2503_v63 = vadd.f32 1e-05, %v2501_v22  ;;  %v2245_v24 = vmax.f32 %v2241_v40, 0.0 }
 0x7f9   :  { %v8764_v45 = vpop.permute.xlu0 %2614 }
 0x7fa   :  { %6922 = vrsqrt.f32 %v2503_v63  ;;  %v2527_v63 = vmul.f32 %v8774_v47, %v7270_v50 }
 0x7fb   :  { %v8766_v41 = vpop.permute.xlu1 %2616 }
 0x7fc   :  { %v2537_v46 = vadd.f32 %v2533_v60, %v2527_v63  ;;  %v10651_v63 = vld [vmem:[#allocation27_spill] sm:$0xff] }
 0x7fd   :  { %v8768_v25 = vpop.permute.xlu0 %2618  ;;  %v2236_v31 = vmul.f32 %v2232_v58, %v10651_v63  ;;  %v2579_v63 = vsel %vm381_vm1, %v8752_v5, %v8754_v32 }
 0x7fe   :  { %v2584_v8 = vadd.f32 %v2576_v3, %v2537_v46 }
 0x7ff   :  { %v8770_v53 = vpop.permute.xlu1 %2620 }
 0x801   :  { %v2654_v55 = vpop.permute.xlu0 %2653 }
 0x803   :  { %v2656_v38 = vpop.permute.xlu1 %2655 }
 0x804   :  { %v6923_v44 = vpop.eup %6922 }
 0x805   :  { %v2658_v54 = vpop.permute.xlu0 %2657  ;;  %v2506_v52 = vmul.f32 %v6923_v44, %v2505_v57 }
 0x807   :  { %v2660_v48 = vpop.permute.xlu1 %2659  ;;  %v2512_v22 = vmul.f32 %v2506_v52, %v2476_v29  ;;  %v2507_v6 = vmul.f32 %v2506_v52, %v8634_v39  ;;  %v2508_v57 = vmul.f32 %v2506_v52, %v8648_v4  ;;  %v2509_v51 = vmul.f32 %v2506_v52, %v8655_v27  ;;  %v10650_v27 = vld [vmem:[#allocation42_spill] sm:$0xff] }
 0x808   :  { %v2510_v36 = vmul.f32 %v2506_v52, %v8659_v62  ;;  %v2534_v29 = vmul.f32 %v8772_v10, %v7318_v16  ;;  %v2246_v4 = vmax.f32 %v2242_v33, 0.0 }
 0x809   :  { %v8783_v30 = vpop.permute.xlu0 %2661  ;;  %v2514_v44 = vsub.f32 %v2513_v43, %v2512_v22  ;;  %v2235_v43 = vmul.f32 %v2232_v58, %v10650_v27 }
 0x80b   :  { %v2664_v34 = vpop.permute.xlu1 %2663  ;;  %v2515_v42 = vadd.f32 %v2514_v44, %v2507_v6  ;;  %v2516_v13 = vadd.f32 %v2514_v44, %v2508_v57  ;;  %v2517_v15 = vadd.f32 %v2514_v44, %v2509_v51  ;;  %v2518_v39 = vadd.f32 %v2514_v44, %v2510_v36 }
 0x80c   :  { %v2528_v51 = vmul.f32 %v8774_v47, %v7278_v11  ;;  %v2622_v6 = vsel %vm381_vm1, %v8756_v2, %v8758_v35  ;;  %v2243_v57 = vadd.f32 %v2240_v37, %v2235_v43  ;;  %v2244_v44 = vadd.f32 %v2240_v37, %v2236_v31 }
 0x80d   :  { %v2666_v62 = vpop.permute.xlu0 %2665  ;;  %v2519_v52 = vmax.f32 %v2515_v42, 0.0  ;;  %v2520_v60 = vmax.f32 %v2516_v13, 0.0  ;;  %v2521_v22 = vmax.f32 %v2517_v15, 0.0  ;;  %v2522_v17 = vmax.f32 %v2518_v39, 0.0 }
 0x80e   :  { %v2577_v13 = vsel %vm381_vm1, %v8742_v19, %v8746_v7  ;;  %v2669_v15 = vsel %vm475_vm2, %v2654_v55, %v2656_v38  ;;  %v4721_v42 = vpack.c.bf16 %v2246_v4, %v2245_v24  ;;  %v2538_v58 = vadd.f32 %v2534_v29, %v2528_v51 }
 0x80f   :  { %v2668_v40 = vpop.permute.xlu1 %2667  ;;  %v4722_v33 = vpack.c.bf16 %v2520_v60, %v2519_v52  ;;  %v2535_v36 = vmul.f32 %v8772_v10, %v7328_v21  ;;  %v2630_v27 = vadd.f32 %v2622_v6, %v2584_v8  ;;  %v4738_v46 = vpack.c.bf16 %v2522_v17, %v2521_v22 }
 0x810   :  { %v2529_v35 = vmul.f32 %v8774_v47, %v7288_v56  ;;  %v2623_v31 = vsel %vm381_vm1, %v8760_v1, %v8762_v23  ;;  %v2585_v19 = vadd.f32 %v2577_v13, %v2538_v58  ;;  %v2247_v38 = vmax.f32 %v2243_v57, 0.0 }
 0x811   :  { %5954 = vmatprep.mubr.bf16.mxu1 %v4722_v33  ;;  %v2700_v2 = vpop.permute.xlu0 %2699  ;;  %v2677_v7 = vadd.f32 %v2669_v15, %v2630_v27  ;;  %v2248_v37 = vmax.f32 %v2244_v44, 0.0  ;;  %v2578_v29 = vsel %vm381_vm1, %v8748_v49, %v8750_v28  ;;  %v2670_v39 = vsel %vm475_vm2, %v2658_v54, %v2660_v48 }
 0x812   :  { %5955 = vmatmul.mubr.bf16.vlgmr.msra.gmra.mrb[8].mxu1 %v4721_v42  ;;  %v2728_v24 = vstv %s8793_s12  ;;  %v2539_v4 = vadd.f32 %v2535_v36, %v2529_v35  ;;  %v2536_v1 = vmul.f32 %v8772_v10, %v7338_v26  ;;  %v2631_v23 = vadd.f32 %v2623_v31, %v2585_v19  ;;  %s6375_s12 = sld [smem:[#allocation10 + $0x601]] }
 0x813   :  { %v2702_v55 = vpop.permute.xlu1 %2701  ;;  %5962 = vmatprep.mubr.bf16.mxu1 %v4738_v46  ;;  %v2624_v60 = vsel %vm381_vm1, %v8764_v45, %v8766_v41  ;;  %v2530_v49 = vmul.f32 %v8774_v47, %v7298_v61  ;;  %v2671_v10 = vsel %vm475_vm2, %v8783_v30, %v2664_v34  ;;  %v4737_v6 = vpack.c.bf16 %v2248_v37, %v2247_v38 }
 0x814   :  { %v2715_v3 = vsel %vm475_vm2, %v2700_v2, %v2702_v55  ;;  %v2586_v22 = vadd.f32 %v2578_v29, %v2539_v4  ;;  %v2678_v28 = vadd.f32 %v2670_v39, %v2631_v23  ;;  %v2625_v8 = vsel %vm381_vm1, %v8768_v25, %v8770_v53 }
 0x815   :  { %v2723_v43 = vadd.f32 %v2715_v3, %v2677_v7  ;;  %v2704_v52 = vpop.permute.xlu0 %2703  ;;  %v2540_v17 = vadd.f32 %v2536_v1, %v2530_v49  ;;  %v2672_v30 = vsel %vm475_vm2, %v2666_v62, %v2668_v40  ;;  %v2817_v35 = vstv %s6348_s13  ;;  %s6385_s13 = sld [smem:[#allocation12 + $0x681]] }
 0x816   :  { %v2632_v45 = vadd.f32 %v2624_v60, %v2586_v22  ;;  %v2819_v31 = vmul.f32 %v2817_v35, %v7273_v9  ;;  %v2820_v19 = vmul.f32 %v2817_v35, %v7278_v11  ;;  %v2821_v7 = vmul.f32 %v2817_v35, %v10588_v14  ;;  %v10657_v22 = vld [vmem:[#allocation34_spill] sm:$0xff] }
 0x817   :  { %v2706_v54 = vpop.permute.xlu1 %2705  ;;  %v8826_v48 = vadd.f32 %v2728_v24, %v2723_v43  ;;  %v2587_v33 = vadd.f32 %v2579_v63, %v2540_v17  ;;  %v2818_v55 = vmul.f32 %v2817_v35, %v7270_v50  ;;  %v2823_v38 = vmul.f32 %v2817_v35, %v10589_v18  ;;  %v10656_v43 = vld [vmem:[#allocation33_spill] sm:$0xff] }
 0x818   :  { %v2716_v51 = vsel %vm475_vm2, %v2704_v52, %v2706_v54  ;;  %v2679_v57 = vadd.f32 %v2671_v10, %v2632_v45  ;;  %v2822_v37 = vmul.f32 %v2817_v35, %v7288_v56  ;;  %v2825_v29 = vmul.f32 %v2817_v35, %v10590_v59 }
 0x819   :  { %10652 = vst [vmem:[#allocation40_spill] sm:$0xff] %v8826_v48  ;;  %v2724_v41 = vadd.f32 %v2716_v51, %v2678_v28  ;;  %2733 = vadd.xlane.f32.xlu0 %v8826_v48  ;;  %v2708_v47 = vpop.permute.xlu0 %2707  ;;  %v2633_v44 = vadd.f32 %v2625_v8, %v2587_v33  ;;  %v2751_v2 = vmul.f32 %v8826_v48, %v8826_v48  ;;  %v2863_v39 = vstv %s6349_s14  ;;  %s6402_s14 = sld [smem:[#allocation10 + $0x781]] }
 0x81a   :  { %5963 = vmatmul.mubr.bf16.gmra.mrb[12].mxu1 %v4737_v6  ;;  %v2824_v3 = vmul.f32 %v2817_v35, %v7298_v61  ;;  %v2864_v4 = vmul.f32 %v2863_v39, %v7310_v12  ;;  %v2867_v1 = vmul.f32 %v2863_v39, %v10592_v0  ;;  %v2866_v23 = vmul.f32 %v2863_v39, %v7318_v16 }
 0x81b   :  { %v2710_v5 = vpop.permute.xlu1 %2709  ;;  %v8838_v32 = vadd.f32 %v2728_v24, %v2724_v41  ;;  %v2680_v15 = vadd.f32 %v2672_v30, %v2633_v44  ;;  %v2869_v52 = vmul.f32 %v2863_v39, %v10656_v43  ;;  %v2868_v60 = vmul.f32 %v2863_v39, %v7328_v21 }
 0x81c   :  { %v2717_v34 = vsel %vm475_vm2, %v2708_v47, %v2710_v5  ;;  %v2871_v49 = vmul.f32 %v2863_v39, %v10657_v22  ;;  %v2910_v28 = vstv %s6350_s6  ;;  %v2870_v54 = vmul.f32 %v2863_v39, %v7338_v26  ;;  %s6376_s6 = sld [smem:[#allocation12 + $0x601]] }
 0x81d   :  { %10653 = vst [vmem:[#allocation38_spill] sm:$0xff] %v8838_v32  ;;  %v2725_v13 = vadd.f32 %v2717_v34, %v2679_v57  ;;  %2735 = vadd.xlane.f32.xlu1 %v8838_v32  ;;  %v2712_v42 = vpop.permute.xlu0 %2711  ;;  %v2752_v25 = vmul.f32 %v8838_v32, %v8838_v32  ;;  %v2912_v63 = vmul.f32 %v2910_v28, %v7273_v9  ;;  %v2956_v47 = vstv %s6351_s15  ;;  %s6393_s15 = sld [smem:[#allocation10 + $0x701]] }
 0x81e   :  { %v2911_v10 = vmul.f32 %v2910_v28, %v7270_v50  ;;  %v2914_v51 = vmul.f32 %v2910_v28, %v10588_v14  ;;  %v2913_v6 = vmul.f32 %v2910_v28, %v7278_v11  ;;  %v2916_v17 = vmul.f32 %v2910_v28, %v10589_v18 }
 0x81f   :  { %v2714_v58 = vpop.permute.xlu1 %2713  ;;  %v8845_v53 = vadd.f32 %v2728_v24, %v2725_v13  ;;  %v2915_v45 = vmul.f32 %v2910_v28, %v7288_v56  ;;  %v2918_v41 = vmul.f32 %v2910_v28, %v10590_v59  ;;  %v2917_v8 = vmul.f32 %v2910_v28, %v7298_v61 }
 0x820   :  { %v2718_v36 = vsel %vm475_vm2, %v2712_v42, %v2714_v58  ;;  %v2958_v33 = vmul.f32 %v2956_v47, %v10591_v20  ;;  %v2957_v57 = vmul.f32 %v2956_v47, %v7310_v12  ;;  %v2960_v5 = vmul.f32 %v2956_v47, %v10592_v0 }
 0x821   :  { %10654 = vst [vmem:[#allocation39_spill] sm:$0xff] %v8845_v53  ;;  %v2726_v27 = vadd.f32 %v2718_v36, %v2680_v15  ;;  %2757 = vadd.xlane.f32.xlu1 %v2752_v25  ;;  %2737 = vadd.xlane.f32.xlu0 %v8845_v53  ;;  %v2753_v46 = vmul.f32 %v8845_v53, %v8845_v53 }
 0x822   :  { %v2959_v30 = vmul.f32 %v2956_v47, %v7318_v16  ;;  %v2962_v34 = vmul.f32 %v2956_v47, %v10656_v43  ;;  %v2961_v44 = vmul.f32 %v2956_v47, %v7328_v21  ;;  %v2964_v13 = vmul.f32 %v2956_v47, %v10657_v22 }
 0x823   :  { %v8849_v62 = vadd.f32 %v2728_v24, %v2726_v27  ;;  %v2865_v24 = vmul.f32 %v2863_v39, %v10591_v20  ;;  %v2963_v15 = vmul.f32 %v2956_v47, %v7338_v26 }
 0x825   :  { %10655 = vst [vmem:[#allocation43_spill] sm:$0xff] %v8849_v62  ;;  %2739 = vadd.xlane.f32.xlu0 %v8849_v62  ;;  %v2754_v40 = vmul.f32 %v8849_v62, %v8849_v62 }
 0x827   :  { %2761 = vadd.xlane.f32.xlu1 %v2754_v40 }
 0x829   :  { %2755 = vadd.xlane.f32.xlu0 %v2751_v2 }
 0x82d   :  { %2759 = vadd.xlane.f32.xlu0 %v2753_v46 }
 0x838   :  { %2836 = vrot.lane.b32.xlu1 %v2819_v31, %s7080_s5 }
 0x83c   :  { %2838 = vrot.lane.b32.xlu1 %v2820_v19, %s7080_s5 }
 0x840   :  { %2840 = vrot.lane.b32.xlu1 %v2821_v7, %s7080_s5 }
 0x843   :  { %2834 = vrot.lane.b32.xlu0 %v2818_v55, %s7080_s5 }
 0x844   :  { %2844 = vrot.lane.b32.xlu1 %v2823_v38, %s7080_s5 }
 0x847   :  { %2842 = vrot.lane.b32.xlu0 %v2822_v37, %s7080_s5 }
 0x848   :  { %2848 = vrot.lane.b32.xlu1 %v2825_v29, %s7080_s5 }
 0x84b   :  { %2846 = vrot.lane.b32.xlu0 %v2824_v3, %s7080_s5 }
 0x84c   :  { %2882 = vrot.lane.b32.xlu1 %v2865_v24, %s7080_s5 }
 0x84f   :  { %2880 = vrot.lane.b32.xlu0 %v2864_v4, %s7080_s5 }
 0x850   :  { %2886 = vrot.lane.b32.xlu1 %v2867_v1, %s7080_s5 }
 0x853   :  { %2884 = vrot.lane.b32.xlu0 %v2866_v23, %s7080_s5 }
 0x854   :  { %2890 = vrot.lane.b32.xlu1 %v2869_v52, %s7080_s5 }
 0x857   :  { %2888 = vrot.lane.b32.xlu0 %v2868_v60, %s7080_s5 }
 0x858   :  { %2894 = vrot.lane.b32.xlu1 %v2871_v49, %s7080_s5 }
 0x85b   :  { %2892 = vrot.lane.b32.xlu0 %v2870_v54, %s7080_s5 }
 0x85c   :  { %2929 = vrot.lane.b32.xlu1 %v2912_v63, %s7081_s0  ;;  %v2806_v63 = vstv %s6347_s16  ;;  %s6386_s16 = sld [smem:[#allocation10 + $0x682]] }
 0x85f   :  { %2927 = vrot.lane.b32.xlu0 %v2911_v10, %s7081_s0 }
 0x860   :  { %2933 = vrot.lane.b32.xlu1 %v2914_v51, %s7081_s0  ;;  %v2800_v51 = vstv %s6346_s4  ;;  %s6403_s4 = sld [smem:[#allocation12 + $0x781]] }
 0x861   :  { %v2802_v62 = vmul.f32 %v2800_v51, %v7278_v11 }
 0x863   :  { %2931 = vrot.lane.b32.xlu0 %v2913_v6, %s7081_s0  ;;  %v2807_v6 = vmul.f32 %v2806_v63, %v7310_v12 }
 0x864   :  { %2937 = vrot.lane.b32.xlu1 %v2916_v17, %s7081_s0 }
 0x867   :  { %2935 = vrot.lane.b32.xlu0 %v2915_v45, %s7081_s0  ;;  %v2801_v45 = vmul.f32 %v2800_v51, %v7270_v50 }
 0x868   :  { %2941 = vrot.lane.b32.xlu1 %v2918_v41, %s7081_s0 }
 0x86b   :  { %2939 = vrot.lane.b32.xlu0 %v2917_v8, %s7081_s0 }
 0x86c   :  { %2975 = vrot.lane.b32.xlu1 %v2958_v33, %s7081_s0  ;;  %v2811_v33 = vadd.f32 %v2807_v6, %v2801_v45 }
 0x86f   :  { %2973 = vrot.lane.b32.xlu0 %v2957_v57, %s7081_s0  ;;  %v2808_v57 = vmul.f32 %v2806_v63, %v7318_v16 }
 0x870   :  { %2979 = vrot.lane.b32.xlu1 %v2960_v5, %s7081_s0 }
 0x871   :  { %v2812_v45 = vadd.f32 %v2808_v57, %v2802_v62  ;;  %v3002_v57 = vstv %s6352_s2  ;;  %s6377_s2 = sld [smem:[#allocation10 + $0x602]] }
 0x873   :  { %2977 = vrot.lane.b32.xlu0 %v2959_v30, %s7081_s0 }
 0x874   :  { %2983 = vrot.lane.b32.xlu1 %v2962_v34, %s7081_s0 }
 0x877   :  { %2981 = vrot.lane.b32.xlu0 %v2961_v44, %s7081_s0 }
 0x878   :  { %2987 = vrot.lane.b32.xlu1 %v2964_v13, %s7081_s0 }
 0x87b   :  { %2985 = vrot.lane.b32.xlu0 %v2963_v15, %s7081_s0 }
 0x8a6   :  { %v8922_v42 = vpop.xlane.xlu0 %2733 }
 0x8aa   :  { %v8924_v58 = vpop.xlane.xlu1 %2735 }
 0x8ae   :  { %v8926_v25 = vpop.xlane.xlu0 %2737  ;;  %v8928_v36 = vpop.xlane.xlu1 %2757 }
 0x8b2   :  { %v8930_v27 = vpop.xlane.xlu0 %2739 }
 0x8b3   :  { %10658 = vst [vmem:[#allocation41_spill] sm:$0xff] %v8930_v27  ;;  %v2809_v27 = vmul.f32 %v2806_v63, %v7328_v21 }
 0x8b4   :  { %v8932_v40 = vpop.xlane.xlu1 %2761 }
 0x8b5   :  { %10659 = vst [vmem:[#allocation42_spill] sm:$0xff] %v8932_v40 }
 0x8b6   :  { %v8934_v2 = vpop.xlane.xlu0 %2755 }
 0x8b8   :  { %v2837_v46 = vpop.permute.xlu1 %2836 }
 0x8ba   :  { %v8936_v35 = vpop.xlane.xlu0 %2759 }
 0x8bb   :  { %10660 = vst [vmem:[#allocation27_spill] sm:$0xff] %v8936_v35 }
 0x8bc   :  { %v2839_v31 = vpop.permute.xlu1 %2838 }
 0x8be   :  { %v2835_v19 = vpop.permute.xlu0 %2834 }
 0x8bf   :  { %v2850_v47 = vsel %vm381_vm1, %v2835_v19, %v2837_v46  ;;  %v10661_v19 = vld [vmem:[#allocation28_spill] sm:$0xff] }
 0x8c0   :  { %v2841_v7 = vpop.permute.xlu1 %2840  ;;  %v2858_v15 = vadd.f32 %v2850_v47, %v2811_v33  ;;  %v10663_v47 = vld [vmem:[#allocation29_spill] sm:$0xff] }
 0x8c1   :  { %v2851_v48 = vsel %vm381_vm1, %v2839_v31, %v2841_v7 }
 0x8c2   :  { %v2843_v55 = vpop.permute.xlu0 %2842  ;;  %v2859_v33 = vadd.f32 %v2851_v48, %v2812_v45  ;;  %v2804_v48 = vmul.f32 %v2800_v51, %v7298_v61  ;;  %v10665_v45 = vld [vmem:[#allocation30_spill] sm:$0xff] }
 0x8c4   :  { %v2845_v38 = vpop.permute.xlu1 %2844 }
 0x8c6   :  { %v8938_v37 = vpop.permute.xlu0 %2846 }
 0x8c8   :  { %v8940_v29 = vpop.permute.xlu1 %2848 }
 0x8ca   :  { %v2881_v39 = vpop.permute.xlu0 %2880 }
 0x8cc   :  { %v2883_v3 = vpop.permute.xlu1 %2882 }
 0x8cd   :  { %v2896_v34 = vsel %vm381_vm1, %v2881_v39, %v2883_v3 }
 0x8ce   :  { %v2885_v24 = vpop.permute.xlu0 %2884  ;;  %v2904_v35 = vadd.f32 %v2896_v34, %v2858_v15 }
 0x8d0   :  { %v2887_v4 = vpop.permute.xlu1 %2886 }
 0x8d1   :  { %v2897_v3 = vsel %vm381_vm1, %v2885_v24, %v2887_v4 }
 0x8d2   :  { %v2889_v1 = vpop.permute.xlu0 %2888  ;;  %v2905_v24 = vadd.f32 %v2897_v3, %v2859_v33 }
 0x8d4   :  { %v2891_v23 = vpop.permute.xlu1 %2890 }
 0x8d6   :  { %v8942_v52 = vpop.permute.xlu0 %2892 }
 0x8d8   :  { %v8944_v60 = vpop.permute.xlu1 %2894 }
 0x8da   :  { %v2928_v49 = vpop.permute.xlu0 %2927 }
 0x8dc   :  { %v2930_v28 = vpop.permute.xlu1 %2929 }
 0x8dd   :  { %v2943_v46 = vsel %vm475_vm2, %v2928_v49, %v2930_v28  ;;  %v2852_v49 = vsel %vm381_vm1, %v2843_v55, %v2845_v38  ;;  %v2853_v38 = vsel %vm381_vm1, %v8938_v37, %v8940_v29  ;;  %v2899_v37 = vsel %vm381_vm1, %v8942_v52, %v8944_v60  ;;  %v10667_v29 = vld [vmem:[#allocation31_spill] sm:$0xff] }
 0x8de   :  { %v2932_v54 = vpop.permute.xlu0 %2931  ;;  %v2951_v31 = vadd.f32 %v2943_v46, %v2904_v35  ;;  %v2898_v35 = vsel %vm381_vm1, %v2889_v1, %v2891_v23 }
 0x8e0   :  { %v2934_v10 = vpop.permute.xlu1 %2933 }
 0x8e1   :  { %v2944_v28 = vsel %vm475_vm2, %v2932_v54, %v2934_v10 }
 0x8e2   :  { %v2936_v17 = vpop.permute.xlu0 %2935  ;;  %v2952_v54 = vadd.f32 %v2944_v28, %v2905_v24 }
 0x8e4   :  { %v2938_v41 = vpop.permute.xlu1 %2937 }
 0x8e5   :  { %v6637_v8 = vpop.f32.mrb[8].mxu1 }
 0x8e6   :  { %v6638_v5 = vpop.f32.mrb[9].mxu1  ;;  %v2940_v30 = vpop.permute.xlu0 %2939 }
 0x8e7   :  { %v6639_v44 = vadd.f32 %v6638_v5, %v6637_v8  ;;  %v6640_v13 = vpop.f32.mrb[10].mxu1  ;;  %v2803_v5 = vmul.f32 %v2800_v51, %v7288_v56 }
 0x8e8   :  { %v6641_v53 = vpop.f32.mrb[11].mxu1  ;;  %v2942_v32 = vpop.permute.xlu1 %2941 }
 0x8e9   :  { %v8955_v40 = vadd.f32 %v6639_v44, %v10661_v19  ;;  %v6642_v6 = vadd.f32 %v6641_v53, %v6640_v13  ;;  %v2813_v34 = vadd.f32 %v2809_v27, %v2803_v5  ;;  %v2810_v44 = vmul.f32 %v2806_v63, %v7338_v26 }
 0x8ea   :  { %v2974_v39 = vpop.permute.xlu0 %2973  ;;  %v2945_v63 = vsel %vm475_vm2, %v2936_v17, %v2938_v41 }
 0x8eb   :  { %10662 = vst [vmem:[#allocation28_spill] sm:$0xff] %v8955_v40  ;;  %v8960_v8 = vadd.f32 %v6642_v6, %v10663_v47  ;;  %v2860_v55 = vadd.f32 %v2852_v49, %v2813_v34  ;;  %v2814_v23 = vadd.f32 %v2810_v44, %v2804_v48  ;;  %v2946_v49 = vsel %vm475_vm2, %v2940_v30, %v2942_v32 }
 0x8ec   :  { %v2976_v7 = vpop.permute.xlu1 %2975 }
 0x8ed   :  { %10664 = vst [vmem:[#allocation29_spill] sm:$0xff] %v8960_v8  ;;  %v2989_v53 = vsel %vm475_vm2, %v2974_v39, %v2976_v7  ;;  %v6643_v62 = vpop.f32.mrb[12].mxu1  ;;  %v2906_v3 = vadd.f32 %v2898_v35, %v2860_v55  ;;  %v2861_v17 = vadd.f32 %v2853_v38, %v2814_v23  ;;  %v3091_v35 = vstv %s6357_s3  ;;  %s6394_s3 = sld [smem:[#allocation12 + $0x701]] }
 0x8ee   :  { %v2997_v4 = vadd.f32 %v2989_v53, %v2951_v31  ;;  %v6644_v13 = vpop.f32.mrb[13].mxu1  ;;  %v2978_v15 = vpop.permute.xlu0 %2977  ;;  %v3092_v55 = vmul.f32 %v3091_v35, %v7270_v50  ;;  %v3097_v38 = vmul.f32 %v3091_v35, %v10589_v18 }
 0x8ef   :  { %v6645_v46 = vadd.f32 %v6644_v13, %v6643_v62  ;;  %v6646_v19 = vpop.f32.mrb[14].mxu1  ;;  %v2953_v41 = vadd.f32 %v2945_v63, %v2906_v3  ;;  %v2907_v53 = vadd.f32 %v2899_v37, %v2861_v17  ;;  %v3098_v63 = vmul.f32 %v3091_v35, %v7298_v61  ;;  %v6842_v37 = vld [vmem:[#allocation18 + $0x248] sm:$0xff]  }
 0x8f0   :  { %v6647_v10 = vpop.f32.mrb[15].mxu1  ;;  %v2980_v27 = vpop.permute.xlu1 %2979  ;;  %v8972_v6 = vadd.f32 %v3002_v57, %v2997_v4 }
 0x8f1   :  { %v8976_v39 = vadd.f32 %v6645_v46, %v10665_v45  ;;  %v6648_v51 = vadd.f32 %v6647_v10, %v6646_v19  ;;  %v2990_v1 = vsel %vm475_vm2, %v2978_v15, %v2980_v27  ;;  %v2954_v34 = vadd.f32 %v2946_v49, %v2907_v53  ;;  %v6844_v49 = vld [vmem:[#allocation18 + $0x250] sm:$0xff]  }
 0x8f2   :  { %v2998_v47 = vadd.f32 %v2990_v1, %v2952_v54  ;;  %3007 = vadd.xlane.f32.xlu0 %v8972_v6  ;;  %v2982_v33 = vpop.permute.xlu0 %2981  ;;  %v3025_v15 = vmul.f32 %v8972_v6, %v8972_v6  ;;  %v3093_v46 = vmul.f32 %v3091_v35, %v7273_v9  ;;  %v3095_v19 = vmul.f32 %v3091_v35, %v10588_v14 }
 0x8f3   :  { %10666 = vst [vmem:[#allocation30_spill] sm:$0xff] %v8976_v39  ;;  %v8984_v5 = vadd.f32 %v6648_v51, %v10667_v29  ;;  %v3096_v54 = vmul.f32 %v3091_v35, %v7288_v56  ;;  %v3099_v10 = vmul.f32 %v3091_v35, %v10590_v59  ;;  %v3137_v27 = vstv %s6358_s17  ;;  %s6387_s17 = sld [smem:[#allocation12 + $0x682]] }
 0x8f4   :  { %v2984_v31 = vpop.permute.xlu1 %2983  ;;  %v8986_v7 = vadd.f32 %v3002_v57, %v2998_v47  ;;  %v3139_v45 = vmul.f32 %v3137_v27, %v10591_v20  ;;  %v3138_v51 = vmul.f32 %v3137_v27, %v7310_v12  ;;  %v3141_v1 = vmul.f32 %v3137_v27, %v10592_v0  ;;  %v6840_v47 = vld [vmem:[#allocation18 + $0x240] sm:$0xff]  }
 0x8f5   :  { %10668 = vst [vmem:[#allocation31_spill] sm:$0xff] %v8984_v5  ;;  %v2991_v28 = vsel %vm475_vm2, %v2982_v33, %v2984_v31  ;;  %v3140_v23 = vmul.f32 %v3137_v27, %v7318_v16  ;;  %v3143_v3 = vmul.f32 %v3137_v27, %v10656_v43  ;;  %v6841_v33 = vld [vmem:[#allocation18 + $0x200] sm:$0xff]   ;;  %v3142_v29 = vmul.f32 %v3137_v27, %v7328_v21 }
 0x8f6   :  { %v2999_v62 = vadd.f32 %v2991_v28, %v2953_v41  ;;  %3009 = vadd.xlane.f32.xlu1 %v8986_v7  ;;  %v2986_v44 = vpop.permute.xlu0 %2985  ;;  %v3026_v52 = vmul.f32 %v8986_v7, %v8986_v7  ;;  %6649 = vmatprep.subr.bf16.mxu0 %v6840_v47  ;;  %v3145_v17 = vmul.f32 %v3137_v27, %v10657_v22  ;;  %v6843_v41 = vld [vmem:[#allocation18 + $0x208] sm:$0xff]   ;;  %v3184_v31 = vstv %s6359_s18  ;;  %s6404_s18 = sld [smem:[#allocation10 + $0x782]] }
 0x8f7   :  { %6650 = vmatpush3.bf16.msra.mxu0 %v6841_v33  ;;  %v3144_v28 = vmul.f32 %v3137_v27, %v7338_v26  ;;  %v3186_v53 = vmul.f32 %v3184_v31, %v7273_v9  ;;  %v6854_v27 = vld [vmem:[#allocation18 + $0x278] sm:$0xff]  }
 0x8f8   :  { %v2988_v24 = vpop.permute.xlu1 %2987  ;;  %v8993_v60 = vadd.f32 %v3002_v57, %v2999_v62  ;;  %6651 = vmatprep.subr.bf16.mxu0 %v6842_v37  ;;  %v6845_v62 = vld [vmem:[#allocation18 + $0x210] sm:$0xff]   ;;  %v2741_v37 = vadd.f32 %v8924_v58, %v8922_v42 }
 0x8f9   :  { %v2992_v4 = vsel %vm475_vm2, %v2986_v44, %v2988_v24  ;;  %v3185_v44 = vmul.f32 %v3184_v31, %v7270_v50  ;;  %v3188_v24 = vmul.f32 %v3184_v31, %v10588_v14 }
 0x8fa   :  { %v3000_v13 = vadd.f32 %v2992_v4, %v2954_v34  ;;  %3031 = vadd.xlane.f32.xlu1 %v3026_v52  ;;  %3011 = vadd.xlane.f32.xlu0 %v8993_v60  ;;  %v3027_v48 = vmul.f32 %v8993_v60, %v8993_v60  ;;  %v6846_v34 = vld [vmem:[#allocation18 + $0x258] sm:$0xff]   ;;  %v6848_v4 = vld [vmem:[#allocation18 + $0x260] sm:$0xff]  }
 0x8fb   :  { %6652 = vmatpush3.bf16.msra.mxu0 %v6843_v41  ;;  %v6847_v52 = vld [vmem:[#allocation18 + $0x218] sm:$0xff]   ;;  %v10669_v41 = vld [vmem:[#allocation27_spill] sm:$0xff] }
 0x8fc   :  { %v8997_v32 = vadd.f32 %v3002_v57, %v3000_v13  ;;  %v3094_v57 = vmul.f32 %v3091_v35, %v7278_v11  ;;  %6653 = vmatprep.subr.bf16.mxu0 %v6844_v49  ;;  %v3187_v13 = vmul.f32 %v3184_v31, %v7278_v11  ;;  %v3189_v35 = vmul.f32 %v3184_v31, %v7288_v56  ;;  %v10670_v49 = vld [vmem:[#allocation41_spill] sm:$0xff] }
 0x8fe   :  { %3013 = vadd.xlane.f32.xlu0 %v8997_v32  ;;  %v3028_v30 = vmul.f32 %v8997_v32, %v8997_v32 }
 0x8ff   :  { %6654 = vmatpush3.bf16.msra.mxu0 %v6845_v62 }
 0x900   :  { %3035 = vadd.xlane.f32.xlu1 %v3028_v30  ;;  %6655 = vmatprep.subr.bf16.mxu0 %v6846_v34  ;;  %v3190_v30 = vmul.f32 %v3184_v31, %v10589_v18 }
 0x902   :  { %3029 = vadd.xlane.f32.xlu0 %v3025_v15  ;;  %v6849_v15 = vld [vmem:[#allocation18 + $0x220] sm:$0xff]  }
 0x903   :  { %6656 = vmatpush3.bf16.msra.mxu0 %v6847_v52 }
 0x904   :  { %6657 = vmatprep.subr.bf16.mxu0 %v6848_v4 }
 0x906   :  { %3033 = vadd.xlane.f32.xlu0 %v3027_v48  ;;  %v6850_v48 = vld [vmem:[#allocation18 + $0x268] sm:$0xff]  }
 0x907   :  { %6658 = vmatpush3.bf16.msra.mxu0 %v6849_v15 }
 0x908   :  { %6659 = vmatprep.subr.bf16.mxu0 %v6850_v48 }
 0x911   :  { %3110 = vrot.lane.b32.xlu1 %v3093_v46, %s7080_s5  ;;  %v3192_v46 = vmul.f32 %v3184_v31, %v10590_v59 }
 0x915   :  { %3112 = vrot.lane.b32.xlu1 %v3094_v57, %s7080_s5  ;;  %v6851_v57 = vld [vmem:[#allocation18 + $0x228] sm:$0xff]  }
 0x916   :  { %6660 = vmatpush3.bf16.msra.mxu0 %v6851_v57 }
 0x919   :  { %3114 = vrot.lane.b32.xlu1 %v3095_v19, %s7080_s5  ;;  %v3230_v19 = vstv %s6360_s7  ;;  %s6378_s7 = sld [smem:[#allocation12 + $0x602]] }
 0x91a   :  { %v3238_v47 = vmul.f32 %v3230_v19, %v10657_v22  ;;  %v3237_v33 = vmul.f32 %v3230_v19, %v7338_v26 }
 0x91c   :  { %3108 = vrot.lane.b32.xlu0 %v3092_v55, %s7080_s5  ;;  %v6852_v55 = vld [vmem:[#allocation18 + $0x270] sm:$0xff]  }
 0x91d   :  { %3118 = vrot.lane.b32.xlu1 %v3097_v38, %s7080_s5  ;;  %v3191_v38 = vmul.f32 %v3184_v31, %v7298_v61  ;;  %6661 = vmatprep.subr.bf16.mxu0 %v6852_v55 }
 0x920   :  { %3116 = vrot.lane.b32.xlu0 %v3096_v54, %s7080_s5  ;;  %v3232_v54 = vmul.f32 %v3230_v19, %v10591_v20 }
 0x921   :  { %3122 = vrot.lane.b32.xlu1 %v3099_v10, %s7080_s5  ;;  %v6853_v10 = vld [vmem:[#allocation18 + $0x230] sm:$0xff]  }
 0x922   :  { %6662 = vmatpush3.bf16.msra.mxu0 %v6853_v10 }
 0x923   :  { %6663 = vmatprep.subr.bf16.mxu0 %v6854_v27 }
 0x924   :  { %3120 = vrot.lane.b32.xlu0 %v3098_v63, %s7080_s5  ;;  %v3231_v63 = vmul.f32 %v3230_v19, %v7310_v12 }
 0x925   :  { %3156 = vrot.lane.b32.xlu1 %v3139_v45, %s7080_s5  ;;  %v3234_v45 = vmul.f32 %v3230_v19, %v10592_v0 }
 0x928   :  { %3154 = vrot.lane.b32.xlu0 %v3138_v51, %s7080_s5  ;;  %v6855_v51 = vld [vmem:[#allocation18 + $0x238] sm:$0xff]  }
 0x929   :  { %3160 = vrot.lane.b32.xlu1 %v3141_v1, %s7080_s5  ;;  %v3233_v1 = vmul.f32 %v3230_v19, %v7318_v16  ;;  %6664 = vmatpush3.bf16.msra.mxu0 %v6855_v51 }
 0x92c   :  { %3158 = vrot.lane.b32.xlu0 %v3140_v23, %s7080_s5  ;;  %v3236_v23 = vmul.f32 %v3230_v19, %v10656_v43 }
 0x92d   :  { %3164 = vrot.lane.b32.xlu1 %v3143_v3, %s7080_s5  ;;  %v3235_v3 = vmul.f32 %v3230_v19, %v7328_v21 }
 0x930   :  { %3162 = vrot.lane.b32.xlu0 %v3142_v29, %s7080_s5  ;;  %v2763_v29 = vadd.f32 %v8928_v36, %v8934_v2 }
 0x931   :  { %3168 = vrot.lane.b32.xlu1 %v3145_v17, %s7080_s5  ;;  %v2742_v17 = vadd.f32 %v2741_v37, %v8926_v25 }
 0x932   :  { %v2764_v31 = vadd.f32 %v2763_v29, %v10669_v41 }
 0x934   :  { %3166 = vrot.lane.b32.xlu0 %v3144_v28, %s7080_s5  ;;  %v2743_v28 = vadd.f32 %v2742_v17, %v10670_v49 }
 0x935   :  { %3203 = vrot.lane.b32.xlu1 %v3186_v53, %s7081_s0  ;;  %v10671_v53 = vld [vmem:[#allocation42_spill] sm:$0xff] }
 0x936   :  { %v2765_v62 = vadd.f32 %v2764_v31, %v10671_v53  ;;  %v2744_v34 = vrot.slane %v2743_v28, 4 }
 0x938   :  { %3201 = vrot.lane.b32.xlu0 %v3185_v44, %s7081_s0  ;;  %v2766_v44 = vrot.slane %v2765_v62, 4 }
 0x939   :  { %3207 = vrot.lane.b32.xlu1 %v3188_v24, %s7081_s0  ;;  %v2745_v24 = vadd.f32 %v2744_v34, %v2743_v28 }
 0x93a   :  { %v2767_v52 = vadd.f32 %v2766_v44, %v2765_v62 }
 0x93b   :  { %v2746_v4 = vrot.slane %v2745_v24, 2 }
 0x93c   :  { %3205 = vrot.lane.b32.xlu0 %v3187_v13, %s7081_s0  ;;  %v2768_v13 = vrot.slane %v2767_v52, 2 }
 0x93d   :  { %3211 = vrot.lane.b32.xlu1 %v3190_v30, %s7081_s0  ;;  %v2747_v30 = vadd.f32 %v2746_v4, %v2745_v24 }
 0x93e   :  { %v2769_v58 = vadd.f32 %v2768_v13, %v2767_v52 }
 0x93f   :  { %v2748_v48 = vrot.slane %v2747_v30, 1 }
 0x940   :  { %3209 = vrot.lane.b32.xlu0 %v3189_v35, %s7081_s0  ;;  %v2770_v25 = vrot.slane %v2769_v58, 1 }
 0x941   :  { %3215 = vrot.lane.b32.xlu1 %v3192_v46, %s7081_s0  ;;  %v2749_v57 = vadd.f32 %v2748_v48, %v2747_v30 }
 0x943   :  { %v2750_v27 = vmul.f32 0.00024414063, %v2749_v57 }
 0x944   :  { %3213 = vrot.lane.b32.xlu0 %v3191_v38, %s7081_s0  ;;  %v2771_v38 = vadd.f32 %v2770_v25, %v2769_v58 }
 0x945   :  { %3249 = vrot.lane.b32.xlu1 %v3232_v54, %s7081_s0 }
 0x946   :  { %v2772_v51 = vmul.f32 0.00024414063, %v2771_v38 }
 0x948   :  { %3247 = vrot.lane.b32.xlu0 %v3231_v63, %s7081_s0 }
 0x949   :  { %3253 = vrot.lane.b32.xlu1 %v3234_v45, %s7081_s0 }
 0x94c   :  { %3251 = vrot.lane.b32.xlu0 %v3233_v1, %s7081_s0 }
 0x94d   :  { %3257 = vrot.lane.b32.xlu1 %v3236_v23, %s7081_s0 }
 0x950   :  { %3255 = vrot.lane.b32.xlu0 %v3235_v3, %s7081_s0 }
 0x951   :  { %3261 = vrot.lane.b32.xlu1 %v3238_v47, %s7081_s0  ;;  %v2773_v47 = vmul.f32 %v2750_v27, %v2750_v27 }
 0x953   :  { %v2774_v17 = vsub.f32 %v2772_v51, %v2773_v47 }
 0x954   :  { %3259 = vrot.lane.b32.xlu0 %v3237_v33, %s7081_s0 }
 0x955   :  { %v2775_v62 = vmax.f32 %v2774_v17, 0.0  ;;  %v2787_v17 = vstv %s6345_s20  ;;  %s6405_s20 = sld [smem:[#allocation12 + $0x782]] }
 0x957   :  { %v2777_v13 = vadd.f32 1e-05, %v2775_v62 }
 0x959   :  { %6924 = vrsqrt.f32 %v2777_v13 }
 0x97f   :  { %v3008_v15 = vpop.xlane.xlu0 %3007 }
 0x983   :  { %v3010_v42 = vpop.xlane.xlu1 %3009 }
 0x984   :  { %v3015_v2 = vadd.f32 %v3010_v42, %v3008_v15 }
 0x987   :  { %v3012_v36 = vpop.xlane.xlu0 %3011  ;;  %v3032_v35 = vpop.xlane.xlu1 %3031 }
 0x988   :  { %v3016_v46 = vadd.f32 %v3015_v2, %v3012_v36 }
 0x98b   :  { %v3014_v19 = vpop.xlane.xlu0 %3013 }
 0x98c   :  { %v3017_v55 = vadd.f32 %v3016_v46, %v3014_v19 }
 0x98d   :  { %v3036_v54 = vpop.xlane.xlu1 %3035 }
 0x98e   :  { %v3018_v10 = vrot.slane %v3017_v55, 4 }
 0x98f   :  { %v3030_v63 = vpop.xlane.xlu0 %3029 }
 0x990   :  { %v3019_v45 = vadd.f32 %v3018_v10, %v3017_v55  ;;  %v3037_v3 = vadd.f32 %v3032_v35, %v3030_v63  ;;  %v6925_v63 = vpop.eup %6924 }
 0x991   :  { %v9078_v1 = vpop.permute.xlu1 %3110 }
 0x992   :  { %v3020_v23 = vrot.slane %v3019_v45, 2 }
 0x993   :  { %v3034_v33 = vpop.xlane.xlu0 %3033 }
 0x994   :  { %v3021_v37 = vadd.f32 %v3020_v23, %v3019_v45  ;;  %v3038_v29 = vadd.f32 %v3037_v3, %v3034_v33  ;;  %v2779_v45 = vstv %s6344_s19  ;;  %s6395_s19 = sld [smem:[#allocation10 + $0x702]] }
 0x995   :  { %v9080_v41 = vpop.permute.xlu1 %3112  ;;  %v2780_v3 = vmul.f32 %v6925_v63, %v2779_v45 }
 0x996   :  { %v3039_v31 = vadd.f32 %v3038_v29, %v3036_v54  ;;  %v3022_v28 = vrot.slane %v3021_v37, 1 }
 0x997   :  { %v9082_v49 = vpop.permute.xlu0 %3108 }
 0x998   :  { %v3040_v53 = vrot.slane %v3039_v31, 4  ;;  %v3023_v52 = vadd.f32 %v3022_v28, %v3021_v37  ;;  %v2786_v37 = vmul.f32 %v2780_v3, %v2750_v27  ;;  %v9110_v28 = vstv %s6356_s22  ;;  %s6364_s22 = sld [smem:[#allocation10 + $0x580]] }
 0x999   :  { %v9084_v34 = vpop.permute.xlu1 %3114 }
 0x99a   :  { %v3041_v44 = vadd.f32 %v3040_v53, %v3039_v31  ;;  %v3024_v58 = vmul.f32 0.00024414063, %v3023_v52  ;;  %v3053_v31 = vstv %s6353_s21  ;;  %v9112_v52 = vstv %s6355_s23  ;;  %s6396_s21 = sld [smem:[#allocation12 + $0x702]]  ;;  %s9927_s23 = sld [smem:[#allocation10 + $0x680]] }
 0x99b   :  { %v9086_v24 = vpop.permute.xlu0 %3116 }
 0x99c   :  { %v3042_v4 = vrot.slane %v3041_v44, 2  ;;  %v3047_v35 = vmul.f32 %v3024_v58, %v3024_v58 }
 0x99d   :  { %v9088_v30 = vpop.permute.xlu1 %3118 }
 0x99e   :  { %v3043_v15 = vadd.f32 %v3042_v4, %v3041_v44  ;;  %v2788_v44 = vsub.f32 %v2787_v17, %v2786_v37 }
 0x99f   :  { %v9090_v42 = vpop.permute.xlu0 %3120 }
 0x9a0   :  { %v3044_v48 = vrot.slane %v3043_v15, 1 }
 0x9a1   :  { %v9092_v36 = vpop.permute.xlu1 %3122 }
 0x9a2   :  { %v3045_v2 = vadd.f32 %v3044_v48, %v3043_v15  ;;  %v3081_v15 = vmul.f32 %v9110_v28, %v7310_v12  ;;  %v3061_v48 = vstv %s6354_s24  ;;  %s9930_s24 = sld [smem:[#allocation13 + $0xb]] }
 0x9a3   :  { %v9094_v25 = vpop.permute.xlu0 %3154 }
 0x9a4   :  { %v3046_v46 = vmul.f32 0.00024414063, %v3045_v2  ;;  %v10672_v2 = vld [vmem:[#allocation40_spill] sm:$0xff] }
 0x9a5   :  { %v9096_v57 = vpop.permute.xlu1 %3156 }
 0x9a6   :  { %v3048_v19 = vsub.f32 %v3046_v46, %v3047_v35  ;;  %v2781_v35 = vmul.f32 %v2780_v3, %v10672_v2  ;;  %v10673_v46 = vld [vmem:[#allocation38_spill] sm:$0xff] }
 0x9a7   :  { %v9098_v55 = vpop.permute.xlu0 %3158  ;;  %v2782_v27 = vmul.f32 %v2780_v3, %v10673_v46 }
 0x9a8   :  { %v3049_v38 = vmax.f32 %v3048_v19, 0.0  ;;  %v2789_v45 = vadd.f32 %v2788_v44, %v2781_v35  ;;  %v3124_v35 = vsel %vm381_vm1, %v9082_v49, %v9078_v1 }
 0x9a9   :  { %v9100_v54 = vpop.permute.xlu1 %3160  ;;  %v2790_v37 = vadd.f32 %v2788_v44, %v2782_v27 }
 0x9aa   :  { %v3051_v10 = vadd.f32 1e-05, %v3049_v38  ;;  %v2793_v27 = vmax.f32 %v2789_v45, 0.0 }
 0x9ab   :  { %v9102_v51 = vpop.permute.xlu0 %3162 }
 0x9ac   :  { %6926 = vrsqrt.f32 %v3051_v10  ;;  %v3075_v10 = vmul.f32 %v9112_v52, %v7270_v50 }
 0x9ad   :  { %v9104_v23 = vpop.permute.xlu1 %3164 }
 0x9ae   :  { %v3085_v39 = vadd.f32 %v3081_v15, %v3075_v10  ;;  %v10675_v10 = vld [vmem:[#allocation43_spill] sm:$0xff] }
 0x9af   :  { %v9106_v47 = vpop.permute.xlu0 %3166  ;;  %v2784_v43 = vmul.f32 %v2780_v3, %v10675_v10  ;;  %v3127_v10 = vsel %vm381_vm1, %v9090_v42, %v9092_v36 }
 0x9b0   :  { %v3132_v49 = vadd.f32 %v3124_v35, %v3085_v39 }
 0x9b1   :  { %v9108_v33 = vpop.permute.xlu1 %3168 }
 0x9b3   :  { %v3202_v29 = vpop.permute.xlu0 %3201 }
 0x9b5   :  { %v3204_v53 = vpop.permute.xlu1 %3203 }
 0x9b6   :  { %v6927_v62 = vpop.eup %6926 }
 0x9b7   :  { %v3206_v4 = vpop.permute.xlu0 %3205  ;;  %v3054_v13 = vmul.f32 %v6927_v62, %v3053_v31 }
 0x9b9   :  { %v3208_v19 = vpop.permute.xlu1 %3207  ;;  %v3060_v38 = vmul.f32 %v3054_v13, %v3024_v58  ;;  %v3055_v63 = vmul.f32 %v3054_v13, %v8972_v6  ;;  %v3056_v31 = vmul.f32 %v3054_v13, %v8986_v7  ;;  %v3057_v5 = vmul.f32 %v3054_v13, %v8993_v60  ;;  %v10674_v60 = vld [vmem:[#allocation39_spill] sm:$0xff] }
 0x9ba   :  { %v3058_v2 = vmul.f32 %v3054_v13, %v8997_v32  ;;  %v3082_v58 = vmul.f32 %v9110_v28, %v7318_v16  ;;  %v2794_v7 = vmax.f32 %v2790_v37, 0.0 }
 0x9bb   :  { %v9121_v17 = vpop.permute.xlu0 %3209  ;;  %v3062_v62 = vsub.f32 %v3061_v48, %v3060_v38  ;;  %v2783_v48 = vmul.f32 %v2780_v3, %v10674_v60 }
 0x9bd   :  { %v3212_v46 = vpop.permute.xlu1 %3211  ;;  %v3063_v8 = vadd.f32 %v3062_v62, %v3055_v63  ;;  %v3064_v40 = vadd.f32 %v3062_v62, %v3056_v31  ;;  %v3065_v22 = vadd.f32 %v3062_v62, %v3057_v5  ;;  %v3066_v6 = vadd.f32 %v3062_v62, %v3058_v2 }
 0x9be   :  { %v3076_v5 = vmul.f32 %v9112_v52, %v7278_v11  ;;  %v3170_v63 = vsel %vm381_vm1, %v9094_v25, %v9096_v57  ;;  %v2791_v31 = vadd.f32 %v2788_v44, %v2783_v48  ;;  %v2792_v62 = vadd.f32 %v2788_v44, %v2784_v43 }
 0x9bf   :  { %v3214_v32 = vpop.permute.xlu0 %3213  ;;  %v3067_v13 = vmax.f32 %v3063_v8, 0.0  ;;  %v3068_v15 = vmax.f32 %v3064_v40, 0.0  ;;  %v3069_v38 = vmax.f32 %v3065_v22, 0.0  ;;  %v3070_v1 = vmax.f32 %v3066_v6, 0.0 }
 0x9c0   :  { %v3125_v40 = vsel %vm381_vm1, %v9080_v41, %v9084_v34  ;;  %v3217_v22 = vsel %vm475_vm2, %v3202_v29, %v3204_v53  ;;  %v4723_v8 = vpack.c.bf16 %v2794_v7, %v2793_v27  ;;  %v3086_v3 = vadd.f32 %v3082_v58, %v3076_v5 }
 0x9c1   :  { %v3216_v45 = vpop.permute.xlu1 %3215  ;;  %v4724_v37 = vpack.c.bf16 %v3068_v15, %v3067_v13  ;;  %v3083_v2 = vmul.f32 %v9110_v28, %v7328_v21  ;;  %v3178_v60 = vadd.f32 %v3170_v63, %v3132_v49  ;;  %v4740_v39 = vpack.c.bf16 %v3070_v1, %v3069_v38 }
 0x9c2   :  { %v3077_v57 = vmul.f32 %v9112_v52, %v7288_v56  ;;  %v3171_v43 = vsel %vm381_vm1, %v9098_v55, %v9100_v54  ;;  %v3133_v41 = vadd.f32 %v3125_v40, %v3086_v3  ;;  %v2795_v53 = vmax.f32 %v2791_v31, 0.0 }
 0x9c3   :  { %6003 = vmatprep.mubr.bf16.mxu0 %v4724_v37  ;;  %v3248_v25 = vpop.permute.xlu0 %3247  ;;  %v3225_v34 = vadd.f32 %v3217_v22, %v3178_v60  ;;  %v2796_v44 = vmax.f32 %v2792_v62, 0.0  ;;  %v3126_v58 = vsel %vm381_vm1, %v9086_v24, %v9088_v30  ;;  %v3218_v6 = vsel %vm475_vm2, %v3206_v4, %v3208_v19 }
 0x9c4   :  { %6004 = vmatmul.mubr.bf16.vlgmr.msra.gmra.mrb[16].mxu0 %v4723_v8  ;;  %v3276_v27 = vstv %s9131_s1  ;;  %v3087_v7 = vadd.f32 %v3083_v2, %v3077_v57  ;;  %v3084_v55 = vmul.f32 %v9110_v28, %v7338_v26  ;;  %v3179_v54 = vadd.f32 %v3171_v43, %v3133_v41  ;;  %s10028_s1 = sld [smem:[#allocation13 + $0xd]] }
 0x9c5   :  { %v3250_v29 = vpop.permute.xlu1 %3249  ;;  %6011 = vmatprep.mubr.bf16.mxu0 %v4740_v39  ;;  %v3172_v15 = vsel %vm381_vm1, %v9102_v51, %v9104_v23  ;;  %v3078_v24 = vmul.f32 %v9112_v52, %v7298_v61  ;;  %v3219_v28 = vsel %vm475_vm2, %v9121_v17, %v3212_v46  ;;  %v4739_v63 = vpack.c.bf16 %v2796_v44, %v2795_v53 }
 0x9c6   :  { %v3263_v35 = vsel %vm475_vm2, %v3248_v25, %v3250_v29  ;;  %v3134_v38 = vadd.f32 %v3126_v58, %v3087_v7  ;;  %v3226_v30 = vadd.f32 %v3218_v6, %v3179_v54  ;;  %v3173_v49 = vsel %vm381_vm1, %v9106_v47, %v9108_v33 }
 0x9c7   :  { %v3271_v48 = vadd.f32 %v3263_v35, %v3225_v34  ;;  %v3252_v13 = vpop.permute.xlu0 %3251  ;;  %v3088_v1 = vadd.f32 %v3084_v55, %v3078_v24  ;;  %v3220_v17 = vsel %vm475_vm2, %v3214_v32, %v3216_v45  ;;  %v3365_v57 = vstv %s6366_s27  ;;  %s10058_s27 = sld [smem:[#allocation13 + $0xc]] }
 0x9c8   :  { %v3180_v51 = vadd.f32 %v3172_v15, %v3134_v38  ;;  %v3367_v43 = vmul.f32 %v3365_v57, %v7273_v9  ;;  %v3368_v41 = vmul.f32 %v3365_v57, %v7278_v11  ;;  %v3369_v34 = vmul.f32 %v3365_v57, %v10588_v14 }
 0x9c9   :  { %v3254_v4 = vpop.permute.xlu1 %3253  ;;  %v9164_v19 = vadd.f32 %v3276_v27, %v3271_v48  ;;  %v3135_v37 = vadd.f32 %v3127_v10, %v3088_v1  ;;  %v3366_v29 = vmul.f32 %v3365_v57, %v7270_v50  ;;  %v3371_v53 = vmul.f32 %v3365_v57, %v10589_v18  ;;  %v10680_v48 = vld [vmem:[#allocation33_spill] sm:$0xff] }
 0x9ca   :  { %v3264_v5 = vsel %vm475_vm2, %v3252_v13, %v3254_v4  ;;  %v3227_v31 = vadd.f32 %v3219_v28, %v3180_v51  ;;  %v3411_v44 = vstv %s6367_s28  ;;  %v3370_v58 = vmul.f32 %v3365_v57, %v7288_v56  ;;  %v10681_v28 = vld [vmem:[#allocation34_spill] sm:$0xff]  ;;  %s6401_s28 = sld [smem:[#allocation12 + $0x780]] }
 0x9cb   :  { %10676 = vst [vmem:[#allocation27_spill] sm:$0xff] %v9164_v19  ;;  %v3272_v23 = vadd.f32 %v3264_v5, %v3226_v30  ;;  %3281 = vadd.xlane.f32.xlu0 %v9164_v19  ;;  %v3256_v52 = vpop.permute.xlu0 %3255  ;;  %v3181_v62 = vadd.f32 %v3173_v49, %v3135_v37  ;;  %v3299_v25 = vmul.f32 %v9164_v19, %v9164_v19  ;;  %v3458_v15 = vstv %s6368_s29  ;;  %s6400_s29 = sld [smem:[#allocation10 + $0x780]] }
 0x9cc   :  { %6012 = vmatmul.mubr.bf16.gmra.mrb[20].mxu0 %v4739_v63  ;;  %v3413_v6 = vmul.f32 %v3411_v44, %v10591_v20  ;;  %v3412_v35 = vmul.f32 %v3411_v44, %v7310_v12  ;;  %v3414_v7 = vmul.f32 %v3411_v44, %v7318_v16  ;;  %v3373_v55 = vmul.f32 %v3365_v57, %v10590_v59 }
 0x9cd   :  { %v3258_v42 = vpop.permute.xlu1 %3257  ;;  %v9176_v36 = vadd.f32 %v3276_v27, %v3272_v23  ;;  %v3228_v22 = vadd.f32 %v3220_v17, %v3181_v62  ;;  %v3372_v54 = vmul.f32 %v3365_v57, %v7298_v61  ;;  %v3417_v13 = vmul.f32 %v3411_v44, %v10680_v48 }
 0x9ce   :  { %v3265_v46 = vsel %vm475_vm2, %v3256_v52, %v3258_v42  ;;  %v3416_v38 = vmul.f32 %v3411_v44, %v7328_v21  ;;  %v3460_v24 = vmul.f32 %v3458_v15, %v7273_v9  ;;  %v3459_v30 = vmul.f32 %v3458_v15, %v7270_v50 }
 0x9cf   :  { %10677 = vst [vmem:[#allocation41_spill] sm:$0xff] %v9176_v36  ;;  %v3273_v40 = vadd.f32 %v3265_v46, %v3227_v31  ;;  %3283 = vadd.xlane.f32.xlu1 %v9176_v36  ;;  %v3260_v8 = vpop.permute.xlu0 %3259  ;;  %v3300_v47 = vmul.f32 %v9176_v36, %v9176_v36  ;;  %v3462_v4 = vmul.f32 %v3458_v15, %v10588_v14  ;;  %v3504_v51 = vstv %s6369_s8  ;;  %s6406_s8 = sld [smem:[#allocation13 + $0xf]] }
 0x9d0   :  { %v3461_v10 = vmul.f32 %v3458_v15, %v7278_v11  ;;  %v3419_v5 = vmul.f32 %v3411_v44, %v10681_v28  ;;  %v3418_v63 = vmul.f32 %v3411_v44, %v7338_v26  ;;  %v3464_v1 = vmul.f32 %v3458_v15, %v10589_v18 }
 0x9d1   :  { %v3262_v3 = vpop.permute.xlu1 %3261  ;;  %v9183_v33 = vadd.f32 %v3276_v27, %v3273_v40  ;;  %v3463_v23 = vmul.f32 %v3458_v15, %v7288_v56  ;;  %v3506_v52 = vmul.f32 %v3504_v51, %v10591_v20  ;;  %v3505_v49 = vmul.f32 %v3504_v51, %v7310_v12 }
 0x9d2   :  { %v3266_v2 = vsel %vm475_vm2, %v3260_v8, %v3262_v3  ;;  %v3508_v37 = vmul.f32 %v3504_v51, %v10592_v0  ;;  %v3507_v31 = vmul.f32 %v3504_v51, %v7318_v16  ;;  %v3466_v42 = vmul.f32 %v3458_v15, %v10590_v59 }
 0x9d3   :  { %10678 = vst [vmem:[#allocation42_spill] sm:$0xff] %v9183_v33  ;;  %v3274_v60 = vadd.f32 %v3266_v2, %v3228_v22  ;;  %3305 = vadd.xlane.f32.xlu1 %v3300_v47  ;;  %3285 = vadd.xlane.f32.xlu0 %v9183_v33  ;;  %v3301_v39 = vmul.f32 %v9183_v33, %v9183_v33  ;;  %v9257_v22 = vstv %s6384_s30  ;;  %s6392_s30 = sld [smem:[#allocation12 + $0x700]] }
 0x9d4   :  { %v3465_v17 = vmul.f32 %v3458_v15, %v7298_v61  ;;  %v3510_v46 = vmul.f32 %v3504_v51, %v10680_v48  ;;  %v3509_v62 = vmul.f32 %v3504_v51, %v7328_v21  ;;  %v3512_v40 = vmul.f32 %v3504_v51, %v10681_v28 }
 0x9d5   :  { %v9187_v32 = vadd.f32 %v3276_v27, %v3274_v60  ;;  %v3415_v27 = vmul.f32 %v3411_v44, %v10592_v0  ;;  %v3511_v8 = vmul.f32 %v3504_v51, %v7338_v26  ;;  %v3915_v3 = vmul.f32 %v9257_v22, %v7273_v9 }
 0x9d6   :  { %v3914_v47 = vmul.f32 %v9257_v22, %v7270_v50  ;;  %v3917_v2 = vmul.f32 %v9257_v22, %v10588_v14  ;;  %v9270_v60 = vstv %s6375_s12  ;;  %v9324_v15 = vstv %s6376_s6  ;;  %s6391_s12 = sld [smem:[#allocation10 + $0x700]]  ;;  %s6363_s6 = sld [smem:[#allocation16 + $0xa]] }
 0x9d7   :  { %10679 = vst [vmem:[#allocation40_spill] sm:$0xff] %v9187_v32  ;;  %3287 = vadd.xlane.f32.xlu0 %v9187_v32  ;;  %v3302_v45 = vmul.f32 %v9187_v32, %v9187_v32  ;;  %v3643_v57 = vmul.f32 %v9270_v60, %v10588_v14  ;;  %v10687_v32 = vld [vmem:[#allocation28_spill] sm:$0xff] }
 0x9d9   :  { %3309 = vadd.xlane.f32.xlu1 %v3302_v45  ;;  %v3916_v45 = vmul.f32 %v9257_v22, %v7278_v11 }
 0x9db   :  { %3303 = vadd.xlane.f32.xlu0 %v3299_v25  ;;  %v3641_v25 = vmul.f32 %v9270_v60, %v7273_v9 }
 0x9df   :  { %3307 = vadd.xlane.f32.xlu0 %v3301_v39  ;;  %v3640_v39 = vmul.f32 %v9270_v60, %v7270_v50 }
 0x9ea   :  { %3384 = vrot.lane.b32.xlu1 %v3367_v43, %s7080_s5  ;;  %v3642_v43 = vmul.f32 %v9270_v60, %v7278_v11 }
 0x9ee   :  { %3386 = vrot.lane.b32.xlu1 %v3368_v41, %s7080_s5  ;;  %v3919_v41 = vmul.f32 %v9257_v22, %v10589_v18 }
 0x9f2   :  { %3388 = vrot.lane.b32.xlu1 %v3369_v34, %s7080_s5  ;;  %v9290_v34 = vstv %s6385_s13  ;;  %s10225_s13 = sld [smem:[#allocation13 + $0xe]] }
 0x9f3   :  { %v3960_v44 = vmul.f32 %v9290_v34, %v7310_v12 }
 0x9f5   :  { %3382 = vrot.lane.b32.xlu0 %v3366_v29, %s7080_s5  ;;  %v3918_v29 = vmul.f32 %v9257_v22, %v7288_v56 }
 0x9f6   :  { %3392 = vrot.lane.b32.xlu1 %v3371_v53, %s7080_s5  ;;  %v3961_v53 = vmul.f32 %v9290_v34, %v10591_v20 }
 0x9f9   :  { %3390 = vrot.lane.b32.xlu0 %v3370_v58, %s7080_s5  ;;  %v3963_v58 = vmul.f32 %v9290_v34, %v10592_v0 }
 0x9fa   :  { %3430 = vrot.lane.b32.xlu1 %v3413_v6, %s7080_s5  ;;  %v9304_v6 = vstv %s6402_s14  ;;  %s6362_s14 = sld [smem:[#allocation15 + $0xa]] }
 0x9fd   :  { %3428 = vrot.lane.b32.xlu0 %v3412_v35, %s7080_s5  ;;  %v3962_v35 = vmul.f32 %v9290_v34, %v7318_v16 }
 0x9fe   :  { %3434 = vrot.lane.b32.xlu1 %v3415_v27, %s7080_s5  ;;  %v4463_v27 = vmul.f32 %v9304_v6, %v7273_v9 }
 0xa01   :  { %3432 = vrot.lane.b32.xlu0 %v3414_v7, %s7080_s5  ;;  %v4462_v7 = vmul.f32 %v9304_v6, %v7270_v50 }
 0xa02   :  { %3396 = vrot.lane.b32.xlu1 %v3373_v55, %s7080_s5  ;;  %v4465_v55 = vmul.f32 %v9304_v6, %v10588_v14 }
 0xa05   :  { %3394 = vrot.lane.b32.xlu0 %v3372_v54, %s7080_s5  ;;  %v4464_v54 = vmul.f32 %v9304_v6, %v7278_v11 }
 0xa06   :  { %3438 = vrot.lane.b32.xlu1 %v3417_v13, %s7080_s5  ;;  %v3645_v13 = vmul.f32 %v9270_v60, %v10589_v18 }
 0xa09   :  { %3436 = vrot.lane.b32.xlu0 %v3416_v38, %s7080_s5  ;;  %v3644_v38 = vmul.f32 %v9270_v60, %v7288_v56 }
 0xa0a   :  { %3477 = vrot.lane.b32.xlu1 %v3460_v24, %s7081_s0  ;;  %v3687_v24 = vmul.f32 %v9324_v15, %v10591_v20 }
 0xa0d   :  { %3475 = vrot.lane.b32.xlu0 %v3459_v30, %s7081_s0  ;;  %v3686_v30 = vmul.f32 %v9324_v15, %v7310_v12 }
 0xa0e   :  { %3481 = vrot.lane.b32.xlu1 %v3462_v4, %s7081_s0  ;;  %v3689_v4 = vmul.f32 %v9324_v15, %v10592_v0 }
 0xa11   :  { %3479 = vrot.lane.b32.xlu0 %v3461_v10, %s7081_s0  ;;  %v9338_v10 = vstv %s6393_s15  ;;  %s6371_s15 = sld [smem:[#allocation15 + $0xb]] }
 0xa12   :  { %3442 = vrot.lane.b32.xlu1 %v3419_v5, %s7080_s5  ;;  %v3688_v5 = vmul.f32 %v9324_v15, %v7318_v16  ;;  %v4189_v51 = vmul.f32 %v9338_v10, %v7273_v9 }
 0xa15   :  { %3440 = vrot.lane.b32.xlu0 %v3418_v63, %s7080_s5 }
 0xa16   :  { %3485 = vrot.lane.b32.xlu1 %v3464_v1, %s7081_s0 }
 0xa19   :  { %3483 = vrot.lane.b32.xlu0 %v3463_v23, %s7081_s0  ;;  %v4188_v23 = vmul.f32 %v9338_v10, %v7270_v50 }
 0xa1a   :  { %3523 = vrot.lane.b32.xlu1 %v3506_v52, %s7081_s0 }
 0xa1d   :  { %3521 = vrot.lane.b32.xlu0 %v3505_v49, %s7081_s0  ;;  %v4191_v49 = vmul.f32 %v9338_v10, %v10588_v14 }
 0xa1e   :  { %3527 = vrot.lane.b32.xlu1 %v3508_v37, %s7081_s0 }
 0xa21   :  { %3525 = vrot.lane.b32.xlu0 %v3507_v31, %s7081_s0  ;;  %v4190_v31 = vmul.f32 %v9338_v10, %v7278_v11 }
 0xa22   :  { %3489 = vrot.lane.b32.xlu1 %v3466_v42, %s7081_s0 }
 0xa25   :  { %3487 = vrot.lane.b32.xlu0 %v3465_v17, %s7081_s0  ;;  %v3921_v17 = vmul.f32 %v9257_v22, %v10590_v59 }
 0xa26   :  { %3531 = vrot.lane.b32.xlu1 %v3510_v46, %s7081_s0 }
 0xa29   :  { %3529 = vrot.lane.b32.xlu0 %v3509_v62, %s7081_s0  ;;  %v3920_v62 = vmul.f32 %v9257_v22, %v7298_v61 }
 0xa2a   :  { %3535 = vrot.lane.b32.xlu1 %v3512_v40, %s7081_s0 }
 0xa2d   :  { %3533 = vrot.lane.b32.xlu0 %v3511_v8, %s7081_s0  ;;  %v3965_v8 = vmul.f32 %v9290_v34, %v10680_v48 }
 0xa2e   :  { %3932 = vrot.lane.b32.xlu1 %v3915_v3, %s7080_s5  ;;  %v9372_v3 = vstv %s6386_s16  ;;  %s6372_s16 = sld [smem:[#allocation16 + $0xb]] }
 0xa2f   :  { %v4008_v22 = vmul.f32 %v9372_v3, %v7273_v9 }
 0xa31   :  { %3930 = vrot.lane.b32.xlu0 %v3914_v47, %s7080_s5 }
 0xa32   :  { %3936 = vrot.lane.b32.xlu1 %v3917_v2, %s7080_s5 }
 0xa35   :  { %3934 = vrot.lane.b32.xlu0 %v3916_v45, %s7080_s5  ;;  %v3964_v45 = vmul.f32 %v9290_v34, %v7328_v21 }
 0xa36   :  { %3658 = vrot.lane.b32.xlu1 %v3641_v25, %s7080_s5 }
 0xa39   :  { %3656 = vrot.lane.b32.xlu0 %v3640_v39, %s7080_s5 }
 0xa3a   :  { %3662 = vrot.lane.b32.xlu1 %v3643_v57, %s7080_s5 }
 0xa3d   :  { %3660 = vrot.lane.b32.xlu0 %v3642_v43, %s7080_s5 }
 0xa3e   :  { %3940 = vrot.lane.b32.xlu1 %v3919_v41, %s7080_s5  ;;  %v4007_v41 = vmul.f32 %v9372_v3, %v7270_v50 }
 0xa41   :  { %3938 = vrot.lane.b32.xlu0 %v3918_v29, %s7080_s5 }
 0xa42   :  { %3978 = vrot.lane.b32.xlu1 %v3961_v53, %s7080_s5  ;;  %v4010_v53 = vmul.f32 %v9372_v3, %v10588_v14 }
 0xa45   :  { %3976 = vrot.lane.b32.xlu0 %v3960_v44, %s7080_s5 }
 0xa46   :  { %3982 = vrot.lane.b32.xlu1 %v3963_v58, %s7080_s5  ;;  %v4009_v58 = vmul.f32 %v9372_v3, %v7278_v11 }
 0xa49   :  { %3980 = vrot.lane.b32.xlu0 %v3962_v35, %s7080_s5 }
 0xa4a   :  { %4480 = vrot.lane.b32.xlu1 %v4463_v27, %s7080_s5  ;;  %v4467_v27 = vmul.f32 %v9304_v6, %v10589_v18 }
 0xa4d   :  { %4478 = vrot.lane.b32.xlu0 %v4462_v7, %s7080_s5  ;;  %v9404_v7 = vstv %s6403_s4  ;;  %s6389_s4 = sld [smem:[#allocation15 + $0xd]] }
 0xa4e   :  { %4484 = vrot.lane.b32.xlu1 %v4465_v55, %s7080_s5 }
 0xa51   :  { %4482 = vrot.lane.b32.xlu0 %v4464_v54, %s7080_s5  ;;  %v4466_v54 = vmul.f32 %v9304_v6, %v7288_v56 }
 0xa52   :  { %3666 = vrot.lane.b32.xlu1 %v3645_v13, %s7080_s5 }
 0xa55   :  { %3664 = vrot.lane.b32.xlu0 %v3644_v38, %s7080_s5  ;;  %v4509_v38 = vmul.f32 %v9404_v7, %v10591_v20 }
 0xa56   :  { %3704 = vrot.lane.b32.xlu1 %v3687_v24, %s7080_s5 }
 0xa58   :  { %v9343_v63 = vpop.xlane.xlu0 %3281 }
 0xa59   :  { %3702 = vrot.lane.b32.xlu0 %v3686_v30, %s7080_s5  ;;  %10682 = vst [vmem:[#allocation38_spill] sm:$0xff] %v9343_v63  ;;  %v4508_v30 = vmul.f32 %v9404_v7, %v7310_v12 }
 0xa5a   :  { %3708 = vrot.lane.b32.xlu1 %v3689_v4, %s7080_s5 }
 0xa5c   :  { %v9345_v1 = vpop.xlane.xlu1 %3283 }
 0xa5d   :  { %10683 = vst [vmem:[#allocation39_spill] sm:$0xff] %v9345_v1  ;;  %3706 = vrot.lane.b32.xlu0 %v3688_v5, %s7080_s5  ;;  %v4511_v5 = vmul.f32 %v9404_v7, %v10592_v0  ;;  %v4011_v1 = vmul.f32 %v9372_v3, %v7288_v56 }
 0xa5e   :  { %4206 = vrot.lane.b32.xlu1 %v4189_v51, %s7080_s5 }
 0xa60   :  { %v9353_v52 = vpop.xlane.xlu0 %3285  ;;  %v3306_v37 = vpop.xlane.xlu1 %3305 }
 0xa61   :  { %10684 = vst [vmem:[#allocation43_spill] sm:$0xff] %v9353_v52  ;;  %4204 = vrot.lane.b32.xlu0 %v4188_v23, %s7080_s5  ;;  %v4510_v23 = vmul.f32 %v9404_v7, %v7318_v16 }
 0xa62   :  { %4210 = vrot.lane.b32.xlu1 %v4191_v49, %s7080_s5 }
 0xa64   :  { %v9361_v42 = vpop.xlane.xlu0 %3287 }
 0xa65   :  { %10685 = vst [vmem:[#allocation33_spill] sm:$0xff] %v9361_v42  ;;  %4208 = vrot.lane.b32.xlu0 %v4190_v31, %s7080_s5 }
 0xa66   :  { %3944 = vrot.lane.b32.xlu1 %v3921_v17, %s7080_s5  ;;  %v3310_v46 = vpop.xlane.xlu1 %3309  ;;  %v3646_v17 = vmul.f32 %v9270_v60, %v7298_v61 }
 0xa68   :  { %v3304_v40 = vpop.xlane.xlu0 %3303 }
 0xa69   :  { %3942 = vrot.lane.b32.xlu0 %v3920_v62, %s7080_s5  ;;  %v3311_v2 = vadd.f32 %v3306_v37, %v3304_v40  ;;  %v3647_v37 = vmul.f32 %v9270_v60, %v10590_v59  ;;  %v3691_v62 = vmul.f32 %v9324_v15, %v10680_v48  ;;  %v9446_v40 = vstv %s6377_s2  ;;  %s6390_s2 = sld [smem:[#allocation16 + $0xd]] }
 0xa6a   :  { %3986 = vrot.lane.b32.xlu1 %v3965_v8, %s7080_s5  ;;  %v9375_v47 = vpop.permute.xlu1 %3384  ;;  %v3734_v60 = vmul.f32 %v9446_v40, %v7273_v9 }
 0xa6c   :  { %v3308_v25 = vpop.xlane.xlu0 %3307 }
 0xa6d   :  { %v3312_v39 = vadd.f32 %v3311_v2, %v3308_v25  ;;  %3984 = vrot.lane.b32.xlu0 %v3964_v45, %s7080_s5  ;;  %v3690_v2 = vmul.f32 %v9324_v15, %v7328_v21 }
 0xa6e   :  { %4025 = vrot.lane.b32.xlu1 %v4008_v22, %s7081_s0  ;;  %v9383_v57 = vpop.permute.xlu1 %3386  ;;  %v3733_v22 = vmul.f32 %v9446_v40, %v7270_v50 }
 0xa6f   :  { %v9385_v43 = vadd.f32 %v3312_v39, %v3310_v46 }
 0xa70   :  { %v9389_v29 = vpop.permute.xlu0 %3382 }
 0xa71   :  { %10686 = vst [vmem:[#allocation34_spill] sm:$0xff] %v9385_v43  ;;  %4023 = vrot.lane.b32.xlu0 %v4007_v41, %s7081_s0  ;;  %v3736_v41 = vmul.f32 %v9446_v40, %v10588_v14 }
 0xa72   :  { %4029 = vrot.lane.b32.xlu1 %v4010_v53, %s7081_s0  ;;  %v9395_v44 = vpop.permute.xlu1 %3388 }
 0xa74   :  { %v9399_v35 = vpop.permute.xlu0 %3390 }
 0xa75   :  { %4027 = vrot.lane.b32.xlu0 %v4009_v58, %s7081_s0  ;;  %v3735_v58 = vmul.f32 %v9446_v40, %v7278_v11 }
 0xa76   :  { %4488 = vrot.lane.b32.xlu1 %v4467_v27, %s7080_s5  ;;  %v9407_v55 = vpop.permute.xlu1 %3392 }
 0xa78   :  { %v9411_v13 = vpop.permute.xlu0 %3428 }
 0xa79   :  { %4486 = vrot.lane.b32.xlu0 %v4466_v54, %s7080_s5  ;;  %v4193_v54 = vmul.f32 %v9338_v10, %v10589_v18 }
 0xa7a   :  { %4526 = vrot.lane.b32.xlu1 %v4509_v38, %s7080_s5  ;;  %v9417_v24 = vpop.permute.xlu1 %3430  ;;  %v9478_v38 = vstv %s6394_s3  ;;  %s6380_s3 = sld [smem:[#allocation15 + $0xc]] }
 0xa7b   :  { %v4236_v19 = vmul.f32 %v9478_v38, %v7318_v16 }
 0xa7c   :  { %v9421_v4 = vpop.permute.xlu0 %3432 }
 0xa7d   :  { %4524 = vrot.lane.b32.xlu0 %v4508_v30, %s7080_s5 }
 0xa7e   :  { %4530 = vrot.lane.b32.xlu1 %v4511_v5, %s7080_s5  ;;  %v9427_v51 = vpop.permute.xlu1 %3434  ;;  %v4192_v5 = vmul.f32 %v9338_v10, %v7288_v56 }
 0xa80   :  { %v9431_v49 = vpop.permute.xlu0 %3394 }
 0xa81   :  { %4528 = vrot.lane.b32.xlu0 %v4510_v23, %s7080_s5 }
 0xa82   :  { %3670 = vrot.lane.b32.xlu1 %v3647_v37, %s7080_s5  ;;  %v9437_v31 = vpop.permute.xlu1 %3396  ;;  %v4235_v37 = vmul.f32 %v9478_v38, %v10591_v20 }
 0xa84   :  { %v9441_v46 = vpop.permute.xlu0 %3436 }
 0xa85   :  { %3668 = vrot.lane.b32.xlu0 %v3646_v17, %s7080_s5 }
 0xa86   :  { %3712 = vrot.lane.b32.xlu1 %v3691_v62, %s7080_s5  ;;  %v9449_v8 = vpop.permute.xlu1 %3438 }
 0xa88   :  { %v9453_v45 = vpop.permute.xlu0 %3475 }
 0xa89   :  { %3710 = vrot.lane.b32.xlu0 %v3690_v2, %s7080_s5  ;;  %v4234_v2 = vmul.f32 %v9478_v38, %v7310_v12 }
 0xa8a   :  { %3751 = vrot.lane.b32.xlu1 %v3734_v60, %s7081_s0  ;;  %v9459_v25 = vpop.permute.xlu1 %3477 }
 0xa8c   :  { %v9463_v39 = vpop.permute.xlu0 %3479 }
 0xa8d   :  { %3749 = vrot.lane.b32.xlu0 %v3733_v22, %s7081_s0 }
 0xa8e   :  { %3755 = vrot.lane.b32.xlu1 %v3736_v41, %s7081_s0  ;;  %v9469_v53 = vpop.permute.xlu1 %3481  ;;  %v4237_v41 = vmul.f32 %v9478_v38, %v10592_v0 }
 0xa90   :  { %v9473_v27 = vpop.permute.xlu0 %3440 }
 0xa91   :  { %3753 = vrot.lane.b32.xlu0 %v3735_v58, %s7081_s0 }
 0xa92   :  { %4214 = vrot.lane.b32.xlu1 %v4193_v54, %s7080_s5  ;;  %v9481_v30 = vpop.permute.xlu1 %3442 }
 0xa94   :  { %v9485_v23 = vpop.permute.xlu0 %3483 }
 0xa95   :  { %4212 = vrot.lane.b32.xlu0 %v4192_v5, %s7080_s5 }
 0xa96   :  { %4252 = vrot.lane.b32.xlu1 %v4235_v37, %s7080_s5  ;;  %v9491_v17 = vpop.permute.xlu1 %3485 }
 0xa97   :  { %v6665_v62 = vpop.f32.mrb[16].mxu0 }
 0xa98   :  { %v6666_v60 = vpop.f32.mrb[17].mxu0  ;;  %v9495_v22 = vpop.permute.xlu0 %3521 }
 0xa99   :  { %v6667_v58 = vadd.f32 %v6666_v60, %v6665_v62  ;;  %v6668_v54 = vpop.f32.mrb[18].mxu0  ;;  %4250 = vrot.lane.b32.xlu0 %v4234_v2, %s7080_s5  ;;  %v3967_v62 = vmul.f32 %v9290_v34, %v10681_v28  ;;  %v10689_v60 = vld [vmem:[#allocation29_spill] sm:$0xff] }
 0xa9a   :  { %v6669_v5 = vpop.f32.mrb[19].mxu0  ;;  %4256 = vrot.lane.b32.xlu1 %v4237_v41, %s7080_s5  ;;  %v9501_v37 = vpop.permute.xlu1 %3523 }
 0xa9b   :  { %v9504_v33 = vadd.f32 %v6667_v58, %v10687_v32  ;;  %v6670_v36 = vadd.f32 %v6669_v5, %v6668_v54  ;;  %v3966_v58 = vmul.f32 %v9290_v34, %v7338_v26 }
 0xa9c   :  { %v9508_v43 = vpop.permute.xlu0 %3525 }
 0xa9d   :  { %10688 = vst [vmem:[#allocation28_spill] sm:$0xff] %v9504_v33  ;;  %v9513_v2 = vadd.f32 %v6670_v36, %v10689_v60  ;;  %4254 = vrot.lane.b32.xlu0 %v4236_v19, %s7080_s5  ;;  %v4012_v33 = vmul.f32 %v9372_v3, %v10589_v18  ;;  %v9526_v36 = vstv %s6387_s17  ;;  %v10691_v60 = vld [vmem:[#allocation30_spill] sm:$0xff]  ;;  %s10453_s17 = sld [smem:[#allocation16 + $0xc]] }
 0xa9e   :  { %3990 = vrot.lane.b32.xlu1 %v3967_v62, %s7080_s5  ;;  %v9517_v41 = vpop.permute.xlu1 %3527 }
 0xa9f   :  { %10690 = vst [vmem:[#allocation29_spill] sm:$0xff] %v9513_v2  ;;  %v6671_v32 = vpop.f32.mrb[20].mxu0 }
 0xaa0   :  { %v6672_v54 = vpop.f32.mrb[21].mxu0  ;;  %v9521_v5 = vpop.permute.xlu0 %3487 }
 0xaa1   :  { %v6673_v42 = vadd.f32 %v6672_v54, %v6671_v32  ;;  %v6674_v52 = vpop.f32.mrb[22].mxu0  ;;  %3988 = vrot.lane.b32.xlu0 %v3966_v58, %s7080_s5  ;;  %v4054_v32 = vmul.f32 %v9526_v36, %v10591_v20  ;;  %v10693_v58 = vld [vmem:[#allocation31_spill] sm:$0xff] }
 0xaa2   :  { %v6675_v19 = vpop.f32.mrb[23].mxu0  ;;  %4033 = vrot.lane.b32.xlu1 %v4012_v33, %s7081_s0  ;;  %v9529_v62 = vpop.permute.xlu1 %3489 }
 0xaa3   :  { %v9532_v2 = vadd.f32 %v6673_v42, %v10691_v60  ;;  %v6676_v34 = vadd.f32 %v6675_v19, %v6674_v52  ;;  %v4053_v52 = vmul.f32 %v9526_v36, %v7310_v12  ;;  %v4056_v19 = vmul.f32 %v9526_v36, %v10592_v0 }
 0xaa4   :  { %v9536_v63 = vpop.permute.xlu0 %3529 }
 0xaa5   :  { %10692 = vst [vmem:[#allocation30_spill] sm:$0xff] %v9532_v2  ;;  %v9541_v54 = vadd.f32 %v6676_v34, %v10693_v58  ;;  %4031 = vrot.lane.b32.xlu0 %v4011_v1, %s7081_s0  ;;  %v4055_v1 = vmul.f32 %v9526_v36, %v7318_v16  ;;  %v9574_v2 = vstv %s6404_s18  ;;  %s10455_s18 = sld [smem:[#allocation15 + $0xf]] }
 0xaa6   :  { %4071 = vrot.lane.b32.xlu1 %v4054_v32, %s7081_s0  ;;  %v9545_v33 = vpop.permute.xlu1 %3531  ;;  %v4469_v32 = vmul.f32 %v9304_v6, %v10590_v59 }
 0xaa7   :  { %10694 = vst [vmem:[#allocation31_spill] sm:$0xff] %v9541_v54  ;;  %v4513_v54 = vmul.f32 %v9404_v7, %v10680_v48 }
 0xaa8   :  { %v9549_v42 = vpop.permute.xlu0 %3533 }
 0xaa9   :  { %4069 = vrot.lane.b32.xlu0 %v4053_v52, %s7081_s0  ;;  %v4468_v52 = vmul.f32 %v9304_v6, %v7298_v61  ;;  %v4556_v6 = vmul.f32 %v9574_v2, %v7273_v9 }
 0xaaa   :  { %4075 = vrot.lane.b32.xlu1 %v4056_v19, %s7081_s0  ;;  %v9555_v60 = vpop.permute.xlu1 %3535 }
 0xaac   :  { %v9559_v34 = vpop.permute.xlu0 %3930 }
 0xaad   :  { %10695 = vst [vmem:[#allocation44_spill] sm:$0xff] %v9559_v34  ;;  %4073 = vrot.lane.b32.xlu0 %v4055_v1, %s7081_s0  ;;  %v4512_v1 = vmul.f32 %v9404_v7, %v7328_v21 }
 0xaae   :  { %4492 = vrot.lane.b32.xlu1 %v4469_v32, %s7080_s5  ;;  %v9565_v58 = vpop.permute.xlu1 %3932 }
 0xaaf   :  { %10696 = vst [vmem:[#allocation45_spill] sm:$0xff] %v9565_v58 }
 0xab0   :  { %v9569_v19 = vpop.permute.xlu0 %3934 }
 0xab1   :  { %10697 = vst [vmem:[#allocation46_spill] sm:$0xff] %v9569_v19  ;;  %4490 = vrot.lane.b32.xlu0 %v4468_v52, %s7080_s5  ;;  %v4555_v52 = vmul.f32 %v9574_v2, %v7270_v50  ;;  %v4558_v19 = vmul.f32 %v9574_v2, %v10588_v14 }
 0xab2   :  { %4534 = vrot.lane.b32.xlu1 %v4513_v54, %s7080_s5  ;;  %v9577_v34 = vpop.permute.xlu1 %3936 }
 0xab3   :  { %10698 = vst [vmem:[#allocation47_spill] sm:$0xff] %v9577_v34 }
 0xab4   :  { %v9581_v32 = vpop.permute.xlu0 %3656 }
 0xab5   :  { %10699 = vst [vmem:[#allocation48_spill] sm:$0xff] %v9581_v32  ;;  %4532 = vrot.lane.b32.xlu0 %v4512_v1, %s7080_s5  ;;  %v4557_v1 = vmul.f32 %v9574_v2, %v7278_v11 }
 0xab6   :  { %4573 = vrot.lane.b32.xlu1 %v4556_v6, %s7081_s0  ;;  %v9587_v58 = vpop.permute.xlu1 %3658 }
 0xab7   :  { %10700 = vst [vmem:[#allocation49_spill] sm:$0xff] %v9587_v58  ;;  %v3693_v58 = vmul.f32 %v9324_v15, %v10681_v28 }
 0xab8   :  { %v9591_v54 = vpop.permute.xlu0 %3660 }
 0xab9   :  { %10701 = vst [vmem:[#allocation50_spill] sm:$0xff] %v9591_v54  ;;  %4571 = vrot.lane.b32.xlu0 %v4555_v52, %s7081_s0  ;;  %v3692_v52 = vmul.f32 %v9324_v15, %v7338_v26 }
 0xaba   :  { %4577 = vrot.lane.b32.xlu1 %v4558_v19, %s7081_s0  ;;  %v9597_v32 = vpop.permute.xlu1 %3662 }
 0xabb   :  { %10702 = vst [vmem:[#allocation51_spill] sm:$0xff] %v9597_v32  ;;  %v3738_v32 = vmul.f32 %v9446_v40, %v10589_v18 }
 0xabc   :  { %v9601_v6 = vpop.permute.xlu0 %3938 }
 0xabd   :  { %10703 = vst [vmem:[#allocation52_spill] sm:$0xff] %v9601_v6  ;;  %4575 = vrot.lane.b32.xlu0 %v4557_v1, %s7081_s0  ;;  %v9616_v6 = vstv %s6378_s7  ;;  %s10458_s7 = sld [smem:[#allocation15 + $0xe]] }
 0xabe   :  { %3716 = vrot.lane.b32.xlu1 %v3693_v58, %s7080_s5  ;;  %v9607_v54 = vpop.permute.xlu1 %3940  ;;  %v3737_v58 = vmul.f32 %v9446_v40, %v7288_v56  ;;  %v3780_v15 = vmul.f32 %v9616_v6, %v10591_v20 }
 0xabf   :  { %10704 = vst [vmem:[#allocation53_spill] sm:$0xff] %v9607_v54 }
 0xac0   :  { %v9611_v19 = vpop.permute.xlu0 %3976 }
 0xac1   :  { %10705 = vst [vmem:[#allocation54_spill] sm:$0xff] %v9611_v19  ;;  %3714 = vrot.lane.b32.xlu0 %v3692_v52, %s7080_s5  ;;  %v3779_v52 = vmul.f32 %v9616_v6, %v7310_v12  ;;  %v3782_v19 = vmul.f32 %v9616_v6, %v10592_v0 }
 0xac2   :  { %3759 = vrot.lane.b32.xlu1 %v3738_v32, %s7081_s0  ;;  %v9619_v34 = vpop.permute.xlu1 %3978 }
 0xac3   :  { %10706 = vst [vmem:[#allocation55_spill] sm:$0xff] %v9619_v34 }
 0xac4   :  { %v9623_v1 = vpop.permute.xlu0 %3980 }
 0xac5   :  { %10707 = vst [vmem:[#allocation56_spill] sm:$0xff] %v9623_v1  ;;  %3757 = vrot.lane.b32.xlu0 %v3737_v58, %s7081_s0  ;;  %v3781_v58 = vmul.f32 %v9616_v6, %v7318_v16  ;;  %v4195_v1 = vmul.f32 %v9338_v10, %v10590_v59 }
 0xac6   :  { %3797 = vrot.lane.b32.xlu1 %v3780_v15, %s7081_s0  ;;  %v9629_v54 = vpop.permute.xlu1 %3982 }
 0xac7   :  { %10708 = vst [vmem:[#allocation57_spill] sm:$0xff] %v9629_v54 }
 0xac8   :  { %v9633_v32 = vpop.permute.xlu0 %4478 }
 0xac9   :  { %10709 = vst [vmem:[#allocation58_spill] sm:$0xff] %v9633_v32  ;;  %3795 = vrot.lane.b32.xlu0 %v3779_v52, %s7081_s0  ;;  %v4194_v52 = vmul.f32 %v9338_v10, %v7298_v61 }
 0xaca   :  { %3801 = vrot.lane.b32.xlu1 %v3782_v19, %s7081_s0  ;;  %v9639_v34 = vpop.permute.xlu1 %4480 }
 0xacb   :  { %10710 = vst [vmem:[#allocation59_spill] sm:$0xff] %v9639_v34  ;;  %v4239_v34 = vmul.f32 %v9478_v38, %v10680_v48 }
 0xacc   :  { %v9643_v15 = vpop.permute.xlu0 %4482 }
 0xacd   :  { %10711 = vst [vmem:[#allocation60_spill] sm:$0xff] %v9643_v15  ;;  %3799 = vrot.lane.b32.xlu0 %v3781_v58, %s7081_s0  ;;  %v9658_v15 = vstv %s6395_s19  ;;  %s10462_s19 = sld [smem:[#allocation16 + $0xf]] }
 0xace   :  { %4218 = vrot.lane.b32.xlu1 %v4195_v1, %s7080_s5  ;;  %v9649_v32 = vpop.permute.xlu1 %4484  ;;  %v4238_v1 = vmul.f32 %v9478_v38, %v7328_v21  ;;  %v4282_v10 = vmul.f32 %v9658_v15, %v7273_v9  ;;  %v4283_v9 = vmul.f32 %v9658_v15, %v7278_v11 }
 0xacf   :  { %10712 = vst [vmem:[#allocation61_spill] sm:$0xff] %v9649_v32 }
 0xad0   :  { %v9653_v19 = vpop.permute.xlu0 %3664 }
 0xad1   :  { %10713 = vst [vmem:[#allocation62_spill] sm:$0xff] %v9653_v19  ;;  %4216 = vrot.lane.b32.xlu0 %v4194_v52, %s7080_s5  ;;  %v4281_v52 = vmul.f32 %v9658_v15, %v7270_v50 }
 0xad2   :  { %4260 = vrot.lane.b32.xlu1 %v4239_v34, %s7080_s5  ;;  %v9661_v54 = vpop.permute.xlu1 %3666 }
 0xad3   :  { %10714 = vst [vmem:[#allocation63_spill] sm:$0xff] %v9661_v54  ;;  %v4284_v54 = vmul.f32 %v9658_v15, %v10588_v14  ;;  %v4013_v14 = vmul.f32 %v9372_v3, %v7298_v61 }
 0xad4   :  { %v9665_v58 = vpop.permute.xlu0 %3702 }
 0xad5   :  { %10715 = vst [vmem:[#allocation64_spill] sm:$0xff] %v9665_v58  ;;  %4258 = vrot.lane.b32.xlu0 %v4238_v1, %s7080_s5 }
 0xad6   :  { %4299 = vrot.lane.b32.xlu1 %v4282_v10, %s7081_s0  ;;  %v9671_v19 = vpop.permute.xlu1 %3704  ;;  %v4014_v10 = vmul.f32 %v9372_v3, %v10590_v59  ;;  %v4515_v3 = vmul.f32 %v9404_v7, %v10681_v28 }
 0xad7   :  { %10716 = vst [vmem:[#allocation65_spill] sm:$0xff] %v9671_v19  ;;  %v3740_v19 = vmul.f32 %v9446_v40, %v10590_v59 }
 0xad8   :  { %v9675_v34 = vpop.permute.xlu0 %3706 }
 0xad9   :  { %4297 = vrot.lane.b32.xlu0 %v4281_v52, %s7081_s0  ;;  %v4058_v52 = vmul.f32 %v9526_v36, %v10680_v48 }
 0xada   :  { %4303 = vrot.lane.b32.xlu1 %v4284_v54, %s7081_s0  ;;  %v9681_v32 = vpop.permute.xlu1 %3708 }
 0xadc   :  { %v9685_v1 = vpop.permute.xlu0 %4204 }
 0xadd   :  { %10717 = vst [vmem:[#allocation66_spill] sm:$0xff] %v9685_v1  ;;  %4301 = vrot.lane.b32.xlu0 %v4283_v9, %s7081_s0  ;;  %v4057_v9 = vmul.f32 %v9526_v36, %v7328_v21 }
 0xade   :  { %4037 = vrot.lane.b32.xlu1 %v4014_v10, %s7081_s0  ;;  %v9691_v58 = vpop.permute.xlu1 %4206 }
 0xadf   :  { %10718 = vst [vmem:[#allocation67_spill] sm:$0xff] %v9691_v58 }
 0xae0   :  { %v9695_v54 = vpop.permute.xlu0 %4208 }
 0xae1   :  { %10719 = vst [vmem:[#allocation68_spill] sm:$0xff] %v9695_v54  ;;  %4035 = vrot.lane.b32.xlu0 %v4013_v14, %s7081_s0  ;;  %v4514_v14 = vmul.f32 %v9404_v7, %v7338_v26 }
 0xae2   :  { %4079 = vrot.lane.b32.xlu1 %v4058_v52, %s7081_s0  ;;  %v9701_v1 = vpop.permute.xlu1 %4210 }
 0xae3   :  { %10720 = vst [vmem:[#allocation69_spill] sm:$0xff] %v9701_v1  ;;  %v4560_v1 = vmul.f32 %v9574_v2, %v10589_v18 }
 0xae4   :  { %v9705_v10 = vpop.permute.xlu0 %3942 }
 0xae5   :  { %10721 = vst [vmem:[#allocation70_spill] sm:$0xff] %v9705_v10  ;;  %4077 = vrot.lane.b32.xlu0 %v4057_v9, %s7081_s0  ;;  %v9720_v10 = vstv %s6405_s20  ;;  %v4559_v9 = vmul.f32 %v9574_v2, %v7288_v56  ;;  %s10469_s20 = sld [smem:[#allocation16 + $0xe]] }
 0xae6   :  { %4538 = vrot.lane.b32.xlu1 %v4515_v3, %s7080_s5  ;;  %v9711_v54 = vpop.permute.xlu1 %3944  ;;  %v4602_v7 = vmul.f32 %v9720_v10, %v10591_v20 }
 0xae7   :  { %10722 = vst [vmem:[#allocation71_spill] sm:$0xff] %v9711_v54 }
 0xae8   :  { %v9715_v52 = vpop.permute.xlu0 %3984 }
 0xae9   :  { %10723 = vst [vmem:[#allocation72_spill] sm:$0xff] %v9715_v52  ;;  %4536 = vrot.lane.b32.xlu0 %v4514_v14, %s7080_s5  ;;  %v4601_v14 = vmul.f32 %v9720_v10, %v7310_v12  ;;  %v4604_v52 = vmul.f32 %v9720_v10, %v10592_v0 }
 0xaea   :  { %4581 = vrot.lane.b32.xlu1 %v4560_v1, %s7081_s0  ;;  %v9723_v58 = vpop.permute.xlu1 %3986 }
 0xaeb   :  { %10724 = vst [vmem:[#allocation73_spill] sm:$0xff] %v9723_v58 }
 0xaec   :  { %v9727_v3 = vpop.permute.xlu0 %4023 }
 0xaed   :  { %10725 = vst [vmem:[#allocation74_spill] sm:$0xff] %v9727_v3  ;;  %4579 = vrot.lane.b32.xlu0 %v4559_v9, %s7081_s0  ;;  %v4603_v9 = vmul.f32 %v9720_v10, %v7318_v16 }
 0xaee   :  { %4619 = vrot.lane.b32.xlu1 %v4602_v7, %s7081_s0  ;;  %v9733_v54 = vpop.permute.xlu1 %4025 }
 0xaef   :  { %10726 = vst [vmem:[#allocation75_spill] sm:$0xff] %v9733_v54  ;;  %v3784_v54 = vmul.f32 %v9616_v6, %v10680_v48 }
 0xaf0   :  { %v9737_v1 = vpop.permute.xlu0 %4027 }
 0xaf1   :  { %4617 = vrot.lane.b32.xlu0 %v4601_v14, %s7081_s0  ;;  %v3739_v14 = vmul.f32 %v9446_v40, %v7298_v61  ;;  %v4241_v40 = vmul.f32 %v9478_v38, %v10681_v28 }
 0xaf2   :  { %4623 = vrot.lane.b32.xlu1 %v4604_v52, %s7081_s0  ;;  %v9743_v58 = vpop.permute.xlu1 %4029 }
 0xaf4   :  { %v9747_v7 = vpop.permute.xlu0 %4486 }
 0xaf5   :  { %10727 = vst [vmem:[#allocation76_spill] sm:$0xff] %v9747_v7  ;;  %4621 = vrot.lane.b32.xlu0 %v4603_v9, %s7081_s0 }
 0xaf6   :  { %3763 = vrot.lane.b32.xlu1 %v3740_v19, %s7081_s0  ;;  %v9753_v3 = vpop.permute.xlu1 %4488  ;;  %v3783_v19 = vmul.f32 %v9616_v6, %v7328_v21 }
 0xaf7   :  { %10728 = vst [vmem:[#allocation77_spill] sm:$0xff] %v9753_v3 }
 0xaf8   :  { %v9757_v52 = vpop.permute.xlu0 %4524 }
 0xaf9   :  { %10729 = vst [vmem:[#allocation78_spill] sm:$0xff] %v9757_v52  ;;  %3761 = vrot.lane.b32.xlu0 %v3739_v14, %s7081_s0  ;;  %v4240_v14 = vmul.f32 %v9478_v38, %v7338_v26  ;;  %v4286_v52 = vmul.f32 %v9658_v15, %v10589_v18 }
 0xafa   :  { %3805 = vrot.lane.b32.xlu1 %v3784_v54, %s7081_s0  ;;  %v9763_v7 = vpop.permute.xlu1 %4526 }
 0xafb   :  { %10730 = vst [vmem:[#allocation79_spill] sm:$0xff] %v9763_v7 }
 0xafc   :  { %v9767_v9 = vpop.permute.xlu0 %4528 }
 0xafd   :  { %10731 = vst [vmem:[#allocation80_spill] sm:$0xff] %v9767_v9  ;;  %3803 = vrot.lane.b32.xlu0 %v3783_v19, %s7081_s0  ;;  %v9782_v9 = vstv %s6396_s21  ;;  %v4285_v19 = vmul.f32 %v9658_v15, %v7288_v56 }
 0xafe   :  { %4264 = vrot.lane.b32.xlu1 %v4241_v40, %s7080_s5  ;;  %v9773_v3 = vpop.permute.xlu1 %4530  ;;  %v4328_v38 = vmul.f32 %v9782_v9, %v10591_v20  ;;  %v4329_v20 = vmul.f32 %v9782_v9, %v7318_v16 }
 0xaff   :  { %10732 = vst [vmem:[#allocation81_spill] sm:$0xff] %v9773_v3  ;;  %v4330_v3 = vmul.f32 %v9782_v9, %v10592_v0  ;;  %v4059_v0 = vmul.f32 %v9526_v36, %v7338_v26 }
 0xb00   :  { %v9777_v54 = vpop.permute.xlu0 %3668 }
 0xb01   :  { %4262 = vrot.lane.b32.xlu0 %v4240_v14, %s7080_s5  ;;  %v4327_v14 = vmul.f32 %v9782_v9, %v7310_v12  ;;  %s6365_s5 = sld [smem:[#allocation12 + $0x580]] }
 0xb02   :  { %4307 = vrot.lane.b32.xlu1 %v4286_v52, %s7081_s0  ;;  %v9785_v7 = vpop.permute.xlu1 %3670 }
 0xb04   :  { %v9789_v40 = vpop.permute.xlu0 %3710 }
 0xb05   :  { %10733 = vst [vmem:[#allocation82_spill] sm:$0xff] %v9789_v40  ;;  %4305 = vrot.lane.b32.xlu0 %v4285_v19, %s7081_s0 }
 0xb06   :  { %4345 = vrot.lane.b32.xlu1 %v4328_v38, %s7081_s0  ;;  %v9795_v18 = vpop.permute.xlu1 %3712  ;;  %v4060_v38 = vmul.f32 %v9526_v36, %v10681_v28 }
 0xb07   :  { %10734 = vst [vmem:[#allocation83_spill] sm:$0xff] %v9795_v18 }
 0xb08   :  { %v9799_v52 = vpop.permute.xlu0 %3749 }
 0xb09   :  { %10735 = vst [vmem:[#allocation84_spill] sm:$0xff] %v9799_v52  ;;  %4343 = vrot.lane.b32.xlu0 %v4327_v14, %s7081_s0  ;;  %v4562_v14 = vmul.f32 %v9574_v2, %v10590_v59 }
 0xb0a   :  { %4349 = vrot.lane.b32.xlu1 %v4330_v3, %s7081_s0  ;;  %v9805_v40 = vpop.permute.xlu1 %3751 }
 0xb0b   :  { %10736 = vst [vmem:[#allocation85_spill] sm:$0xff] %v9805_v40  ;;  %v4606_v40 = vmul.f32 %v9720_v10, %v10680_v48 }
 0xb0c   :  { %v9809_v19 = vpop.permute.xlu0 %3753 }
 0xb0d   :  { %4347 = vrot.lane.b32.xlu0 %v4329_v20, %s7081_s0  ;;  %v4561_v20 = vmul.f32 %v9574_v2, %v7298_v61 }
 0xb0e   :  { %4083 = vrot.lane.b32.xlu1 %v4060_v38, %s7081_s0  ;;  %v9815_v18 = vpop.permute.xlu1 %3755 }
 0xb10   :  { %v9819_v3 = vpop.permute.xlu0 %4212 }
 0xb11   :  { %10737 = vst [vmem:[#allocation86_spill] sm:$0xff] %v9819_v3  ;;  %4081 = vrot.lane.b32.xlu0 %v4059_v0, %s7081_s0  ;;  %v4605_v0 = vmul.f32 %v9720_v10, %v7328_v21  ;;  %v3786_v3 = vmul.f32 %v9616_v6, %v10681_v28 }
 0xb12   :  { %4585 = vrot.lane.b32.xlu1 %v4562_v14, %s7081_s0  ;;  %v9825_v52 = vpop.permute.xlu1 %4214 }
 0xb13   :  { %10738 = vst [vmem:[#allocation87_spill] sm:$0xff] %v9825_v52  ;;  %v4288_v52 = vmul.f32 %v9658_v15, %v10590_v59  ;;  %v4331_v59 = vmul.f32 %v9782_v9, %v7328_v21 }
 0xb14   :  { %v9829_v38 = vpop.permute.xlu0 %4250 }
 0xb15   :  { %10739 = vst [vmem:[#allocation88_spill] sm:$0xff] %v9829_v38  ;;  %4583 = vrot.lane.b32.xlu0 %v4561_v20, %s7081_s0  ;;  %v3785_v20 = vmul.f32 %v9616_v6, %v7338_v26  ;;  %v3354_v38 = vstv %s6365_s5 }
 0xb16   :  { %4627 = vrot.lane.b32.xlu1 %v4606_v40, %s7081_s0  ;;  %v9835_v36 = vpop.permute.xlu1 %4252 }
 0xb17   :  { %10740 = vst [vmem:[#allocation89_spill] sm:$0xff] %v9835_v36 }
 0xb18   :  { %v9839_v14 = vpop.permute.xlu0 %4254 }
 0xb19   :  { %10741 = vst [vmem:[#allocation90_spill] sm:$0xff] %v9839_v14  ;;  %4625 = vrot.lane.b32.xlu0 %v4605_v0, %s7081_s0  ;;  %v4287_v0 = vmul.f32 %v9658_v15, %v7298_v61 }
 0xb1a   :  { %3809 = vrot.lane.b32.xlu1 %v3786_v3, %s7081_s0  ;;  %v9845_v2 = vpop.permute.xlu1 %4256 }
 0xb1b   :  { %10742 = vst [vmem:[#allocation91_spill] sm:$0xff] %v9845_v2  ;;  %v4332_v2 = vmul.f32 %v9782_v9, %v10680_v48  ;;  %v4607_v48 = vmul.f32 %v9720_v10, %v7338_v26 }
 0xb1c   :  { %v9849_v40 = vpop.permute.xlu0 %3988 }
 0xb1d   :  { %10743 = vst [vmem:[#allocation92_spill] sm:$0xff] %v9849_v40  ;;  %3807 = vrot.lane.b32.xlu0 %v3785_v20, %s7081_s0  ;;  %v4608_v20 = vmul.f32 %v9720_v10, %v10681_v28 }
 0xb1e   :  { %4311 = vrot.lane.b32.xlu1 %v4288_v52, %s7081_s0  ;;  %v9855_v14 = vpop.permute.xlu1 %3990 }
 0xb1f   :  { %10744 = vst [vmem:[#allocation93_spill] sm:$0xff] %v9855_v14 }
 0xb20   :  { %v9859_v3 = vpop.permute.xlu0 %4031 }
 0xb21   :  { %10745 = vst [vmem:[#allocation94_spill] sm:$0xff] %v9859_v3  ;;  %4309 = vrot.lane.b32.xlu0 %v4287_v0, %s7081_s0  ;;  %v4334_v0 = vmul.f32 %v9782_v9, %v10681_v28 }
 0xb22   :  { %4353 = vrot.lane.b32.xlu1 %v4332_v2, %s7081_s0  ;;  %v9865_v6 = vpop.permute.xlu1 %4033 }
 0xb23   :  { %10746 = vst [vmem:[#allocation95_spill] sm:$0xff] %v9865_v6  ;;  %v10757_v6 = vld [vmem:[#allocation37_spill] sm:$0xff] }
 0xb24   :  { %v9869_v52 = vpop.permute.xlu0 %4069 }
 0xb25   :  { %10747 = vst [vmem:[#allocation96_spill] sm:$0xff] %v9869_v52  ;;  %4351 = vrot.lane.b32.xlu0 %v4331_v59, %s7081_s0  ;;  %v4333_v59 = vmul.f32 %v9782_v9, %v7338_v26  ;;  %v3348_v9 = vstv %s6364_s22 }
 0xb26   :  { %4631 = vrot.lane.b32.xlu1 %v4608_v20, %s7081_s0  ;;  %v9875_v15 = vpop.permute.xlu1 %4071 }
 0xb27   :  { %10748 = vst [vmem:[#allocation97_spill] sm:$0xff] %v9875_v15 }
 0xb28   :  { %v9879_v2 = vpop.permute.xlu0 %4073 }
 0xb29   :  { %4629 = vrot.lane.b32.xlu0 %v4607_v48, %s7081_s0 }
 0xb2a   :  { %4357 = vrot.lane.b32.xlu1 %v4334_v0, %s7081_s0  ;;  %v9885_v40 = vpop.permute.xlu1 %4075 }
 0xb2c   :  { %v9889_v20 = vpop.permute.xlu0 %4490 }
 0xb2d   :  { %10749 = vst [vmem:[#allocation98_spill] sm:$0xff] %v9889_v20  ;;  %4355 = vrot.lane.b32.xlu0 %v4333_v59, %s7081_s0  ;;  %v3355_v20 = vmul.f32 %v3354_v38, %v7310_v12  ;;  %v3675_v59 = vsel %vm381_vm1, %v9777_v54, %v9785_v7  ;;  %s9915_s0 = sld [smem:[#allocation12 + $0x680]]  ;;  %v3399_v7 = vsel %vm381_vm1, %v9383_v57, %v9395_v44 }
 0xb2e   :  { %v9892_v14 = vpop.permute.xlu1 %4492  ;;  %v3683_v52 = vadd.f32 %v3675_v59, %v10757_v6  ;;  %v3351_v54 = vmul.f32 %v3348_v9, %v7288_v56  ;;  %v3358_v6 = vmul.f32 %v3354_v38, %v7338_v26  ;;  %v3400_v57 = vsel %vm381_vm1, %v9399_v35, %v9407_v55 }
 0xb2f   :  { %10750 = vst [vmem:[#allocation99_spill] sm:$0xff] %v9892_v14  ;;  %v3349_v14 = vmul.f32 %v3348_v9, %v7270_v50  ;;  %v3445_v44 = vsel %vm381_vm1, %v9421_v4, %v9427_v51  ;;  %v3401_v35 = vsel %vm381_vm1, %v9431_v49, %v9437_v31  ;;  %v3446_v55 = vsel %vm381_vm1, %v9441_v46, %v9449_v8 }
 0xb30   :  { %v9894_v10 = vpop.permute.xlu0 %4532  ;;  %v3492_v4 = vsel %vm475_vm2, %v9463_v39, %v9469_v53  ;;  %v3537_v51 = vsel %vm475_vm2, %v9495_v22, %v9501_v37  ;;  %v3447_v49 = vsel %vm381_vm1, %v9473_v27, %v9481_v30  ;;  %v3493_v31 = vsel %vm475_vm2, %v9485_v23, %v9491_v17 }
 0xb31   :  { %10751 = vst [vmem:[#allocation100_spill] sm:$0xff] %v9894_v10  ;;  %v3356_v10 = vmul.f32 %v3354_v38, %v7318_v16  ;;  %v3538_v46 = vsel %vm475_vm2, %v9508_v43, %v9517_v41  ;;  %v3494_v27 = vsel %vm475_vm2, %v9521_v5, %v9529_v62  ;;  %v3539_v30 = vsel %vm475_vm2, %v9536_v63, %v9545_v33 }
 0xb32   :  { %v9896_v28 = vpop.permute.xlu1 %4534  ;;  %v9984_v23 = vstv %s9927_s23  ;;  %v3550_v17 = vstv %s9930_s24  ;;  %s7082_s23 = smov [#allocation19]  }
 0xb33   :  { %10752 = vst [vmem:[#allocation101_spill] sm:$0xff] %v9896_v28  ;;  %v9973_v8 = vstv %s9915_s0  ;;  %v3898_v62 = vmul.f32 %v9984_v23, %v7278_v11  ;;  %s6250_s24 = sshll.u32 %s7082_s23, 4  ;;  %s6251_s24 = int_to_ptr.vmem [resolvable:$true] %s6250_s24 }
 0xb34   :  { %v9898_v48 = vpop.permute.xlu0 %4571  ;;  %p7037_p7 = scmp.lt.s32.totalorder %s6251_s24, %s6251_s24 }
 0xb35   :  { %10753 = vst [vmem:[#allocation102_spill] sm:$0xff] %v9898_v48  ;;  %v3398_v48 = vsel %vm381_vm1, %v9389_v29, %v9375_v47  ;;  %v3444_v47 = vsel %vm381_vm1, %v9411_v13, %v9417_v24  ;;  %v3491_v13 = vsel %vm475_vm2, %v9453_v45, %v9459_v25 }
 0xb36   :  { %v9900_v0 = vpop.permute.xlu1 %4573 }
 0xb37   :  { %10754 = vst [vmem:[#allocation103_spill] sm:$0xff] %v9900_v0  ;;  %v3350_v0 = vmul.f32 %v3348_v9, %v7278_v11 }
 0xb38   :  { %v9902_v36 = vpop.permute.xlu0 %4575 }
 0xb39   :  { %10755 = vst [vmem:[#allocation104_spill] sm:$0xff] %v9902_v36  ;;  %v3359_v36 = vadd.f32 %v3355_v20, %v3349_v14  ;;  %v3360_v20 = vadd.f32 %v3356_v10, %v3350_v0 }
 0xb3a   :  { %v9905_v3 = vpop.permute.xlu1 %4577 }
 0xb3b   :  { %10756 = vst [vmem:[#allocation105_spill] sm:$0xff] %v9905_v3  ;;  %v3357_v3 = vmul.f32 %v3354_v38, %v7328_v21  ;;  %v3406_v14 = vadd.f32 %v3398_v48, %v3359_v36  ;;  %v3407_v24 = vadd.f32 %v3399_v7, %v3360_v20  ;;  %v10759_v20 = vld [vmem:[#allocation46_spill] sm:$0xff] }
 0xb3c   :  { %v3715_v28 = vpop.permute.xlu0 %3714 }
 0xb3d   :  { %v3361_v36 = vadd.f32 %v3357_v3, %v3351_v54  ;;  %v3452_v38 = vadd.f32 %v3444_v47, %v3406_v14  ;;  %v3453_v25 = vadd.f32 %v3445_v44, %v3407_v24  ;;  %v3540_v54 = vsel %vm475_vm2, %v9549_v42, %v9555_v60  ;;  %v10758_v14 = vld [vmem:[#allocation47_spill] sm:$0xff] }
 0xb3e   :  { %v3717_v15 = vpop.permute.xlu1 %3716 }
 0xb3f   :  { %v3721_v29 = vsel %vm381_vm1, %v3715_v28, %v3717_v15  ;;  %v3408_v45 = vadd.f32 %v3400_v57, %v3361_v36  ;;  %v3499_v10 = vadd.f32 %v3491_v13, %v3452_v38  ;;  %v3500_v22 = vadd.f32 %v3492_v4, %v3453_v25  ;;  %v10760_v13 = vld [vmem:[#allocation36_spill] sm:$0xff]  ;;  %v10761_v36 = vld [vmem:[#allocation57_spill] sm:$0xff]  ;;  %v10763_v4 = vld [vmem:[#allocation35_spill] sm:$0xff] }
 0xb40   :  { %v9933_v59 = vadd.f32 %v3721_v29, %v3683_v52  ;;  %v9935_v21 = vpop.permute.xlu0 %3757  ;;  %v3352_v52 = vmul.f32 %v3348_v9, %v7298_v61  ;;  %v3904_v9 = vmul.f32 %v9973_v8, %v7318_v16  ;;  %v3903_v29 = vmul.f32 %v9973_v8, %v7310_v12  ;;  %v10762_v38 = vld [vmem:[#allocation56_spill] sm:$0xff] }
 0xb41   :  { %v3454_v53 = vadd.f32 %v3446_v55, %v3408_v45  ;;  %v3545_v37 = vadd.f32 %v3537_v51, %v3499_v10  ;;  %v3546_v0 = vadd.f32 %v3538_v46, %v3500_v22  ;;  %v3630_v42 = vmul.f32 %v10760_v13, %v7318_v16  ;;  %v10765_v10 = vld [vmem:[#allocation44_spill] sm:$0xff]  ;;  %v10767_v46 = vld [vmem:[#allocation50_spill] sm:$0xff] }
 0xb42   :  { %v9947_v15 = vpop.permute.xlu1 %3759  ;;  %v3362_v3 = vadd.f32 %v3358_v6, %v3352_v52  ;;  %v3947_v6 = vsel %vm381_vm1, %v10759_v20, %v10758_v14  ;;  %v3908_v44 = vadd.f32 %v3904_v9, %v3898_v62  ;;  %v3993_v52 = vsel %vm381_vm1, %v10762_v38, %v10761_v36  ;;  %v10768_v9 = vld [vmem:[#allocation55_spill] sm:$0xff]  ;;  %v10772_v38 = vld [vmem:[#allocation49_spill] sm:$0xff] }
 0xb43   :  { %v3501_v41 = vadd.f32 %v3493_v31, %v3454_v53  ;;  %v9994_v33 = vadd.f32 %v3550_v17, %v3545_v37  ;;  %v10004_v24 = vadd.f32 %v3550_v17, %v3546_v0  ;;  %v3624_v51 = vmul.f32 %v10763_v4, %v7278_v11  ;;  %v10766_v31 = vld [vmem:[#allocation51_spill] sm:$0xff] }
 0xb44   :  { %v9961_v28 = vpop.permute.xlu0 %3795  ;;  %v3409_v39 = vadd.f32 %v3401_v35, %v3362_v3  ;;  %v3897_v35 = vmul.f32 %v9984_v23, %v7270_v50  ;;  %v3955_v55 = vadd.f32 %v3947_v6, %v3908_v44  ;;  %v10764_v3 = vld [vmem:[#allocation45_spill] sm:$0xff]  ;;  %v4040_v53 = vsel %vm475_vm2, %v9737_v1, %v9743_v58  ;;  %v10770_v6 = vld [vmem:[#allocation75_spill] sm:$0xff] }
 0xb45   :  { %v3547_v5 = vadd.f32 %v3539_v30, %v3501_v41  ;;  %v3629_v0 = vmul.f32 %v10760_v13, %v7310_v12  ;;  %v3719_v1 = vsel %vm381_vm1, %v9675_v34, %v9681_v32  ;;  %v3573_v14 = vmul.f32 %v9994_v33, %v9994_v33 }
 0xb46   :  { %v9975_v48 = vpop.permute.xlu1 %3797  ;;  %v3455_v43 = vadd.f32 %v3447_v49, %v3409_v39  ;;  %v3946_v49 = vsel %vm381_vm1, %v10765_v10, %v10764_v3  ;;  %v3673_v39 = vsel %vm381_vm1, %v10767_v46, %v10766_v31  ;;  %v3907_v37 = vadd.f32 %v3903_v29, %v3897_v35  ;;  %v10776_v46 = vld [vmem:[#allocation32_spill] sm:$0xff] }
 0xb47   :  { %v10014_v25 = vadd.f32 %v3550_v17, %v3547_v5  ;;  %v4001_v30 = vadd.f32 %v3993_v52, %v3955_v55  ;;  %v3623_v20 = vmul.f32 %v10763_v4, %v7270_v50  ;;  %v3766_v34 = vsel %vm475_vm2, %v9809_v19, %v9815_v18  ;;  %v10773_v52 = vld [vmem:[#allocation48_spill] sm:$0xff]  ;;  %v10774_v18 = vld [vmem:[#allocation97_spill] sm:$0xff] }
 0xb48   :  { %v3800_v7 = vpop.permute.xlu0 %3799  ;;  %v3502_v47 = vadd.f32 %v3494_v27, %v3455_v43  ;;  %v3634_v27 = vadd.f32 %v3630_v42, %v3624_v51  ;;  %v3954_v5 = vadd.f32 %v3946_v49, %v3907_v37  ;;  %v3672_v35 = vsel %vm381_vm1, %v10773_v52, %v10772_v38  ;;  %v10775_v19 = vld [vmem:[#allocation96_spill] sm:$0xff] }
 0xb49   :  { %v4048_v29 = vadd.f32 %v4040_v53, %v4001_v30  ;;  %v4085_v55 = vsel %vm475_vm2, %v10775_v19, %v10774_v18  ;;  %v3574_v31 = vmul.f32 %v10004_v24, %v10004_v24  ;;  %v10777_v53 = vld [vmem:[#allocation65_spill] sm:$0xff]  ;;  %v10778_v37 = vld [vmem:[#allocation64_spill] sm:$0xff]  ;;  %v10081_v30 = vstv %s10028_s1  ;;  %v10786_v19 = vld [vmem:[#allocation94_spill] sm:$0xff] }
 0xb4a   :  { %v3802_v63 = vpop.permute.xlu1 %3801  ;;  %v3548_v57 = vadd.f32 %v3540_v54, %v3502_v47  ;;  %v10769_v54 = vld [vmem:[#allocation54_spill] sm:$0xff]  ;;  %v4086_v47 = vsel %vm475_vm2, %v9879_v2, %v9885_v40  ;;  %v3681_v62 = vadd.f32 %v3673_v39, %v3634_v27  ;;  %v3905_v39 = vmul.f32 %v9973_v8, %v10776_v46  ;;  %v10784_v38 = vld [vmem:[#allocation72_spill] sm:$0xff] }
 0xb4b   :  { %v3992_v58 = vsel %vm381_vm1, %v10769_v54, %v10768_v9  ;;  %v4094_v42 = vadd.f32 %v4086_v47, %v4048_v29  ;;  %v3812_v51 = vsel %vm475_vm2, %v3800_v7, %v3802_v63  ;;  %v3718_v27 = vsel %vm381_vm1, %v10778_v37, %v10777_v53  ;;  %v10779_v54 = vld [vmem:[#allocation85_spill] sm:$0xff] }
 0xb4c   :  { %3555 = vadd.xlane.f32.xlu0 %v9994_v33  ;;  %v4217_v60 = vpop.permute.xlu0 %4216  ;;  %v10031_v41 = vadd.f32 %v3550_v17, %v3548_v57  ;;  %v10771_v57 = vld [vmem:[#allocation74_spill] sm:$0xff]  ;;  %v4000_v2 = vadd.f32 %v3992_v58, %v3954_v5  ;;  %v3727_v44 = vadd.f32 %v3719_v1, %v3681_v62  ;;  %v10780_v58 = vld [vmem:[#allocation84_spill] sm:$0xff]  ;;  %v3899_v47 = vmul.f32 %v9984_v23, %v7288_v56 }
 0xb4d   :  { %v4039_v32 = vsel %vm475_vm2, %v10771_v57, %v10770_v6  ;;  %v10086_v9 = vadd.f32 %v10081_v30, %v4094_v42  ;;  %v3765_v1 = vsel %vm475_vm2, %v10780_v58, %v10779_v54  ;;  %v3575_v29 = vmul.f32 %v10014_v25, %v10014_v25 }
 0xb4e   :  { %v4219_v45 = vpop.permute.xlu1 %4218  ;;  %3557 = vadd.xlane.f32.xlu1 %v10004_v24  ;;  %v3576_v36 = vmul.f32 %v10031_v41, %v10031_v41  ;;  %v4047_v3 = vadd.f32 %v4039_v32, %v4000_v2  ;;  %v3774_v10 = vadd.f32 %v3766_v34, %v3727_v44  ;;  %v3811_v6 = vsel %vm475_vm2, %v9961_v28, %v9975_v48  ;;  %v10785_v48 = vld [vmem:[#allocation95_spill] sm:$0xff] }
 0xb4f   :  { %v10026_v22 = vsel %vm381_vm1, %v4217_v60, %v4219_v45  ;;  %v3633_v45 = vadd.f32 %v3629_v0, %v3623_v20  ;;  %v10105_v57 = vstv %s10058_s27  ;;  %v3909_v32 = vadd.f32 %v3905_v39, %v3899_v47  ;;  %v10787_v47 = vld [vmem:[#allocation59_spill] sm:$0xff] }
 0xb50   :  { %3559 = vadd.xlane.f32.xlu0 %v10014_v25  ;;  %v4259_v43 = vpop.permute.xlu0 %4258  ;;  %v4093_v7 = vadd.f32 %v4085_v55, %v4047_v3  ;;  %v3820_v63 = vadd.f32 %v3812_v51, %v3774_v10  ;;  %v4041_v55 = vsel %vm475_vm2, %v10786_v19, %v10785_v48  ;;  %v10127_v10 = vstv %s6401_s28  ;;  %v10791_v48 = vld [vmem:[#allocation61_spill] sm:$0xff]  ;;  %v10792_v19 = vld [vmem:[#allocation60_spill] sm:$0xff] }
 0xb51   :  { %v10132_v37 = vstv %s6400_s29 }
 0xb52   :  { %v4261_v17 = vpop.permute.xlu1 %4260  ;;  %3561 = vadd.xlane.f32.xlu1 %v10031_v41  ;;  %v10110_v44 = vadd.f32 %v10105_v57, %v3820_v63  ;;  %v10113_v42 = vadd.f32 %v10081_v30, %v4093_v7  ;;  %v4445_v54 = vmul.f32 %v10132_v37, %v7270_v50 }
 0xb53   :  { %v10056_v40 = vsel %vm381_vm1, %v4259_v43, %v4261_v17  ;;  %v3680_v43 = vadd.f32 %v3672_v35, %v3633_v45  ;;  %v10781_v17 = vld [vmem:[#allocation53_spill] sm:$0xff] }
 0xb54   :  { %3577 = vadd.xlane.f32.xlu0 %v3573_v14  ;;  %v10060_v60 = vpop.permute.xlu0 %4297  ;;  %v10782_v14 = vld [vmem:[#allocation52_spill] sm:$0xff]  ;;  %v4121_v3 = vmul.f32 %v10113_v42, %v10113_v42 }
 0xb55   :  { %v3726_v5 = vadd.f32 %v3718_v27, %v3680_v43  ;;  %v3948_v20 = vsel %vm381_vm1, %v10782_v14, %v10781_v17  ;;  %v4451_v43 = vmul.f32 %v10127_v10, %v7310_v12 }
 0xb56   :  { %v10071_v49 = vpop.permute.xlu1 %4299  ;;  %3583 = vadd.xlane.f32.xlu1 %v3576_v36  ;;  %v10783_v36 = vld [vmem:[#allocation73_spill] sm:$0xff]  ;;  %v3956_v35 = vadd.f32 %v3948_v20, %v3909_v32  ;;  %v4452_v20 = vmul.f32 %v10127_v10, %v7318_v16  ;;  %v10789_v32 = vld [vmem:[#allocation79_spill] sm:$0xff] }
 0xb57   :  { %v3773_v34 = vadd.f32 %v3765_v1, %v3726_v5  ;;  %v3994_v52 = vsel %vm381_vm1, %v10784_v38, %v10783_v36  ;;  %v10788_v5 = vld [vmem:[#allocation58_spill] sm:$0xff]  ;;  %v4455_v14 = vadd.f32 %v4451_v43, %v4445_v54  ;;  %v10795_v43 = vld [vmem:[#allocation81_spill] sm:$0xff] }
 0xb58   :  { %3579 = vadd.xlane.f32.xlu0 %v3574_v31  ;;  %v10083_v0 = vpop.permute.xlu0 %4301  ;;  %v4002_v51 = vadd.f32 %v3994_v52, %v3956_v35  ;;  %v4446_v52 = vmul.f32 %v10132_v37, %v7278_v11 }
 0xb59   :  { %v3819_v18 = vadd.f32 %v3811_v6, %v3773_v34  ;;  %v10790_v34 = vld [vmem:[#allocation78_spill] sm:$0xff] }
 0xb5a   :  { %v10093_v62 = vpop.permute.xlu1 %4303  ;;  %4105 = vadd.xlane.f32.xlu1 %v10086_v9  ;;  %v4049_v31 = vadd.f32 %v4041_v55, %v4002_v51  ;;  %v4540_v36 = vsel %vm381_vm1, %v10790_v34, %v10789_v32  ;;  %v4495_v55 = vsel %vm381_vm1, %v10792_v19, %v10791_v48  ;;  %v10793_v51 = vld [vmem:[#allocation103_spill] sm:$0xff]  ;;  %v10176_v34 = vstv %s6406_s8 }
 0xb5b   :  { %v10130_v53 = vadd.f32 %v10105_v57, %v3819_v18  ;;  %v4122_v18 = vmul.f32 %v10086_v9, %v10086_v9 }
 0xb5c   :  { %3581 = vadd.xlane.f32.xlu0 %v3575_v29  ;;  %v10107_v2 = vpop.permute.xlu0 %4035  ;;  %v4494_v29 = vsel %vm381_vm1, %v10788_v5, %v10787_v47  ;;  %v10797_v5 = vld [vmem:[#allocation105_spill] sm:$0xff] }
 0xb5d   :  { %v4502_v38 = vadd.f32 %v4494_v29, %v4455_v14  ;;  %v10798_v29 = vld [vmem:[#allocation104_spill] sm:$0xff] }
 0xb5e   :  { %v10118_v28 = vpop.permute.xlu1 %4037  ;;  %3831 = vadd.xlane.f32.xlu1 %v10110_v44  ;;  %v4588_v14 = vsel %vm475_vm2, %v10798_v29, %v10797_v5 }
 0xb60   :  { %4103 = vadd.xlane.f32.xlu0 %v10113_v42  ;;  %v4078_v45 = vpop.permute.xlu0 %4077 }
 0xb62   :  { %v4080_v39 = vpop.permute.xlu1 %4079  ;;  %4125 = vadd.xlane.f32.xlu1 %v4121_v3 }
 0xb63   :  { %v4087_v27 = vsel %vm475_vm2, %v4078_v45, %v4080_v39  ;;  %v10794_v45 = vld [vmem:[#allocation102_spill] sm:$0xff]  ;;  %v4548_v39 = vadd.f32 %v4540_v36, %v4502_v38 }
 0xb64   :  { %v4095_v7 = vadd.f32 %v4087_v27, %v4049_v31  ;;  %3829 = vadd.xlane.f32.xlu0 %v10130_v53  ;;  %v4537_v63 = vpop.permute.xlu0 %4536  ;;  %v4587_v3 = vsel %vm475_vm2, %v10794_v45, %v10793_v51  ;;  %v4456_v31 = vadd.f32 %v4452_v20, %v4446_v52  ;;  %v3631_v20 = vmul.f32 %v10760_v13, %v10776_v46  ;;  %v10799_v51 = vld [vmem:[#allocation63_spill] sm:$0xff]  ;;  %v10800_v45 = vld [vmem:[#allocation62_spill] sm:$0xff] }
 0xb66   :  { %v4539_v58 = vpop.permute.xlu1 %4538  ;;  %v10141_v1 = vadd.f32 %v10081_v30, %v4095_v7  ;;  %v10796_v7 = vld [vmem:[#allocation80_spill] sm:$0xff]  ;;  %v4503_v54 = vadd.f32 %v4495_v55, %v4456_v31 }
 0xb67   :  { %v10147_v17 = vsel %vm381_vm1, %v4537_v63, %v4539_v58  ;;  %v4541_v63 = vsel %vm381_vm1, %v10796_v7, %v10795_v43  ;;  %v4595_v58 = vadd.f32 %v4587_v3, %v4548_v39  ;;  %v3674_v3 = vsel %vm381_vm1, %v10800_v45, %v10799_v51  ;;  %v10801_v43 = vld [vmem:[#allocation83_spill] sm:$0xff] }
 0xb68   :  { %4107 = vadd.xlane.f32.xlu0 %v10141_v1  ;;  %v10152_v6 = vpop.permute.xlu0 %4579  ;;  %v4549_v36 = vadd.f32 %v4541_v63, %v4503_v54  ;;  %v10803_v45 = vld [vmem:[#allocation67_spill] sm:$0xff] }
 0xb6a   :  { %v10159_v35 = vpop.permute.xlu1 %4581  ;;  %v4596_v48 = vadd.f32 %v4588_v14, %v4549_v36  ;;  %v10204_v14 = vstv %s6392_s30  ;;  %v3847_v36 = vmul.f32 %v10130_v53, %v10130_v53 }
 0xb6c   :  { %4127 = vadd.xlane.f32.xlu0 %v4122_v18  ;;  %v4618_v27 = vpop.permute.xlu0 %4617  ;;  %v3625_v18 = vmul.f32 %v10763_v4, %v7288_v56  ;;  %v10802_v4 = vld [vmem:[#allocation82_spill] sm:$0xff] }
 0xb6d   :  { %v3720_v7 = vsel %vm381_vm1, %v10802_v4, %v10801_v43  ;;  %v10806_v43 = vld [vmem:[#allocation88_spill] sm:$0xff] }
 0xb6e   :  { %v4620_v47 = vpop.permute.xlu1 %4619  ;;  %v3635_v13 = vadd.f32 %v3631_v20, %v3625_v18  ;;  %v4177_v18 = vmul.f32 %v10204_v14, %v7310_v12  ;;  %v4178_v12 = vmul.f32 %v10204_v14, %v7318_v16  ;;  %v6858_v16 = vld [vmem:[#allocation18 + $0x2c8] sm:$0xff]  }
 0xb6f   :  { %v4633_v32 = vsel %vm475_vm2, %v4618_v27, %v4620_v47  ;;  %v3767_v47 = vsel %vm475_vm2, %v9935_v21, %v9947_v15 }
 0xb70   :  { %v4641_v38 = vadd.f32 %v4633_v32, %v4595_v58  ;;  %v4622_v52 = vpop.permute.xlu0 %4621  ;;  %v3682_v63 = vadd.f32 %v3674_v3, %v3635_v13  ;;  %v10804_v3 = vld [vmem:[#allocation66_spill] sm:$0xff] }
 0xb72   :  { %v4624_v19 = vpop.permute.xlu1 %4623  ;;  %v10183_v55 = vadd.f32 %v10176_v34, %v4641_v38  ;;  %v3728_v5 = vadd.f32 %v3720_v7, %v3682_v63  ;;  %v10208_v38 = vstv %s6391_s12 }
 0xb73   :  { %v4634_v31 = vsel %vm475_vm2, %v4622_v52, %v4624_v19  ;;  %v4171_v15 = vmul.f32 %v10208_v38, %v7270_v50  ;;  %v10805_v50 = vld [vmem:[#allocation89_spill] sm:$0xff]  ;;  %v4172_v63 = vmul.f32 %v10208_v38, %v7278_v11  ;;  %v3906_v11 = vmul.f32 %v9973_v8, %v7338_v26  ;;  %v10811_v8 = vld [vmem:[#allocation71_spill] sm:$0xff] }
 0xb74   :  { %v4642_v39 = vadd.f32 %v4634_v31, %v4596_v48  ;;  %4651 = vadd.xlane.f32.xlu1 %v10183_v55  ;;  %v10190_v27 = vpop.permute.xlu0 %3761  ;;  %v3775_v32 = vadd.f32 %v3767_v47, %v3728_v5  ;;  %v4220_v31 = vsel %vm381_vm1, %v10804_v3, %v10803_v45  ;;  %v4266_v4 = vsel %vm381_vm1, %v10806_v43, %v10805_v50  ;;  %v10809_v3 = vld [vmem:[#allocation91_spill] sm:$0xff]  ;;  %v6859_v50 = vld [vmem:[#allocation18 + $0x288] sm:$0xff]  }
 0xb75   :  { %v4181_v13 = vadd.f32 %v4177_v18, %v4171_v15  ;;  %v3848_v5 = vmul.f32 %v10110_v44, %v10110_v44  ;;  %v4313_v18 = vsel %vm475_vm2, %v10060_v60, %v10071_v49 }
 0xb76   :  { %v10195_v54 = vpop.permute.xlu1 %3763  ;;  %v10198_v58 = vadd.f32 %v10176_v34, %v4642_v39 }
 0xb77   :  { %v4228_v7 = vadd.f32 %v4220_v31, %v4181_v13  ;;  %v10810_v31 = vld [vmem:[#allocation90_spill] sm:$0xff] }
 0xb78   :  { %4653 = vadd.xlane.f32.xlu0 %v10198_v58  ;;  %v3804_v29 = vpop.permute.xlu0 %3803  ;;  %v4267_v13 = vsel %vm381_vm1, %v10810_v31, %v10809_v3 }
 0xb79   :  { %v4274_v15 = vadd.f32 %v4266_v4, %v4228_v7  ;;  %v10812_v4 = vld [vmem:[#allocation70_spill] sm:$0xff] }
 0xb7a   :  { %v3806_v20 = vpop.permute.xlu1 %3805  ;;  %v3949_v7 = vsel %vm381_vm1, %v10812_v4, %v10811_v8 }
 0xb7b   :  { %v3813_v52 = vsel %vm475_vm2, %v3804_v29, %v3806_v20  ;;  %v6856_v29 = vld [vmem:[#allocation18 + $0x2c0] sm:$0xff]   ;;  %v10807_v20 = vld [vmem:[#allocation69_spill] sm:$0xff]  ;;  %v4321_v60 = vadd.f32 %v4313_v18, %v4274_v15 }
 0xb7c   :  { %v3821_v48 = vadd.f32 %v3813_v52, %v3775_v32  ;;  %3851 = vadd.xlane.f32.xlu0 %v3847_v36  ;;  %v10213_v21 = vpop.permute.xlu0 %4262  ;;  %v6857_v32 = vld [vmem:[#allocation18 + $0x280] sm:$0xff]   ;;  %v10808_v36 = vld [vmem:[#allocation68_spill] sm:$0xff]  ;;  %6677 = vmatprep.subr.bf16.mxu1 %v6856_v29  ;;  %v10262_v29 = vstv %s10225_s13  ;;  %v10813_v18 = vld [vmem:[#allocation93_spill] sm:$0xff] }
 0xb7d   :  { %v4221_v52 = vsel %vm381_vm1, %v10808_v36, %v10807_v20  ;;  %6678 = vmatpush3.bf16.msra.mxu1 %v6857_v32  ;;  %v3900_v20 = vmul.f32 %v9984_v23, %v7298_v61  ;;  %v6861_v15 = vld [vmem:[#allocation18 + $0x290] sm:$0xff]  }
 0xb7e   :  { %v10217_v19 = vpop.permute.xlu1 %4264  ;;  %v10220_v51 = vadd.f32 %v10105_v57, %v3821_v48  ;;  %v4182_v48 = vadd.f32 %v4178_v12, %v4172_v63  ;;  %6679 = vmatprep.subr.bf16.mxu1 %v6858_v16  ;;  %v6860_v12 = vld [vmem:[#allocation18 + $0x2d0] sm:$0xff]   ;;  %v4314_v63 = vsel %vm475_vm2, %v10083_v0, %v10093_v62  ;;  %v6862_v0 = vld [vmem:[#allocation18 + $0x2d8] sm:$0xff]   ;;  %v4042_v62 = vsel %vm475_vm2, %v10107_v2, %v10118_v28  ;;  %v6864_v2 = vld [vmem:[#allocation18 + $0x2e0] sm:$0xff]  }
 0xb7f   :  { %v3910_v32 = vadd.f32 %v3906_v11, %v3900_v20  ;;  %v6863_v20 = vld [vmem:[#allocation18 + $0x298] sm:$0xff]   ;;  %v10815_v28 = vld [vmem:[#allocation77_spill] sm:$0xff] }
 0xb80   :  { %3833 = vadd.xlane.f32.xlu1 %v10220_v51  ;;  %v10230_v39 = vpop.permute.xlu0 %4305  ;;  %v4229_v43 = vadd.f32 %v4221_v52, %v4182_v48  ;;  %v10814_v48 = vld [vmem:[#allocation92_spill] sm:$0xff] }
 0xb81   :  { %v3995_v16 = vsel %vm381_vm1, %v10814_v48, %v10813_v18  ;;  %6680 = vmatpush3.bf16.msra.mxu1 %v6859_v50  ;;  %v3957_v3 = vadd.f32 %v3949_v7, %v3910_v32  ;;  %v10817_v18 = vld [vmem:[#allocation101_spill] sm:$0xff]  ;;  %v10818_v48 = vld [vmem:[#allocation100_spill] sm:$0xff] }
 0xb82   :  { %v10237_v47 = vpop.permute.xlu1 %4307  ;;  %v4275_v36 = vadd.f32 %v4267_v13, %v4229_v43  ;;  %6681 = vmatprep.subr.bf16.mxu1 %v6860_v12 }
 0xb83   :  { %v4003_v13 = vadd.f32 %v3995_v16, %v3957_v3  ;;  %v4542_v16 = vsel %vm381_vm1, %v10818_v48, %v10817_v18 }
 0xb84   :  { %3853 = vadd.xlane.f32.xlu1 %v3848_v5  ;;  %v4344_v45 = vpop.permute.xlu0 %4343  ;;  %v4322_v31 = vadd.f32 %v4314_v63, %v4275_v36  ;;  %v10816_v63 = vld [vmem:[#allocation76_spill] sm:$0xff] }
 0xb85   :  { %6682 = vmatpush3.bf16.msra.mxu1 %v6861_v15  ;;  %v6865_v15 = vld [vmem:[#allocation18 + $0x2a0] sm:$0xff]  }
 0xb86   :  { %v4346_v49 = vpop.permute.xlu1 %4345  ;;  %6683 = vmatprep.subr.bf16.mxu1 %v6862_v0 }
 0xb87   :  { %v4359_v5 = vsel %vm475_vm2, %v4344_v45, %v4346_v49  ;;  %v4453_v45 = vmul.f32 %v10127_v10, %v10776_v46  ;;  %v4050_v49 = vadd.f32 %v4042_v62, %v4003_v13  ;;  %v6866_v62 = vld [vmem:[#allocation18 + $0x2e8] sm:$0xff]  }
 0xb88   :  { %v4367_v52 = vadd.f32 %v4359_v5, %v4321_v60  ;;  %v4348_v23 = vpop.permute.xlu0 %4347  ;;  %v4447_v60 = vmul.f32 %v10132_v37, %v7288_v56  ;;  %v4496_v5 = vsel %vm381_vm1, %v10816_v63, %v10815_v28  ;;  %v6869_v28 = vld [vmem:[#allocation18 + $0x2b0] sm:$0xff]   ;;  %v4173_v63 = vmul.f32 %v10208_v38, %v7288_v56  ;;  %v6871_v56 = vld [vmem:[#allocation18 + $0x2b8] sm:$0xff]  }
 0xb89   :  { %6684 = vmatpush3.bf16.msra.mxu1 %v6863_v20 }
 0xb8a   :  { %v4350_v8 = vpop.permute.xlu1 %4349  ;;  %v10268_v4 = vadd.f32 %v10262_v29, %v4367_v52  ;;  %v4457_v36 = vadd.f32 %v4453_v45, %v4447_v60  ;;  %6685 = vmatprep.subr.bf16.mxu1 %v6864_v2  ;;  %v4669_v60 = vmul.f32 %v10183_v55, %v10183_v55 }
 0xb8b   :  { %v4360_v11 = vsel %vm475_vm2, %v4348_v23, %v4350_v8  ;;  %v4123_v8 = vmul.f32 %v10141_v1, %v10141_v1 }
 0xb8c   :  { %v4368_v50 = vadd.f32 %v4360_v11, %v4322_v31  ;;  %4377 = vadd.xlane.f32.xlu0 %v10268_v4  ;;  %v4082_v43 = vpop.permute.xlu0 %4081  ;;  %v4504_v3 = vadd.f32 %v4496_v5, %v4457_v36  ;;  %v4589_v11 = vsel %vm475_vm2, %v10152_v6, %v10159_v35  ;;  %v4179_v35 = vmul.f32 %v10204_v14, %v10776_v46 }
 0xb8d   :  { %6686 = vmatpush3.bf16.msra.mxu1 %v6865_v15 }
 0xb8e   :  { %v4084_v12 = vpop.permute.xlu1 %4083  ;;  %v10280_v7 = vadd.f32 %v10262_v29, %v4368_v50  ;;  %v4550_v45 = vadd.f32 %v4542_v16, %v4504_v3  ;;  %v6867_v50 = vld [vmem:[#allocation18 + $0x2a8] sm:$0xff]   ;;  %6687 = vmatprep.subr.bf16.mxu1 %v6866_v62  ;;  %v4183_v48 = vadd.f32 %v4179_v35, %v4173_v63  ;;  %v4454_v3 = vmul.f32 %v10127_v10, %v7338_v26 }
 0xb8f   :  { %v4088_v32 = vsel %vm475_vm2, %v4082_v43, %v4084_v12  ;;  %v4670_v62 = vmul.f32 %v10198_v58, %v10198_v58  ;;  %v4395_v63 = vmul.f32 %v10268_v4, %v10268_v4 }
 0xb90   :  { %v4096_v52 = vadd.f32 %v4088_v32, %v4050_v49  ;;  %4379 = vadd.xlane.f32.xlu1 %v10280_v7  ;;  %v10287_v23 = vpop.permute.xlu0 %4583  ;;  %v4597_v43 = vadd.f32 %v4589_v11, %v4550_v45  ;;  %v3768_v49 = vsel %vm475_vm2, %v10190_v27, %v10195_v54  ;;  %v6870_v27 = vld [vmem:[#allocation18 + $0x2f8] sm:$0xff]   ;;  %v10819_v54 = vld [vmem:[#allocation87_spill] sm:$0xff]  ;;  %v4315_v45 = vsel %vm475_vm2, %v10230_v39, %v10237_v47 }
 0xb91   :  { %6688 = vmatpush3.bf16.msra.mxu1 %v6867_v50  ;;  %v3776_v5 = vadd.f32 %v3768_v49, %v9933_v59 }
 0xb92   :  { %v10292_v31 = vpop.permute.xlu1 %4585  ;;  %v10297_v0 = vadd.f32 %v10081_v30, %v4096_v52  ;;  %v6868_v30 = vld [vmem:[#allocation18 + $0x2f0] sm:$0xff]   ;;  %v10820_v52 = vld [vmem:[#allocation86_spill] sm:$0xff] }
 0xb93   :  { %6689 = vmatprep.subr.bf16.mxu1 %v6868_v30  ;;  %v4222_v46 = vsel %vm381_vm1, %v10820_v52, %v10819_v54  ;;  %v4180_v30 = vmul.f32 %v10204_v14, %v7338_v26 }
 0xb94   :  { %4129 = vadd.xlane.f32.xlu1 %v4123_v8  ;;  %4109 = vadd.xlane.f32.xlu0 %v10297_v0  ;;  %v4626_v13 = vpop.permute.xlu0 %4625  ;;  %v4230_v59 = vadd.f32 %v4222_v46, %v4183_v48  ;;  %v4124_v46 = vmul.f32 %v10297_v0, %v10297_v0 }
 0xb95   :  { %6690 = vmatpush3.bf16.msra.mxu1 %v6869_v28 }
 0xb96   :  { %v4628_v20 = vpop.permute.xlu1 %4627  ;;  %6691 = vmatprep.subr.bf16.mxu1 %v6870_v27  ;;  %v4276_v50 = vadd.f32 %v10056_v40, %v4230_v59 }
 0xb97   :  { %v4635_v6 = vsel %vm475_vm2, %v4626_v13, %v4628_v20  ;;  %v4448_v13 = vmul.f32 %v10132_v37, %v7298_v61  ;;  %v10822_v20 = vld [vmem:[#allocation98_spill] sm:$0xff]  ;;  %v3849_v37 = vmul.f32 %v10220_v51, %v10220_v51 }
 0xb98   :  { %v4643_v12 = vadd.f32 %v4635_v6, %v4597_v43  ;;  %4673 = vadd.xlane.f32.xlu1 %v4669_v60  ;;  %v3808_v2 = vpop.permute.xlu0 %3807  ;;  %v10821_v43 = vld [vmem:[#allocation99_spill] sm:$0xff]  ;;  %v4323_v49 = vadd.f32 %v4315_v45, %v4276_v50  ;;  %v4174_v6 = vmul.f32 %v10208_v38, %v7298_v61  ;;  %v4269_v61 = vsel %vm381_vm1, %v10213_v21, %v10217_v19  ;;  %v10826_v50 = vld [vmem:[#allocation33_spill] sm:$0xff] }
 0xb99   :  { %v4497_v60 = vsel %vm381_vm1, %v10822_v20, %v10821_v43  ;;  %6692 = vmatpush3.bf16.msra.mxu1 %v6871_v56  ;;  %v4396_v21 = vmul.f32 %v10280_v7, %v10280_v7  ;;  %v10827_v20 = vld [vmem:[#allocation34_spill] sm:$0xff] }
 0xb9a   :  { %v3810_v32 = vpop.permute.xlu1 %3809  ;;  %v10315_v36 = vadd.f32 %v10176_v34, %v4643_v12  ;;  %v4184_v28 = vadd.f32 %v4180_v30, %v4174_v6 }
 0xb9b   :  { %v3814_v18 = vsel %vm475_vm2, %v3808_v2, %v3810_v32  ;;  %v4590_v2 = vsel %vm475_vm2, %v10287_v23, %v10292_v31 }
 0xb9c   :  { %v3822_v16 = vadd.f32 %v3814_v18, %v3776_v5  ;;  %4655 = vadd.xlane.f32.xlu0 %v10315_v36  ;;  %v4310_v15 = vpop.permute.xlu0 %4309  ;;  %v4231_v32 = vadd.f32 %v10026_v22, %v4184_v28  ;;  %v4671_v48 = vmul.f32 %v10315_v36, %v10315_v36 }
 0xb9e   :  { %v4312_v8 = vpop.permute.xlu1 %4311  ;;  %v10327_v11 = vadd.f32 %v10105_v57, %v3822_v16  ;;  %v4458_v57 = vadd.f32 %v4454_v3, %v4448_v13  ;;  %v4277_v23 = vadd.f32 %v4269_v61, %v4231_v32 }
 0xba0   :  { %4675 = vadd.xlane.f32.xlu0 %v4670_v62  ;;  %3835 = vadd.xlane.f32.xlu1 %v10327_v11  ;;  %v4352_v10 = vpop.permute.xlu0 %4351  ;;  %v4505_v47 = vadd.f32 %v4497_v60, %v4458_v57  ;;  %v10824_v62 = vld [vmem:[#allocation39_spill] sm:$0xff]  ;;  %v3314_v60 = vrot.slane %v10827_v20, 4 }
 0xba2   :  { %v4354_v39 = vpop.permute.xlu1 %4353  ;;  %v4551_v26 = vadd.f32 %v10147_v17, %v4505_v47  ;;  %v4316_v17 = vsel %vm475_vm2, %v4310_v15, %v4312_v8  ;;  %v3850_v15 = vmul.f32 %v10327_v11, %v10327_v11  ;;  %v10823_v8 = vld [vmem:[#allocation38_spill] sm:$0xff]  ;;  %v3315_v30 = vadd.f32 %v3314_v60, %v10827_v20 }
 0xba3   :  { %v4361_v40 = vsel %vm475_vm2, %v4352_v10, %v4354_v39  ;;  %v4324_v18 = vadd.f32 %v4316_v17, %v4277_v23  ;;  %v3289_v45 = vadd.f32 %v10824_v62, %v10823_v8  ;;  %v6874_v8 = vld [vmem:[#allocation18 + $0x348] sm:$0xff]   ;;  %v6877_v62 = vld [vmem:[#allocation18 + $0x3c0] sm:$0xff]  }
 0xba4   :  { %v4369_v35 = vadd.f32 %v4361_v40, %v4323_v49  ;;  %3855 = vadd.xlane.f32.xlu0 %v3849_v37  ;;  %v4630_v12 = vpop.permute.xlu0 %4629  ;;  %v4598_v27 = vadd.f32 %v4590_v2, %v4551_v26  ;;  %v3316_v39 = vrot.slane %v3315_v30, 2  ;;  %6733 = vmatprep.subr.bf16.mxu1 %v6877_v62 }
 0xba6   :  { %v4632_v14 = vpop.permute.xlu1 %4631  ;;  %v10353_v5 = vadd.f32 %v10262_v29, %v4369_v35  ;;  %v3317_v47 = vadd.f32 %v3316_v39, %v3315_v30  ;;  %v6878_v30 = vld [vmem:[#allocation18 + $0x310] sm:$0xff]   ;;  %v6880_v39 = vld [vmem:[#allocation18 + $0x358] sm:$0xff]  }
 0xba7   :  { %v4636_v38 = vsel %vm475_vm2, %v4630_v12, %v4632_v14 }
 0xba8   :  { %4399 = vadd.xlane.f32.xlu0 %v4395_v63  ;;  %4381 = vadd.xlane.f32.xlu1 %v10353_v5  ;;  %v4644_v31 = vadd.f32 %v4636_v38, %v4598_v27  ;;  %v4356_v54 = vpop.permute.xlu0 %4355  ;;  %v4397_v59 = vmul.f32 %v10353_v5, %v10353_v5  ;;  %v3318_v26 = vrot.slane %v3317_v47, 1 }
 0xbaa   :  { %v4358_v52 = vpop.permute.xlu1 %4357  ;;  %v10370_v16 = vadd.f32 %v10176_v34, %v4644_v31  ;;  %v3319_v27 = vadd.f32 %v3318_v26, %v3317_v47  ;;  %v6882_v47 = vld [vmem:[#allocation18 + $0x318] sm:$0xff]  }
 0xbab   :  { %v4362_v19 = vsel %vm475_vm2, %v4356_v54, %v4358_v52 }
 0xbac   :  { %4131 = vadd.xlane.f32.xlu0 %v4124_v46  ;;  %4401 = vadd.xlane.f32.xlu1 %v4396_v21  ;;  %v4370_v22 = vadd.f32 %v4362_v19, %v4324_v18  ;;  %v4672_v3 = vmul.f32 %v10370_v16, %v10370_v16  ;;  %v3320_v52 = vmul.f32 0.00024414063, %v3319_v27 }
 0xbae   :  { %v10376_v56 = vadd.f32 %v10262_v29, %v4370_v22  ;;  %v10825_v29 = vld [vmem:[#allocation43_spill] sm:$0xff] }
 0xbaf   :  { %v3290_v13 = vadd.f32 %v3289_v45, %v10825_v29 }
 0xbb0   :  { %4677 = vadd.xlane.f32.xlu0 %v4671_v48  ;;  %4657 = vadd.xlane.f32.xlu1 %v10370_v16  ;;  %v4398_v34 = vmul.f32 %v10376_v56, %v10376_v56 }
 0xbb1   :  { %v3291_v10 = vadd.f32 %v3290_v13, %v10826_v50  ;;  %v6875_v50 = vld [vmem:[#allocation18 + $0x308] sm:$0xff]  }
 0xbb3   :  { %v3292_v43 = vrot.slane %v3291_v10, 4 }
 0xbb4   :  { %3857 = vadd.xlane.f32.xlu1 %v3850_v15  ;;  %4383 = vadd.xlane.f32.xlu0 %v10376_v56 }
 0xbb5   :  { %v3293_v57 = vadd.f32 %v3292_v43, %v3291_v10  ;;  %v6876_v43 = vld [vmem:[#allocation18 + $0x350] sm:$0xff]  }
 0xbb7   :  { %v3294_v49 = vrot.slane %v3293_v57, 2 }
 0xbb8   :  { %4403 = vadd.xlane.f32.xlu1 %v4397_v59  ;;  %4679 = vadd.xlane.f32.xlu0 %v4672_v3  ;;  %v6872_v3 = vld [vmem:[#allocation18 + $0x340] sm:$0xff]  }
 0xbb9   :  { %v3295_v37 = vadd.f32 %v3294_v49, %v3293_v57  ;;  %6705 = vmatprep.subr.bf16.mxu0 %v6872_v3 }
 0xbbb   :  { %v3296_v12 = vrot.slane %v3295_v37, 1 }
 0xbbc   :  { %4405 = vadd.xlane.f32.xlu1 %v4398_v34  ;;  %v6873_v34 = vld [vmem:[#allocation18 + $0x300] sm:$0xff]  }
 0xbbd   :  { %v3297_v61 = vadd.f32 %v3296_v12, %v3295_v37  ;;  %6706 = vmatpush3.bf16.msra.mxu0 %v6873_v34 }
 0xbbe   :  { %6707 = vmatprep.subr.bf16.mxu0 %v6874_v8 }
 0xbbf   :  { %v10391_v23 = vmul.f32 0.00024414063, %v3297_v61 }
 0xbc1   :  { %v3321_v21 = vmul.f32 %v10391_v23, %v10391_v23  ;;  %6708 = vmatpush3.bf16.msra.mxu0 %v6875_v50 }
 0xbc2   :  { %6709 = vmatprep.subr.bf16.mxu0 %v6876_v43 }
 0xbc3   :  { %v3322_v48 = vsub.f32 %v3320_v52, %v3321_v21  ;;  %v6894_v52 = vld [vmem:[#allocation18 + $0x330] sm:$0xff]   ;;  %v6896_v21 = vld [vmem:[#allocation18 + $0x378] sm:$0xff]  }
 0xbc5   :  { %v3323_v13 = vmax.f32 %v3322_v48, 0.0  ;;  %6710 = vmatpush3.bf16.msra.mxu0 %v6878_v30 }
 0xbc6   :  { %6711 = vmatprep.subr.bf16.mxu0 %v6880_v39 }
 0xbc7   :  { %v3325_v57 = vadd.f32 1e-05, %v3323_v13  ;;  %v10828_v13 = vld [vmem:[#allocation27_spill] sm:$0xff] }
 0xbc9   :  { %6928 = vrsqrt.f32 %v3325_v57  ;;  %6712 = vmatpush3.bf16.msra.mxu0 %v6882_v47 }
 0xbd9   :  { %v3556_v40 = vpop.xlane.xlu0 %3555 }
 0xbdb   :  { %v3558_v6 = vpop.xlane.xlu1 %3557 }
 0xbdc   :  { %v3563_v35 = vadd.f32 %v3558_v6, %v3556_v40 }
 0xbdd   :  { %v3560_v2 = vpop.xlane.xlu0 %3559 }
 0xbde   :  { %v3564_v28 = vadd.f32 %v3563_v35, %v3560_v2  ;;  %v6884_v35 = vld [vmem:[#allocation18 + $0x360] sm:$0xff]  }
 0xbdf   :  { %v3562_v14 = vpop.xlane.xlu1 %3561  ;;  %6713 = vmatprep.subr.bf16.mxu0 %v6884_v35 }
 0xbe0   :  { %v3565_v63 = vadd.f32 %v3564_v28, %v3562_v14  ;;  %v6886_v28 = vld [vmem:[#allocation18 + $0x320] sm:$0xff]   ;;  %v6888_v14 = vld [vmem:[#allocation18 + $0x368] sm:$0xff]  }
 0xbe1   :  { %v3578_v38 = vpop.xlane.xlu0 %3577  ;;  %6714 = vmatpush3.bf16.msra.mxu0 %v6886_v28 }
 0xbe2   :  { %v3566_v32 = vrot.slane %v3565_v63, 4  ;;  %6715 = vmatprep.subr.bf16.mxu0 %v6888_v14 }
 0xbe3   :  { %v3584_v15 = vpop.xlane.xlu1 %3583 }
 0xbe4   :  { %v3567_v17 = vadd.f32 %v3566_v32, %v3565_v63 }
 0xbe5   :  { %v3580_v31 = vpop.xlane.xlu0 %3579 }
 0xbe6   :  { %v3568_v54 = vrot.slane %v3567_v17, 2  ;;  %v3585_v46 = vadd.f32 %v3580_v31, %v3578_v38  ;;  %v6890_v38 = vld [vmem:[#allocation18 + $0x328] sm:$0xff]   ;;  %v6929_v31 = vpop.eup %6928 }
 0xbe7   :  { %v10395_v61 = vpop.xlane.xlu1 %4105  ;;  %6716 = vmatpush3.bf16.msra.mxu0 %v6890_v38 }
 0xbe8   :  { %v3569_v18 = vadd.f32 %v3568_v54, %v3567_v17  ;;  %v6892_v17 = vld [vmem:[#allocation18 + $0x370] sm:$0xff]   ;;  %v3327_v54 = vstv %s6362_s14 }
 0xbe9   :  { %v3582_v19 = vpop.xlane.xlu0 %3581  ;;  %6717 = vmatprep.subr.bf16.mxu0 %v6892_v17 }
 0xbea   :  { %v3586_v22 = vadd.f32 %v3585_v46, %v3582_v19  ;;  %v3570_v45 = vrot.slane %v3569_v18, 1  ;;  %v3328_v46 = vmul.f32 %v6929_v31, %v3327_v54 }
 0xbeb   :  { %v10399_v19 = vpop.xlane.xlu1 %3831  ;;  %6718 = vmatpush3.bf16.msra.mxu0 %v6894_v52  ;;  %v6879_v52 = vld [vmem:[#allocation18 + $0x380] sm:$0xff]  }
 0xbec   :  { %v3587_v59 = vadd.f32 %v3586_v22, %v3584_v15  ;;  %v3571_v20 = vadd.f32 %v3570_v45, %v3569_v18  ;;  %v6898_v22 = vld [vmem:[#allocation18 + $0x338] sm:$0xff]   ;;  %v3334_v48 = vmul.f32 %v3328_v46, %v10391_v23  ;;  %6719 = vmatprep.subr.bf16.mxu0 %v6896_v21  ;;  %v3335_v15 = vstv %s6363_s6 }
 0xbed   :  { %v10397_v27 = vpop.xlane.xlu0 %4103  ;;  %v3329_v50 = vmul.f32 %v3328_v46, %v10828_v13 }
 0xbee   :  { %v3588_v29 = vrot.slane %v3587_v59, 4  ;;  %v3572_v37 = vmul.f32 0.00024414063, %v3571_v20  ;;  %v3336_v62 = vsub.f32 %v3335_v15, %v3334_v48  ;;  %v6881_v15 = vld [vmem:[#allocation18 + $0x3c8] sm:$0xff]  }
 0xbef   :  { %v10404_v3 = vpop.xlane.xlu1 %4125  ;;  %6720 = vmatpush3.bf16.msra.mxu0 %v6898_v22 }
 0xbf0   :  { %v3589_v10 = vadd.f32 %v3588_v29, %v3587_v59  ;;  %v3595_v12 = vmul.f32 %v3572_v37, %v3572_v37  ;;  %v3601_v59 = vstv %s6371_s15  ;;  %v3609_v29 = vstv %s6372_s16 }
 0xbf1   :  { %v10401_v18 = vpop.xlane.xlu0 %3829  ;;  %v3337_v57 = vadd.f32 %v3336_v62, %v3329_v50 }
 0xbf2   :  { %v3590_v60 = vrot.slane %v3589_v10, 2 }
 0xbf3   :  { %v3341_v14 = vmax.f32 %v3337_v57, 0.0  ;;  %v4111_v57 = vadd.f32 %v10395_v61, %v10397_v27  ;;  %v6899_v61 = vld [vmem:[#allocation18 + $0x3a8] sm:$0xff]   ;;  %v6900_v27 = vld [vmem:[#allocation18 + $0x3f0] sm:$0xff]  }
 0xbf4   :  { %v3591_v49 = vadd.f32 %v3590_v60, %v3589_v10  ;;  %v10829_v10 = vld [vmem:[#allocation41_spill] sm:$0xff] }
 0xbf5   :  { %v10406_v8 = vpop.xlane.xlu0 %4107  ;;  %v3330_v43 = vmul.f32 %v3328_v46, %v10829_v10 }
 0xbf6   :  { %v3592_v40 = vrot.slane %v3591_v49, 1 }
 0xbf7   :  { %v3338_v30 = vadd.f32 %v3336_v62, %v3330_v43  ;;  %v6887_v43 = vld [vmem:[#allocation18 + $0x390] sm:$0xff]  }
 0xbf8   :  { %v3593_v6 = vadd.f32 %v3592_v40, %v3591_v49 }
 0xbfa   :  { %v3594_v2 = vmul.f32 0.00024414063, %v3593_v6  ;;  %v10416_v6 = vpop.xlane.xlu0 %4127 }
 0xbfc   :  { %v3596_v26 = vsub.f32 %v3594_v2, %v3595_v12 }
 0xbfe   :  { %v3597_v63 = vmax.f32 %v3596_v26, 0.0 }
 0xc00   :  { %v3599_v32 = vadd.f32 1e-05, %v3597_v63 }
 0xc01   :  { %v10410_v20 = vpop.xlane.xlu1 %4651 }
 0xc02   :  { %6930 = vrsqrt.f32 %v3599_v32 }
 0xc05   :  { %v10418_v17 = vpop.xlane.xlu0 %4653 }
 0xc0c   :  { %v6931_v34 = vpop.eup %6930 }
 0xc0d   :  { %v3602_v45 = vmul.f32 %v6931_v34, %v3601_v59  ;;  %v3834_v35 = vpop.xlane.xlu1 %3833 }
 0xc0f   :  { %v3608_v60 = vmul.f32 %v3602_v45, %v3572_v37  ;;  %v3603_v23 = vmul.f32 %v3602_v45, %v9994_v33  ;;  %v3604_v49 = vmul.f32 %v3602_v45, %v10004_v24  ;;  %v3605_v40 = vmul.f32 %v3602_v45, %v10014_v25  ;;  %v10830_v24 = vld [vmem:[#allocation42_spill] sm:$0xff]  ;;  %v10831_v25 = vld [vmem:[#allocation40_spill] sm:$0xff] }
 0xc10   :  { %v3606_v47 = vmul.f32 %v3602_v45, %v10031_v41  ;;  %v3342_v37 = vmax.f32 %v3338_v30, 0.0  ;;  %v3331_v31 = vmul.f32 %v3328_v46, %v10830_v24  ;;  %v3332_v54 = vmul.f32 %v3328_v46, %v10831_v25  ;;  %v6883_v45 = vld [vmem:[#allocation18 + $0x388] sm:$0xff]   ;;  %v6885_v46 = vld [vmem:[#allocation18 + $0x3d0] sm:$0xff]   ;;  %v6902_v25 = vld [vmem:[#allocation18 + $0x3f8] sm:$0xff]  }
 0xc11   :  { %v3610_v39 = vsub.f32 %v3609_v29, %v3608_v60  ;;  %v10422_v59 = vpop.xlane.xlu1 %3853  ;;  %v10424_v29 = vpop.xlane.xlu0 %3851 }
 0xc12   :  { %v4725_v21 = vpack.c.bf16 %v3342_v37, %v3341_v14  ;;  %v3339_v22 = vadd.f32 %v3336_v62, %v3331_v31  ;;  %v3340_v48 = vadd.f32 %v3336_v62, %v3332_v54  ;;  %v3837_v37 = vadd.f32 %v10399_v19, %v10401_v18  ;;  %v6901_v31 = vld [vmem:[#allocation18 + $0x3b0] sm:$0xff]  }
 0xc13   :  { %v3611_v12 = vadd.f32 %v3610_v39, %v3603_v23  ;;  %v3612_v2 = vadd.f32 %v3610_v39, %v3604_v49  ;;  %v3613_v28 = vadd.f32 %v3610_v39, %v3605_v40  ;;  %v3614_v26 = vadd.f32 %v3610_v39, %v3606_v47  ;;  %v6889_v23 = vld [vmem:[#allocation18 + $0x3d8] sm:$0xff]   ;;  %v6893_v40 = vld [vmem:[#allocation18 + $0x3e0] sm:$0xff]  }
 0xc14   :  { %v3343_v13 = vmax.f32 %v3339_v22, 0.0  ;;  %v3344_v50 = vmax.f32 %v3340_v48, 0.0  ;;  %v6891_v49 = vld [vmem:[#allocation18 + $0x398] sm:$0xff]   ;;  %v4112_v47 = vadd.f32 %v4111_v57, %v10406_v8  ;;  %v4133_v22 = vadd.f32 %v10416_v6, %v10404_v3 }
 0xc15   :  { %v3615_v63 = vmax.f32 %v3611_v12, 0.0  ;;  %v3616_v33 = vmax.f32 %v3612_v2, 0.0  ;;  %v3617_v38 = vmax.f32 %v3613_v28, 0.0  ;;  %v3618_v32 = vmax.f32 %v3614_v26, 0.0  ;;  %v6895_v2 = vld [vmem:[#allocation18 + $0x3a0] sm:$0xff]   ;;  %v6897_v28 = vld [vmem:[#allocation18 + $0x3e8] sm:$0xff]  }
 0xc16   :  { %v4741_v62 = vpack.c.bf16 %v3344_v50, %v3343_v13  ;;  %v4659_v13 = vadd.f32 %v10418_v17, %v10410_v20 }
 0xc17   :  { %v4726_v41 = vpack.c.bf16 %v3616_v33, %v3615_v63  ;;  %v4742_v34 = vpack.c.bf16 %v3618_v32, %v3617_v38  ;;  %v3838_v33 = vadd.f32 %v3837_v37, %v3834_v35 }
 0xc19   :  { %6052 = vmatprep.mubr.bf16.mxu1 %v4726_v41  ;;  %v4378_v60 = vpop.xlane.xlu0 %4377 }
 0xc1a   :  { %6053 = vmatmul.mubr.bf16.vlgmr.msra.gmra.mrb[16].mxu1 %v4725_v21  ;;  %v6903_v21 = vld [vmem:[#allocation18 + $0x3b8] sm:$0xff]  }
 0xc1b   :  { %6060 = vmatprep.mubr.bf16.mxu1 %v4742_v34  ;;  %6734 = vmatpush3.bf16.msra.mxu1 %v6879_v52 }
 0xc1c   :  { %6735 = vmatprep.subr.bf16.mxu1 %v6881_v15 }
 0xc1d   :  { %v4380_v10 = vpop.xlane.xlu1 %4379 }
 0xc1e   :  { %v4385_v3 = vadd.f32 %v4380_v10, %v4378_v60 }
 0xc1f   :  { %6736 = vmatpush3.bf16.msra.mxu1 %v6883_v45 }
 0xc20   :  { %6737 = vmatprep.subr.bf16.mxu1 %v6885_v46 }
 0xc21   :  { %v4130_v30 = vpop.xlane.xlu1 %4129  ;;  %v4110_v39 = vpop.xlane.xlu0 %4109 }
 0xc22   :  { %6061 = vmatmul.mubr.bf16.gmra.mrb[20].mxu1 %v4741_v62  ;;  %v4113_v12 = vadd.f32 %v4112_v47, %v4110_v39  ;;  %v4134_v15 = vadd.f32 %v4133_v22, %v4130_v30  ;;  %v3859_v39 = vadd.f32 %v10422_v59, %v10424_v29 }
 0xc23   :  { %6738 = vmatpush3.bf16.msra.mxu1 %v6887_v43 }
 0xc24   :  { %6739 = vmatprep.subr.bf16.mxu1 %v6889_v23  ;;  %v4114_v63 = vrot.slane %v4113_v12, 4 }
 0xc25   :  { %v4674_v26 = vpop.xlane.xlu1 %4673 }
 0xc26   :  { %v4115_v24 = vadd.f32 %v4114_v63, %v4113_v12 }
 0xc27   :  { %6740 = vmatpush3.bf16.msra.mxu1 %v6891_v49 }
 0xc28   :  { %6741 = vmatprep.subr.bf16.mxu1 %v6893_v40  ;;  %v4116_v41 = vrot.slane %v4115_v24, 2 }
 0xc29   :  { %v4656_v14 = vpop.xlane.xlu0 %4655 }
 0xc2a   :  { %v4117_v35 = vadd.f32 %v4116_v41, %v4115_v24  ;;  %v4660_v62 = vadd.f32 %v4659_v13, %v4656_v14 }
 0xc2b   :  { %6742 = vmatpush3.bf16.msra.mxu1 %v6895_v2 }
 0xc2c   :  { %6743 = vmatprep.subr.bf16.mxu1 %v6897_v28  ;;  %v4118_v46 = vrot.slane %v4117_v35, 1 }
 0xc2d   :  { %v3836_v38 = vpop.xlane.xlu1 %3835  ;;  %v4676_v32 = vpop.xlane.xlu0 %4675 }
 0xc2e   :  { %v3839_v8 = vadd.f32 %v3838_v33, %v3836_v38  ;;  %v4119_v47 = vadd.f32 %v4118_v46, %v4117_v35  ;;  %v4681_v24 = vadd.f32 %v4676_v32, %v4674_v26 }
 0xc2f   :  { %6744 = vmatpush3.bf16.msra.mxu1 %v6899_v61 }
 0xc30   :  { %6745 = vmatprep.subr.bf16.mxu1 %v6900_v27  ;;  %v3840_v52 = vrot.slane %v3839_v8, 4  ;;  %v10437_v33 = vmul.f32 0.00024414063, %v4119_v47 }
 0xc31   :  { %v3856_v54 = vpop.xlane.xlu0 %3855 }
 0xc32   :  { %v3841_v48 = vadd.f32 %v3840_v52, %v3839_v8  ;;  %v3860_v12 = vadd.f32 %v3859_v39, %v3856_v54 }
 0xc33   :  { %6746 = vmatpush3.bf16.msra.mxu1 %v6901_v31 }
 0xc34   :  { %6747 = vmatprep.subr.bf16.mxu1 %v6902_v25  ;;  %v3842_v43 = vrot.slane %v3841_v48, 2 }
 0xc35   :  { %v4382_v19 = vpop.xlane.xlu1 %4381  ;;  %v4400_v18 = vpop.xlane.xlu0 %4399 }
 0xc36   :  { %v3843_v30 = vadd.f32 %v3842_v43, %v3841_v48  ;;  %v4386_v2 = vadd.f32 %v4385_v3, %v4382_v19  ;;  %v4143_v19 = vmul.f32 %v10437_v33, %v10437_v33 }
 0xc37   :  { %6748 = vmatpush3.bf16.msra.mxu1 %v6903_v21 }
 0xc38   :  { %v3844_v38 = vrot.slane %v3843_v30, 1 }
 0xc39   :  { %v4402_v34 = vpop.xlane.xlu1 %4401  ;;  %v4132_v45 = vpop.xlane.xlu0 %4131 }
 0xc3a   :  { %v4135_v50 = vadd.f32 %v4134_v15, %v4132_v45  ;;  %v4407_v22 = vadd.f32 %v4402_v34, %v4400_v18  ;;  %v3845_v48 = vadd.f32 %v3844_v38, %v3843_v30 }
 0xc3c   :  { %v4136_v23 = vrot.slane %v4135_v50, 4  ;;  %v10441_v39 = vmul.f32 0.00024414063, %v3845_v48 }
 0xc3d   :  { %v4658_v57 = vpop.xlane.xlu1 %4657  ;;  %v4678_v49 = vpop.xlane.xlu0 %4677 }
 0xc3e   :  { %v4137_v6 = vadd.f32 %v4136_v23, %v4135_v50  ;;  %v4661_v40 = vadd.f32 %v4660_v62, %v4658_v57  ;;  %v4682_v8 = vadd.f32 %v4681_v24, %v4678_v49 }
 0xc40   :  { %v4138_v28 = vrot.slane %v4137_v6, 2  ;;  %v4662_v37 = vrot.slane %v4661_v40, 4 }
 0xc41   :  { %v3858_v20 = vpop.xlane.xlu1 %3857  ;;  %v4384_v17 = vpop.xlane.xlu0 %4383 }
 0xc42   :  { %v4139_v63 = vadd.f32 %v4138_v28, %v4137_v6  ;;  %v4663_v61 = vadd.f32 %v4662_v37, %v4661_v40  ;;  %v3861_v14 = vadd.f32 %v3860_v12, %v3858_v20  ;;  %v4387_v27 = vadd.f32 %v4386_v2, %v4384_v17 }
 0xc43   :  { %v3869_v37 = vmul.f32 %v10441_v39, %v10441_v39 }
 0xc44   :  { %v4140_v59 = vrot.slane %v4139_v63, 1  ;;  %v4664_v29 = vrot.slane %v4663_v61, 2  ;;  %v3862_v10 = vrot.slane %v3861_v14, 4  ;;  %v4388_v60 = vrot.slane %v4387_v27, 4 }
 0xc45   :  { %v4404_v31 = vpop.xlane.xlu1 %4403  ;;  %v4680_v25 = vpop.xlane.xlu0 %4679 }
 0xc46   :  { %v4141_v54 = vadd.f32 %v4140_v59, %v4139_v63  ;;  %v4665_v41 = vadd.f32 %v4664_v29, %v4663_v61  ;;  %v3863_v52 = vadd.f32 %v3862_v10, %v3861_v14  ;;  %v4389_v21 = vadd.f32 %v4388_v60, %v4387_v27 }
 0xc47   :  { %v4683_v35 = vadd.f32 %v4682_v8, %v4680_v25  ;;  %v4408_v13 = vadd.f32 %v4407_v22, %v4404_v31 }
 0xc48   :  { %v4142_v15 = vmul.f32 0.00024414063, %v4141_v54  ;;  %v3864_v45 = vrot.slane %v3863_v52, 2  ;;  %v4390_v26 = vrot.slane %v4389_v21, 2  ;;  %v4666_v32 = vrot.slane %v4665_v41, 1 }
 0xc49   :  { %v4684_v50 = vrot.slane %v4683_v35, 4  ;;  %v4406_v46 = vpop.xlane.xlu1 %4405 }
 0xc4a   :  { %v4144_v43 = vsub.f32 %v4142_v15, %v4143_v19  ;;  %v3865_v62 = vadd.f32 %v3864_v45, %v3863_v52  ;;  %v4391_v23 = vadd.f32 %v4390_v26, %v4389_v21  ;;  %v4409_v49 = vadd.f32 %v4408_v13, %v4406_v46 }
 0xc4b   :  { %v4685_v57 = vadd.f32 %v4684_v50, %v4683_v35  ;;  %v4667_v40 = vadd.f32 %v4666_v32, %v4665_v41  ;;  %v4149_v41 = vstv %s6389_s4  ;;  %v4157_v26 = vstv %s6390_s2 }
 0xc4c   :  { %v4145_v3 = vmax.f32 %v4144_v43, 0.0  ;;  %v3866_v6 = vrot.slane %v3865_v62, 1  ;;  %v4392_v18 = vrot.slane %v4391_v23, 1  ;;  %v4410_v47 = vrot.slane %v4409_v49, 4 }
 0xc4d   :  { %v4686_v34 = vrot.slane %v4685_v57, 2  ;;  %v10445_v17 = vmul.f32 0.00024414063, %v4667_v40  ;;  %v3875_v50 = vstv %s6380_s3  ;;  %v3883_v40 = vstv %s10453_s17 }
 0xc4e   :  { %v4147_v30 = vadd.f32 1e-05, %v4145_v3  ;;  %v3867_v12 = vadd.f32 %v3866_v6, %v3865_v62  ;;  %v4411_v28 = vadd.f32 %v4410_v47, %v4409_v49  ;;  %v4393_v63 = vadd.f32 %v4392_v18, %v4391_v23 }
 0xc4f   :  { %v4687_v2 = vadd.f32 %v4686_v34, %v4685_v57  ;;  %v4691_v29 = vmul.f32 %v10445_v17, %v10445_v17 }
 0xc50   :  { %6932 = vrsqrt.f32 %v4147_v30  ;;  %v3868_v20 = vmul.f32 0.00024414063, %v3867_v12  ;;  %v4412_v14 = vrot.slane %v4411_v28, 2  ;;  %v10449_v10 = vmul.f32 0.00024414063, %v4393_v63 }
 0xc51   :  { %v4688_v61 = vrot.slane %v4687_v2, 1  ;;  %v4697_v30 = vstv %s10455_s18 }
 0xc52   :  { %v3870_v27 = vsub.f32 %v3868_v20, %v3869_v37  ;;  %v4413_v24 = vadd.f32 %v4412_v14, %v4411_v28  ;;  %v4417_v52 = vmul.f32 %v10449_v10, %v10449_v10  ;;  %v4423_v28 = vstv %s10458_s7 }
 0xc53   :  { %v4689_v38 = vadd.f32 %v4688_v61, %v4687_v2  ;;  %v4705_v14 = vstv %s10462_s19 }
 0xc54   :  { %v3871_v59 = vmax.f32 %v3870_v27, 0.0  ;;  %v4414_v8 = vrot.slane %v4413_v24, 1 }
 0xc55   :  { %v4690_v60 = vmul.f32 0.00024414063, %v4689_v38 }
 0xc56   :  { %v3873_v31 = vadd.f32 1e-05, %v3871_v59  ;;  %v4415_v54 = vadd.f32 %v4414_v8, %v4413_v24 }
 0xc57   :  { %v4692_v25 = vsub.f32 %v4690_v60, %v4691_v29 }
 0xc58   :  { %6934 = vrsqrt.f32 %v3873_v31  ;;  %v4416_v19 = vmul.f32 0.00024414063, %v4415_v54 }
 0xc59   :  { %v4693_v21 = vmax.f32 %v4692_v25, 0.0 }
 0xc5a   :  { %v6933_v22 = vpop.eup %6932  ;;  %v4418_v48 = vsub.f32 %v4416_v19, %v4417_v52  ;;  %v4431_v19 = vstv %s10469_s20 }
 0xc5b   :  { %v4695_v35 = vadd.f32 1e-05, %v4693_v21  ;;  %v4150_v15 = vmul.f32 %v6933_v22, %v4149_v41 }
 0xc5c   :  { %v4419_v45 = vmax.f32 %v4418_v48, 0.0 }
 0xc5d   :  { %6936 = vrsqrt.f32 %v4695_v35  ;;  %v4156_v32 = vmul.f32 %v4150_v15, %v10437_v33  ;;  %v4151_v46 = vmul.f32 %v4150_v15, %v10113_v42  ;;  %v4152_v43 = vmul.f32 %v4150_v15, %v10086_v9 }
 0xc5e   :  { %v4421_v13 = vadd.f32 1e-05, %v4419_v45  ;;  %v4153_v3 = vmul.f32 %v4150_v15, %v10141_v1  ;;  %v4154_v33 = vmul.f32 %v4150_v15, %v10297_v0 }
 0xc5f   :  { %v4158_v62 = vsub.f32 %v4157_v26, %v4156_v32 }
 0xc60   :  { %6938 = vrsqrt.f32 %v4421_v13 }
 0xc61   :  { %v4159_v57 = vadd.f32 %v4158_v62, %v4151_v46  ;;  %v4160_v49 = vadd.f32 %v4158_v62, %v4152_v43  ;;  %v4161_v42 = vadd.f32 %v4158_v62, %v4153_v3  ;;  %v4162_v9 = vadd.f32 %v4158_v62, %v4154_v33 }
 0xc62   :  { %v6935_v23 = vpop.eup %6934 }
 0xc63   :  { %v3876_v6 = vmul.f32 %v6935_v23, %v3875_v50  ;;  %v4163_v18 = vmax.f32 %v4159_v57, 0.0  ;;  %v4164_v34 = vmax.f32 %v4160_v49, 0.0  ;;  %v4165_v20 = vmax.f32 %v4161_v42, 0.0 }
 0xc64   :  { %v4166_v63 = vmax.f32 %v4162_v9, 0.0 }
 0xc65   :  { %v3882_v47 = vmul.f32 %v3876_v6, %v10441_v39  ;;  %v4728_v12 = vpack.c.bf16 %v4164_v34, %v4163_v18  ;;  %v3877_v37 = vmul.f32 %v3876_v6, %v10130_v53  ;;  %v3878_v1 = vmul.f32 %v3876_v6, %v10110_v44 }
 0xc66   :  { %v3879_v39 = vmul.f32 %v3876_v6, %v10220_v51  ;;  %v3880_v24 = vmul.f32 %v3876_v6, %v10327_v11  ;;  %v4744_v21 = vpack.c.bf16 %v4166_v63, %v4165_v20 }
 0xc67   :  { %v6937_v2 = vpop.eup %6936  ;;  %v3884_v0 = vsub.f32 %v3883_v40, %v3882_v47  ;;  %6101 = vmatprep.mubr.bf16.mxu0 %v4728_v12 }
 0xc68   :  { %v4698_v61 = vmul.f32 %v6937_v2, %v4697_v30  ;;  %v10832_v2 = vld [vmem:[#allocation28_spill] sm:$0xff] }
 0xc69   :  { %v3885_v27 = vadd.f32 %v3884_v0, %v3877_v37  ;;  %v3886_v38 = vadd.f32 %v3884_v0, %v3878_v1  ;;  %v3887_v8 = vadd.f32 %v3884_v0, %v3879_v39  ;;  %v3888_v44 = vadd.f32 %v3884_v0, %v3880_v24  ;;  %v10835_v39 = vld [vmem:[#allocation31_spill] sm:$0xff] }
 0xc6a   :  { %v4704_v59 = vmul.f32 %v4698_v61, %v10445_v17  ;;  %v6939_v29 = vpop.eup %6938  ;;  %v4699_v25 = vmul.f32 %v4698_v61, %v10183_v55  ;;  %v4700_v54 = vmul.f32 %v4698_v61, %v10198_v58  ;;  %v4701_v11 = vmul.f32 %v4698_v61, %v10315_v36 }
 0xc6b   :  { %v3889_v60 = vmax.f32 %v3885_v27, 0.0  ;;  %v3890_v53 = vmax.f32 %v3886_v38, 0.0  ;;  %v4424_v31 = vmul.f32 %v6939_v29, %v4423_v28  ;;  %v4702_v17 = vmul.f32 %v4698_v61, %v10370_v16 }
 0xc6c   :  { %v4706_v41 = vsub.f32 %v4705_v14, %v4704_v59  ;;  %v3891_v35 = vmax.f32 %v3887_v8, 0.0  ;;  %v3892_v48 = vmax.f32 %v3888_v44, 0.0  ;;  %v10834_v14 = vld [vmem:[#allocation30_spill] sm:$0xff] }
 0xc6d   :  { %v4727_v52 = vpack.c.bf16 %v3890_v53, %v3889_v60  ;;  %v4430_v15 = vmul.f32 %v4424_v31, %v10449_v10  ;;  %v4425_v32 = vmul.f32 %v4424_v31, %v10268_v4  ;;  %v4426_v13 = vmul.f32 %v4424_v31, %v10280_v7 }
 0xc6e   :  { %v4707_v22 = vadd.f32 %v4706_v41, %v4699_v25  ;;  %v4708_v51 = vadd.f32 %v4706_v41, %v4700_v54  ;;  %v4709_v26 = vadd.f32 %v4706_v41, %v4701_v11  ;;  %v4710_v58 = vadd.f32 %v4706_v41, %v4702_v17 }
 0xc6f   :  { %6102 = vmatmul.mubr.bf16.vlgmr.msra.gmra.mrb[24].mxu0 %v4727_v52  ;;  %v4432_v50 = vsub.f32 %v4431_v19, %v4430_v15  ;;  %v4743_v16 = vpack.c.bf16 %v3892_v48, %v3891_v35  ;;  %v4427_v10 = vmul.f32 %v4424_v31, %v10353_v5  ;;  %v4428_v3 = vmul.f32 %v4424_v31, %v10376_v56  ;;  %v10833_v56 = vld [vmem:[#allocation29_spill] sm:$0xff] }
 0xc70   :  { %6109 = vmatprep.mubr.bf16.mxu0 %v4744_v21  ;;  %v4711_v45 = vmax.f32 %v4707_v22, 0.0  ;;  %v4712_v55 = vmax.f32 %v4708_v51, 0.0  ;;  %v4713_v62 = vmax.f32 %v4709_v26, 0.0  ;;  %v4714_v23 = vmax.f32 %v4710_v58, 0.0 }
 0xc71   :  { %v4433_v43 = vadd.f32 %v4432_v50, %v4425_v32  ;;  %v4434_v36 = vadd.f32 %v4432_v50, %v4426_v13  ;;  %v4435_v6 = vadd.f32 %v4432_v50, %v4427_v10  ;;  %v4436_v4 = vadd.f32 %v4432_v50, %v4428_v3 }
 0xc72   :  { %v4730_v46 = vpack.c.bf16 %v4712_v55, %v4711_v45  ;;  %v4746_v40 = vpack.c.bf16 %v4714_v23, %v4713_v62 }
 0xc73   :  { %v4437_v57 = vmax.f32 %v4433_v43, 0.0  ;;  %v4438_v49 = vmax.f32 %v4434_v36, 0.0  ;;  %v4439_v7 = vmax.f32 %v4435_v6, 0.0  ;;  %v4440_v18 = vmax.f32 %v4436_v4, 0.0 }
 0xc74   :  { %6150 = vmatprep.mubr.bf16.mxu1 %v4730_v46 }
 0xc75   :  { %v4729_v33 = vpack.c.bf16 %v4438_v49, %v4437_v57  ;;  %v4745_v34 = vpack.c.bf16 %v4440_v18, %v4439_v7 }
 0xc77   :  { %6110 = vmatmul.mubr.bf16.gmra.mrb[28].mxu0 %v4743_v16  ;;  %6151 = vmatmul.mubr.bf16.vlgmr.msra.gmra.mrb[24].mxu1 %v4729_v33 }
 0xc78   :  { %6158 = vmatprep.mubr.bf16.mxu1 %v4746_v40 }
 0xc7f   :  { %6159 = vmatmul.mubr.bf16.gmra.mrb[28].mxu1 %v4745_v34 }
 0xced   :  { %v6693_v42 = vpop.f32.mrb[16].mxu1 }
 0xcee   :  { %v6694_v9 = vpop.f32.mrb[17].mxu1 }
 0xcef   :  { %v6695_v47 = vadd.f32 %v6694_v9, %v6693_v42  ;;  %v6696_v30 = vpop.f32.mrb[18].mxu1 }
 0xcf0   :  { %v6697_v12 = vpop.f32.mrb[19].mxu1 }
 0xcf1   :  { %v6055_v5 = vadd.f32 %v6695_v47, %v10832_v2  ;;  %v6698_v28 = vadd.f32 %v6697_v12, %v6696_v30 }
 0xcf3   :  { %v6058_v37 = vadd.f32 %v6698_v28, %v10833_v56 }
 0xcf5   :  { %v6699_v1 = vpop.f32.mrb[20].mxu1 }
 0xcf6   :  { %v6700_v0 = vpop.f32.mrb[21].mxu1 }
 0xcf7   :  { %v6701_v20 = vadd.f32 %v6700_v0, %v6699_v1  ;;  %v6702_v63 = vpop.f32.mrb[22].mxu1 }
 0xcf8   :  { %v6703_v61 = vpop.f32.mrb[23].mxu1 }
 0xcf9   :  { %v6063_v27 = vadd.f32 %v6701_v20, %v10834_v14  ;;  %v6704_v38 = vadd.f32 %v6703_v61, %v6702_v63 }
 0xcfb   :  { %v6066_v24 = vadd.f32 %v6704_v38, %v10835_v39  ;;  %v6210_v39 = vld [vmem:[%s10522_s9] sm:$0x1]  ;;  %s7032_s9 = scalar_lea.vmem %s6251_s24, 512 }
 0xcfc   :  { %p7033_p6 = scmp.ne.s32.totalorder %s6251_s24, %s7032_s9  ;;  %p7038_p8 = scmp.lt.s32.totalorder %s7032_s9, %s7032_s9 }
 0xcfe   :  { %p7039_p9 = por %p7038_p8, %p7037_p7 }
 0xd00   :  { %p7040_p10 = pnand %p7039_p9, %p7033_p6 }
 0xd42   :  { %v6721_v59 = vpop.f32.mrb[24].mxu0 }
 0xd43   :  { %v6722_v29 = vpop.f32.mrb[25].mxu0 }
 0xd44   :  { %v6723_v60 = vadd.f32 %v6722_v29, %v6721_v59  ;;  %v6724_v53 = vpop.f32.mrb[26].mxu0 }
 0xd45   :  { %v6725_v8 = vpop.f32.mrb[27].mxu0 }
 0xd46   :  { %v6104_v44 = vadd.f32 %v6723_v60, %v6055_v5  ;;  %v6726_v31 = vadd.f32 %v6725_v8, %v6724_v53  ;;  %v6224_v8 = vld [vmem:[%s10523_s10] sm:$0x1] }
 0xd48   :  { %v6107_v25 = vadd.f32 %v6726_v31, %v6058_v37 }
 0xd4a   :  { %v6727_v54 = vpop.f32.mrb[28].mxu0  ;;  %v6749_v52 = vpop.f32.mrb[24].mxu1 }
 0xd4b   :  { %v6728_v41 = vpop.f32.mrb[29].mxu0  ;;  %v6750_v22 = vpop.f32.mrb[25].mxu1 }
 0xd4c   :  { %v6729_v21 = vadd.f32 %v6728_v41, %v6727_v54  ;;  %v6730_v19 = vpop.f32.mrb[30].mxu0  ;;  %v6751_v17 = vadd.f32 %v6750_v22, %v6749_v52  ;;  %v6752_v35 = vpop.f32.mrb[26].mxu1 }
 0xd4d   :  { %v6731_v51 = vpop.f32.mrb[31].mxu0  ;;  %v6753_v15 = vpop.f32.mrb[27].mxu1 }
 0xd4e   :  { %v6112_v11 = vadd.f32 %v6729_v21, %v6063_v27  ;;  %v6732_v48 = vadd.f32 %v6731_v51, %v6730_v19  ;;  %v6153_v45 = vadd.f32 %v6751_v17, %v6104_v44  ;;  %v6754_v26 = vadd.f32 %v6753_v15, %v6752_v35 }
 0xd4f   :  { %v6215_v27 = vlaneseq }
 0xd50   :  { %v6115_v55 = vadd.f32 %v6732_v48, %v6066_v24  ;;  %v6156_v58 = vadd.f32 %v6754_v26, %v6107_v25  ;;  %v6193_v32 = vmul.f32 %v6153_v45, %v6153_v45 }
 0xd51   :  { %v6216_v38 = vshrl.u32 %v6215_v27, 7 }
 0xd52   :  { %v6182_v13 = vadd.f32 %v6156_v58, %v6153_v45  ;;  %v6194_v50 = vmul.f32 %v6156_v58, %v6156_v58  ;;  %v6755_v46 = vpop.f32.mrb[28].mxu1 }
 0xd53   :  { %v6756_v43 = vpop.f32.mrb[29].mxu1  ;;  %v6217_v24 = vsub.s32 0, %v6216_v38 }
 0xd54   :  { %v6197_v36 = vadd.f32 %v6194_v50, %v6193_v32  ;;  %v6757_v16 = vadd.f32 %v6756_v43, %v6755_v46  ;;  %v6758_v62 = vpop.f32.mrb[30].mxu1 }
 0xd55   :  { %v6759_v23 = vpop.f32.mrb[31].mxu1 }
 0xd56   :  { %v6161_v57 = vadd.f32 %v6757_v16, %v6112_v11  ;;  %v6760_v49 = vadd.f32 %v6759_v23, %v6758_v62 }
 0xd58   :  { %v6183_v10 = vadd.f32 %v6182_v13, %v6161_v57  ;;  %v6195_v3 = vmul.f32 %v6161_v57, %v6161_v57  ;;  %v6164_v33 = vadd.f32 %v6760_v49, %v6115_v55 }
 0xd5a   :  { %v6198_v6 = vadd.f32 %v6197_v36, %v6195_v3  ;;  %v6184_v4 = vadd.f32 %v6183_v10, %v6164_v33  ;;  %v6196_v40 = vmul.f32 %v6164_v33, %v6164_v33 }
 0xd5c   :  { %v6185_v7 = vrot.slane %v6184_v4, 4  ;;  %v6199_v18 = vadd.f32 %v6198_v6, %v6196_v40 }
 0xd5e   :  { %v6186_v34 = vadd.f32 %v6185_v7, %v6184_v4  ;;  %v6200_v42 = vrot.slane %v6199_v18, 4 }
 0xd60   :  { %v6187_v9 = vrot.slane %v6186_v34, 2  ;;  %v6201_v47 = vadd.f32 %v6200_v42, %v6199_v18 }
 0xd62   :  { %v6188_v30 = vadd.f32 %v6187_v9, %v6186_v34  ;;  %v6202_v12 = vrot.slane %v6201_v47, 2 }
 0xd64   :  { %v6189_v2 = vrot.slane %v6188_v30, 1  ;;  %v6203_v5 = vadd.f32 %v6202_v12, %v6201_v47 }
 0xd66   :  { %v6190_v28 = vadd.f32 %v6189_v2, %v6188_v30  ;;  %v6204_v56 = vrot.slane %v6203_v5, 1 }
 0xd68   :  { %v6192_v37 = vmul.f32 0.03125, %v6190_v28  ;;  %v6205_v1 = vadd.f32 %v6204_v56, %v6203_v5 }
 0xd6a   :  { %v6206_v0 = vmul.f32 0.03125, %v6205_v1  ;;  %v6207_v20 = vmul.f32 %v6192_v37, %v6192_v37 }
 0xd6c   :  { %v6208_v63 = vsub.f32 %v6206_v0, %v6207_v20 }
 0xd6e   :  { %v6209_v61 = vmax.f32 %v6208_v63, 0.0 }
 0xd70   :  { %v6211_v14 = vadd.f32 1e-05, %v6209_v61 }
 0xd72   :  { %6940 = vrsqrt.f32 %v6211_v14 }
 0xd7c   :  { %v6941_v59 = vpop.eup %6940 }
 0xd7d   :  { %v6213_v29 = vmul.f32 %v6941_v59, %v6210_v39 }
 0xd7f   :  { %v6218_v60 = vrot.slane %v6213_v29, %v6217_v24  ;;  %v6225_v53 = vmul.f32 %v6213_v29, %v6192_v37 }
 0xd81   :  { %v6223_v44 = vmul.f32 %v6218_v60, %v6164_v33  ;;  %v6220_v31 = vmul.f32 %v6218_v60, %v6153_v45  ;;  %v6221_v25 = vmul.f32 %v6218_v60, %v6156_v58  ;;  %v6222_v54 = vmul.f32 %v6218_v60, %v6161_v57 }
 0xd82   :  { %v6226_v41 = vsub.f32 %v6224_v8, %v6225_v53 }
 0xd84   :  { %v6231_v52 = vrot.slane %v6226_v41, %v6217_v24 }
 0xd86   :  { %v6233_v21 = vadd.f32 %v6231_v52, %v6220_v31  ;;  %v6234_v19 = vadd.f32 %v6231_v52, %v6221_v25  ;;  %v6235_v22 = vadd.f32 %v6231_v52, %v6222_v54  ;;  %v6236_v51 = vadd.f32 %v6231_v52, %v6223_v44 }
 0xd88   :  { %v6237_v11 = vmax.f32 %v6233_v21, 0.0  ;;  %v6238_v17 = vmax.f32 %v6234_v19, 0.0  ;;  %v6239_v35 = vmax.f32 %v6235_v22, 0.0  ;;  %v6240_v48 = vmax.f32 %v6236_v51, 0.0 }
 0xd8a   :  { %6241 = vst [vmem:[#allocation19] sm:$0xff] %v6237_v11  ;;  %6242 = vst [vmem:[#allocation19 + $0x8] sm:$0xff] %v6238_v17 }
 0xd8b   :  { %6243 = vst [vmem:[#allocation19 + $0x10] sm:$0xff] %v6239_v35  ;;  %6244 = vst [vmem:[#allocation19 + $0x18] sm:$0xff] %v6240_v48 }
 0xd8c   :  { %7043 = shalt.err (!%p7040_p10)
}
 0xd8d   :  { %s7044_s27 = scalar_lea.hbm %s10524_s11, 512 }
 0xd8e   :  { %p7045_p11 = scmp.ne.s32.totalorder %s10524_s11, %s7044_s27  ;;  %p7048_p12 = scmp.lt.u32.totalorder %s7044_s27, %s10524_s11 }
 0xd90   :  { %p7050_p13 = pnand %p7048_p12, %p7045_p11 }
 0xd92   :  { %7053 = shalt.err (!%p7050_p13)
}
 0xd93   :  { %6256 = dma.vmem_to_hbm [thread:$0]  %s6251_s24, 512, %s10524_s11, [#allocation7], %s7069_s25, %s7069_s25, %s7070_s26  }
 0xd94   :  { %7066 = dma.done.wait [#allocation7], 512  }
 0xd95   :  { %7067 = vsyncadd [#allocation7], 4294966784 }
 0xd96   :  { %6260 = vsyncpa [#allocation6], 1 }
 0xd97   :  { %6261 = vsyncpa [#allocation7], 1 }
 0xd98   :  { %6262 = vsyncpa [#allocation8], 1 }
 0xd99   :  { %6263 = vsyncpa [#allocation17], 1 }
 0xd9a   :  { %6264 = vsyncpa [#allocation9], 1 }
 0xd9b   :  { %6265 = vsyncpa [#allocation11], 1 }
 0xd9c   :  { %6266 = vsyncpa [#allocation14], 1 }

</bundles_post_ra>
